<compile_context>
chip_gen: v7x
topology: tpu7x:2x2x1
jax: 0.10.0
libtpu: 0.0.40
codegen_flags: <defaults>
</compile_context>

<pallas_src>
import functools

import jax
import jax.numpy as jnp
from jax.experimental import pallas as pl
from jax.experimental.pallas import tpu as pltpu


def _elementwise_dtype():
    """bf16 elementwise math on v6e/v7x (bf16 VPU/EUP); f32 elsewhere (v5e...)."""
    try:
        kind = jax.devices()[0].device_kind.lower()
    except Exception:
        return jnp.float32
    if ("v6" in kind) or ("v7" in kind) or ("tpu7" in kind):
        return jnp.bfloat16
    return jnp.float32


def _mish_fast(x, compute_dtype):
    # Mish(x) = x * tanh(softplus(x));  tanh(softplus(x)) = n / (n + 2),
    # n = e*(e+2), e = exp(x).  Clamp x at 20 so exp never overflows (for
    # x > 20 the ratio rounds to 1.0, so the result is exactly x, as Mish).
    xt = x.astype(compute_dtype)
    e = jnp.exp(jnp.minimum(xt, 20.0))
    n = e * (e + 2.0)                                  # 2 VALU ops (was 3)
    if compute_dtype == jnp.float32:
        t = n * pl.reciprocal(n + 2.0, approx=True)    # cheap EUP recip
    else:
        t = n / (n + 2.0)                              # bf16 div (EUP)
    return xt * t


def agent_kernel(x_ref, w1_ref, b1_ref, w2_ref, b2_ref, w3_ref, b3_ref, o_ref,
                 *, compute_dtype):
    # x_ref : (TB, 8)    f32        (raw observations; 1/500 folded into w1)
    # w1_ref: (8, 128)   bf16       b1_ref: (1, 128) f32
    # w2_ref: (128, 128) bf16       b2_ref: (1, 128) f32
    # w3_ref: (1, 128)   f32        b3_ref: (1,)     f32 (SMEM scalar)
    # o_ref : (TB/128, 128) f32     (batch rows laid out lane-dense)
    x = x_ref[...].astype(jnp.bfloat16)                              # (TB, 8)

    h1 = jnp.dot(x, w1_ref[...],
                 preferred_element_type=jnp.float32) + b1_ref[...]
    h1 = _mish_fast(h1, compute_dtype)                               # (TB, 128)

    h2 = jnp.dot(h1.astype(jnp.bfloat16), w2_ref[...],
                 preferred_element_type=jnp.float32) + b2_ref[...]
    h2 = _mish_fast(h2, compute_dtype)                               # (TB, 128)

    # Final (120 -> 1) layer: VPU multiply (promotes to f32) + lane reduce.
    r = jnp.sum(h2 * w3_ref[...], axis=-1)                           # (TB,) f32

    # Pack to lane-dense FIRST, then bias + sigmoid on dense vregs.
    r = r.reshape(o_ref.shape)                                       # (TB/128, 128)
    o_ref[...] = jax.nn.sigmoid(r + b3_ref[0]).astype(o_ref.dtype)


def init_params(key):
    """PyTorch-like init (uniform +-1/sqrt(fan_in)), PyTorch layouts:
    weights (out, in), biases (out,)."""
    def linear(key, fan_in, fan_out):
        kw, kb = jax.random.split(key)
        bound = 1.0 / jnp.sqrt(jnp.float32(fan_in))
        w = jax.random.uniform(kw, (fan_out, fan_in), jnp.float32, -bound, bound)
        b = jax.random.uniform(kb, (fan_out,), jnp.float32, -bound, bound)
        return w, b

    k1, k2, k3 = jax.random.split(key, 3)
    return (linear(k1, 8, 120), linear(k2, 120, 120), linear(k3, 120, 1))


def prepare_params(params):
    """One-time parameter prep: transpose to (in, out), fold the 1/500 input
    scale into w1 (in f32), zero-pad features to 128, cast matmul weights to
    bf16.  Padded lanes contribute exact zeros."""
    (w1, b1), (w2, b2), (w3, b3) = params

    def pad(a, shape):
        out = jnp.zeros(shape, a.dtype)
        return out.at[tuple(slice(0, s) for s in a.shape)].set(a)

    w1p = pad(w1.T * (1.0 / 500.0), (8, 128)).astype(jnp.bfloat16)  # (8, 128)
    b1p = pad(b1[None, :], (1, 128))                                # (1, 128) f32
    w2p = pad(w2.T, (128, 128)).astype(jnp.bfloat16)                # (128, 128)
    b2p = pad(b2[None, :], (1, 128))                                # (1, 128) f32
    w3p = pad(w3, (1, 128))                                         # (1, 128) f32
    b3p = b3.reshape((1,)).astype(jnp.float32)                      # (1,) SMEM
    return (w1p, b1p, w2p, b2p, w3p, b3p)


def _pick_block_rows(batch, *, unit=1024, max_units=4):
    """Tile-size heuristic: multiples of 1024, capped at 4096 (VMEM-safe on
    v7x's 64 MiB and within the 32 MiB default scoped limit everywhere).
    For multi-tile batches, prefer an even tile count so v7x's two TensorCores
    split the 'parallel' axis evenly."""
    n_units = -(-batch // unit)
    if n_units <= 1:
        return unit
    if n_units <= 2 * max_units:
        # Exactly 2 tiles (one per v7x core), as balanced as possible.
        return (-(-n_units // 2)) * unit
    # Large batches: biggest tile that yields an even tile count, else max.
    for u in range(max_units, 0, -1):
        if (-(-n_units // u)) % 2 == 0:
            return u * unit
    return max_units * unit


def agent_forward(x, prepared, *, block_rows=None):
    """x: (B, 8) float32 -> (B, 1) float32."""
    w1p, b1p, w2p, b2p, w3p, b3p = prepared

    B = x.shape[0]
    tb = _pick_block_rows(B) if block_rows is None else block_rows
    assert tb % 1024 == 0, "block_rows must be a multiple of 1024"

    b_pad = pl.cdiv(B, tb) * tb
    if b_pad != B:
        x = jnp.pad(x, ((0, b_pad - B), (0, 0)))
    n_tiles = b_pad // tb
    rows = tb // 128  # output rows per tile (lane-dense layout)

    kernel = functools.partial(agent_kernel, compute_dtype=_elementwise_dtype())

    out2d = pl.pallas_call(
        kernel,
        out_shape=jax.ShapeDtypeStruct((b_pad // 128, 128), jnp.float32),
        grid=(n_tiles,),
        in_specs=[
            pl.BlockSpec((tb, 8), lambda i: (i, 0)),             # x tile
            pl.BlockSpec((8, 128), lambda i: (0, 0)),            # w1 (resident)
            pl.BlockSpec((1, 128), lambda i: (0, 0)),            # b1
            pl.BlockSpec((128, 128), lambda i: (0, 0)),          # w2
            pl.BlockSpec((1, 128), lambda i: (0, 0)),            # b2
            pl.BlockSpec((1, 128), lambda i: (0, 0)),            # w3 row
            pl.BlockSpec(memory_space=pltpu.MemorySpace.SMEM),   # b3 scalar
        ],
        out_specs=pl.BlockSpec((rows, 128), lambda i: (i, 0)),
        compiler_params=pltpu.CompilerParams(
            dimension_semantics=("parallel",),
        ),
    )(x, w1p, b1p, w2p, b2p, w3p, b3p)

    return out2d.reshape(b_pad)[:B].reshape(B, 1)


def reference_forward(x, params):
    """Pure-JAX f32 reference matching the PyTorch module."""
    (w1, b1), (w2, b2), (w3, b3) = params

    def mish(v):
        return v * jnp.tanh(jnp.logaddexp(v, 0.0))

    h = x / 500.0
    h = mish(h @ w1.T + b1)
    h = mish(h @ w2.T + b2)
    return jax.nn.sigmoid(h @ w3.T + b3)


if __name__ == "__main__":
    key = jax.random.PRNGKey(0)
    k_params, k_x, k_x2 = jax.random.split(key, 3)

    params = init_params(k_params)
    prepared = prepare_params(params)

    # Small batch of observations (flappy-bird state has 8 features).
    x = jax.random.uniform(k_x, (8, 8), jnp.float32, 0.0, 500.0)
    out = jax.block_until_ready(agent_forward(x, prepared))
    ref = reference_forward(x, params)
    assert out.shape == (8, 1), out.shape
    # bf16 MXU operands + approx reciprocal / bf16 Mish -> loose tolerance.
    err = float(jnp.max(jnp.abs(out - ref)))
    assert err < 2e-2, ("max abs err", err)

    # Exercise the multi-tile + padding + even-tile-count path
    # (B=2500 -> 2 tiles of 2048, balanced across v7x's two cores).
    x2 = jax.random.uniform(k_x2, (2500, 8), jnp.float32, 0.0, 500.0)
    out2 = jax.block_until_ready(agent_forward(x2, prepared))
    ref2 = reference_forward(x2, params)
    assert out2.shape == (2500, 1), out2.shape
    err2 = float(jnp.max(jnp.abs(out2 - ref2)))
    assert err2 < 2e-2, ("max abs err (multi-tile)", err2)

    print("KERNEL_OK")
</pallas_src>

<mosaic_0001>
module attributes {stable_mosaic.version = 11 : i64} {
  func.func @agent_kernel(%arg0: i32, %arg1: memref<1024x8xf32, #tpu.memory_space<vmem>>, %arg2: memref<8x128xbf16, #tpu.memory_space<vmem>>, %arg3: memref<1x128xf32, #tpu.memory_space<vmem>>, %arg4: memref<128x128xbf16, #tpu.memory_space<vmem>>, %arg5: memref<1x128xf32, #tpu.memory_space<vmem>>, %arg6: memref<1x128xf32, #tpu.memory_space<vmem>>, %arg7: memref<1xf32, #tpu.memory_space<smem>>, %arg8: memref<8x128xf32, #tpu.memory_space<vmem>>) attributes {dimension_semantics = [#tpu.dimension_semantics<parallel>], iteration_bounds = array<i64: 1>, scalar_prefetch = 0 : i64, scratch_operands = 0 : i64, tpu.core_type = #tpu.core_type<tc>, window_params = [{transform_indices = @transform_0, window_bounds = array<i64: 1024, 8>}, {pipeline_mode = #tpu.pipeline_mode<synchronous>, transform_indices = @transform_1, window_bounds = array<i64: 8, 128>}, {pipeline_mode = #tpu.pipeline_mode<synchronous>, transform_indices = @transform_2, window_bounds = array<i64: 1, 128>}, {pipeline_mode = #tpu.pipeline_mode<synchronous>, transform_indices = @transform_3, window_bounds = array<i64: 128, 128>}, {pipeline_mode = #tpu.pipeline_mode<synchronous>, transform_indices = @transform_4, window_bounds = array<i64: 1, 128>}, {pipeline_mode = #tpu.pipeline_mode<synchronous>, transform_indices = @transform_5, window_bounds = array<i64: 1, 128>}, {transform_indices = @transform_6, window_bounds = array<i64: 1>}, {transform_indices = @transform_7, window_bounds = array<i64: 8, 128>}]} {
    %c0 = arith.constant 0 : index
    %c0_0 = arith.constant 0 : index
    %0 = vector.load %arg1[%c0, %c0_0] : memref<1024x8xf32, #tpu.memory_space<vmem>>, vector<1024x8xf32>
    %1 = arith.truncf %0 : vector<1024x8xf32> to vector<1024x8xbf16>
    %c0_1 = arith.constant 0 : index
    %c0_2 = arith.constant 0 : index
    %2 = vector.load %arg2[%c0_1, %c0_2] : memref<8x128xbf16, #tpu.memory_space<vmem>>, vector<8x128xbf16>
    %cst = arith.constant dense<0.000000e+00> : vector<1024x128xf32>
    %3 = tpu.matmul %1, %2, %cst {dimension_numbers = #tpu.dot_dimension_numbers<[1], [0], [0], [1], [0, 0, 1, 1], [], []>} : vector<1024x8xbf16>, vector<8x128xbf16>, vector<1024x128xf32> -> vector<1024x128xf32>
    %c0_3 = arith.constant 0 : index
    %c0_4 = arith.constant 0 : index
    %4 = vector.load %arg3[%c0_3, %c0_4] : memref<1x128xf32, #tpu.memory_space<vmem>>, vector<1x128xf32>
    %5 = vector.broadcast %4 : vector<1x128xf32> to vector<1024x128xf32>
    %6 = arith.addf %3, %5 : vector<1024x128xf32>
    %cst_5 = arith.constant 2.000000e+01 : f32
    %7 = vector.broadcast %cst_5 : f32 to vector<1024x128xf32>
    %8 = arith.minimumf %6, %7 : vector<1024x128xf32>
    %9 = math.exp %8 : vector<1024x128xf32>
    %cst_6 = arith.constant 2.000000e+00 : f32
    %10 = vector.broadcast %cst_6 : f32 to vector<1024x128xf32>
    %11 = arith.addf %9, %10 : vector<1024x128xf32>
    %12 = arith.mulf %9, %11 : vector<1024x128xf32>
    %cst_7 = arith.constant 2.000000e+00 : f32
    %13 = vector.broadcast %cst_7 : f32 to vector<1024x128xf32>
    %14 = arith.addf %12, %13 : vector<1024x128xf32>
    %15 = tpu.reciprocal %14 {approx = true} : vector<1024x128xf32> -> vector<1024x128xf32>
    %16 = arith.mulf %12, %15 : vector<1024x128xf32>
    %17 = arith.mulf %6, %16 : vector<1024x128xf32>
    %18 = arith.truncf %17 : vector<1024x128xf32> to vector<1024x128xbf16>
    %c0_8 = arith.constant 0 : index
    %c0_9 = arith.constant 0 : index
    %19 = vector.load %arg4[%c0_8, %c0_9] : memref<128x128xbf16, #tpu.memory_space<vmem>>, vector<128x128xbf16>
    %cst_10 = arith.constant dense<0.000000e+00> : vector<1024x128xf32>
    %20 = tpu.matmul %18, %19, %cst_10 {dimension_numbers = #tpu.dot_dimension_numbers<[1], [0], [0], [1], [0, 0, 1, 1], [], []>} : vector<1024x128xbf16>, vector<128x128xbf16>, vector<1024x128xf32> -> vector<1024x128xf32>
    %c0_11 = arith.constant 0 : index
    %c0_12 = arith.constant 0 : index
    %21 = vector.load %arg5[%c0_11, %c0_12] : memref<1x128xf32, #tpu.memory_space<vmem>>, vector<1x128xf32>
    %22 = vector.broadcast %21 : vector<1x128xf32> to vector<1024x128xf32>
    %23 = arith.addf %20, %22 : vector<1024x128xf32>
    %cst_13 = arith.constant 2.000000e+01 : f32
    %24 = vector.broadcast %cst_13 : f32 to vector<1024x128xf32>
    %25 = arith.minimumf %23, %24 : vector<1024x128xf32>
    %26 = math.exp %25 : vector<1024x128xf32>
    %cst_14 = arith.constant 2.000000e+00 : f32
    %27 = vector.broadcast %cst_14 : f32 to vector<1024x128xf32>
    %28 = arith.addf %26, %27 : vector<1024x128xf32>
    %29 = arith.mulf %26, %28 : vector<1024x128xf32>
    %cst_15 = arith.constant 2.000000e+00 : f32
    %30 = vector.broadcast %cst_15 : f32 to vector<1024x128xf32>
    %31 = arith.addf %29, %30 : vector<1024x128xf32>
    %32 = tpu.reciprocal %31 {approx = true} : vector<1024x128xf32> -> vector<1024x128xf32>
    %33 = arith.mulf %29, %32 : vector<1024x128xf32>
    %34 = arith.mulf %23, %33 : vector<1024x128xf32>
    %c0_16 = arith.constant 0 : index
    %c0_17 = arith.constant 0 : index
    %35 = vector.load %arg6[%c0_16, %c0_17] : memref<1x128xf32, #tpu.memory_space<vmem>>, vector<1x128xf32>
    %36 = vector.broadcast %35 : vector<1x128xf32> to vector<1024x128xf32>
    %37 = arith.mulf %34, %36 : vector<1024x128xf32>
    %cst_18 = arith.constant dense<0.000000e+00> : vector<1024xf32>
    %38 = vector.multi_reduction <add>, %37, %cst_18 [1] : vector<1024x128xf32> to vector<1024xf32>
    %39 = vector.shape_cast %38 : vector<1024xf32> to vector<8x128xf32>
    %c0_19 = arith.constant 0 : index
    %40 = memref.load %arg7[%c0_19] : memref<1xf32, #tpu.memory_space<smem>>
    %41 = vector.broadcast %40 : f32 to vector<8x128xf32>
    %42 = arith.addf %39, %41 : vector<8x128xf32>
    %43 = arith.negf %42 : vector<8x128xf32>
    %44 = math.exp %43 : vector<8x128xf32>
    %cst_20 = arith.constant 1.000000e+00 : f32
    %45 = vector.broadcast %cst_20 : f32 to vector<8x128xf32>
    %46 = arith.addf %45, %44 : vector<8x128xf32>
    %47 = arith.divf %45, %46 : vector<8x128xf32>
    %c0_21 = arith.constant 0 : index
    %c0_22 = arith.constant 0 : index
    %48 = vector.load %arg8[%c0_21, %c0_22] : memref<8x128xf32, #tpu.memory_space<vmem>>, vector<8x128xf32>
    tpu.vector_store %arg8[%c0_21, %c0_22], %47 {strides = array<i32>} : memref<8x128xf32, #tpu.memory_space<vmem>>, vector<8x128xf32>,
    return
  }
  func.func @transform_0(%arg0: i32) -> (i32, i32) {
    %c0_i32 = arith.constant 0 : i32
    %c0_i32_0 = arith.constant 0 : i32
    return %arg0, %c0_i32 : i32, i32
  }
  func.func @transform_1(%arg0: i32) -> (i32, i32) {
    %c0_i32 = arith.constant 0 : i32
    %c0_i32_0 = arith.constant 0 : i32
    %c0_i32_1 = arith.constant 0 : i32
    return %c0_i32, %c0_i32_0 : i32, i32
  }
  func.func @transform_2(%arg0: i32) -> (i32, i32) {
    %c0_i32 = arith.constant 0 : i32
    %c0_i32_0 = arith.constant 0 : i32
    %c0_i32_1 = arith.constant 0 : i32
    return %c0_i32, %c0_i32_0 : i32, i32
  }
  func.func @transform_3(%arg0: i32) -> (i32, i32) {
    %c0_i32 = arith.constant 0 : i32
    %c0_i32_0 = arith.constant 0 : i32
    %c0_i32_1 = arith.constant 0 : i32
    return %c0_i32, %c0_i32_0 : i32, i32
  }
  func.func @transform_4(%arg0: i32) -> (i32, i32) {
    %c0_i32 = arith.constant 0 : i32
    %c0_i32_0 = arith.constant 0 : i32
    %c0_i32_1 = arith.constant 0 : i32
    return %c0_i32, %c0_i32_0 : i32, i32
  }
  func.func @transform_5(%arg0: i32) -> (i32, i32) {
    %c0_i32 = arith.constant 0 : i32
    %c0_i32_0 = arith.constant 0 : i32
    %c0_i32_1 = arith.constant 0 : i32
    return %c0_i32, %c0_i32_0 : i32, i32
  }
  func.func @transform_6(%arg0: i32) -> i32 {
    %c0_i32 = arith.constant 0 : i32
    %c0_i32_0 = arith.constant 0 : i32
    return %c0_i32 : i32
  }
  func.func @transform_7(%arg0: i32) -> (i32, i32) {
    %c0_i32 = arith.constant 0 : i32
    %c0_i32_0 = arith.constant 0 : i32
    return %arg0, %c0_i32 : i32, i32
  }
}

</mosaic_0001>

<bundles_post_ra>
// kernel: tpu_custom_call.1
= control target key start
LH: loop header
LB: loop body
LE: loop exit
PB: predicated region body
PF: predicated region fallthrough
CT: control target
= control target key end

     0   :  { %vm422_vm0 = vcmask 1043456   ;;  %vm229_vm1 = vcmask 64512   ;;  %s13505_s0 = inlined_call_operand.vmem [shape: f32[1024,8], index: 0, kind: input, shape index: {}]   ;;  %s13506_s1 = inlined_call_operand.vmem [shape: bf16[8,128], index: 1, kind: input, shape index: {}]   ;;  %s13507_s2 = inlined_call_operand.vmem [shape: f32[1,128], index: 2, kind: input, shape index: {}]   ;;  %s13508_s3 = inlined_call_operand.vmem [shape: bf16[128,128], index: 3, kind: input, shape index: {}]   ;;  %s13509_s4 = inlined_call_operand.vmem [shape: f32[1,128], index: 4, kind: input, shape index: {}]   ;;  %s13510_s5 = inlined_call_operand.vmem [shape: f32[1,128], index: 5, kind: input, shape index: {}]   ;;  %s13511_s6 = inlined_call_operand.<no memory space> [shape: f32[1], index: 6, kind: input, shape index: {}]   ;;  %s13512_s7 = inlined_call_operand.hbm [shape: f32[8,128], index: 7, kind: output, shape index: {}]  }
   0x1   :  { %v221_v0 = vld [vmem:[%s13506_s1] sm:$0xf]  ;;  %v30_v2 = vld [vmem:[%s13505_s0 + $0x8] sm:$0xff]  ;;  %v31_v5 = vld [vmem:[%s13505_s0 + $0x10] sm:$0xff] }
   0x2   :  { %v29_v1 = vld [vmem:[%s13505_s0] sm:$0xff]  ;;  %6696 = vmatprep.subr.msk.bf16.mxu0 %vm422_vm0, %v221_v0  ;;  %v424_v3 = vsel %vm422_vm0, %v221_v0, 0  ;;  %v32_v6 = vld [vmem:[%s13505_s0 + $0x18] sm:$0xff]  ;;  %v34_v9 = vld [vmem:[%s13505_s0 + $0x28] sm:$0xff] }
   0x3   :  { %v157_v4 = vpack.c.bf16 %v30_v2, %v29_v1  ;;  %v33_v7 = vld [vmem:[%s13505_s0 + $0x20] sm:$0xff]  ;;  %6407 = vmatpush3.bf16.msra.mxu0 %v424_v3  ;;  %v158_v8 = vpack.c.bf16 %v32_v6, %v31_v5  ;;  %v35_v11 = vld [vmem:[%s13505_s0 + $0x30] sm:$0xff]  ;;  %v36_v12 = vld [vmem:[%s13505_s0 + $0x38] sm:$0xff] }
   0x4   :  { %v159_v10 = vpack.c.bf16 %v34_v9, %v33_v7  ;;  %v6698_v13 = vld [vmem:[%s13508_s3] sm:$0xff]   ;;  %v38_v15 = vld [vmem:[%s13505_s0 + $0x48] sm:$0xff]  ;;  %v160_v16 = vpack.c.bf16 %v36_v12, %v35_v11  ;;  %v39_v19 = vld [vmem:[%s13505_s0 + $0x50] sm:$0xff] }
   0x5   :  { %6408 = vmatprep.mubr.msk.bf16.mxu0 %vm229_vm1, %v157_v4  ;;  %v37_v14 = vld [vmem:[%s13505_s0 + $0x40] sm:$0xff]  ;;  %6536 = vmatprep.subr.bf16.mxu0 %v6698_v13  ;;  %v6699_v18 = vld [vmem:[%s13508_s3 + $0x8] sm:$0xff]   ;;  %v40_v20 = vld [vmem:[%s13505_s0 + $0x58] sm:$0xff] }
   0x6   :  { %6409 = vmatmul.mubr.msk.bf16.vlgmr.msra.gmra.mrb[0].mxu0 %vm229_vm1, %v158_v8  ;;  %6680 = vmatprep.subr.bf16.mxu1 %v6698_v13  ;;  %v161_v17 = vpack.c.bf16 %v38_v15, %v37_v14  ;;  %v41_v21 = vld [vmem:[%s13505_s0 + $0x60] sm:$0xff]  ;;  %v42_v22 = vld [vmem:[%s13505_s0 + $0x68] sm:$0xff]  ;;  %v162_v23 = vpack.c.bf16 %v40_v20, %v39_v19  ;;  %v6700_v25 = vld [vmem:[%s13508_s3 + $0x10] sm:$0xff]  }
   0x7   :  { %6412 = vmatprep.mubr.msk.bf16.mxu0 %vm229_vm1, %v159_v10  ;;  %6537 = vmatpush3.bf16.msra.mxu0 %v6698_v13  ;;  %v163_v24 = vpack.c.bf16 %v42_v22, %v41_v21  ;;  %v43_v26 = vld [vmem:[%s13505_s0 + $0x70] sm:$0xff]  ;;  %v44_v27 = vld [vmem:[%s13505_s0 + $0x78] sm:$0xff]  ;;  %v45_v28 = vld [vmem:[%s13505_s0 + $0x80] sm:$0xff] }
   0x8   :  { %6688 = vmatpush3.bf16.msra.mxu1 %v6698_v13  ;;  %6538 = vmatprep.subr.bf16.mxu0 %v6699_v18  ;;  %v46_v29 = vld [vmem:[%s13505_s0 + $0x88] sm:$0xff]  ;;  %v164_v30 = vpack.c.bf16 %v44_v27, %v43_v26  ;;  %v6701_v31 = vld [vmem:[%s13508_s3 + $0x18] sm:$0xff]   ;;  %v47_v33 = vld [vmem:[%s13505_s0 + $0x90] sm:$0xff] }
   0x9   :  { %6681 = vmatprep.subr.bf16.mxu1 %v6699_v18  ;;  %v165_v32 = vpack.c.bf16 %v46_v29, %v45_v28  ;;  %v48_v34 = vld [vmem:[%s13505_s0 + $0x98] sm:$0xff]  ;;  %v49_v35 = vld [vmem:[%s13505_s0 + $0xa0] sm:$0xff]  ;;  %v50_v36 = vld [vmem:[%s13505_s0 + $0xa8] sm:$0xff] }
   0xa   :  { %v6702_v37 = vld [vmem:[%s13508_s3 + $0x20] sm:$0xff]   ;;  %v166_v38 = vpack.c.bf16 %v48_v34, %v47_v33  ;;  %v167_v39 = vpack.c.bf16 %v50_v36, %v49_v35 }
   0xb   :  { %6539 = vmatpush3.bf16.msra.mxu0 %v6699_v18 }
   0xc   :  { %6689 = vmatpush3.bf16.msra.mxu1 %v6699_v18  ;;  %6540 = vmatprep.subr.bf16.mxu0 %v6700_v25 }
   0xd   :  { %6682 = vmatprep.subr.bf16.mxu1 %v6700_v25 }
   0xe   :  { %6413 = vmatmul.mubr.msk.bf16.gmra.mrb[4].mxu0 %vm229_vm1, %v160_v16 }
   0xf   :  { %6416 = vmatprep.mubr.msk.bf16.mxu0 %vm229_vm1, %v161_v17  ;;  %6541 = vmatpush3.bf16.msra.mxu0 %v6700_v25 }
  0x10   :  { %6690 = vmatpush3.bf16.msra.mxu1 %v6700_v25  ;;  %6542 = vmatprep.subr.bf16.mxu0 %v6701_v31 }
  0x11   :  { %6683 = vmatprep.subr.bf16.mxu1 %v6701_v31 }
  0x13   :  { %6543 = vmatpush3.bf16.msra.mxu0 %v6701_v31 }
  0x14   :  { %6691 = vmatpush3.bf16.msra.mxu1 %v6701_v31  ;;  %6544 = vmatprep.subr.bf16.mxu0 %v6702_v37 }
  0x15   :  { %6684 = vmatprep.subr.bf16.mxu1 %v6702_v37 }
  0x16   :  { %6417 = vmatmul.mubr.msk.bf16.gmra.mrb[8].mxu0 %vm229_vm1, %v162_v23 }
  0x17   :  { %6420 = vmatprep.mubr.msk.bf16.mxu0 %vm229_vm1, %v163_v24  ;;  %6545 = vmatpush3.bf16.msra.mxu0 %v6702_v37 }
  0x18   :  { %6692 = vmatpush3.bf16.msra.mxu1 %v6702_v37 }
  0x1e   :  { %6421 = vmatmul.mubr.msk.bf16.gmra.mrb[12].mxu0 %vm229_vm1, %v164_v30 }
  0x1f   :  { %6424 = vmatprep.mubr.msk.bf16.mxu0 %vm229_vm1, %v165_v32 }
  0x20   :  { %13 = vsyncpa [#allocation4], 0  ;;  %v51_v40 = vld [vmem:[%s13505_s0 + $0xb0] sm:$0xff]  ;;  %v52_v41 = vld [vmem:[%s13505_s0 + $0xb8] sm:$0xff]  ;;  %vm5383_vm2 = vcmask 130112   ;;  %vm5390_vm3 = vcmask 195712  }
  0x21   :  { %v53_v42 = vld [vmem:[%s13505_s0 + $0xc0] sm:$0xff]  ;;  %v54_v43 = vld [vmem:[%s13505_s0 + $0xc8] sm:$0xff]  ;;  %v168_v44 = vpack.c.bf16 %v52_v41, %v51_v40  ;;  %v55_v46 = vld [vmem:[%s13505_s0 + $0xd0] sm:$0xff]  ;;  %vm5397_vm4 = vcmask 261312   ;;  %vm5404_vm5 = vcmask 326912   ;;  %vm5411_vm6 = vcmask 392512  }
  0x22   :  { %v169_v45 = vpack.c.bf16 %v54_v43, %v53_v42  ;;  %v56_v47 = vld [vmem:[%s13505_s0 + $0xd8] sm:$0xff]  ;;  %v57_v48 = vld [vmem:[%s13505_s0 + $0xe0] sm:$0xff]  ;;  %v58_v49 = vld [vmem:[%s13505_s0 + $0xe8] sm:$0xff]  ;;  %vm5418_vm7 = vcmask 458112   ;;  %vm5425_vm8 = vcmask 523712   ;;  %vm5432_vm9 = vcmask 589312  }
  0x23   :  { %v170_v50 = vpack.c.bf16 %v56_v47, %v55_v46  ;;  %v171_v51 = vpack.c.bf16 %v58_v49, %v57_v48  ;;  %v59_v52 = vld [vmem:[%s13505_s0 + $0xf0] sm:$0xff]  ;;  %v60_v53 = vld [vmem:[%s13505_s0 + $0xf8] sm:$0xff]  ;;  %v61_v54 = vld [vmem:[%s13505_s0 + $0x100] sm:$0xff]  ;;  %vm5439_vm10 = vcmask 654912   ;;  %vm5446_vm11 = vcmask 720512  }
  0x24   :  { %v62_v55 = vld [vmem:[%s13505_s0 + $0x108] sm:$0xff]  ;;  %v172_v56 = vpack.c.bf16 %v60_v53, %v59_v52  ;;  %v63_v59 = vld [vmem:[%s13505_s0 + $0x110] sm:$0xff]  ;;  %v64_v60 = vld [vmem:[%s13505_s0 + $0x118] sm:$0xff]  ;;  %vm5453_vm12 = vcmask 786112   ;;  %vm5460_vm13 = vcmask 851712   ;;  %vm13609_vm14 = vcmask 917312  }
  0x25   :  { %v173_v57 = vpack.c.bf16 %v62_v55, %v61_v54  ;;  %v6703_v58 = vld [vmem:[%s13508_s3 + $0x28] sm:$0xff]   ;;  %v65_v61 = vld [vmem:[%s13505_s0 + $0x120] sm:$0xff]  ;;  %v174_v63 = vpack.c.bf16 %v64_v60, %v63_v59  ;;  %v67_v1 = vld [vmem:[%s13505_s0 + $0x130] sm:$0xff]  ;;  %vm13610_vm15 = vcmask 982912   ;;  %vm5481_vm0 = vcmask 1048512  }
  0x26   :  { %6425 = vmatmul.mubr.msk.bf16.gmra.mrb[16].mxu0 %vm229_vm1, %v166_v38  ;;  %v66_v62 = vld [vmem:[%s13505_s0 + $0x128] sm:$0xff]  ;;  %6546 = vmatprep.subr.bf16.mxu0 %v6703_v58  ;;  %v68_v2 = vld [vmem:[%s13505_s0 + $0x138] sm:$0xff]  ;;  %v69_v3 = vld [vmem:[%s13505_s0 + $0x140] sm:$0xff] }
  0x27   :  { %6428 = vmatprep.mubr.msk.bf16.mxu0 %vm229_vm1, %v167_v39  ;;  %6685 = vmatprep.subr.bf16.mxu1 %v6703_v58  ;;  %v175_v0 = vpack.c.bf16 %v66_v62, %v65_v61  ;;  %v70_v4 = vld [vmem:[%s13505_s0 + $0x148] sm:$0xff]  ;;  %v176_v5 = vpack.c.bf16 %v68_v2, %v67_v1  ;;  %v71_v7 = vld [vmem:[%s13505_s0 + $0x150] sm:$0xff]  ;;  %v72_v8 = vld [vmem:[%s13505_s0 + $0x158] sm:$0xff] }
  0x28   :  { %6547 = vmatpush3.bf16.msra.mxu0 %v6703_v58  ;;  %6693 = vmatpush3.bf16.msra.mxu1 %v6703_v58  ;;  %v177_v6 = vpack.c.bf16 %v70_v4, %v69_v3  ;;  %v73_v9 = vld [vmem:[%s13505_s0 + $0x160] sm:$0xff]  ;;  %v74_v10 = vld [vmem:[%s13505_s0 + $0x168] sm:$0xff]  ;;  %v178_v11 = vpack.c.bf16 %v72_v8, %v71_v7  ;;  %v75_v13 = vld [vmem:[%s13505_s0 + $0x170] sm:$0xff] }
  0x29   :  { %v179_v12 = vpack.c.bf16 %v74_v10, %v73_v9  ;;  %v76_v14 = vld [vmem:[%s13505_s0 + $0x178] sm:$0xff]  ;;  %v77_v15 = vld [vmem:[%s13505_s0 + $0x180] sm:$0xff]  ;;  %v78_v16 = vld [vmem:[%s13505_s0 + $0x188] sm:$0xff] }
  0x2a   :  { %v180_v17 = vpack.c.bf16 %v76_v14, %v75_v13  ;;  %v181_v18 = vpack.c.bf16 %v78_v16, %v77_v15  ;;  %v79_v19 = vld [vmem:[%s13505_s0 + $0x190] sm:$0xff]  ;;  %v80_v20 = vld [vmem:[%s13505_s0 + $0x198] sm:$0xff]  ;;  %v81_v21 = vld [vmem:[%s13505_s0 + $0x1a0] sm:$0xff] }
  0x2b   :  { %v82_v22 = vld [vmem:[%s13505_s0 + $0x1a8] sm:$0xff]  ;;  %v182_v23 = vpack.c.bf16 %v80_v20, %v79_v19  ;;  %v83_v25 = vld [vmem:[%s13505_s0 + $0x1b0] sm:$0xff]  ;;  %v84_v26 = vld [vmem:[%s13505_s0 + $0x1b8] sm:$0xff] }
  0x2c   :  { %v183_v24 = vpack.c.bf16 %v82_v22, %v81_v21  ;;  %v85_v27 = vld [vmem:[%s13505_s0 + $0x1c0] sm:$0xff]  ;;  %v86_v28 = vld [vmem:[%s13505_s0 + $0x1c8] sm:$0xff]  ;;  %v184_v29 = vpack.c.bf16 %v84_v26, %v83_v25  ;;  %v87_v31 = vld [vmem:[%s13505_s0 + $0x1d0] sm:$0xff] }
  0x2d   :  { %v185_v30 = vpack.c.bf16 %v86_v28, %v85_v27  ;;  %v88_v32 = vld [vmem:[%s13505_s0 + $0x1d8] sm:$0xff]  ;;  %v89_v33 = vld [vmem:[%s13505_s0 + $0x1e0] sm:$0xff]  ;;  %v90_v34 = vld [vmem:[%s13505_s0 + $0x1e8] sm:$0xff] }
  0x2e   :  { %6429 = vmatmul.mubr.msk.bf16.gmra.mrb[20].mxu0 %vm229_vm1, %v168_v44  ;;  %v186_v35 = vpack.c.bf16 %v88_v32, %v87_v31  ;;  %v187_v36 = vpack.c.bf16 %v90_v34, %v89_v33  ;;  %v91_v37 = vld [vmem:[%s13505_s0 + $0x1f0] sm:$0xff]  ;;  %v92_v38 = vld [vmem:[%s13505_s0 + $0x1f8] sm:$0xff]  ;;  %v93_v39 = vld [vmem:[%s13505_s0 + $0x200] sm:$0xff] }
  0x2f   :  { %6432 = vmatprep.mubr.msk.bf16.mxu0 %vm229_vm1, %v169_v45  ;;  %v94_v40 = vld [vmem:[%s13505_s0 + $0x208] sm:$0xff]  ;;  %v188_v41 = vpack.c.bf16 %v92_v38, %v91_v37  ;;  %v6704_v43 = vld [vmem:[%s13508_s3 + $0x30] sm:$0xff]   ;;  %v96_v45 = vld [vmem:[%s13505_s0 + $0x218] sm:$0xff] }
  0x30   :  { %v189_v42 = vpack.c.bf16 %v94_v40, %v93_v39  ;;  %6548 = vmatprep.subr.bf16.mxu0 %v6704_v43  ;;  %v95_v44 = vld [vmem:[%s13505_s0 + $0x210] sm:$0xff]  ;;  %v97_v46 = vld [vmem:[%s13505_s0 + $0x220] sm:$0xff]  ;;  %v98_v47 = vld [vmem:[%s13505_s0 + $0x228] sm:$0xff]  ;;  %6686 = vmatprep.subr.bf16.mxu1 %v6704_v43 }
  0x31   :  { %6549 = vmatpush3.bf16.msra.mxu0 %v6704_v43  ;;  %6694 = vmatpush3.bf16.msra.mxu1 %v6704_v43  ;;  %v190_v48 = vpack.c.bf16 %v96_v45, %v95_v44  ;;  %v191_v49 = vpack.c.bf16 %v98_v47, %v97_v46  ;;  %v6705_v52 = vld [vmem:[%s13508_s3 + $0x38] sm:$0xff]   ;;  %v101_v53 = vld [vmem:[%s13505_s0 + $0x240] sm:$0xff]  ;;  %v102_v54 = vld [vmem:[%s13505_s0 + $0x248] sm:$0xff] }
  0x32   :  { %6550 = vmatprep.subr.bf16.mxu0 %v6705_v52  ;;  %6687 = vmatprep.subr.bf16.mxu1 %v6705_v52  ;;  %v104_v58 = vld [vmem:[%s13505_s0 + $0x258] sm:$0xff]  ;;  %v105_v59 = vld [vmem:[%s13505_s0 + $0x260] sm:$0xff]  ;;  %v106_v60 = vld [vmem:[%s13505_s0 + $0x268] sm:$0xff] }
  0x33   :  { %v195_v62 = vpack.c.bf16 %v106_v60, %v105_v59  ;;  %v109_v1 = vld [vmem:[%s13505_s0 + $0x280] sm:$0xff]  ;;  %v110_v2 = vld [vmem:[%s13505_s0 + $0x288] sm:$0xff] }
  0x34   :  { %v197_v4 = vpack.c.bf16 %v110_v2, %v109_v1  ;;  %v113_v7 = vld [vmem:[%s13505_s0 + $0x2a0] sm:$0xff]  ;;  %v114_v8 = vld [vmem:[%s13505_s0 + $0x2a8] sm:$0xff] }
  0x35   :  { %6551 = vmatpush3.bf16.msra.mxu0 %v6705_v52  ;;  %6695 = vmatpush3.bf16.msra.mxu1 %v6705_v52  ;;  %v199_v10 = vpack.c.bf16 %v114_v8, %v113_v7  ;;  %v117_v13 = vld [vmem:[%s13505_s0 + $0x2c0] sm:$0xff]  ;;  %v118_v14 = vld [vmem:[%s13505_s0 + $0x2c8] sm:$0xff] }
  0x36   :  { %6433 = vmatmul.mubr.msk.bf16.gmra.mrb[24].mxu0 %vm229_vm1, %v170_v50  ;;  %v99_v50 = vld [vmem:[%s13505_s0 + $0x230] sm:$0xff]  ;;  %v201_v16 = vpack.c.bf16 %v118_v14, %v117_v13  ;;  %v121_v19 = vld [vmem:[%s13505_s0 + $0x2e0] sm:$0xff]  ;;  %v122_v20 = vld [vmem:[%s13505_s0 + $0x2e8] sm:$0xff] }
  0x37   :  { %6436 = vmatprep.mubr.msk.bf16.mxu0 %vm229_vm1, %v171_v51  ;;  %v100_v51 = vld [vmem:[%s13505_s0 + $0x238] sm:$0xff]  ;;  %v203_v22 = vpack.c.bf16 %v122_v20, %v121_v19  ;;  %v125_v25 = vld [vmem:[%s13505_s0 + $0x300] sm:$0xff]  ;;  %v126_v26 = vld [vmem:[%s13505_s0 + $0x308] sm:$0xff] }
  0x38   :  { %v192_v55 = vpack.c.bf16 %v100_v51, %v99_v50  ;;  %v205_v28 = vpack.c.bf16 %v126_v26, %v125_v25  ;;  %v129_v31 = vld [vmem:[%s13505_s0 + $0x320] sm:$0xff]  ;;  %v130_v32 = vld [vmem:[%s13505_s0 + $0x328] sm:$0xff] }
  0x39   :  { %v207_v34 = vpack.c.bf16 %v130_v32, %v129_v31  ;;  %v133_v37 = vld [vmem:[%s13505_s0 + $0x340] sm:$0xff]  ;;  %v134_v38 = vld [vmem:[%s13505_s0 + $0x348] sm:$0xff] }
  0x3a   :  { %v209_v40 = vpack.c.bf16 %v134_v38, %v133_v37  ;;  %v137_v43 = vld [vmem:[%s13505_s0 + $0x360] sm:$0xff]  ;;  %v138_v44 = vld [vmem:[%s13505_s0 + $0x368] sm:$0xff] }
  0x3b   :  { %v211_v46 = vpack.c.bf16 %v138_v44, %v137_v43  ;;  %v8732_v47 = vld [vmem:[%s13507_s2] ss:$0 sm:$0xff]  ;;  %v142_v51 = vld [vmem:[%s13505_s0 + $0x388] sm:$0xff] }
  0x3c   :  { %v141_v50 = vld [vmem:[%s13505_s0 + $0x380] sm:$0xff]  ;;  %v146_v8 = vld [vmem:[%s13505_s0 + $0x3a8] sm:$0xff] }
  0x3d   :  { %v145_v7 = vld [vmem:[%s13505_s0 + $0x3a0] sm:$0xff] }
  0x3e   :  { %6437 = vmatmul.mubr.msk.bf16.gmra.mrb[28].mxu0 %vm229_vm1, %v172_v56  ;;  %v193_v56 = vpack.c.bf16 %v102_v54, %v101_v53  ;;  %v149_v26 = vld [vmem:[%s13505_s0 + $0x3c0] sm:$0xff] }
  0x3f   :  { %6440 = vmatprep.mubr.msk.bf16.mxu0 %vm229_vm1, %v173_v57  ;;  %v103_v57 = vld [vmem:[%s13505_s0 + $0x250] sm:$0xff] }
  0x40   :  { %v194_v61 = vpack.c.bf16 %v104_v58, %v103_v57  ;;  %v213_v58 = vpack.c.bf16 %v142_v51, %v141_v50 }
  0x46   :  { %6441 = vmatmul.mubr.msk.bf16.gmra.mrb[32].mxu0 %vm229_vm1, %v174_v63  ;;  %v107_v63 = vld [vmem:[%s13505_s0 + $0x270] sm:$0xff] }
  0x47   :  { %6444 = vmatprep.mubr.msk.bf16.mxu0 %vm229_vm1, %v175_v0  ;;  %v108_v0 = vld [vmem:[%s13505_s0 + $0x278] sm:$0xff] }
  0x48   :  { %v196_v3 = vpack.c.bf16 %v108_v0, %v107_v63 }
  0x4e   :  { %6445 = vmatmul.mubr.msk.bf16.gmra.mrb[36].mxu0 %vm229_vm1, %v176_v5  ;;  %v111_v5 = vld [vmem:[%s13505_s0 + $0x290] sm:$0xff] }
  0x4f   :  { %6448 = vmatprep.mubr.msk.bf16.mxu0 %vm229_vm1, %v177_v6  ;;  %v112_v6 = vld [vmem:[%s13505_s0 + $0x298] sm:$0xff] }
  0x50   :  { %v198_v9 = vpack.c.bf16 %v112_v6, %v111_v5  ;;  %v144_v5 = vld [vmem:[%s13505_s0 + $0x398] sm:$0xff] }
  0x56   :  { %6449 = vmatmul.mubr.msk.bf16.gmra.mrb[40].mxu0 %vm229_vm1, %v178_v11  ;;  %v115_v11 = vld [vmem:[%s13505_s0 + $0x2b0] sm:$0xff] }
  0x57   :  { %6452 = vmatprep.mubr.msk.bf16.mxu0 %vm229_vm1, %v179_v12  ;;  %v116_v12 = vld [vmem:[%s13505_s0 + $0x2b8] sm:$0xff] }
  0x58   :  { %v200_v15 = vpack.c.bf16 %v116_v12, %v115_v11 }
  0x5e   :  { %6453 = vmatmul.mubr.msk.bf16.gmra.mrb[44].mxu0 %vm229_vm1, %v180_v17  ;;  %v119_v17 = vld [vmem:[%s13505_s0 + $0x2d0] sm:$0xff] }
  0x5f   :  { %6456 = vmatprep.mubr.msk.bf16.mxu0 %vm229_vm1, %v181_v18  ;;  %v120_v18 = vld [vmem:[%s13505_s0 + $0x2d8] sm:$0xff] }
  0x60   :  { %v202_v21 = vpack.c.bf16 %v120_v18, %v119_v17 }
  0x66   :  { %6457 = vmatmul.mubr.msk.bf16.gmra.mrb[48].mxu0 %vm229_vm1, %v182_v23  ;;  %v123_v23 = vld [vmem:[%s13505_s0 + $0x2f0] sm:$0xff] }
  0x67   :  { %6460 = vmatprep.mubr.msk.bf16.mxu0 %vm229_vm1, %v183_v24  ;;  %v124_v24 = vld [vmem:[%s13505_s0 + $0x2f8] sm:$0xff] }
  0x68   :  { %v204_v27 = vpack.c.bf16 %v124_v24, %v123_v23  ;;  %v148_v23 = vld [vmem:[%s13505_s0 + $0x3b8] sm:$0xff] }
  0x6e   :  { %6461 = vmatmul.mubr.msk.bf16.gmra.mrb[52].mxu0 %vm229_vm1, %v184_v29  ;;  %v127_v29 = vld [vmem:[%s13505_s0 + $0x310] sm:$0xff] }
  0x6f   :  { %6464 = vmatprep.mubr.msk.bf16.mxu0 %vm229_vm1, %v185_v30  ;;  %v128_v30 = vld [vmem:[%s13505_s0 + $0x318] sm:$0xff] }
  0x70   :  { %v206_v33 = vpack.c.bf16 %v128_v30, %v127_v29 }
  0x76   :  { %6465 = vmatmul.mubr.msk.bf16.gmra.mrb[56].mxu0 %vm229_vm1, %v186_v35  ;;  %v131_v35 = vld [vmem:[%s13505_s0 + $0x330] sm:$0xff] }
  0x77   :  { %6468 = vmatprep.mubr.msk.bf16.mxu0 %vm229_vm1, %v187_v36  ;;  %v132_v36 = vld [vmem:[%s13505_s0 + $0x338] sm:$0xff] }
  0x78   :  { %v208_v39 = vpack.c.bf16 %v132_v36, %v131_v35 }
  0x7e   :  { %6469 = vmatmul.mubr.msk.bf16.gmra.mrb[60].mxu0 %vm229_vm1, %v188_v41  ;;  %v135_v41 = vld [vmem:[%s13505_s0 + $0x350] sm:$0xff] }
  0x7f   :  { %6472 = vmatprep.mubr.msk.bf16.mxu0 %vm229_vm1, %v189_v42  ;;  %v136_v42 = vld [vmem:[%s13505_s0 + $0x358] sm:$0xff] }
  0x80   :  { %v210_v45 = vpack.c.bf16 %v136_v42, %v135_v41 }
  0x86   :  { %6473 = vmatmul.mubr.msk.bf16.gmra.mrb[64].mxu0 %vm229_vm1, %v190_v48  ;;  %v139_v48 = vld [vmem:[%s13505_s0 + $0x370] sm:$0xff] }
  0x87   :  { %6476 = vmatprep.mubr.msk.bf16.mxu0 %vm229_vm1, %v191_v49  ;;  %v140_v49 = vld [vmem:[%s13505_s0 + $0x378] sm:$0xff] }
  0x8e   :  { %6477 = vmatmul.mubr.msk.bf16.gmra.mrb[68].mxu0 %vm229_vm1, %v192_v55  ;;  %v212_v55 = vpack.c.bf16 %v140_v49, %v139_v48 }
  0x8f   :  { %6480 = vmatprep.mubr.msk.bf16.mxu0 %vm229_vm1, %v193_v56 }
  0x96   :  { %6481 = vmatmul.mubr.msk.bf16.gmra.mrb[72].mxu0 %vm229_vm1, %v194_v61 }
  0x97   :  { %6484 = vmatprep.mubr.msk.bf16.mxu0 %vm229_vm1, %v195_v62 }
  0x9e   :  { %6485 = vmatmul.mubr.msk.bf16.gmra.mrb[76].mxu0 %vm229_vm1, %v196_v3 }
  0x9f   :  { %6488 = vmatprep.mubr.msk.bf16.mxu0 %vm229_vm1, %v197_v4  ;;  %v143_v4 = vld [vmem:[%s13505_s0 + $0x390] sm:$0xff] }
  0xa0   :  { %v214_v13 = vpack.c.bf16 %v144_v5, %v143_v4 }
  0xa6   :  { %6489 = vmatmul.mubr.msk.bf16.gmra.mrb[80].mxu0 %vm229_vm1, %v198_v9 }
  0xa7   :  { %6492 = vmatprep.mubr.msk.bf16.mxu0 %vm229_vm1, %v199_v10 }
  0xae   :  { %6493 = vmatmul.mubr.msk.bf16.gmra.mrb[84].mxu0 %vm229_vm1, %v200_v15  ;;  %v215_v15 = vpack.c.bf16 %v146_v8, %v145_v7 }
  0xaf   :  { %6496 = vmatprep.mubr.msk.bf16.mxu0 %vm229_vm1, %v201_v16 }
  0xb6   :  { %6497 = vmatmul.mubr.msk.bf16.gmra.mrb[88].mxu0 %vm229_vm1, %v202_v21 }
  0xb7   :  { %6500 = vmatprep.mubr.msk.bf16.mxu0 %vm229_vm1, %v203_v22  ;;  %v147_v22 = vld [vmem:[%s13505_s0 + $0x3b0] sm:$0xff] }
  0xbe   :  { %6501 = vmatmul.mubr.msk.bf16.gmra.mrb[92].mxu0 %vm229_vm1, %v204_v27  ;;  %v150_v27 = vld [vmem:[%s13505_s0 + $0x3c8] sm:$0xff] }
  0xbf   :  { %6504 = vmatprep.mubr.msk.bf16.mxu0 %vm229_vm1, %v205_v28  ;;  %v217_v38 = vpack.c.bf16 %v150_v27, %v149_v26 }
  0xc6   :  { %6505 = vmatmul.mubr.msk.bf16.gmra.mrb[96].mxu0 %vm229_vm1, %v206_v33  ;;  %v216_v33 = vpack.c.bf16 %v148_v23, %v147_v22 }
  0xc7   :  { %6508 = vmatprep.mubr.msk.bf16.mxu0 %vm229_vm1, %v207_v34 }
  0xce   :  { %6509 = vmatmul.mubr.msk.bf16.gmra.mrb[100].mxu0 %vm229_vm1, %v208_v39 }
  0xcf   :  { %6512 = vmatprep.mubr.msk.bf16.mxu0 %vm229_vm1, %v209_v40 }
  0xd6   :  { %6513 = vmatmul.mubr.msk.bf16.gmra.mrb[104].mxu0 %vm229_vm1, %v210_v45  ;;  %v151_v45 = vld [vmem:[%s13505_s0 + $0x3d0] sm:$0xff] }
  0xd7   :  { %6516 = vmatprep.mubr.msk.bf16.mxu0 %vm229_vm1, %v211_v46 }
  0xd9   :  { %v6410_v52 = vpop.f32.mrb[0].mxu0 }
  0xda   :  { %v8748_v53 = vadd.f32 %v6410_v52, %v8732_v47  ;;  %v460_v54 = vpop.f32.mrb[1].mxu0  ;;  %v152_v52 = vld [vmem:[%s13505_s0 + $0x3d8] sm:$0xff] }
  0xdb   :  { %v8751_v56 = vadd.f32 %v8732_v47, %v460_v54  ;;  %v6411_v57 = vpop.f32.mrb[2].mxu0  ;;  %v153_v54 = vld [vmem:[%s13505_s0 + $0x3e0] sm:$0xff] }
  0xdc   :  { %v973_v59 = vmin.f32 %v8748_v53, 20.0  ;;  %v8755_v60 = vadd.f32 %v6411_v57, %v8732_v47  ;;  %v463_v61 = vpop.f32.mrb[3].mxu0 }
  0xdd   :  { %v971_v62 = vmin.f32 %v8751_v56, 20.0  ;;  %v8759_v63 = vadd.f32 %v8732_v47, %v463_v61 }
  0xde   :  { %v1103_v0 = vmul.f32 1.442695, %v973_v59  ;;  %v974_v1 = vmin.f32 %v8755_v60, 20.0  ;;  %6517 = vmatmul.mubr.msk.bf16.gmra.mrb[108].mxu0 %vm229_vm1, %v212_v55  ;;  %v154_v55 = vld [vmem:[%s13505_s0 + $0x3e8] sm:$0xff] }
  0xdf   :  { %v1099_v2 = vmul.f32 1.442695, %v971_v62  ;;  %v972_v3 = vmin.f32 %v8759_v63, 20.0  ;;  %6520 = vmatprep.mubr.msk.bf16.mxu0 %vm229_vm1, %v213_v58  ;;  %v219_v4 = vpack.c.bf16 %v154_v55, %v153_v54 }
  0xe0   :  { %6706 = vpow2.f32 %v1103_v0  ;;  %v1105_v6 = vmul.f32 1.442695, %v974_v1 }
  0xe1   :  { %6708 = vpow2.f32 %v1099_v2  ;;  %v1101_v9 = vmul.f32 1.442695, %v972_v3  ;;  %v6414_v10 = vpop.f32.mrb[4].mxu0  ;;  %v218_v3 = vpack.c.bf16 %v152_v52, %v151_v45 }
  0xe2   :  { %6710 = vpow2.f32 %v1105_v6  ;;  %v8778_v11 = vadd.f32 %v6414_v10, %v8732_v47  ;;  %v476_v12 = vpop.f32.mrb[5].mxu0 }
  0xe3   :  { %6712 = vpow2.f32 %v1101_v9  ;;  %v6415_v14 = vpop.f32.mrb[6].mxu0  ;;  %v8785_v20 = vadd.f32 %v8732_v47, %v476_v12 }
  0xe4   :  { %v977_v16 = vmin.f32 %v8778_v11, 20.0  ;;  %v8782_v17 = vadd.f32 %v6415_v14, %v8732_v47  ;;  %v479_v18 = vpop.f32.mrb[7].mxu0 }
  0xe5   :  { %v8797_v25 = vadd.f32 %v8732_v47, %v479_v18  ;;  %v975_v30 = vmin.f32 %v8785_v20, 20.0 }
  0xe6   :  { %v1111_v19 = vmul.f32 1.442695, %v977_v16  ;;  %v978_v21 = vmin.f32 %v8782_v17, 20.0  ;;  %6521 = vmatmul.mubr.msk.bf16.gmra.mrb[112].mxu0 %vm229_vm1, %v214_v13 }
  0xe7   :  { %6524 = vmatprep.mubr.msk.bf16.mxu0 %vm229_vm1, %v215_v15  ;;  %v976_v41 = vmin.f32 %v8797_v25, 20.0  ;;  %v1107_v58 = vmul.f32 1.442695, %v975_v30 }
  0xe8   :  { %6714 = vpow2.f32 %v1111_v19  ;;  %v1113_v24 = vmul.f32 1.442695, %v978_v21 }
  0xe9   :  { %v6418_v28 = vpop.f32.mrb[8].mxu0  ;;  %v1109_v2 = vmul.f32 1.442695, %v976_v41 }
  0xea   :  { %v6707_v29 = vpop.eup %6706  ;;  %6716 = vpow2.f32 %v1113_v24  ;;  %v8807_v31 = vadd.f32 %v6418_v28, %v8732_v47  ;;  %v492_v32 = vpop.f32.mrb[9].mxu0 }
  0xeb   :  { %v6709_v34 = vpop.eup %6708  ;;  %v1357_v35 = vadd.f32 2.0, %v6707_v29  ;;  %v8810_v36 = vadd.f32 %v8732_v47, %v492_v32  ;;  %v6419_v37 = vpop.f32.mrb[10].mxu0 }
  0xec   :  { %v6711_v39 = vpop.eup %6710  ;;  %v1355_v40 = vadd.f32 2.0, %v6709_v34  ;;  %v981_v42 = vmin.f32 %v8807_v31, 20.0  ;;  %v8815_v43 = vadd.f32 %v6419_v37, %v8732_v47  ;;  %v495_v44 = vpop.f32.mrb[11].mxu0  ;;  %v155_v37 = vld [vmem:[%s13505_s0 + $0x3f0] sm:$0xff] }
  0xed   :  { %v6713_v46 = vpop.eup %6712  ;;  %v8820_v48 = vmul.f32 %v6707_v29, %v1357_v35  ;;  %v1358_v49 = vadd.f32 2.0, %v6711_v39  ;;  %v979_v50 = vmin.f32 %v8810_v36, 20.0  ;;  %v8824_v51 = vadd.f32 %v8732_v47, %v495_v44 }
  0xee   :  { %v1356_v57 = vadd.f32 2.0, %v6713_v46  ;;  %v1119_v59 = vmul.f32 1.442695, %v981_v42  ;;  %v982_v61 = vmin.f32 %v8815_v43, 20.0  ;;  %6525 = vmatmul.mubr.msk.bf16.gmra.mrb[116].mxu0 %vm229_vm1, %v216_v33  ;;  %v8842_v5 = vmul.f32 %v6709_v34, %v1355_v40 }
  0xef   :  { %v1613_v62 = vadd.f32 2.0, %v8820_v48  ;;  %v8838_v0 = vmul.f32 %v6711_v39, %v1358_v49  ;;  %v980_v1 = vmin.f32 %v8824_v51, 20.0  ;;  %6528 = vmatprep.mubr.msk.bf16.mxu0 %vm229_vm1, %v217_v38  ;;  %v1115_v7 = vmul.f32 1.442695, %v979_v50  ;;  %v156_v38 = vld [vmem:[%s13505_s0 + $0x3f8] sm:$0xff] }
  0xf0   :  { %6718 = vpow2.f32 %v1119_v59  ;;  %v8845_v10 = vmul.f32 %v6713_v46, %v1356_v57  ;;  %v1121_v12 = vmul.f32 1.442695, %v982_v61  ;;  %v1611_v26 = vadd.f32 2.0, %v8842_v5 }
  0xf1   :  { %6720 = vrcp.f32 %v1613_v62  ;;  %v1614_v6 = vadd.f32 2.0, %v8838_v0  ;;  %v6422_v8 = vpop.f32.mrb[12].mxu0  ;;  %v1117_v16 = vmul.f32 1.442695, %v980_v1  ;;  %v220_v50 = vpack.c.bf16 %v156_v38, %v155_v37 }
  0xf2   :  { %v6715_v9 = vpop.eup %6714  ;;  %6722 = vpow2.f32 %v1107_v58  ;;  %v8848_v13 = vadd.f32 %v6422_v8, %v8732_v47  ;;  %v508_v14 = vpop.f32.mrb[13].mxu0  ;;  %v1612_v33 = vadd.f32 2.0, %v8845_v10 }
  0xf3   :  { %6724 = vrcp.f32 %v1614_v6  ;;  %v1361_v15 = vadd.f32 2.0, %v6715_v9  ;;  %v8851_v18 = vadd.f32 %v8732_v47, %v508_v14  ;;  %v6423_v19 = vpop.f32.mrb[14].mxu0 }
  0xf4   :  { %v6717_v21 = vpop.eup %6716  ;;  %6726 = vpow2.f32 %v1109_v2  ;;  %v985_v22 = vmin.f32 %v8848_v13, 20.0  ;;  %v8855_v23 = vadd.f32 %v6423_v19, %v8732_v47  ;;  %v511_v24 = vpop.f32.mrb[15].mxu0 }
  0xf5   :  { %v1362_v27 = vadd.f32 2.0, %v6717_v21  ;;  %6728 = vpow2.f32 %v1115_v7  ;;  %v983_v28 = vmin.f32 %v8851_v18, 20.0  ;;  %v8861_v32 = vadd.f32 %v8732_v47, %v511_v24 }
  0xf6   :  { %6730 = vpow2.f32 %v1121_v12  ;;  %v1127_v29 = vmul.f32 1.442695, %v985_v22  ;;  %v986_v30 = vmin.f32 %v8855_v23, 20.0  ;;  %6529 = vmatmul.mubr.msk.bf16.gmra.mrb[120].mxu0 %vm229_vm1, %v218_v3  ;;  %v8865_v34 = vmul.f32 %v6715_v9, %v1361_v15 }
  0xf7   :  { %6732 = vpow2.f32 %v1117_v16  ;;  %v1123_v35 = vmul.f32 1.442695, %v983_v28  ;;  %6532 = vmatprep.mubr.msk.bf16.mxu0 %vm229_vm1, %v219_v4  ;;  %v984_v40 = vmin.f32 %v8861_v32, 20.0  ;;  %v8875_v41 = vmul.f32 %v6717_v21, %v1362_v27 }
  0xf8   :  { %6734 = vpow2.f32 %v1127_v29  ;;  %v1129_v39 = vmul.f32 1.442695, %v986_v30  ;;  %v1617_v54 = vadd.f32 2.0, %v8865_v34 }
  0xf9   :  { %6736 = vrcp.f32 %v1611_v26  ;;  %v6426_v42 = vpop.f32.mrb[16].mxu0  ;;  %v1125_v45 = vmul.f32 1.442695, %v984_v40  ;;  %v1618_v4 = vadd.f32 2.0, %v8875_v41 }
  0xfa   :  { %v6719_v44 = vpop.eup %6718  ;;  %6738 = vpow2.f32 %v1123_v35  ;;  %v8878_v46 = vadd.f32 %v6426_v42, %v8732_v47  ;;  %v524_v49 = vpop.f32.mrb[17].mxu0 }
  0xfb   :  { %v6721_v52 = vpop.eup %6720  ;;  %6740 = vrcp.f32 %v1612_v33  ;;  %v1365_v55 = vadd.f32 2.0, %v6719_v44  ;;  %v8882_v57 = vadd.f32 %v8732_v47, %v524_v49  ;;  %v6427_v58 = vpop.f32.mrb[18].mxu0 }
  0xfc   :  { %v6723_v59 = vpop.eup %6722  ;;  %v1869_v61 = vmul.f32 %v6721_v52, %v8820_v48  ;;  %6742 = vpow2.f32 %v1129_v39  ;;  %v989_v62 = vmin.f32 %v8878_v46, 20.0  ;;  %v8887_v1 = vadd.f32 %v6427_v58, %v8732_v47  ;;  %v527_v2 = vpop.f32.mrb[19].mxu0 }
  0xfd   :  { %v6725_v3 = vpop.eup %6724  ;;  %v8890_v6 = vmul.f32 %v6719_v44, %v1365_v55  ;;  %6744 = vpow2.f32 %v1125_v45  ;;  %v987_v7 = vmin.f32 %v8882_v57, 20.0  ;;  %v1359_v19 = vadd.f32 2.0, %v6723_v59 }
  0xfe   :  { %v8893_v8 = vpop.eup %6726  ;;  %v1870_v9 = vmul.f32 %v6725_v3, %v8838_v0  ;;  %v1135_v48 = vmul.f32 1.442695, %v989_v62  ;;  %v990_v12 = vmin.f32 %v8887_v1, 20.0  ;;  %6533 = vmatmul.mubr.msk.bf16.gmra.mrb[124].mxu0 %vm229_vm1, %v220_v50  ;;  %v8899_v15 = vmul.f32 %v1869_v61, %v8748_v53 }
  0xff   :  { %v6729_v14 = vpop.eup %6728  ;;  %6746 = vrcp.f32 %v1617_v54  ;;  %v1131_v16 = vmul.f32 1.442695, %v987_v7  ;;  %v1621_v27 = vadd.f32 2.0, %v8890_v6  ;;  %v8906_v29 = vadd.f32 %v8732_v47, %v527_v2 }
 0x100   :  { %v6731_v21 = vpop.eup %6730  ;;  %v8902_v22 = vmul.f32 %v1870_v9, %v8755_v60  ;;  %v1363_v24 = vadd.f32 2.0, %v6729_v14  ;;  %6748 = vpow2.f32 %v1135_v48  ;;  %v1137_v26 = vmul.f32 1.442695, %v990_v12 }
 0x101   :  { %v6733_v0 = vpop.eup %6732  ;;  %6750 = vrcp.f32 %v1618_v4  ;;  %v1366_v28 = vadd.f32 2.0, %v6731_v21  ;;  %v6430_v53 = vpop.f32.mrb[20].mxu0  ;;  %v988_v42 = vmin.f32 %v8906_v29, 20.0  ;;  %v8922_v55 = vadd.f32 2.0, %v8893_v8 }
 0x102   :  { %v6735_v30 = vpop.eup %6734  ;;  %v2124_v33 = vpack.c.bf16 %v8902_v22, %v8899_v15  ;;  %v8910_v35 = vmul.f32 %v6729_v14, %v1363_v24  ;;  %v1364_v60 = vadd.f32 2.0, %v6733_v0  ;;  %6752 = vpow2.f32 %v1131_v16  ;;  %v540_v37 = vpop.f32.mrb[21].mxu0 }
 0x103   :  { %v6737_v38 = vpop.eup %6736  ;;  %v8912_v39 = vmul.f32 %v6731_v21, %v1366_v28  ;;  %v1369_v40 = vadd.f32 2.0, %v6735_v30  ;;  %6754 = vpow2.f32 %v1137_v26  ;;  %v6431_v44 = vpop.f32.mrb[22].mxu0  ;;  %v8919_v52 = vadd.f32 %v6430_v53, %v8732_v47 }
 0x104   :  { %v6739_v45 = vpop.eup %6738  ;;  %v1619_v49 = vadd.f32 2.0, %v8910_v35  ;;  %v8916_v50 = vmul.f32 %v6733_v0, %v1364_v60  ;;  %v543_v54 = vpop.f32.mrb[23].mxu0  ;;  %v8927_v3 = vmul.f32 %v6723_v59, %v1359_v19  ;;  %v1867_v7 = vmul.f32 %v6737_v38, %v8842_v5 }
 0x105   :  { %13611 = vst [vmem:[#allocation6_spill] sm:$0xff] %v8919_v52  ;;  %v6741_v58 = vpop.eup %6740  ;;  %v1622_v61 = vadd.f32 2.0, %v8912_v39  ;;  %v8925_v62 = vmul.f32 %v6735_v30, %v1369_v40  ;;  %v1367_v2 = vadd.f32 2.0, %v6739_v45  ;;  %6756 = vrcp.f32 %v1621_v27 }
 0x106   :  { %v6743_v4 = vpop.eup %6742  ;;  %v1620_v9 = vadd.f32 2.0, %v8916_v50  ;;  %v1133_v48 = vmul.f32 1.442695, %v988_v42  ;;  %6758 = vrcp.f32 %v1619_v49  ;;  %v1868_v24 = vmul.f32 %v6741_v58, %v8845_v10 }
 0x107   :  { %v6745_v12 = vpop.eup %6744  ;;  %v1625_v14 = vadd.f32 2.0, %v8925_v62  ;;  %v8932_v16 = vmul.f32 %v6739_v45, %v1367_v2  ;;  %v1370_v21 = vadd.f32 2.0, %v6743_v4  ;;  %6760 = vrcp.f32 %v1622_v61 }
 0x108   :  { %v1368_v26 = vadd.f32 2.0, %v6745_v12  ;;  %v993_v59 = vmin.f32 %v8919_v52, 20.0  ;;  %6762 = vrcp.f32 %v1620_v9  ;;  %v8940_v27 = vadd.f32 %v8732_v47, %v540_v37 }
 0x109   :  { %v6747_v19 = vpop.eup %6746  ;;  %v1623_v5 = vadd.f32 2.0, %v8932_v16  ;;  %v8937_v0 = vmul.f32 %v6743_v4, %v1370_v21  ;;  %v6434_v28 = vpop.f32.mrb[24].mxu0  ;;  %6764 = vpow2.f32 %v1133_v48  ;;  %v8945_v10 = vadd.f32 %v6431_v44, %v8732_v47 }
 0x10a   :  { %v6749_v53 = vpop.eup %6748  ;;  %v8942_v30 = vmul.f32 %v6745_v12, %v1368_v26  ;;  %v1143_v60 = vmul.f32 1.442695, %v993_v59  ;;  %v556_v38 = vpop.f32.mrb[25].mxu0  ;;  %v1995_v42 = vmul.f32 %v1867_v7, %v8751_v56  ;;  %6766 = vrcp.f32 %v1625_v14 }
 0x10b   :  { %v6751_v40 = vpop.eup %6750  ;;  %v1373_v45 = vadd.f32 2.0, %v6749_v53  ;;  %v991_v49 = vmin.f32 %v8940_v27, 20.0  ;;  %v6435_v58 = vpop.f32.mrb[26].mxu0  ;;  %v1996_v61 = vmul.f32 %v1868_v24, %v8759_v63  ;;  %v1873_v2 = vmul.f32 %v6747_v19, %v8865_v34 }
 0x10c   :  { %v6753_v37 = vpop.eup %6752  ;;  %6768 = vpow2.f32 %v1143_v60  ;;  %v994_v4 = vmin.f32 %v8945_v10, 20.0  ;;  %v559_v9 = vpop.f32.mrb[27].mxu0  ;;  %v1626_v48 = vadd.f32 2.0, %v8937_v0  ;;  %v1624_v14 = vadd.f32 2.0, %v8942_v30 }
 0x10d   :  { %v6755_v44 = vpop.eup %6754  ;;  %v8953_v12 = vmul.f32 %v6749_v53, %v1373_v45  ;;  %v1371_v56 = vadd.f32 2.0, %v6753_v37  ;;  %v1139_v7 = vmul.f32 1.442695, %v991_v49  ;;  %6770 = vrcp.f32 %v1623_v5 }
 0x10e   :  { %v1374_v21 = vadd.f32 2.0, %v6755_v44  ;;  %v1145_v26 = vmul.f32 1.442695, %v994_v4  ;;  %v1874_v63 = vmul.f32 %v6751_v40, %v8875_v41  ;;  %v8959_v24 = vadd.f32 %v8732_v47, %v543_v54 }
 0x10f   :  { %v1629_v34 = vadd.f32 2.0, %v8953_v12  ;;  %6772 = vpow2.f32 %v1139_v7  ;;  %v6757_v59 = vpop.eup %6756  ;;  %v8961_v19 = vmul.f32 %v6753_v37, %v1371_v56  ;;  %v2123_v53 = vpack.c.bf16 %v1996_v61, %v1995_v42 }
 0x110   :  { %6774 = vpow2.f32 %v1145_v26  ;;  %v8964_v60 = vadd.f32 %v6434_v28, %v8732_v47  ;;  %v6759_v5 = vpop.eup %6758  ;;  %v992_v45 = vmin.f32 %v8959_v24, 20.0  ;;  %v8969_v41 = vmul.f32 %v8893_v8, %v8922_v55 }
 0x111   :  { %6776 = vrcp.f32 %v1626_v48  ;;  %v8971_v40 = vpop.f32.mrb[28].mxu0  ;;  %v6761_v54 = vpop.eup %6760  ;;  %v8973_v49 = vmul.f32 %v6755_v44, %v1374_v21  ;;  %6552 = vmatprep.mubr.bf16.mxu0 %v2123_v53  ;;  %v8977_v28 = vadd.f32 %v8732_v47, %v556_v38  ;;  %v8982_v4 = vmul.f32 %v1873_v2, %v8778_v11 }
 0x112   :  { %13612 = vst [vmem:[#allocation7_spill] sm:$0xff] %v8964_v60  ;;  %6778 = vrcp.f32 %v1624_v14  ;;  %v997_v42 = vmin.f32 %v8964_v60, 20.0  ;;  %v8979_v37 = vpop.f32.mrb[29].mxu0  ;;  %v6763_v61 = vpop.eup %6762  ;;  %v1141_v8 = vmul.f32 1.442695, %v992_v45  ;;  %6553 = vmatmul.mubr.bf16.vlgmr.msra.gmra.mrb[128].mxu0 %v2124_v33  ;;  %v8988_v55 = vadd.f32 2.0, %v8927_v3 }
 0x113   :  { %13613 = vst [vmem:[#allocation8_spill] sm:$0xff] %v8977_v28  ;;  %6780 = vrcp.f32 %v1629_v34  ;;  %v8990_v44 = vpop.f32.mrb[30].mxu0  ;;  %v6765_v48 = vpop.eup %6764  ;;  %v8993_v38 = vmul.f32 %v1874_v63, %v8782_v17  ;;  %v1877_v56 = vmul.f32 %v6757_v59, %v8890_v6  ;;  %v1627_v11 = vadd.f32 2.0, %v8961_v19 }
 0x114   :  { %v1151_v2 = vmul.f32 1.442695, %v997_v42  ;;  %v8997_v7 = vpop.f32.mrb[31].mxu0  ;;  %v6767_v14 = vpop.eup %6766  ;;  %v1875_v15 = vmul.f32 %v6759_v5, %v8910_v35  ;;  %v1372_v22 = vadd.f32 2.0, %v6765_v48  ;;  %6782 = vpow2.f32 %v1141_v8 }
 0x115   :  { %v995_v33 = vmin.f32 %v8977_v28, 20.0  ;;  %v1878_v26 = vmul.f32 %v6761_v54, %v8912_v39  ;;  %v1630_v17 = vadd.f32 2.0, %v8973_v49  ;;  %v9004_v6 = vadd.f32 %v6435_v58, %v8732_v47 }
 0x116   :  { %v6769_v21 = vpop.eup %6768  ;;  %6784 = vpow2.f32 %v1151_v2  ;;  %v9006_v63 = vmul.f32 %v6765_v48, %v1372_v22  ;;  %v9009_v53 = vadd.f32 %v8732_v47, %v559_v9  ;;  %v9012_v5 = vmul.f32 %v1877_v56, %v8807_v31 }
 0x117   :  { %13614 = vst [vmem:[#allocation9_spill] sm:$0xff] %v9004_v6  ;;  %v1377_v34 = vadd.f32 2.0, %v6769_v21  ;;  %v1147_v59 = vmul.f32 1.442695, %v995_v33  ;;  %v6771_v35 = vpop.eup %6770  ;;  %v1876_v45 = vmul.f32 %v6763_v61, %v8916_v50  ;;  %6786 = vrcp.f32 %v1627_v11 }
 0x118   :  { %13615 = vst [vmem:[#allocation10_spill] sm:$0xff] %v9009_v53  ;;  %v998_v39 = vmin.f32 %v9004_v6, 20.0  ;;  %v1881_v58 = vmul.f32 %v6767_v14, %v8925_v62  ;;  %v1628_v42 = vadd.f32 2.0, %v9006_v63  ;;  %v996_v56 = vmin.f32 %v9009_v53, 20.0 }
 0x119   :  { %v6773_v54 = vpop.eup %6772  ;;  %v9018_v8 = vmul.f32 %v6769_v21, %v1377_v34  ;;  %6788 = vpow2.f32 %v1147_v59  ;;  %v9020_v48 = vpop.f32.mrb[32].mxu0  ;;  %v9026_v11 = vmul.f32 %v1875_v15, %v8810_v36  ;;  %v9029_v62 = vmul.f32 %v1878_v26, %v8815_v43 }
 0x11a   :  { %v6775_v9 = vpop.eup %6774  ;;  %6790 = vrcp.f32 %v1630_v17  ;;  %v1375_v2 = vadd.f32 2.0, %v6773_v54  ;;  %v1153_v31 = vmul.f32 1.442695, %v998_v39  ;;  %v9023_v50 = vpop.f32.mrb[33].mxu0  ;;  %v9034_v21 = vmul.f32 %v1876_v45, %v8824_v51 }
 0x11b   :  { %v6777_v61 = vpop.eup %6776  ;;  %6792 = vrcp.f32 %v1628_v42  ;;  %v1378_v14 = vadd.f32 2.0, %v6775_v9  ;;  %v9031_v22 = vpop.f32.mrb[34].mxu0  ;;  %v1633_v17 = vadd.f32 2.0, %v9018_v8  ;;  %v1149_v34 = vmul.f32 1.442695, %v996_v56 }
 0x11c   :  { %v6779_v33 = vpop.eup %6778  ;;  %6794 = vpow2.f32 %v1153_v31  ;;  %v9037_v59 = vpop.f32.mrb[35].mxu0  ;;  %v9039_v36 = vmul.f32 %v6773_v54, %v1375_v2  ;;  %v9047_v26 = vadd.f32 %v8971_v40, %v8732_v47  ;;  %v9050_v51 = vmul.f32 %v1881_v58, %v8848_v13 }
 0x11d   :  { %v6781_v39 = vpop.eup %6780  ;;  %v9041_v15 = vmul.f32 %v6775_v9, %v1378_v14  ;;  %v1879_v45 = vmul.f32 %v6771_v35, %v8932_v16  ;;  %6796 = vpow2.f32 %v1149_v34  ;;  %v1616_v42 = vadd.f32 2.0, %v8969_v41 }
 0x11e   :  { %13616 = vst [vmem:[#allocation11_spill] sm:$0xff] %v9047_v26  ;;  %v6783_v31 = vpop.eup %6782  ;;  %v1882_v54 = vmul.f32 %v6777_v61, %v8937_v0  ;;  %v1880_v9 = vmul.f32 %v6779_v33, %v8942_v30  ;;  %6798 = vrcp.f32 %v8988_v55  ;;  %v1001_v2 = vmin.f32 %v9047_v26, 20.0 }
 0x11f   :  { %v1885_v40 = vmul.f32 %v6781_v39, %v8953_v12  ;;  %6800 = vrcp.f32 %v1633_v17  ;;  %v1376_v13 = vadd.f32 2.0, %v6783_v31  ;;  %v9061_v16 = vadd.f32 %v8732_v47, %v8979_v37 }
 0x120   :  { %v6785_v56 = vpop.eup %6784  ;;  %v1631_v35 = vadd.f32 2.0, %v9039_v36  ;;  %v1634_v58 = vadd.f32 2.0, %v9041_v15  ;;  %v1159_v61 = vmul.f32 1.442695, %v1001_v2  ;;  %6802 = vrcp.f32 %v1616_v42 }
 0x121   :  { %13617 = vst [vmem:[#allocation12_spill] sm:$0xff] %v9061_v16  ;;  %v1381_v0 = vadd.f32 2.0, %v6785_v56  ;;  %v9065_v30 = vpop.f32.mrb[36].mxu0  ;;  %v6787_v55 = vpop.eup %6786  ;;  %v9067_v14 = vmul.f32 %v6783_v31, %v1376_v13  ;;  %v999_v12 = vmin.f32 %v9061_v16, 20.0  ;;  %v9072_v33 = vadd.f32 %v8990_v44, %v8732_v47 }
 0x122   :  { %v9074_v37 = vpop.f32.mrb[37].mxu0  ;;  %6804 = vpow2.f32 %v1159_v61  ;;  %v9080_v39 = vadd.f32 %v8732_v47, %v8997_v7  ;;  %v9095_v61 = vadd.f32 %v9020_v48, %v8732_v47  ;;  %v9102_v60 = vmul.f32 %v1879_v45, %v8851_v18 }
 0x123   :  { %13618 = vst [vmem:[#allocation13_spill] sm:$0xff] %v9072_v33  ;;  %v6789_v17 = vpop.eup %6788  ;;  %v9076_v34 = vmul.f32 %v6785_v56, %v1381_v0  ;;  %v9084_v42 = vpop.f32.mrb[38].mxu0  ;;  %v1632_v13 = vadd.f32 2.0, %v9067_v14  ;;  %v1155_v43 = vmul.f32 1.442695, %v999_v12  ;;  %v1002_v16 = vmin.f32 %v9072_v33, 20.0 }
 0x124   :  { %13619 = vst [vmem:[#allocation14_spill] sm:$0xff] %v9080_v39  ;;  %v6791_v2 = vpop.eup %6790  ;;  %v1379_v44 = vadd.f32 2.0, %v6789_v17  ;;  %v9088_v26 = vpop.f32.mrb[39].mxu0  ;;  %6806 = vrcp.f32 %v1631_v35  ;;  %v1000_v0 = vmin.f32 %v9080_v39, 20.0  ;;  %v1005_v35 = vmin.f32 %v9095_v61, 20.0 }
 0x125   :  { %v6793_v56 = vpop.eup %6792  ;;  %6808 = vrcp.f32 %v1634_v58  ;;  %v1637_v53 = vadd.f32 2.0, %v9076_v34  ;;  %v1161_v33 = vmul.f32 1.442695, %v1002_v16  ;;  %v1883_v7 = vmul.f32 %v6787_v55, %v8961_v19 }
 0x126   :  { %v6795_v31 = vpop.eup %6794  ;;  %v9098_v12 = vmul.f32 %v6789_v17, %v1379_v44  ;;  %6810 = vrcp.f32 %v1632_v13  ;;  %v1157_v28 = vmul.f32 1.442695, %v1000_v0  ;;  %v1167_v16 = vmul.f32 1.442695, %v1005_v35 }
 0x127   :  { %v1382_v6 = vadd.f32 2.0, %v6795_v31  ;;  %v6797_v39 = vpop.eup %6796  ;;  %6812 = vpow2.f32 %v1155_v43  ;;  %v9113_v0 = vmul.f32 %v1882_v54, %v8855_v23  ;;  %v9118_v19 = vadd.f32 %v8732_v47, %v9023_v50 }
 0x128   :  { %v1635_v48 = vadd.f32 2.0, %v9098_v12  ;;  %v6799_v58 = vpop.eup %6798  ;;  %v1380_v17 = vadd.f32 2.0, %v6797_v39  ;;  %6814 = vpow2.f32 %v1161_v33  ;;  %v9126_v45 = vmul.f32 %v1885_v40, %v8878_v46 }
 0x129   :  { %v9106_v52 = vmul.f32 %v6795_v31, %v1382_v6  ;;  %v9108_v13 = vpop.f32.mrb[40].mxu0  ;;  %v9110_v44 = vpop.eup %6800  ;;  %6816 = vrcp.f32 %v1637_v53  ;;  %v1871_v18 = vmul.f32 %v6799_v58, %v8927_v3  ;;  %v9123_v6 = vmul.f32 %v1880_v9, %v8861_v32 }
 0x12a   :  { %v9120_v43 = vpop.f32.mrb[41].mxu0  ;;  %6818 = vpow2.f32 %v1157_v28  ;;  %v6803_v53 = vpop.eup %6802  ;;  %v1886_v3 = vmul.f32 %v6791_v2, %v8973_v49  ;;  %v9132_v54 = vmul.f32 %v6797_v39, %v1380_v17  ;;  %v1003_v50 = vmin.f32 %v9118_v19, 20.0 }
 0x12b   :  { %v1638_v55 = vadd.f32 2.0, %v9106_v52  ;;  %v9129_v23 = vpop.f32.mrb[42].mxu0  ;;  %6820 = vpow2.f32 %v1167_v16  ;;  %v9138_v9 = vmul.f32 %v1883_v7, %v8882_v57  ;;  %v1884_v46 = vmul.f32 %v6793_v56, %v9006_v63 }
 0x12c   :  { %v9135_v33 = vpop.f32.mrb[43].mxu0  ;;  %v6805_v32 = vpop.eup %6804  ;;  %6822 = vrcp.f32 %v1635_v48  ;;  %v1872_v28 = vmul.f32 %v6803_v53, %v8969_v41  ;;  %v1999_v40 = vmul.f32 %v1871_v18, %v8785_v20  ;;  %v1163_v49 = vmul.f32 1.442695, %v1003_v50 }
 0x12d   :  { %v1385_v31 = vadd.f32 2.0, %v6805_v32  ;;  %v9145_v39 = vadd.f32 %v9031_v22, %v8732_v47  ;;  %6824 = vrcp.f32 %v1638_v55  ;;  %v9150_v57 = vadd.f32 %v8732_v47, %v9037_v59 }
 0x12e   :  { %v6807_v2 = vpop.eup %6806  ;;  %v2000_v35 = vmul.f32 %v1872_v28, %v8797_v25  ;;  %v2129_v63 = vpack.c.bf16 %v9123_v6, %v9102_v60  ;;  %v1636_v20 = vadd.f32 2.0, %v9132_v54  ;;  %6826 = vpow2.f32 %v1163_v49  ;;  %v9271_v60 = vld [vmem:[%s13507_s2] ss:$0 sm:$0xff] }
 0x12f   :  { %v6809_v41 = vpop.eup %6808  ;;  %v1006_v56 = vmin.f32 %v9145_v39, 20.0  ;;  %v9158_v58 = vmul.f32 %v6805_v32, %v1385_v31  ;;  %v1004_v25 = vmin.f32 %v9150_v57, 20.0  ;;  %v9163_v59 = vadd.f32 %v9065_v30, %v8732_v47 }
 0x130   :  { %v6811_v7 = vpop.eup %6810  ;;  %v2125_v48 = vpack.c.bf16 %v2000_v35, %v1999_v40  ;;  %v9168_v18 = vmul.f32 %v1886_v3, %v8887_v1  ;;  %v9171_v55 = vmul.f32 %v1884_v46, %v8906_v29  ;;  %v9175_v50 = vadd.f32 %v8732_v47, %v9074_v37 }
 0x131   :  { %v9165_v17 = vpop.f32.mrb[44].mxu0  ;;  %v6813_v16 = vpop.eup %6812  ;;  %v1169_v53 = vmul.f32 1.442695, %v1006_v56  ;;  %v1887_v30 = vmul.f32 %v6807_v2, %v9039_v36  ;;  %v1165_v31 = vmul.f32 1.442695, %v1004_v25  ;;  %v1009_v49 = vmin.f32 %v9163_v59, 20.0 }
 0x132   :  { %v9177_v32 = vpop.f32.mrb[45].mxu0  ;;  %v6815_v28 = vpop.eup %6814  ;;  %6556 = vmatprep.mubr.bf16.mxu1 %v2125_v48  ;;  %v1383_v40 = vadd.f32 2.0, %v6813_v16  ;;  %v1888_v29 = vmul.f32 %v6811_v7, %v9067_v14  ;;  %6828 = vrcp.f32 %v1636_v20  ;;  %v13620_v37 = vpack.c.bf16 %v8993_v38, %v8982_v4 }
 0x133   :  { %v9181_v1 = vpop.f32.mrb[46].mxu0  ;;  %v6817_v3 = vpop.eup %6816  ;;  %v1386_v46 = vadd.f32 2.0, %v6815_v28  ;;  %v1007_v35 = vmin.f32 %v9175_v50, 20.0  ;;  %v1641_v2 = vadd.f32 2.0, %v9158_v58  ;;  %v13621_v25 = vpack.c.bf16 %v9034_v21, %v9026_v11 }
 0x134   :  { %6557 = vmatmul.mubr.bf16.vlgmr.msra.gmra.mrb[0].mxu1 %v13620_v37  ;;  %v9188_v56 = vpop.f32.mrb[47].mxu0  ;;  %v6819_v36 = vpop.eup %6818  ;;  %v9191_v48 = vmul.f32 %v6813_v16, %v1383_v40  ;;  %6830 = vpow2.f32 %v1169_v53  ;;  %v1175_v14 = vmul.f32 1.442695, %v1009_v49  ;;  %v9200_v22 = vmul.f32 %v9110_v44, %v9018_v8 }
 0x135   :  { %6560 = vmatprep.mubr.bf16.mxu1 %v13621_v25  ;;  %v6821_v20 = vpop.eup %6820  ;;  %v9196_v7 = vmul.f32 %v6815_v28, %v1386_v46  ;;  %v1384_v4 = vadd.f32 2.0, %v6819_v36  ;;  %6832 = vpow2.f32 %v1165_v31  ;;  %v1171_v38 = vmul.f32 1.442695, %v1007_v35 }
 0x136   :  { %v6823_v37 = vpop.eup %6822  ;;  %v9203_v16 = vmul.f32 %v6809_v41, %v9041_v15  ;;  %v1389_v40 = vadd.f32 2.0, %v6821_v20  ;;  %6834 = vpow2.f32 %v1175_v14  ;;  %v9206_v11 = vmul.f32 %v1887_v30, %v8940_v27 }
 0x137   :  { %v1639_v21 = vadd.f32 2.0, %v9191_v48  ;;  %v9209_v53 = vmul.f32 %v6819_v36, %v1384_v4  ;;  %6836 = vpow2.f32 %v1171_v38  ;;  %v6825_v28 = vpop.eup %6824  ;;  %v1642_v31 = vadd.f32 2.0, %v9196_v7 }
 0x138   :  { %v9212_v49 = vmul.f32 %v6821_v20, %v1389_v40  ;;  %v9216_v8 = vadd.f32 %v9084_v42, %v8732_v47  ;;  %v9220_v15 = vadd.f32 %v8732_v47, %v9088_v26  ;;  %v6827_v44 = vpop.eup %6826  ;;  %v9225_v41 = vmul.f32 %v1888_v29, %v8959_v24 }
 0x139   :  { %v9222_v27 = vpop.f32.mrb[48].mxu0  ;;  %v9228_v30 = vmul.f32 %v6817_v3, %v9076_v34  ;;  %6838 = vrcp.f32 %v1641_v2  ;;  %v1640_v46 = vadd.f32 2.0, %v9209_v53  ;;  %v9234_v42 = vmul.f32 %v6823_v37, %v9098_v12 }
 0x13a   :  { %v9231_v35 = vpop.f32.mrb[49].mxu0  ;;  %v1387_v36 = vadd.f32 2.0, %v6827_v44  ;;  %v1010_v26 = vmin.f32 %v9216_v8, 20.0  ;;  %v1008_v25 = vmin.f32 %v9220_v15, 20.0  ;;  %v1894_v24 = vmul.f32 %v6825_v28, %v9106_v52 }
 0x13b   :  { %v9238_v14 = vpop.f32.mrb[50].mxu0  ;;  %6840 = vrcp.f32 %v1639_v21  ;;  %v13622_v34 = vpack.c.bf16 %v9029_v62, %v9012_v5  ;;  %v2131_v3 = vpack.c.bf16 %v9171_v55, %v9138_v9  ;;  %v1645_v2 = vadd.f32 2.0, %v9212_v49 }
 0x13c   :  { %v9248_v29 = vpop.f32.mrb[51].mxu0  ;;  %6842 = vrcp.f32 %v1642_v31  ;;  %v1177_v52 = vmul.f32 1.442695, %v1010_v26  ;;  %v1173_v20 = vmul.f32 1.442695, %v1008_v25  ;;  %v6829_v4 = vpop.eup %6828  ;;  %v9256_v5 = vadd.f32 %v9108_v13, %v8732_v47 }
 0x13d   :  { %6561 = vmatmul.mubr.bf16.gmra.mrb[4].mxu1 %v13622_v34  ;;  %6844 = vrcp.f32 %v1640_v46  ;;  %v9260_v62 = vadd.f32 %v8732_v47, %v9120_v43  ;;  %v9264_v9 = vadd.f32 %v9129_v23, %v8732_v47  ;;  %v9266_v38 = vmul.f32 %v6827_v44, %v1387_v36 }
 0x13e   :  { %6564 = vmatprep.mubr.bf16.mxu1 %v2129_v63  ;;  %v6831_v55 = vpop.eup %6830  ;;  %6846 = vpow2.f32 %v1177_v52  ;;  %v9275_v13 = vadd.f32 %v9271_v60, %v9135_v33  ;;  %v1013_v47 = vmin.f32 %v9256_v5, 20.0  ;;  %v1892_v40 = vmul.f32 %v6829_v4, %v9132_v54 }
 0x13f   :  { %13623 = vst [vmem:[#allocation15_spill] sm:$0xff] %v9264_v9  ;;  %v6833_v6 = vpop.eup %6832  ;;  %v1390_v63 = vadd.f32 2.0, %v6831_v55  ;;  %6848 = vpow2.f32 %v1173_v20  ;;  %v1011_v23 = vmin.f32 %v9260_v62, 20.0  ;;  %v1014_v28 = vmin.f32 %v9264_v9, 20.0 }
 0x140   :  { %13624 = vst [vmem:[#allocation16_spill] sm:$0xff] %v9275_v13  ;;  %v6835_v37 = vpop.eup %6834  ;;  %6850 = vrcp.f32 %v1645_v2  ;;  %v1388_v21 = vadd.f32 2.0, %v6833_v6  ;;  %v1183_v36 = vmul.f32 1.442695, %v1013_v47  ;;  %v1643_v34 = vadd.f32 2.0, %v9266_v38 }
 0x141   :  { %v9283_v31 = vpop.f32.mrb[52].mxu0  ;;  %v6837_v33 = vpop.eup %6836  ;;  %v9285_v44 = vmul.f32 %v6831_v55, %v1390_v63  ;;  %v1393_v46 = vadd.f32 2.0, %v6835_v37  ;;  %v1179_v26 = vmul.f32 1.442695, %v1011_v23  ;;  %v1012_v54 = vmin.f32 %v9275_v13, 20.0  ;;  %v13626_v23 = vld [vmem:[#allocation6_spill] sm:$0xff] }
 0x142   :  { %v9287_v25 = vpop.f32.mrb[53].mxu0  ;;  %v9290_v52 = vmul.f32 %v6833_v6, %v1388_v21  ;;  %v1391_v20 = vadd.f32 2.0, %v6837_v33  ;;  %v9297_v43 = vmul.f32 %v9203_v16, %v8945_v10  ;;  %v13625_v63 = vpack.c.bf16 %v9113_v0, %v9050_v51  ;;  %v13627_v16 = vld [vmem:[#allocation7_spill] sm:$0xff]  ;;  %v13628_v0 = vld [vmem:[#allocation8_spill] sm:$0xff] }
 0x143   :  { %v9293_v2 = vpop.f32.mrb[54].mxu0  ;;  %v6839_v4 = vpop.eup %6838  ;;  %v1646_v55 = vadd.f32 2.0, %v9285_v44  ;;  %v9303_v47 = vmul.f32 %v6835_v37, %v1393_v46  ;;  %6852 = vpow2.f32 %v1183_v36  ;;  %v9309_v21 = vmul.f32 %v9200_v22, %v13626_v23  ;;  %v13629_v46 = vld [vmem:[#allocation9_spill] sm:$0xff]  ;;  %v13630_v23 = vld [vmem:[#allocation10_spill] sm:$0xff] }
 0x144   :  { %v9305_v6 = vpop.f32.mrb[55].mxu0  ;;  %v1644_v12 = vadd.f32 2.0, %v9290_v52  ;;  %v9312_v13 = vmul.f32 %v6837_v33, %v1391_v20  ;;  %6854 = vpow2.f32 %v1179_v26  ;;  %v9316_v51 = vmul.f32 %v9228_v30, %v13627_v16 }
 0x145   :  { %6565 = vmatmul.mubr.bf16.gmra.mrb[8].mxu1 %v13625_v63  ;;  %v6841_v10 = vpop.eup %6840  ;;  %v9320_v37 = vmul.f32 %v9234_v42, %v13628_v0  ;;  %v9323_v36 = vmul.f32 %v1894_v24, %v13629_v46  ;;  %v1185_v22 = vmul.f32 1.442695, %v1014_v28  ;;  %v9326_v9 = vmul.f32 %v1892_v40, %v13630_v23 }
 0x146   :  { %6568 = vmatprep.mubr.bf16.mxu1 %v2131_v3  ;;  %v6843_v63 = vpop.eup %6842  ;;  %v9329_v3 = vmul.f32 %v6839_v4, %v9158_v58  ;;  %6856 = vrcp.f32 %v1643_v34  ;;  %v1181_v33 = vmul.f32 1.442695, %v1012_v54  ;;  %v1649_v30 = vadd.f32 2.0, %v9303_v47 }
 0x147   :  { %v6845_v26 = vpop.eup %6844  ;;  %6858 = vrcp.f32 %v1646_v55  ;;  %v9336_v24 = vadd.f32 %v9271_v60, %v9165_v17  ;;  %v1647_v40 = vadd.f32 2.0, %v9312_v13  ;;  %v9341_v58 = vadd.f32 %v9271_v60, %v9177_v32 }
 0x148   :  { %v6847_v28 = vpop.eup %6846  ;;  %6860 = vrcp.f32 %v1644_v12  ;;  %v9345_v34 = vadd.f32 %v9271_v60, %v9181_v1  ;;  %v1895_v4 = vmul.f32 %v6841_v10, %v9191_v48  ;;  %v13633_v48 = vpack.c.bf16 %v9168_v18, %v9126_v45 }
 0x149   :  { %13631 = vst [vmem:[#allocation6_spill] sm:$0xff] %v9341_v58  ;;  %v9347_v20 = vpop.f32.mrb[56].mxu0  ;;  %v6849_v54 = vpop.eup %6848  ;;  %v1394_v55 = vadd.f32 2.0, %v6847_v28  ;;  %6862 = vpow2.f32 %v1185_v22  ;;  %v1017_v17 = vmin.f32 %v9336_v24, 20.0  ;;  %v1015_v32 = vmin.f32 %v9341_v58, 20.0 }
 0x14a   :  { %13632 = vst [vmem:[#allocation7_spill] sm:$0xff] %v9345_v34  ;;  %v9351_v12 = vpop.f32.mrb[57].mxu0  ;;  %v6851_v16 = vpop.eup %6850  ;;  %v1392_v0 = vadd.f32 2.0, %v6849_v54  ;;  %6864 = vpow2.f32 %v1181_v33  ;;  %v1018_v46 = vmin.f32 %v9345_v34, 20.0  ;;  %v9364_v22 = vadd.f32 %v9271_v60, %v9188_v56 }
 0x14b   :  { %v9355_v1 = vpop.f32.mrb[58].mxu0  ;;  %6866 = vrcp.f32 %v1649_v30  ;;  %v9357_v23 = vmul.f32 %v6847_v28, %v1394_v55  ;;  %v1191_v10 = vmul.f32 1.442695, %v1017_v17  ;;  %v13635_v34 = vpack.c.bf16 %v9225_v41, %v9206_v11 }
 0x14c   :  { %13634 = vst [vmem:[#allocation8_spill] sm:$0xff] %v9364_v22  ;;  %v9366_v42 = vpop.f32.mrb[59].mxu0  ;;  %6868 = vrcp.f32 %v1647_v40  ;;  %v9368_v33 = vmul.f32 %v6849_v54, %v1392_v0  ;;  %v1187_v30 = vmul.f32 1.442695, %v1015_v32  ;;  %v2135_v28 = vpack.c.bf16 %v9326_v9, %v9320_v37 }
 0x14d   :  { %6569 = vmatmul.mubr.bf16.gmra.mrb[12].mxu1 %v13633_v48  ;;  %v6853_v45 = vpop.eup %6852  ;;  %v1898_v18 = vmul.f32 %v6843_v63, %v9196_v7  ;;  %6870 = vpow2.f32 %v1191_v10  ;;  %v1193_v55 = vmul.f32 1.442695, %v1018_v46  ;;  %v1016_v56 = vmin.f32 %v9364_v22, 20.0 }
 0x14e   :  { %6572 = vmatprep.mubr.bf16.mxu1 %v13635_v34  ;;  %v6855_v17 = vpop.eup %6854  ;;  %v1896_v40 = vmul.f32 %v6845_v26, %v9209_v53  ;;  %v1397_v54 = vadd.f32 2.0, %v6853_v45  ;;  %6872 = vpow2.f32 %v1187_v30  ;;  %v1650_v41 = vadd.f32 2.0, %v9357_v23 }
 0x14f   :  { %v1395_v34 = vadd.f32 2.0, %v6855_v17  ;;  %v1189_v0 = vmul.f32 1.442695, %v1016_v56  ;;  %v9383_v9 = vadd.f32 %v9271_v60, %v9222_v27  ;;  %v1901_v37 = vmul.f32 %v6851_v16, %v9212_v49  ;;  %v13638_v49 = vld [vmem:[#allocation11_spill] sm:$0xff]  ;;  %v13639_v56 = vld [vmem:[#allocation12_spill] sm:$0xff] }
 0x150   :  { %v6857_v7 = vpop.eup %6856  ;;  %v1648_v63 = vadd.f32 2.0, %v9368_v33  ;;  %v9389_v53 = vadd.f32 %v9271_v60, %v9231_v35  ;;  %v9393_v46 = vmul.f32 %v6853_v45, %v1397_v54  ;;  %6874 = vpow2.f32 %v1193_v55  ;;  %v13640_v45 = vld [vmem:[#allocation13_spill] sm:$0xff] }
 0x151   :  { %13636 = vst [vmem:[#allocation9_spill] sm:$0xff] %v9383_v9  ;;  %v9391_v26 = vpop.f32.mrb[60].mxu0  ;;  %v6859_v32 = vpop.eup %6858  ;;  %v9395_v48 = vmul.f32 %v6855_v17, %v1395_v34  ;;  %v1021_v27 = vmin.f32 %v9383_v9, 20.0  ;;  %v9402_v16 = vmul.f32 %v9329_v3, %v13638_v49  ;;  %v2023_v35 = vmul.f32 %v1895_v4, %v13639_v56  ;;  %v13641_v17 = vld [vmem:[#allocation14_spill] sm:$0xff] }
 0x152   :  { %13637 = vst [vmem:[#allocation10_spill] sm:$0xff] %v9389_v53  ;;  %v9398_v10 = vpop.f32.mrb[61].mxu0  ;;  %v6861_v30 = vpop.eup %6860  ;;  %6876 = vpow2.f32 %v1189_v0  ;;  %v9408_v54 = vmul.f32 %v1898_v18, %v13640_v45  ;;  %v2024_v55 = vmul.f32 %v1896_v40, %v13641_v17  ;;  %v13642_v34 = vpack.c.bf16 %v9297_v43, %v9309_v21 }
 0x153   :  { %v9405_v11 = vpop.f32.mrb[62].mxu0  ;;  %v6863_v22 = vpop.eup %6862  ;;  %6878 = vrcp.f32 %v1650_v41  ;;  %v1199_v9 = vmul.f32 1.442695, %v1021_v27  ;;  %v9417_v4 = vmul.f32 %v1901_v37, %v9095_v61  ;;  %v1019_v18 = vmin.f32 %v9389_v53, 20.0 }
 0x154   :  { %v9414_v58 = vpop.f32.mrb[63].mxu0  ;;  %v6865_v3 = vpop.eup %6864  ;;  %6880 = vrcp.f32 %v1648_v63  ;;  %v1398_v0 = vadd.f32 2.0, %v6863_v22  ;;  %v1653_v40 = vadd.f32 2.0, %v9393_v46  ;;  %v1651_v41 = vadd.f32 2.0, %v9395_v48 }
 0x155   :  { %6573 = vmatmul.mubr.bf16.gmra.mrb[16].mxu1 %v13642_v34  ;;  %v6867_v49 = vpop.eup %6866  ;;  %v1396_v56 = vadd.f32 2.0, %v6865_v3  ;;  %v9424_v43 = vadd.f32 %v9271_v60, %v9238_v14  ;;  %6882 = vpow2.f32 %v1199_v9  ;;  %v1195_v61 = vmul.f32 1.442695, %v1019_v18 }
 0x156   :  { %6576 = vmatprep.mubr.bf16.mxu1 %v2135_v28  ;;  %v6869_v21 = vpop.eup %6868  ;;  %v9426_v27 = vmul.f32 %v6863_v22, %v1398_v0  ;;  %v9430_v28 = vadd.f32 %v9271_v60, %v9248_v29  ;;  %v2137_v17 = vpack.c.bf16 %v2024_v55, %v2023_v35  ;;  %v1899_v53 = vmul.f32 %v6857_v7, %v9266_v38 }
 0x157   :  { %v6871_v37 = vpop.eup %6870  ;;  %v9432_v63 = vmul.f32 %v6865_v3, %v1396_v56  ;;  %v1022_v45 = vmin.f32 %v9424_v43, 20.0  ;;  %6884 = vpow2.f32 %v1195_v61  ;;  %v1902_v29 = vmul.f32 %v6859_v32, %v9285_v44 }
 0x158   :  { %13643 = vst [vmem:[#allocation11_spill] sm:$0xff] %v9430_v28  ;;  %v6873_v14 = vpop.eup %6872  ;;  %v1401_v22 = vadd.f32 2.0, %v6871_v37  ;;  %v1020_v9 = vmin.f32 %v9430_v28, 20.0  ;;  %6886 = vrcp.f32 %v1653_v40  ;;  %v9444_v18 = vadd.f32 %v9271_v60, %v9283_v31 }
 0x159   :  { %v9439_v0 = vpop.f32.mrb[64].mxu0  ;;  %v1201_v3 = vmul.f32 1.442695, %v1022_v45  ;;  %v1900_v55 = vmul.f32 %v6861_v30, %v9290_v52  ;;  %6888 = vrcp.f32 %v1651_v41  ;;  %v1654_v38 = vadd.f32 2.0, %v9426_v27 }
 0x15a   :  { %13644 = vst [vmem:[#allocation12_spill] sm:$0xff] %v9444_v18  ;;  %v9446_v35 = vpop.f32.mrb[65].mxu0  ;;  %v1197_v7 = vmul.f32 1.442695, %v1020_v9  ;;  %v6875_v61 = vpop.eup %6874  ;;  %v1652_v34 = vadd.f32 2.0, %v9432_v63  ;;  %v9453_v44 = vmul.f32 %v6871_v37, %v1401_v22  ;;  %v1399_v32 = vadd.f32 2.0, %v6873_v14 }
 0x15b   :  { %v9450_v56 = vpop.f32.mrb[66].mxu0  ;;  %v13645_v31 = vpack.c.bf16 %v9323_v36, %v9316_v51  ;;  %v1025_v40 = vmin.f32 %v9444_v18, 20.0  ;;  %v2027_v30 = vmul.f32 %v1899_v53, %v9118_v19  ;;  %v1905_v41 = vmul.f32 %v6867_v49, %v9303_v47 }
 0x15c   :  { %v9459_v45 = vpop.f32.mrb[67].mxu0  ;;  %v6877_v52 = vpop.eup %6876  ;;  %v1903_v9 = vmul.f32 %v6869_v21, %v9312_v13  ;;  %6890 = vpow2.f32 %v1201_v3  ;;  %v9465_v22 = vmul.f32 %v1902_v29, %v9145_v39  ;;  %v1402_v28 = vadd.f32 2.0, %v6875_v61 }
 0x15d   :  { %6577 = vmatmul.mubr.bf16.gmra.mrb[20].mxu1 %v13645_v31  ;;  %v6879_v37 = vpop.eup %6878  ;;  %v1400_v51 = vadd.f32 2.0, %v6877_v52  ;;  %6892 = vpow2.f32 %v1197_v7  ;;  %v2028_v31 = vmul.f32 %v1900_v55, %v9150_v57  ;;  %v1207_v18 = vmul.f32 1.442695, %v1025_v40 }
 0x15e   :  { %6580 = vmatprep.mubr.bf16.mxu1 %v2137_v17  ;;  %v6881_v36 = vpop.eup %6880  ;;  %6894 = vrcp.f32 %v1654_v38  ;;  %v9470_v19 = vadd.f32 %v9271_v60, %v9287_v25  ;;  %v1657_v13 = vadd.f32 2.0, %v9453_v44  ;;  %v9473_v47 = vmul.f32 %v6873_v14, %v1399_v32 }
 0x15f   :  { %6896 = vrcp.f32 %v1652_v34  ;;  %v9477_v39 = vadd.f32 %v9271_v60, %v9293_v2  ;;  %v6883_v53 = vpop.eup %6882  ;;  %v9480_v49 = vmul.f32 %v1905_v41, %v9163_v59  ;;  %v9483_v57 = vmul.f32 %v1903_v9, %v9175_v50 }
 0x160   :  { %6898 = vpow2.f32 %v1207_v18  ;;  %v1023_v25 = vmin.f32 %v9470_v19, 20.0  ;;  %v9488_v17 = vmul.f32 %v6875_v61, %v1402_v28  ;;  %v9490_v34 = vmul.f32 %v6877_v52, %v1400_v51 }
 0x161   :  { %v9486_v21 = vpop.f32.mrb[68].mxu0  ;;  %v1405_v14 = vadd.f32 2.0, %v6883_v53  ;;  %v1026_v2 = vmin.f32 %v9477_v39, 20.0  ;;  %v6885_v3 = vpop.eup %6884  ;;  %v1906_v59 = vmul.f32 %v6879_v37, %v9357_v23  ;;  %v1904_v50 = vmul.f32 %v6881_v36, %v9368_v33 }
 0x162   :  { %v9493_v29 = vpop.f32.mrb[69].mxu0  ;;  %v1203_v55 = vmul.f32 1.442695, %v1023_v25  ;;  %v9499_v18 = vadd.f32 %v9271_v60, %v9305_v6  ;;  %v6887_v28 = vpop.eup %6886  ;;  %6900 = vrcp.f32 %v1657_v13  ;;  %v1655_v7 = vadd.f32 2.0, %v9473_v47 }
 0x163   :  { %v9501_v38 = vpop.f32.mrb[70].mxu0  ;;  %v1403_v61 = vadd.f32 2.0, %v6885_v3  ;;  %v13646_v32 = vpack.c.bf16 %v9408_v54, %v9402_v16  ;;  %v1209_v40 = vmul.f32 1.442695, %v1026_v2  ;;  %v6889_v33 = vpop.eup %6888  ;;  %v2139_v6 = vpack.c.bf16 %v2028_v31, %v2027_v30 }
 0x164   :  { %v9507_v23 = vpop.f32.mrb[71].mxu0  ;;  %6902 = vpow2.f32 %v1203_v55  ;;  %v1024_v52 = vmin.f32 %v9499_v18, 20.0  ;;  %v2140_v41 = vpack.c.bf16 %v9465_v22, %v9417_v4  ;;  %v1658_v9 = vadd.f32 2.0, %v9488_v17 }
 0x165   :  { %6581 = vmatmul.mubr.bf16.gmra.mrb[24].mxu1 %v13646_v32  ;;  %v1656_v37 = vadd.f32 2.0, %v9490_v34  ;;  %v9514_v51 = vmul.f32 %v6883_v53, %v1405_v14  ;;  %6904 = vpow2.f32 %v1209_v40  ;;  %v9516_v54 = vmul.f32 %v6885_v3, %v1403_v61 }
 0x166   :  { %v6891_v16 = vpop.eup %6890  ;;  %v1205_v36 = vmul.f32 1.442695, %v1024_v52  ;;  %6584 = vmatprep.mubr.bf16.mxu1 %v2139_v6  ;;  %v9520_v13 = vadd.f32 %v9271_v60, %v9347_v20  ;;  %v9524_v30 = vadd.f32 %v9271_v60, %v9351_v12  ;;  %v9527_v22 = vmul.f32 %v1906_v59, %v9216_v8 }
 0x167   :  { %v6893_v4 = vpop.eup %6892  ;;  %v2032_v31 = vmul.f32 %v1904_v50, %v9220_v15  ;;  %6906 = vrcp.f32 %v1655_v7  ;;  %v1406_v53 = vadd.f32 2.0, %v6891_v16  ;;  %v1909_v14 = vmul.f32 %v6887_v28, %v9393_v46 }
 0x168   :  { %v6895_v25 = vpop.eup %6894  ;;  %v1907_v2 = vmul.f32 %v6889_v33, %v9395_v48  ;;  %6908 = vpow2.f32 %v1205_v36  ;;  %v1029_v20 = vmin.f32 %v9520_v13, 20.0  ;;  %v1661_v55 = vadd.f32 2.0, %v9514_v51 }
 0x169   :  { %v9533_v3 = vpop.f32.mrb[72].mxu0  ;;  %v6897_v12 = vpop.eup %6896  ;;  %6910 = vrcp.f32 %v1658_v9  ;;  %v1404_v8 = vadd.f32 2.0, %v6893_v4  ;;  %v1027_v59 = vmin.f32 %v9524_v30, 20.0  ;;  %v1659_v46 = vadd.f32 2.0, %v9516_v54 }
 0x16a   :  { %v9537_v15 = vpop.f32.mrb[73].mxu0  ;;  %v6899_v50 = vpop.eup %6898  ;;  %6912 = vrcp.f32 %v1656_v37  ;;  %v1215_v28 = vmul.f32 1.442695, %v1029_v20  ;;  %v9542_v48 = vadd.f32 %v9271_v60, %v9355_v1  ;;  %v1910_v61 = vmul.f32 %v6895_v25, %v9426_v27 }
 0x16b   :  { %v9544_v7 = vpop.f32.mrb[74].mxu0  ;;  %v9547_v32 = vmul.f32 %v6891_v16, %v1406_v53  ;;  %v1409_v40 = vadd.f32 2.0, %v6899_v50  ;;  %v1211_v33 = vmul.f32 1.442695, %v1027_v59  ;;  %v9552_v6 = vmul.f32 %v1909_v14, %v9256_v5  ;;  %v13647_v14 = vld [vmem:[#allocation15_spill] sm:$0xff] }
 0x16c   :  { %v9549_v52 = vpop.f32.mrb[75].mxu0  ;;  %v9555_v9 = vmul.f32 %v1907_v2, %v9260_v62  ;;  %6914 = vpow2.f32 %v1215_v28  ;;  %v1030_v1 = vmin.f32 %v9542_v48, 20.0  ;;  %v6901_v37 = vpop.eup %6900  ;;  %v1908_v36 = vmul.f32 %v6897_v12, %v9432_v63 }
 0x16d   :  { %6585 = vmatmul.mubr.bf16.gmra.mrb[28].mxu1 %v2140_v41  ;;  %6916 = vrcp.f32 %v1661_v55  ;;  %v9559_v27 = vmul.f32 %v6893_v4, %v1404_v8  ;;  %v9563_v41 = vadd.f32 %v9271_v60, %v9366_v42  ;;  %v9565_v5 = vmul.f32 %v6899_v50, %v1409_v40 }
 0x16e   :  { %v6903_v16 = vpop.eup %6902  ;;  %6918 = vrcp.f32 %v1659_v46  ;;  %v1217_v53 = vmul.f32 1.442695, %v1030_v1  ;;  %v2141_v62 = vpack.c.bf16 %v2032_v31, %v9483_v57  ;;  %v9569_v2 = vmul.f32 %v1910_v61, %v13647_v14 }
 0x16f   :  { %v6905_v25 = vpop.eup %6904  ;;  %v1662_v63 = vadd.f32 2.0, %v9547_v32  ;;  %v1407_v20 = vadd.f32 2.0, %v6903_v16  ;;  %6920 = vpow2.f32 %v1211_v33  ;;  %v1913_v4 = vmul.f32 %v6901_v37, %v9453_v44 }
 0x170   :  { %v1410_v12 = vadd.f32 2.0, %v6905_v25  ;;  %6922 = vpow2.f32 %v1217_v53  ;;  %v1028_v42 = vmin.f32 %v9563_v41, 20.0  ;;  %6588 = vmatprep.mubr.bf16.mxu1 %v2141_v62  ;;  %v1660_v57 = vadd.f32 2.0, %v9559_v27  ;;  %v13650_v62 = vld [vmem:[#allocation16_spill] sm:$0xff] }
 0x171   :  { %v9574_v55 = vpop.f32.mrb[76].mxu0  ;;  %v6907_v8 = vpop.eup %6906  ;;  %v9577_v31 = vmul.f32 %v6903_v16, %v1407_v20  ;;  %v2142_v59 = vpack.c.bf16 %v9527_v22, %v9480_v49  ;;  %v9583_v50 = vadd.f32 %v9271_v60, %v9391_v26  ;;  %v1665_v28 = vadd.f32 2.0, %v9565_v5 }
 0x172   :  { %v9585_v44 = vpop.f32.mrb[77].mxu0  ;;  %v6909_v46 = vpop.eup %6908  ;;  %v9588_v61 = vmul.f32 %v6905_v25, %v1410_v12  ;;  %v1213_v40 = vmul.f32 1.442695, %v1028_v42  ;;  %v9592_v33 = vadd.f32 %v9271_v60, %v9398_v10  ;;  %6924 = vrcp.f32 %v1662_v63 }
 0x173   :  { %13648 = vst [vmem:[#allocation13_spill] sm:$0xff] %v9583_v50  ;;  %v9594_v1 = vpop.f32.mrb[78].mxu0  ;;  %v6911_v37 = vpop.eup %6910  ;;  %v1408_v49 = vadd.f32 2.0, %v6909_v46  ;;  %v1033_v26 = vmin.f32 %v9583_v50, 20.0  ;;  %v9599_v22 = vadd.f32 %v9271_v60, %v9405_v11  ;;  %v2036_v25 = vmul.f32 %v1908_v36, %v13650_v62 }
 0x174   :  { %v9601_v16 = vpop.f32.mrb[79].mxu0  ;;  %v6913_v53 = vpop.eup %6912  ;;  %v1911_v10 = vmul.f32 %v6907_v8, %v9473_v47  ;;  %v1663_v14 = vadd.f32 2.0, %v9577_v31  ;;  %6926 = vpow2.f32 %v1213_v40  ;;  %v1666_v63 = vadd.f32 2.0, %v9588_v61 }
 0x175   :  { %6589 = vmatmul.mubr.bf16.gmra.mrb[32].mxu1 %v2142_v59  ;;  %13649 = vst [vmem:[#allocation14_spill] sm:$0xff] %v9599_v22  ;;  %6928 = vrcp.f32 %v1660_v57  ;;  %v1223_v20 = vmul.f32 1.442695, %v1033_v26  ;;  %v1031_v12 = vmin.f32 %v9592_v33, 20.0  ;;  %v9608_v11 = vmul.f32 %v6909_v46, %v1408_v49 }
 0x176   :  { %v6915_v42 = vpop.eup %6914  ;;  %6930 = vrcp.f32 %v1665_v28  ;;  %v1034_v59 = vmin.f32 %v9599_v22, 20.0  ;;  %v9613_v36 = vadd.f32 %v9271_v60, %v9414_v58  ;;  %v9616_v8 = vmul.f32 %v1913_v4, %v9336_v24 }
 0x177   :  { %v6917_v47 = vpop.eup %6916  ;;  %v1413_v57 = vadd.f32 2.0, %v6915_v42  ;;  %6932 = vpow2.f32 %v1223_v20  ;;  %v1219_v40 = vmul.f32 1.442695, %v1031_v12  ;;  %v2143_v46 = vpack.c.bf16 %v2036_v25, %v9555_v9  ;;  %v13652_v25 = vld [vmem:[#allocation6_spill] sm:$0xff] }
 0x178   :  { %v6919_v26 = vpop.eup %6918  ;;  %6934 = vrcp.f32 %v1663_v14  ;;  %v1225_v62 = vmul.f32 1.442695, %v1034_v59  ;;  %v1032_v28 = vmin.f32 %v9613_v36, 20.0  ;;  %v1914_v58 = vmul.f32 %v6911_v37, %v9488_v17 }
 0x179   :  { %v9620_v49 = vpop.f32.mrb[80].mxu0  ;;  %v6921_v50 = vpop.eup %6920  ;;  %6936 = vrcp.f32 %v1666_v63  ;;  %v9623_v22 = vmul.f32 %v6915_v42, %v1413_v57  ;;  %v2144_v24 = vpack.c.bf16 %v9569_v2, %v9552_v6  ;;  %v1664_v14 = vadd.f32 2.0, %v9608_v11  ;;  %6592 = vmatprep.mubr.bf16.mxu1 %v2143_v46 }
 0x17a   :  { %13651 = vst [vmem:[#allocation15_spill] sm:$0xff] %v9620_v49  ;;  %v9627_v4 = vpop.f32.mrb[81].mxu0  ;;  %v6923_v20 = vpop.eup %6922  ;;  %v1411_v12 = vadd.f32 2.0, %v6921_v50  ;;  %6938 = vpow2.f32 %v1219_v40  ;;  %v1221_v59 = vmul.f32 1.442695, %v1032_v28  ;;  %v9633_v49 = vmul.f32 %v1911_v10, %v13652_v25 }
 0x17b   :  { %v9630_v9 = vpop.f32.mrb[82].mxu0  ;;  %v1912_v17 = vmul.f32 %v6913_v53, %v9490_v34  ;;  %v1669_v37 = vadd.f32 2.0, %v9623_v22  ;;  %6940 = vpow2.f32 %v1225_v62  ;;  %v1917_v2 = vmul.f32 %v6917_v47, %v9514_v51  ;;  %v13657_v47 = vld [vmem:[#allocation7_spill] sm:$0xff] }
 0x17c   :  { %v9637_v6 = vpop.f32.mrb[83].mxu0  ;;  %v1414_v63 = vadd.f32 2.0, %v6923_v20  ;;  %6942 = vpow2.f32 %v1221_v59  ;;  %v9642_v42 = vadd.f32 %v9271_v60, %v9439_v0  ;;  %v6925_v57 = vpop.eup %6924  ;;  %v1915_v10 = vmul.f32 %v6919_v26, %v9516_v54 }
 0x17d   :  { %6593 = vmatmul.mubr.bf16.gmra.mrb[36].mxu1 %v2144_v24  ;;  %13653 = vst [vmem:[#allocation16_spill] sm:$0xff] %v9637_v6  ;;  %v9645_v40 = vmul.f32 %v6921_v50, %v1411_v12  ;;  %v9649_v34 = vadd.f32 %v9271_v60, %v9446_v35  ;;  %v9653_v53 = vadd.f32 %v9271_v60, %v9450_v56  ;;  %6944 = vrcp.f32 %v1664_v14  ;;  %v13659_v56 = vld [vmem:[#allocation8_spill] sm:$0xff] }
 0x17e   :  { %13654 = vst [vmem:[#allocation6_spill] sm:$0xff] %v9642_v42  ;;  %v6927_v51 = vpop.eup %6926  ;;  %v2042_v62 = vmul.f32 %v1914_v58, %v13657_v47  ;;  %v1037_v0 = vmin.f32 %v9642_v42, 20.0  ;;  %v9659_v28 = vadd.f32 %v9271_v60, %v9459_v45  ;;  %6946 = vrcp.f32 %v1669_v37  ;;  %v13661_v45 = vld [vmem:[#allocation9_spill] sm:$0xff]  ;;  %v13662_v37 = vld [vmem:[#allocation10_spill] sm:$0xff] }
 0x17f   :  { %13655 = vst [vmem:[#allocation17_spill] sm:$0xff] %v9649_v34  ;;  %13656 = vst [vmem:[#allocation18_spill] sm:$0xff] %v9653_v53  ;;  %v6929_v54 = vpop.eup %6928  ;;  %v1412_v50 = vadd.f32 2.0, %v6927_v51  ;;  %v1035_v35 = vmin.f32 %v9649_v34, 20.0  ;;  %v1038_v26 = vmin.f32 %v9653_v53, 20.0  ;;  %v2040_v24 = vmul.f32 %v1912_v17, %v13659_v56 }
 0x180   :  { %13658 = vst [vmem:[#allocation7_spill] sm:$0xff] %v9659_v28  ;;  %v6931_v46 = vpop.eup %6930  ;;  %v9664_v12 = vmul.f32 %v6923_v20, %v1414_v63  ;;  %v1231_v58 = vmul.f32 1.442695, %v1037_v0  ;;  %v1036_v14 = vmin.f32 %v9659_v28, 20.0  ;;  %v9670_v47 = vmul.f32 %v1917_v2, %v13661_v45 }
 0x181   :  { %v9667_v59 = vpop.f32.mrb[84].mxu0  ;;  %v6933_v25 = vpop.eup %6932  ;;  %v9673_v42 = vmul.f32 %v1915_v10, %v13662_v37  ;;  %v1667_v34 = vadd.f32 2.0, %v9645_v40  ;;  %v1227_v53 = vmul.f32 1.442695, %v1035_v35  ;;  %v1918_v20 = vmul.f32 %v6925_v57, %v9547_v32 }
 0x182   :  { %13660 = vst [vmem:[#allocation8_spill] sm:$0xff] %v9667_v59  ;;  %v9676_v6 = vpop.f32.mrb[85].mxu0  ;;  %v6935_v17 = vpop.eup %6934  ;;  %v1417_v63 = vadd.f32 2.0, %v6933_v25  ;;  %6948 = vpow2.f32 %v1231_v58  ;;  %v1233_v0 = vmul.f32 1.442695, %v1038_v26  ;;  %v1916_v2 = vmul.f32 %v6929_v54, %v9559_v27 }
 0x183   :  { %13663 = vst [vmem:[#allocation9_spill] sm:$0xff] %v9676_v6  ;;  %v9679_v56 = vpop.f32.mrb[86].mxu0  ;;  %v6937_v28 = vpop.eup %6936  ;;  %v9682_v45 = vmul.f32 %v6927_v51, %v1412_v50  ;;  %6950 = vpow2.f32 %v1227_v53  ;;  %v1229_v10 = vmul.f32 1.442695, %v1036_v14  ;;  %v1921_v6 = vmul.f32 %v6931_v46, %v9565_v5 }
 0x184   :  { %v9684_v37 = vpop.f32.mrb[87].mxu0  ;;  %v6939_v35 = vpop.eup %6938  ;;  %v1670_v59 = vadd.f32 2.0, %v9664_v12  ;;  %6952 = vpow2.f32 %v1233_v0  ;;  %v2145_v32 = vpack.c.bf16 %v2040_v24, %v9633_v49  ;;  %v9689_v26 = vmul.f32 %v6933_v25, %v1417_v63 }
 0x185   :  { %v6941_v57 = vpop.eup %6940  ;;  %6954 = vrcp.f32 %v1667_v34  ;;  %v2146_v27 = vpack.c.bf16 %v2042_v62, %v9616_v8  ;;  %v9694_v53 = vadd.f32 %v9271_v60, %v9486_v21  ;;  %v9697_v54 = vmul.f32 %v1918_v20, %v9424_v43  ;;  %v13665_v62 = vld [vmem:[#allocation11_spill] sm:$0xff]  ;;  %v13666_v43 = vld [vmem:[#allocation12_spill] sm:$0xff] }
 0x186   :  { %v6943_v51 = vpop.eup %6942  ;;  %v1919_v5 = vmul.f32 %v6935_v17, %v9577_v31  ;;  %v1415_v50 = vadd.f32 2.0, %v6939_v35  ;;  %6956 = vpow2.f32 %v1229_v10  ;;  %6596 = vmatprep.mubr.bf16.mxu1 %v2145_v32  ;;  %v1668_v49 = vadd.f32 2.0, %v9682_v45 }
 0x187   :  { %v1416_v34 = vadd.f32 2.0, %v6943_v51  ;;  %6597 = vmatmul.mubr.bf16.gmra.mrb[40].mxu1 %v2146_v27  ;;  %v1041_v46 = vmin.f32 %v9694_v53, 20.0  ;;  %v9704_v8 = vadd.f32 %v9271_v60, %v9493_v29  ;;  %v6945_v21 = vpop.eup %6944  ;;  %v2044_v24 = vmul.f32 %v1916_v2, %v13665_v62 }
 0x188   :  { %v9708_v58 = vmul.f32 %v1921_v6, %v13666_v43  ;;  %6958 = vrcp.f32 %v1670_v59  ;;  %v9712_v31 = vadd.f32 %v9271_v60, %v9501_v38  ;;  %v6947_v25 = vpop.eup %6946  ;;  %v1922_v17 = vmul.f32 %v6937_v28, %v9588_v61 }
 0x189   :  { %13664 = vst [vmem:[#allocation10_spill] sm:$0xff] %v9704_v8  ;;  %v9714_v14 = vpop.f32.mrb[88].mxu0  ;;  %v1673_v20 = vadd.f32 2.0, %v9689_v26  ;;  %v1418_v29 = vadd.f32 2.0, %v6941_v57  ;;  %v1039_v63 = vmin.f32 %v9704_v8, 20.0  ;;  %v9721_v2 = vmul.f32 %v6939_v35, %v1415_v50 }
 0x18a   :  { %13667 = vst [vmem:[#allocation11_spill] sm:$0xff] %v9712_v31  ;;  %v9719_v0 = vpop.f32.mrb[89].mxu0  ;;  %v1239_v6 = vmul.f32 1.442695, %v1041_v46  ;;  %v1042_v59 = vmin.f32 %v9712_v31, 20.0  ;;  %v9726_v38 = vadd.f32 %v9271_v60, %v9507_v23  ;;  %v9731_v61 = vmul.f32 %v1919_v5, %v9470_v19 }
 0x18b   :  { %v9728_v10 = vpop.f32.mrb[90].mxu0  ;;  %6960 = vrcp.f32 %v1668_v49  ;;  %v9733_v28 = vmul.f32 %v6943_v51, %v1416_v34  ;;  %v1235_v32 = vmul.f32 1.442695, %v1039_v63  ;;  %v1920_v50 = vmul.f32 %v6945_v21, %v9608_v11 }
 0x18c   :  { %v9735_v27 = vpop.f32.mrb[91].mxu0  ;;  %v6949_v35 = vpop.eup %6948  ;;  %v1925_v46 = vmul.f32 %v6947_v25, %v9623_v22  ;;  %v1241_v62 = vmul.f32 1.442695, %v1042_v59  ;;  %v1040_v23 = vmin.f32 %v9726_v38, 20.0  ;;  %6962 = vrcp.f32 %v1673_v20 }
 0x18d   :  { %v6951_v43 = vpop.eup %6950  ;;  %v9740_v31 = vmul.f32 %v6941_v57, %v1418_v29  ;;  %v1421_v19 = vadd.f32 2.0, %v6949_v35  ;;  %v2147_v5 = vpack.c.bf16 %v2044_v24, %v9673_v42  ;;  %v1671_v49 = vadd.f32 2.0, %v9721_v2 }
 0x18e   :  { %v6953_v51 = vpop.eup %6952  ;;  %v1419_v34 = vadd.f32 2.0, %v6951_v43  ;;  %6964 = vpow2.f32 %v1239_v6  ;;  %v1237_v63 = vmul.f32 1.442695, %v1040_v23  ;;  %v1672_v11 = vadd.f32 2.0, %v9733_v28 }
 0x18f   :  { %v6955_v8 = vpop.eup %6954  ;;  %v9745_v22 = vmul.f32 %v6949_v35, %v1421_v19  ;;  %6966 = vpow2.f32 %v1235_v32  ;;  %6600 = vmatprep.mubr.bf16.mxu1 %v2147_v5  ;;  %v2148_v57 = vpack.c.bf16 %v9697_v54, %v9670_v47  ;;  %v9750_v25 = vmul.f32 %v1922_v17, %v9477_v39 }
 0x190   :  { %v6957_v21 = vpop.eup %6956  ;;  %v1422_v42 = vadd.f32 2.0, %v6953_v51  ;;  %6968 = vpow2.f32 %v1241_v62  ;;  %v9754_v24 = vadd.f32 %v9271_v60, %v9533_v3  ;;  %v2048_v29 = vmul.f32 %v1920_v50, %v9499_v18 }
 0x191   :  { %v9756_v20 = vpop.f32.mrb[92].mxu0  ;;  %v1674_v6 = vadd.f32 2.0, %v9740_v31  ;;  %v9760_v59 = vmul.f32 %v6951_v43, %v1419_v34  ;;  %6970 = vpow2.f32 %v1237_v63  ;;  %6601 = vmatmul.mubr.bf16.gmra.mrb[44].mxu1 %v2148_v57  ;;  %v1420_v54 = vadd.f32 2.0, %v6957_v21 }
 0x192   :  { %v9762_v47 = vpop.f32.mrb[93].mxu0  ;;  %v6959_v39 = vpop.eup %6958  ;;  %6972 = vrcp.f32 %v1671_v49  ;;  %v1045_v17 = vmin.f32 %v9754_v24, 20.0  ;;  %v9767_v3 = vadd.f32 %v9271_v60, %v9537_v15  ;;  %v9772_v18 = vmul.f32 %v1925_v46, %v9520_v13 }
 0x193   :  { %v9769_v32 = vpop.f32.mrb[94].mxu0  ;;  %v1923_v35 = vmul.f32 %v6955_v8, %v9645_v40  ;;  %6974 = vrcp.f32 %v1672_v11  ;;  %v1677_v50 = vadd.f32 2.0, %v9745_v22  ;;  %v9778_v23 = vmul.f32 %v6953_v51, %v1422_v42 }
 0x194   :  { %v9776_v62 = vpop.f32.mrb[95].mxu0  ;;  %v1247_v43 = vmul.f32 1.442695, %v1045_v17  ;;  %v1043_v19 = vmin.f32 %v9767_v3, 20.0  ;;  %v9783_v15 = vadd.f32 %v9271_v60, %v9544_v7  ;;  %v1926_v13 = vmul.f32 %v6959_v39, %v9664_v12 }
 0x195   :  { %v6961_v5 = vpop.eup %6960  ;;  %6976 = vrcp.f32 %v1674_v6  ;;  %v1675_v40 = vadd.f32 2.0, %v9760_v59  ;;  %v9789_v8 = vadd.f32 %v9271_v60, %v9549_v52  ;;  %v9791_v46 = vmul.f32 %v6957_v21, %v1420_v54 }
 0x196   :  { %6978 = vpow2.f32 %v1247_v43  ;;  %v1243_v51 = vmul.f32 1.442695, %v1043_v19  ;;  %v1046_v49 = vmin.f32 %v9783_v15, 20.0  ;;  %v6963_v34 = vpop.eup %6962  ;;  %v9795_v7 = vmul.f32 %v1923_v35, %v9524_v30 }
 0x197   :  { %6980 = vrcp.f32 %v1677_v50  ;;  %v1044_v12 = vmin.f32 %v9789_v8, 20.0  ;;  %v2149_v63 = vpack.c.bf16 %v2048_v29, %v9731_v61  ;;  %v1924_v57 = vmul.f32 %v6961_v5, %v9682_v45 }
 0x198   :  { %v6965_v11 = vpop.eup %6964  ;;  %v1678_v52 = vadd.f32 2.0, %v9778_v23  ;;  %6982 = vpow2.f32 %v1243_v51  ;;  %v1249_v21 = vmul.f32 1.442695, %v1046_v49  ;;  %v2150_v30 = vpack.c.bf16 %v9750_v25, %v9708_v58 }
 0x199   :  { %v9801_v42 = vpop.f32.mrb[96].mxu0  ;;  %v6967_v6 = vpop.eup %6966  ;;  %6984 = vrcp.f32 %v1675_v40  ;;  %v1425_v39 = vadd.f32 2.0, %v6965_v11  ;;  %v1245_v54 = vmul.f32 1.442695, %v1044_v12  ;;  %6604 = vmatprep.mubr.bf16.mxu1 %v2149_v63  ;;  %v1676_v29 = vadd.f32 2.0, %v9791_v46 }
 0x19a   :  { %v9805_v17 = vpop.f32.mrb[97].mxu0  ;;  %v6969_v61 = vpop.eup %6968  ;;  %v1423_v45 = vadd.f32 2.0, %v6967_v6  ;;  %6986 = vpow2.f32 %v1249_v21  ;;  %v9810_v35 = vadd.f32 %v9271_v60, %v9574_v55  ;;  %6605 = vmatmul.mubr.bf16.gmra.mrb[48].mxu1 %v2150_v30  ;;  %v9818_v58 = vadd.f32 %v9271_v60, %v9585_v44  ;;  %v9831_v60 = vld [vmem:[%s13507_s2] ss:$0 sm:$0xff] }
 0x19b   :  { %v9812_v50 = vpop.f32.mrb[98].mxu0  ;;  %v6971_v43 = vpop.eup %6970  ;;  %v9814_v19 = vmul.f32 %v6965_v11, %v1425_v39  ;;  %v1426_v5 = vadd.f32 2.0, %v6969_v61  ;;  %6988 = vpow2.f32 %v1245_v54  ;;  %v2054_v63 = vmul.f32 %v1926_v13, %v9542_v48 }
 0x19c   :  { %13668 = vst [vmem:[#allocation12_spill] sm:$0xff] %v9810_v35  ;;  %v9820_v25 = vpop.f32.mrb[99].mxu0  ;;  %v6973_v40 = vpop.eup %6972  ;;  %6990 = vrcp.f32 %v1678_v52  ;;  %v9822_v51 = vmul.f32 %v6967_v6, %v1423_v45  ;;  %v1424_v55 = vadd.f32 2.0, %v6971_v43  ;;  %v1049_v49 = vmin.f32 %v9810_v35, 20.0 }
 0x19d   :  { %13669 = vst [vmem:[#allocation19_spill] sm:$0xff] %v9820_v25  ;;  %v6975_v12 = vpop.eup %6974  ;;  %v1681_v11 = vadd.f32 2.0, %v9814_v19  ;;  %v1047_v21 = vmin.f32 %v9818_v58, 20.0  ;;  %v9835_v44 = vadd.f32 %v9831_v60, %v9594_v1  ;;  %v9838_v6 = vmul.f32 %v6969_v61, %v1426_v5 }
 0x19e   :  { %v1679_v52 = vadd.f32 2.0, %v9822_v51  ;;  %v9840_v39 = vmul.f32 %v6971_v43, %v1424_v55  ;;  %v9844_v48 = vadd.f32 %v9831_v60, %v9601_v16  ;;  %v2052_v54 = vmul.f32 %v1924_v57, %v9563_v41 }
 0x19f   :  { %13670 = vst [vmem:[#allocation20_spill] sm:$0xff] %v9835_v44  ;;  %v6977_v13 = vpop.eup %6976  ;;  %v9848_v30 = vmul.f32 %v6963_v34, %v9689_v26  ;;  %6992 = vrcp.f32 %v1676_v29  ;;  %v1255_v45 = vmul.f32 1.442695, %v1049_v49  ;;  %v1927_v35 = vmul.f32 %v6973_v40, %v9721_v2 }
 0x1a0   :  { %v6979_v1 = vpop.eup %6978  ;;  %6994 = vrcp.f32 %v1681_v11  ;;  %v1680_v61 = vadd.f32 2.0, %v9840_v39  ;;  %v1251_v43 = vmul.f32 1.442695, %v1047_v21  ;;  %v1928_v16 = vmul.f32 %v6975_v12, %v9733_v28 }
 0x1a1   :  { %v9852_v5 = vpop.f32.mrb[100].mxu0  ;;  %v6981_v55 = vpop.eup %6980  ;;  %6996 = vrcp.f32 %v1679_v52  ;;  %v1429_v25 = vadd.f32 2.0, %v6979_v1  ;;  %v1050_v41 = vmin.f32 %v9835_v44, 20.0  ;;  %v1930_v57 = vmul.f32 %v6977_v13, %v9740_v31 }
 0x1a2   :  { %13671 = vst [vmem:[#allocation21_spill] sm:$0xff] %v9852_v5  ;;  %v9856_v26 = vpop.f32.mrb[101].mxu0  ;;  %v6983_v34 = vpop.eup %6982  ;;  %v1682_v2 = vadd.f32 2.0, %v9838_v6  ;;  %6998 = vrcp.f32 %v1680_v61  ;;  %v1048_v29 = vmin.f32 %v9844_v48, 20.0  ;;  %v2151_v13 = vpack.c.bf16 %v2052_v54, %v9795_v7 }
 0x1a3   :  { %13672 = vst [vmem:[#allocation22_spill] sm:$0xff] %v9856_v26  ;;  %v9861_v40 = vpop.f32.mrb[102].mxu0  ;;  %v6985_v49 = vpop.eup %6984  ;;  %v9863_v11 = vmul.f32 %v6979_v1, %v1429_v25  ;;  %v1427_v28 = vadd.f32 2.0, %v6983_v34  ;;  %7000 = vpow2.f32 %v1255_v45  ;;  %v1257_v12 = vmul.f32 1.442695, %v1050_v41  ;;  %v13675_v41 = vld [vmem:[#allocation15_spill] sm:$0xff] }
 0x1a4   :  { %13673 = vst [vmem:[#allocation23_spill] sm:$0xff] %v9861_v40  ;;  %v9865_v21 = vpop.f32.mrb[103].mxu0  ;;  %v6987_v52 = vpop.eup %6986  ;;  %v2055_v26 = vmul.f32 %v1927_v35, %v9592_v33  ;;  %7002 = vpow2.f32 %v1251_v43  ;;  %v1253_v31 = vmul.f32 1.442695, %v1048_v29  ;;  %v2056_v5 = vmul.f32 %v1928_v16, %v9613_v36  ;;  %6608 = vmatprep.mubr.bf16.mxu1 %v2151_v13 }
 0x1a5   :  { %13674 = vst [vmem:[#allocation24_spill] sm:$0xff] %v9865_v21  ;;  %v6989_v61 = vpop.eup %6988  ;;  %v1933_v40 = vmul.f32 %v6981_v55, %v9745_v22  ;;  %v9871_v44 = vmul.f32 %v6983_v34, %v1427_v28  ;;  %7004 = vpow2.f32 %v1257_v12  ;;  %v1430_v45 = vadd.f32 2.0, %v6987_v52  ;;  %v13680_v21 = vld [vmem:[#allocation13_spill] sm:$0xff] }
 0x1a6   :  { %v6991_v25 = vpop.eup %6990  ;;  %7006 = vpow2.f32 %v1253_v31  ;;  %v2152_v1 = vpack.c.bf16 %v2054_v63, %v9772_v18  ;;  %v9876_v33 = vadd.f32 %v9831_v60, %v13675_v41  ;;  %v1685_v7 = vadd.f32 2.0, %v9863_v11  ;;  %v13676_v63 = vld [vmem:[#allocation16_spill] sm:$0xff]  ;;  %v13678_v31 = vld [vmem:[#allocation14_spill] sm:$0xff] }
 0x1a7   :  { %7008 = vrcp.f32 %v1682_v2  ;;  %v1428_v35 = vadd.f32 2.0, %v6989_v61  ;;  %v9881_v36 = vadd.f32 %v9831_v60, %v9627_v4  ;;  %v1683_v22 = vadd.f32 2.0, %v9871_v44 }
 0x1a8   :  { %6609 = vmatmul.mubr.bf16.gmra.mrb[52].mxu1 %v2152_v1  ;;  %v1053_v54 = vmin.f32 %v9876_v33, 20.0  ;;  %v9887_v18 = vadd.f32 %v9831_v60, %v9630_v9  ;;  %v9891_v43 = vadd.f32 %v9831_v60, %v13676_v63  ;;  %v1931_v34 = vmul.f32 %v6985_v49, %v9760_v59 }
 0x1a9   :  { %v9893_v55 = vpop.f32.mrb[104].mxu0  ;;  %v6993_v16 = vpop.eup %6992  ;;  %v1934_v4 = vmul.f32 %v6991_v25, %v9778_v23  ;;  %v1051_v2 = vmin.f32 %v9881_v36, 20.0  ;;  %v2153_v29 = vpack.c.bf16 %v2056_v5, %v2055_v26  ;;  %v2058_v9 = vmul.f32 %v1930_v57, %v13678_v31  ;;  %v13682_v57 = vld [vmem:[#allocation6_spill] sm:$0xff]  ;;  %v13683_v31 = vld [vmem:[#allocation17_spill] sm:$0xff] }
 0x1aa   :  { %13677 = vst [vmem:[#allocation15_spill] sm:$0xff] %v9893_v55  ;;  %v9898_v28 = vpop.f32.mrb[105].mxu0  ;;  %v6995_v12 = vpop.eup %6994  ;;  %v9901_v13 = vmul.f32 %v6987_v52, %v1430_v45  ;;  %v1263_v1 = vmul.f32 1.442695, %v1053_v54  ;;  %v1054_v41 = vmin.f32 %v9887_v18, 20.0  ;;  %v2057_v59 = vmul.f32 %v9848_v30, %v13680_v21  ;;  %v13684_v30 = vld [vmem:[#allocation18_spill] sm:$0xff] }
 0x1ab   :  { %v9904_v63 = vpop.f32.mrb[106].mxu0  ;;  %v6997_v55 = vpop.eup %6996  ;;  %7010 = vrcp.f32 %v1685_v7  ;;  %v1259_v23 = vmul.f32 1.442695, %v1051_v2  ;;  %v1052_v5 = vmin.f32 %v9891_v43, 20.0  ;;  %6612 = vmatprep.mubr.bf16.mxu1 %v2153_v29  ;;  %v9912_v52 = vmul.f32 %v1933_v40, %v13682_v57 }
 0x1ac   :  { %13679 = vst [vmem:[#allocation16_spill] sm:$0xff] %v9904_v63  ;;  %v9909_v26 = vpop.f32.mrb[107].mxu0  ;;  %v6999_v49 = vpop.eup %6998  ;;  %7012 = vrcp.f32 %v1683_v22  ;;  %v9914_v25 = vmul.f32 %v6989_v61, %v1428_v35  ;;  %v1265_v45 = vmul.f32 1.442695, %v1054_v41  ;;  %v9917_v63 = vmul.f32 %v1931_v34, %v13683_v31  ;;  %v13685_v41 = vld [vmem:[#allocation8_spill] sm:$0xff]  ;;  %v13690_v31 = vld [vmem:[#allocation7_spill] sm:$0xff] }
 0x1ad   :  { %13681 = vst [vmem:[#allocation14_spill] sm:$0xff] %v9909_v26  ;;  %v7001_v54 = vpop.eup %7000  ;;  %v9920_v21 = vmul.f32 %v1934_v4, %v13684_v30  ;;  %7014 = vpow2.f32 %v1263_v1  ;;  %v1261_v7 = vmul.f32 1.442695, %v1052_v5  ;;  %v1932_v29 = vmul.f32 %v6993_v16, %v9791_v46  ;;  %v13687_v46 = vld [vmem:[#allocation9_spill] sm:$0xff] }
 0x1ae   :  { %v7003_v2 = vpop.eup %7002  ;;  %v1686_v26 = vadd.f32 2.0, %v9901_v13  ;;  %7016 = vpow2.f32 %v1259_v23  ;;  %v2154_v40 = vpack.c.bf16 %v2058_v9, %v2057_v59  ;;  %v1937_v61 = vmul.f32 %v6995_v12, %v9814_v19 }
 0x1af   :  { %v7005_v22 = vpop.eup %7004  ;;  %v1431_v35 = vadd.f32 2.0, %v7003_v2  ;;  %7018 = vpow2.f32 %v1265_v45  ;;  %v9927_v34 = vadd.f32 %v9831_v60, %v13685_v41  ;;  %v1684_v1 = vadd.f32 2.0, %v9914_v25 }
 0x1b0   :  { %v7007_v4 = vpop.eup %7006  ;;  %v1433_v5 = vadd.f32 2.0, %v7001_v54  ;;  %7020 = vpow2.f32 %v1261_v7  ;;  %6613 = vmatmul.mubr.bf16.gmra.mrb[56].mxu1 %v2154_v40  ;;  %v9932_v16 = vadd.f32 %v9831_v60, %v13687_v46  ;;  %v9941_v57 = vadd.f32 %v9831_v60, %v9679_v56 }
 0x1b1   :  { %13686 = vst [vmem:[#allocation13_spill] sm:$0xff] %v9927_v34  ;;  %v9934_v9 = vpop.f32.mrb[108].mxu0  ;;  %v7009_v59 = vpop.eup %7008  ;;  %v9936_v19 = vmul.f32 %v7003_v2, %v1431_v35  ;;  %v1432_v12 = vadd.f32 2.0, %v7007_v4  ;;  %v1057_v23 = vmin.f32 %v9927_v34, 20.0  ;;  %v2060_v30 = vmul.f32 %v1932_v29, %v13690_v31 }
 0x1b2   :  { %13688 = vst [vmem:[#allocation6_spill] sm:$0xff] %v9934_v9  ;;  %v9943_v45 = vpop.f32.mrb[109].mxu0  ;;  %v9947_v7 = vmul.f32 %v6997_v55, %v9822_v51  ;;  %v1434_v40 = vadd.f32 2.0, %v7005_v22  ;;  %v1055_v41 = vmin.f32 %v9932_v16, 20.0  ;;  %v1936_v2 = vmul.f32 %v6999_v49, %v9840_v39 }
 0x1b3   :  { %13689 = vst [vmem:[#allocation17_spill] sm:$0xff] %v9943_v45  ;;  %v9950_v46 = vpop.f32.mrb[110].mxu0  ;;  %v1687_v35 = vadd.f32 2.0, %v9936_v19  ;;  %v9954_v9 = vmul.f32 %v7007_v4, %v1432_v12  ;;  %v1058_v56 = vmin.f32 %v9941_v57, 20.0  ;;  %v9960_v29 = vmul.f32 %v1937_v61, %v9694_v53 }
 0x1b4   :  { %13691 = vst [vmem:[#allocation18_spill] sm:$0xff] %v9950_v46  ;;  %v9957_v34 = vpop.f32.mrb[111].mxu0  ;;  %v1938_v51 = vmul.f32 %v7009_v59, %v9838_v6  ;;  %7022 = vrcp.f32 %v1686_v26  ;;  %v1271_v55 = vmul.f32 1.442695, %v1057_v23  ;;  %v9963_v46 = vmul.f32 %v7001_v54, %v1433_v5 }
 0x1b5   :  { %13692 = vst [vmem:[#allocation8_spill] sm:$0xff] %v9957_v34  ;;  %v7011_v31 = vpop.eup %7010  ;;  %7024 = vrcp.f32 %v1684_v1  ;;  %v1688_v39 = vadd.f32 2.0, %v9954_v9  ;;  %v1267_v49 = vmul.f32 1.442695, %v1055_v41  ;;  %v9966_v12 = vmul.f32 %v7005_v22, %v1434_v40 }
 0x1b6   :  { %v7013_v4 = vpop.eup %7012  ;;  %7026 = vrcp.f32 %v1687_v35  ;;  %v1273_v45 = vmul.f32 1.442695, %v1058_v56  ;;  %v9970_v53 = vadd.f32 %v9831_v60, %v9684_v37  ;;  %v9973_v6 = vmul.f32 %v1936_v2, %v9726_v38 }
 0x1b7   :  { %v7015_v61 = vpop.eup %7014  ;;  %7028 = vrcp.f32 %v1688_v39  ;;  %v2155_v26 = vpack.c.bf16 %v2060_v30, %v9917_v63  ;;  %v2156_v54 = vpack.c.bf16 %v9920_v21, %v9912_v52  ;;  %v1941_v5 = vmul.f32 %v7011_v31, %v9863_v11 }
 0x1b8   :  { %v7017_v1 = vpop.eup %7016  ;;  %v1437_v22 = vadd.f32 2.0, %v7015_v61  ;;  %7030 = vpow2.f32 %v1271_v55  ;;  %v1056_v59 = vmin.f32 %v9970_v53, 20.0  ;;  %v1689_v40 = vadd.f32 2.0, %v9963_v46 }
 0x1b9   :  { %v9980_v23 = vpop.f32.mrb[112].mxu0  ;;  %v7019_v37 = vpop.eup %7018  ;;  %v1435_v38 = vadd.f32 2.0, %v7017_v1  ;;  %7032 = vpow2.f32 %v1267_v49  ;;  %6616 = vmatprep.mubr.bf16.mxu1 %v2155_v26  ;;  %v9985_v63 = vadd.f32 %v9831_v60, %v9714_v14  ;;  %v1690_v11 = vadd.f32 2.0, %v9966_v12 }
 0x1ba   :  { %13693 = vst [vmem:[#allocation9_spill] sm:$0xff] %v9980_v23  ;;  %v9987_v52 = vpop.f32.mrb[113].mxu0  ;;  %v7021_v21 = vpop.eup %7020  ;;  %v9990_v30 = vmul.f32 %v7015_v61, %v1437_v22  ;;  %7034 = vpow2.f32 %v1273_v45  ;;  %v1269_v41 = vmul.f32 1.442695, %v1056_v59  ;;  %6617 = vmatmul.mubr.bf16.gmra.mrb[60].mxu1 %v2156_v54  ;;  %v1438_v56 = vadd.f32 2.0, %v7019_v37 }
 0x1bb   :  { %13694 = vst [vmem:[#allocation7_spill] sm:$0xff] %v9987_v52  ;;  %v9992_v2 = vpop.f32.mrb[114].mxu0  ;;  %v9994_v35 = vmul.f32 %v7017_v1, %v1435_v38  ;;  %v1061_v55 = vmin.f32 %v9985_v63, 20.0  ;;  %v9999_v14 = vadd.f32 %v9831_v60, %v9719_v0  ;;  %v1436_v49 = vadd.f32 2.0, %v7021_v21 }
 0x1bc   :  { %13695 = vst [vmem:[#allocation25_spill] sm:$0xff] %v9992_v2  ;;  %v10001_v31 = vpop.f32.mrb[115].mxu0  ;;  %v1693_v39 = vadd.f32 2.0, %v9990_v30  ;;  %7036 = vpow2.f32 %v1269_v41  ;;  %v10006_v45 = vadd.f32 %v9831_v60, %v9728_v10  ;;  %v1939_v61 = vmul.f32 %v7013_v4, %v9871_v44  ;;  %v13697_v41 = vld [vmem:[#allocation10_spill] sm:$0xff] }
 0x1bd   :  { %13696 = vst [vmem:[#allocation26_spill] sm:$0xff] %v10001_v31  ;;  %7038 = vrcp.f32 %v1689_v40  ;;  %v1691_v26 = vadd.f32 2.0, %v9994_v35  ;;  %v1059_v54 = vmin.f32 %v9999_v14, 20.0  ;;  %v1279_v0 = vmul.f32 1.442695, %v1061_v55  ;;  %v13698_v31 = vld [vmem:[#allocation11_spill] sm:$0xff] }
 0x1be   :  { %v7023_v1 = vpop.eup %7022  ;;  %7040 = vrcp.f32 %v1690_v11  ;;  %v1062_v22 = vmin.f32 %v10006_v45, 20.0  ;;  %v10014_v59 = vadd.f32 %v9831_v60, %v9735_v27  ;;  %v2063_v10 = vmul.f32 %v9947_v7, %v13697_v41 }
 0x1bf   :  { %v7025_v38 = vpop.eup %7024  ;;  %v2066_v44 = vmul.f32 %v1938_v51, %v13698_v31  ;;  %v10019_v4 = vmul.f32 %v7019_v37, %v1438_v56  ;;  %v1275_v40 = vmul.f32 1.442695, %v1059_v54  ;;  %7042 = vrcp.f32 %v1693_v39 }
 0x1c0   :  { %v7027_v2 = vpop.eup %7026  ;;  %v10021_v52 = vmul.f32 %v7021_v21, %v1436_v49  ;;  %v1281_v11 = vmul.f32 1.442695, %v1062_v22  ;;  %v1060_v55 = vmin.f32 %v10014_v59, 20.0  ;;  %v10027_v34 = vmul.f32 %v1941_v5, %v9754_v24 }
 0x1c1   :  { %v10024_v23 = vpop.f32.mrb[116].mxu0  ;;  %v7029_v27 = vpop.eup %7028  ;;  %v10030_v7 = vmul.f32 %v1939_v61, %v9767_v3  ;;  %7044 = vrcp.f32 %v1691_v26  ;;  %v2157_v51 = vpack.c.bf16 %v9973_v6, %v2063_v10  ;;  %v1942_v21 = vmul.f32 %v7023_v1, %v9901_v13 }
 0x1c2   :  { %v10033_v37 = vpop.f32.mrb[117].mxu0  ;;  %v7031_v56 = vpop.eup %7030  ;;  %v1940_v31 = vmul.f32 %v7025_v38, %v9914_v25  ;;  %7046 = vpow2.f32 %v1279_v0  ;;  %v1277_v39 = vmul.f32 1.442695, %v1060_v55  ;;  %v1694_v24 = vadd.f32 2.0, %v10019_v4 }
 0x1c3   :  { %v10037_v49 = vpop.f32.mrb[118].mxu0  ;;  %v7033_v54 = vpop.eup %7032  ;;  %v1441_v5 = vadd.f32 2.0, %v7031_v56  ;;  %7048 = vpow2.f32 %v1275_v40  ;;  %6620 = vmatprep.mubr.bf16.mxu1 %v2157_v51  ;;  %v2158_v3 = vpack.c.bf16 %v2066_v44, %v9960_v29  ;;  %v1692_v26 = vadd.f32 2.0, %v10021_v52 }
 0x1c4   :  { %v10041_v6 = vpop.f32.mrb[119].mxu0  ;;  %v7035_v61 = vpop.eup %7034  ;;  %v1439_v13 = vadd.f32 2.0, %v7033_v54  ;;  %7050 = vpow2.f32 %v1281_v11  ;;  %v10046_v25 = vadd.f32 %v9831_v60, %v9756_v20  ;;  %v10052_v22 = vadd.f32 %v9831_v60, %v9762_v47 }
 0x1c5   :  { %13699 = vst [vmem:[#allocation10_spill] sm:$0xff] %v10041_v6  ;;  %v10048_v1 = vmul.f32 %v7031_v56, %v1441_v5  ;;  %v1442_v0 = vadd.f32 2.0, %v7035_v61  ;;  %7052 = vpow2.f32 %v1277_v39  ;;  %6621 = vmatmul.mubr.bf16.gmra.mrb[64].mxu1 %v2158_v3  ;;  %v10059_v10 = vadd.f32 %v9831_v60, %v9769_v32 }
 0x1c6   :  { %v7037_v29 = vpop.eup %7036  ;;  %v10054_v38 = vmul.f32 %v7033_v54, %v1439_v13  ;;  %v1065_v41 = vmin.f32 %v10046_v25, 20.0  ;;  %v10063_v20 = vadd.f32 %v9831_v60, %v9776_v62  ;;  %v1943_v40 = vmul.f32 %v7027_v2, %v9936_v19 }
 0x1c7   :  { %v7039_v44 = vpop.eup %7038  ;;  %v1697_v11 = vadd.f32 2.0, %v10048_v1  ;;  %v1440_v47 = vadd.f32 2.0, %v7037_v29  ;;  %v1063_v55 = vmin.f32 %v10052_v22, 20.0  ;;  %v1944_v56 = vmul.f32 %v7029_v27, %v9954_v9 }
 0x1c8   :  { %v7041_v51 = vpop.eup %7040  ;;  %v1287_v39 = vmul.f32 1.442695, %v1065_v41  ;;  %v1066_v54 = vmin.f32 %v10059_v10, 20.0  ;;  %v1064_v32 = vmin.f32 %v10063_v20, 20.0  ;;  %v2068_v62 = vmul.f32 %v1940_v31, %v9789_v8 }
 0x1c9   :  { %v10071_v5 = vpop.f32.mrb[120].mxu0  ;;  %7054 = vrcp.f32 %v1694_v24  ;;  %v1695_v19 = vadd.f32 2.0, %v10054_v38  ;;  %v10075_v2 = vmul.f32 %v7035_v61, %v1442_v0  ;;  %v10079_v13 = vpop.eup %7042  ;;  %v2070_v9 = vmul.f32 %v1942_v21, %v9783_v15 }
 0x1ca   :  { %13700 = vst [vmem:[#allocation11_spill] sm:$0xff] %v10071_v5  ;;  %v10077_v3 = vpop.f32.mrb[121].mxu0  ;;  %7056 = vrcp.f32 %v1692_v26  ;;  %v10082_v27 = vmul.f32 %v7037_v29, %v1440_v47  ;;  %v1283_v41 = vmul.f32 1.442695, %v1063_v55  ;;  %v1945_v8 = vmul.f32 %v7039_v44, %v9963_v46 }
 0x1cb   :  { %13701 = vst [vmem:[#allocation27_spill] sm:$0xff] %v10077_v3  ;;  %v10084_v6 = vpop.f32.mrb[122].mxu0  ;;  %v7045_v5 = vpop.eup %7044  ;;  %v1946_v31 = vmul.f32 %v7041_v51, %v9966_v12  ;;  %7058 = vrcp.f32 %v1697_v11  ;;  %v1289_v24 = vmul.f32 1.442695, %v1066_v54  ;;  %v10091_v3 = vmul.f32 %v1943_v40, %v9818_v58 }
 0x1cc   :  { %v10088_v61 = vpop.f32.mrb[123].mxu0  ;;  %v7047_v0 = vpop.eup %7046  ;;  %v10094_v15 = vmul.f32 %v1944_v56, %v9844_v48  ;;  %7060 = vpow2.f32 %v1287_v39  ;;  %v1285_v21 = vmul.f32 1.442695, %v1064_v32  ;;  %v1698_v29 = vadd.f32 2.0, %v10075_v2 }
 0x1cd   :  { %13702 = vst [vmem:[#allocation28_spill] sm:$0xff] %v10088_v61  ;;  %v7049_v26 = vpop.eup %7048  ;;  %7062 = vrcp.f32 %v1695_v19  ;;  %v1445_v46 = vadd.f32 2.0, %v7047_v0  ;;  %v2159_v12 = vpack.c.bf16 %v2068_v62, %v10030_v7  ;;  %v1696_v11 = vadd.f32 2.0, %v10082_v27 }
 0x1ce   :  { %v7051_v44 = vpop.eup %7050  ;;  %v1443_v47 = vadd.f32 2.0, %v7049_v26  ;;  %7064 = vpow2.f32 %v1283_v41  ;;  %v2160_v58 = vpack.c.bf16 %v2070_v9, %v10027_v34  ;;  %v10104_v51 = vadd.f32 %v9831_v60, %v9801_v42  ;;  %v13705_v41 = vld [vmem:[#allocation19_spill] sm:$0xff] }
 0x1cf   :  { %v7053_v40 = vpop.eup %7052  ;;  %v10100_v55 = vmul.f32 %v7047_v0, %v1445_v46  ;;  %v1446_v48 = vadd.f32 2.0, %v7051_v44  ;;  %7066 = vpow2.f32 %v1289_v24  ;;  %6624 = vmatprep.mubr.bf16.mxu1 %v2159_v12  ;;  %v10110_v39 = vadd.f32 %v9831_v60, %v9805_v17 }
 0x1d0   :  { %v10106_v56 = vmul.f32 %v7049_v26, %v1443_v47  ;;  %v1444_v7 = vadd.f32 2.0, %v7053_v40  ;;  %7068 = vpow2.f32 %v1285_v21  ;;  %6625 = vmatmul.mubr.bf16.gmra.mrb[68].mxu1 %v2160_v58  ;;  %v1069_v62 = vmin.f32 %v10104_v51, 20.0 }
 0x1d1   :  { %v10112_v34 = vpop.f32.mrb[124].mxu0  ;;  %v1701_v54 = vadd.f32 2.0, %v10100_v55  ;;  %v10115_v32 = vmul.f32 %v7051_v44, %v1446_v48  ;;  %v10120_v42 = vadd.f32 %v9831_v60, %v9812_v50  ;;  %7070 = vrcp.f32 %v1698_v29  ;;  %v13708_v44 = vld [vmem:[#allocation20_spill] sm:$0xff] }
 0x1d2   :  { %13703 = vst [vmem:[#allocation29_spill] sm:$0xff] %v10112_v34  ;;  %v10122_v19 = vpop.f32.mrb[125].mxu0  ;;  %v1699_v9 = vadd.f32 2.0, %v10106_v56  ;;  %v1067_v17 = vmin.f32 %v10110_v39, 20.0  ;;  %v10128_v24 = vadd.f32 %v9831_v60, %v13705_v41  ;;  %7072 = vrcp.f32 %v1696_v11 }
 0x1d3   :  { %13704 = vst [vmem:[#allocation30_spill] sm:$0xff] %v10122_v19  ;;  %v10130_v0 = vpop.f32.mrb[126].mxu0  ;;  %v7055_v21 = vpop.eup %7054  ;;  %v1702_v26 = vadd.f32 2.0, %v10115_v32  ;;  %v1295_v46 = vmul.f32 1.442695, %v1069_v62  ;;  %v1070_v50 = vmin.f32 %v10120_v42, 20.0  ;;  %v2074_v47 = vmul.f32 %v1946_v31, %v13708_v44 }
 0x1d4   :  { %13706 = vst [vmem:[#allocation19_spill] sm:$0xff] %v10130_v0  ;;  %v10134_v12 = vpop.f32.mrb[127].mxu0  ;;  %v7057_v29 = vpop.eup %7056  ;;  %7074 = vrcp.f32 %v1701_v54  ;;  %v10137_v58 = vmul.f32 %v7053_v40, %v1444_v7  ;;  %v1291_v48 = vmul.f32 1.442695, %v1067_v17  ;;  %v13709_v19 = vld [vmem:[#allocation12_spill] sm:$0xff]  ;;  %v1068_v11 = vmin.f32 %v10128_v24, 20.0 }
 0x1d5   :  { %13707 = vst [vmem:[#allocation31_spill] sm:$0xff] %v10134_v12  ;;  %v7059_v41 = vpop.eup %7058  ;;  %v2073_v34 = vmul.f32 %v1945_v8, %v13709_v19  ;;  %7076 = vrcp.f32 %v1699_v9  ;;  %v1297_v0 = vmul.f32 1.442695, %v1070_v50  ;;  %v1949_v62 = vmul.f32 %v10079_v13, %v9990_v30 }
 0x1d6   :  { %v7061_v61 = vpop.eup %7060  ;;  %v1947_v12 = vmul.f32 %v7045_v5, %v9994_v35  ;;  %7078 = vrcp.f32 %v1702_v26  ;;  %v2161_v31 = vpack.c.bf16 %v10094_v15, %v10091_v3  ;;  %v1950_v7 = vmul.f32 %v7055_v21, %v10019_v4  ;;  %v13710_v3 = vld [vmem:[#allocation21_spill] sm:$0xff] }
 0x1d7   :  { %v7063_v40 = vpop.eup %7062  ;;  %v1449_v54 = vadd.f32 2.0, %v7061_v61  ;;  %7080 = vpow2.f32 %v1295_v46  ;;  %v1293_v8 = vmul.f32 1.442695, %v1068_v11  ;;  %v1948_v9 = vmul.f32 %v7057_v29, %v10021_v52  ;;  %v13712_v52 = vld [vmem:[#allocation22_spill] sm:$0xff] }
 0x1d8   :  { %v7065_v19 = vpop.eup %7064  ;;  %v1700_v17 = vadd.f32 2.0, %v10137_v58  ;;  %7082 = vpow2.f32 %v1291_v48  ;;  %6628 = vmatprep.mubr.bf16.mxu1 %v2161_v31  ;;  %v2162_v30 = vpack.c.bf16 %v2074_v47, %v2073_v34  ;;  %v10153_v15 = vadd.f32 %v9831_v60, %v13710_v3  ;;  %v13713_v47 = vld [vmem:[#allocation23_spill] sm:$0xff]  ;;  %v13715_v48 = vld [vmem:[#allocation24_spill] sm:$0xff] }
 0x1d9   :  { %v7067_v13 = vpop.eup %7066  ;;  %v10149_v35 = vmul.f32 %v7061_v61, %v1449_v54  ;;  %v1447_v5 = vadd.f32 2.0, %v7065_v19  ;;  %7084 = vpow2.f32 %v1297_v0  ;;  %v2077_v21 = vmul.f32 %v1949_v62, %v9876_v33 }
 0x1da   :  { %13711 = vst [vmem:[#allocation20_spill] sm:$0xff] %v10153_v15  ;;  %v7069_v4 = vpop.eup %7068  ;;  %v1450_v26 = vadd.f32 2.0, %v7067_v13  ;;  %7086 = vpow2.f32 %v1293_v8  ;;  %6629 = vmatmul.mubr.bf16.gmra.mrb[72].mxu1 %v2162_v30  ;;  %v10158_v46 = vadd.f32 %v9831_v60, %v13712_v52  ;;  %v1073_v0 = vmin.f32 %v10153_v15, 20.0 }
 0x1db   :  { %v1705_v34 = vadd.f32 2.0, %v10149_v35  ;;  %v10161_v61 = vmul.f32 %v7065_v19, %v1447_v5  ;;  %v1448_v50 = vadd.f32 2.0, %v7069_v4  ;;  %v7071_v29 = vpop.eup %7070  ;;  %7088 = vrcp.f32 %v1700_v17 }
 0x1dc   :  { %v1071_v44 = vmin.f32 %v10158_v46, 20.0  ;;  %v10167_v33 = vadd.f32 %v9831_v60, %v13713_v47  ;;  %v10171_v11 = vadd.f32 %v9831_v60, %v13715_v48  ;;  %v7073_v62 = vpop.eup %7072  ;;  %v2078_v31 = vmul.f32 %v1950_v7, %v9887_v18 }
 0x1dd   :  { %v2076_v54 = vmul.f32 %v1948_v9, %v9891_v43  ;;  %v1703_v8 = vadd.f32 2.0, %v10161_v61  ;;  %v10176_v19 = vmul.f32 %v7069_v4, %v1448_v50  ;;  %v1951_v30 = vmul.f32 %v7063_v40, %v10054_v38 }
 0x1de   :  { %13714 = vst [vmem:[#allocation12_spill] sm:$0xff] %v10167_v33  ;;  %v7075_v17 = vpop.eup %7074  ;;  %v10179_v5 = vmul.f32 %v7067_v13, %v1450_v26  ;;  %v1303_v3 = vmul.f32 1.442695, %v1073_v0  ;;  %v1074_v52 = vmin.f32 %v10167_v33, 20.0  ;;  %7090 = vrcp.f32 %v1705_v34 }
 0x1df   :  { %v7077_v47 = vpop.eup %7076  ;;  %v1704_v48 = vadd.f32 2.0, %v10176_v19  ;;  %v1299_v15 = vmul.f32 1.442695, %v1071_v44  ;;  %v1072_v18 = vmin.f32 %v10171_v11, 20.0  ;;  %v2075_v7 = vmul.f32 %v1947_v12, %v9881_v36 }
 0x1e0   :  { %v7079_v43 = vpop.eup %7078  ;;  %v1952_v9 = vmul.f32 %v7073_v62, %v10082_v27  ;;  %7092 = vrcp.f32 %v1703_v8  ;;  %v1305_v4 = vmul.f32 1.442695, %v1074_v52  ;;  %v1953_v40 = vmul.f32 %v7059_v41, %v10048_v1 }
 0x1e1   :  { %v7081_v38 = vpop.eup %7080  ;;  %v1954_v13 = vmul.f32 %v7071_v29, %v10075_v2  ;;  %7094 = vrcp.f32 %v1704_v48  ;;  %v1301_v26 = vmul.f32 1.442695, %v1072_v18  ;;  %v1706_v50 = vadd.f32 2.0, %v10179_v5  ;;  %v13716_v2 = vld [vmem:[#allocation15_spill] sm:$0xff]  ;;  %v13719_v48 = vld [vmem:[#allocation14_spill] sm:$0xff] }
 0x1e2   :  { %v7083_v34 = vpop.eup %7082  ;;  %v1453_v0 = vadd.f32 2.0, %v7081_v38  ;;  %7096 = vpow2.f32 %v1303_v3  ;;  %v2163_v44 = vpack.c.bf16 %v2076_v54, %v2075_v7  ;;  %v2079_v36 = vmul.f32 %v1951_v30, %v9932_v16  ;;  %v13717_v30 = vld [vmem:[#allocation16_spill] sm:$0xff] }
 0x1e3   :  { %v7085_v33 = vpop.eup %7084  ;;  %v1451_v12 = vadd.f32 2.0, %v7083_v34  ;;  %7098 = vpow2.f32 %v1299_v15  ;;  %v2164_v27 = vpack.c.bf16 %v2078_v31, %v2077_v21  ;;  %v2080_v8 = vmul.f32 %v1952_v9, %v9970_v53 }
 0x1e4   :  { %v7087_v62 = vpop.eup %7086  ;;  %v10191_v1 = vmul.f32 %v7081_v38, %v1453_v0  ;;  %7100 = vpow2.f32 %v1305_v4  ;;  %6632 = vmatprep.mubr.bf16.mxu1 %v2163_v44  ;;  %v10195_v41 = vadd.f32 %v9831_v60, %v13716_v2  ;;  %v1957_v29 = vmul.f32 %v7075_v17, %v10100_v55 }
 0x1e5   :  { %v10198_v54 = vmul.f32 %v7083_v34, %v1451_v12  ;;  %7102 = vpow2.f32 %v1301_v26  ;;  %6633 = vmatmul.mubr.bf16.gmra.mrb[76].mxu1 %v2164_v27  ;;  %v10202_v16 = vadd.f32 %v9831_v60, %v9898_v28  ;;  %v10204_v15 = vpop.f32.mrb[128].mxu0  ;;  %v7089_v53 = vpop.eup %7088  ;;  %v10210_v3 = vadd.f32 %v9831_v60, %v13717_v30  ;;  %v13720_v30 = vld [vmem:[#allocation13_spill] sm:$0xff] }
 0x1e6   :  { %7104 = vrcp.f32 %v1706_v50  ;;  %v1709_v21 = vadd.f32 2.0, %v10191_v1  ;;  %v1077_v31 = vmin.f32 %v10195_v41, 20.0  ;;  %v10212_v55 = vpop.f32.mrb[129].mxu0  ;;  %v1454_v52 = vadd.f32 2.0, %v7085_v33 }
 0x1e7   :  { %13718 = vst [vmem:[#allocation21_spill] sm:$0xff] %v10212_v55  ;;  %v1707_v17 = vadd.f32 2.0, %v10198_v54  ;;  %v1075_v28 = vmin.f32 %v10202_v16, 20.0  ;;  %v10218_v18 = vadd.f32 %v9831_v60, %v13719_v48  ;;  %v10220_v7 = vpop.f32.mrb[130].mxu0  ;;  %v2082_v9 = vmul.f32 %v1954_v13, %v9941_v57 }
 0x1e8   :  { %v1955_v4 = vmul.f32 %v7077_v47, %v10106_v56  ;;  %v1452_v38 = vadd.f32 2.0, %v7087_v62  ;;  %v1311_v26 = vmul.f32 1.442695, %v1077_v31  ;;  %v10224_v34 = vpop.f32.mrb[131].mxu0  ;;  %v7091_v50 = vpop.eup %7090  ;;  %v1958_v0 = vmul.f32 %v7079_v43, %v10115_v32 }
 0x1e9   :  { %v1956_v44 = vmul.f32 %v7089_v53, %v10137_v58  ;;  %v1307_v12 = vmul.f32 1.442695, %v1075_v28  ;;  %v1078_v27 = vmin.f32 %v10210_v3, 20.0  ;;  %v2081_v48 = vmul.f32 %v1953_v40, %v13720_v30 }
 0x1ea   :  { %v7093_v2 = vpop.eup %7092  ;;  %v10231_v55 = vmul.f32 %v1957_v29, %v9985_v63  ;;  %7106 = vrcp.f32 %v1709_v21  ;;  %v1076_v57 = vmin.f32 %v10218_v18, 20.0  ;;  %v10234_v47 = vmul.f32 %v7085_v33, %v1454_v52 }
 0x1eb   :  { %v7095_v56 = vpop.eup %7094  ;;  %7108 = vrcp.f32 %v1707_v17  ;;  %v1313_v13 = vmul.f32 1.442695, %v1078_v27  ;;  %v2165_v32 = vpack.c.bf16 %v2080_v8, %v2079_v36  ;;  %v2083_v58 = vmul.f32 %v1955_v4, %v9999_v14  ;;  %v13721_v8 = vld [vmem:[#allocation6_spill] sm:$0xff]  ;;  %v13724_v27 = vld [vmem:[#allocation8_spill] sm:$0xff] }
 0x1ec   :  { %v7097_v43 = vpop.eup %7096  ;;  %v10237_v53 = vmul.f32 %v7087_v62, %v1452_v38  ;;  %7110 = vpow2.f32 %v1311_v26  ;;  %v1309_v31 = vmul.f32 1.442695, %v1076_v57  ;;  %v10240_v63 = vmul.f32 %v1958_v0, %v10006_v45  ;;  %v13722_v45 = vld [vmem:[#allocation17_spill] sm:$0xff]  ;;  %v13723_v26 = vld [vmem:[#allocation18_spill] sm:$0xff] }
 0x1ed   :  { %v7099_v40 = vpop.eup %7098  ;;  %v2084_v29 = vmul.f32 %v1956_v44, %v10014_v59  ;;  %7112 = vpow2.f32 %v1307_v12  ;;  %6636 = vmatprep.mubr.bf16.mxu1 %v2165_v32  ;;  %v2166_v21 = vpack.c.bf16 %v2082_v9, %v2081_v48  ;;  %v1961_v17 = vmul.f32 %v7091_v50, %v10149_v35 }
 0x1ee   :  { %v7101_v33 = vpop.eup %7100  ;;  %v1457_v36 = vadd.f32 2.0, %v7097_v43  ;;  %7114 = vpow2.f32 %v1313_v13  ;;  %v10246_v14 = vadd.f32 %v9831_v60, %v13721_v8  ;;  %v1710_v52 = vadd.f32 2.0, %v10234_v47 }
 0x1ef   :  { %v7103_v62 = vpop.eup %7102  ;;  %v1455_v28 = vadd.f32 2.0, %v7099_v40  ;;  %7116 = vpow2.f32 %v1309_v31  ;;  %6637 = vmatmul.mubr.bf16.gmra.mrb[80].mxu1 %v2166_v21  ;;  %v10251_v59 = vadd.f32 %v9831_v60, %v13722_v45  ;;  %v1708_v4 = vadd.f32 2.0, %v10237_v53 }
 0x1f0   :  { %v7105_v9 = vpop.eup %7104  ;;  %v1456_v35 = vadd.f32 2.0, %v7103_v62  ;;  %v1081_v38 = vmin.f32 %v10246_v14, 20.0  ;;  %v10257_v50 = vadd.f32 %v9831_v60, %v13723_v26  ;;  %v1959_v0 = vmul.f32 %v7093_v2, %v10161_v61 }
 0x1f1   :  { %v1458_v44 = vadd.f32 2.0, %v7101_v33  ;;  %v1079_v12 = vmin.f32 %v10251_v59, 20.0  ;;  %v10263_v30 = vadd.f32 %v9831_v60, %v13724_v27  ;;  %v1960_v48 = vmul.f32 %v7095_v56, %v10176_v19 }
 0x1f2   :  { %v10266_v57 = vmul.f32 %v7097_v43, %v1457_v36  ;;  %v10268_v13 = vmul.f32 %v7103_v62, %v1456_v35  ;;  %v1082_v32 = vmin.f32 %v10257_v50, 20.0  ;;  %v10272_v31 = vmul.f32 %v1961_v17, %v10046_v25 }
 0x1f3   :  { %7118 = vrcp.f32 %v1710_v52  ;;  %v10274_v61 = vmul.f32 %v7099_v40, %v1455_v28  ;;  %v1319_v2 = vmul.f32 1.442695, %v1081_v38  ;;  %v1962_v8 = vmul.f32 %v7105_v9, %v10179_v5 }
 0x1f4   :  { %v7107_v21 = vpop.eup %7106  ;;  %7120 = vrcp.f32 %v1708_v4  ;;  %v1712_v45 = vadd.f32 2.0, %v10268_v13  ;;  %v1315_v19 = vmul.f32 1.442695, %v1079_v12  ;;  %v10279_v43 = vmul.f32 %v1959_v0, %v10052_v22 }
 0x1f5   :  { %v7109_v56 = vpop.eup %7108  ;;  %v10281_v36 = vmul.f32 %v7101_v33, %v1458_v44  ;;  %v1321_v62 = vmul.f32 1.442695, %v1082_v32  ;;  %v1080_v25 = vmin.f32 %v10263_v30, 20.0  ;;  %v2088_v40 = vmul.f32 %v1960_v48, %v10063_v20 }
 0x1f6   :  { %v7111_v17 = vpop.eup %7110  ;;  %v1713_v52 = vadd.f32 2.0, %v10266_v57  ;;  %7122 = vrcp.f32 %v1712_v45  ;;  %v2167_v5 = vpack.c.bf16 %v2084_v29, %v2083_v58  ;;  %v1711_v9 = vadd.f32 2.0, %v10274_v61  ;;  %v13725_v58 = vld [vmem:[#allocation9_spill] sm:$0xff] }
 0x1f7   :  { %v7113_v28 = vpop.eup %7112  ;;  %v1461_v4 = vadd.f32 2.0, %v7111_v17  ;;  %7124 = vpow2.f32 %v1319_v2  ;;  %v1317_v35 = vmul.f32 1.442695, %v1080_v25  ;;  %v1965_v33 = vmul.f32 %v7107_v21, %v10191_v1  ;;  %v13726_v1 = vld [vmem:[#allocation7_spill] sm:$0xff]  ;;  %v13727_v2 = vld [vmem:[#allocation25_spill] sm:$0xff] }
 0x1f8   :  { %v7115_v22 = vpop.eup %7114  ;;  %v1459_v38 = vadd.f32 2.0, %v7113_v28  ;;  %7126 = vpow2.f32 %v1315_v19  ;;  %6640 = vmatprep.mubr.bf16.mxu1 %v2167_v5  ;;  %v2168_v26 = vpack.c.bf16 %v10240_v63, %v10231_v55  ;;  %v1714_v0 = vadd.f32 2.0, %v10281_v36 }
 0x1f9   :  { %v7117_v20 = vpop.eup %7116  ;;  %v10291_v44 = vmul.f32 %v7111_v17, %v1461_v4  ;;  %7128 = vpow2.f32 %v1321_v62  ;;  %v10295_v29 = vadd.f32 %v9831_v60, %v13725_v58  ;;  %v1462_v27 = vadd.f32 2.0, %v7115_v22  ;;  %v13728_v62 = vld [vmem:[#allocation26_spill] sm:$0xff] }
 0x1fa   :  { %v10297_v12 = vmul.f32 %v7113_v28, %v1459_v38  ;;  %7130 = vpow2.f32 %v1317_v35  ;;  %6641 = vmatmul.mubr.bf16.gmra.mrb[84].mxu1 %v2168_v26  ;;  %v10301_v48 = vadd.f32 %v9831_v60, %v13726_v1  ;;  %v1460_v63 = vadd.f32 2.0, %v7117_v20 }
 0x1fb   :  { %v1717_v55 = vadd.f32 2.0, %v10291_v44  ;;  %v1085_v32 = vmin.f32 %v10295_v29, 20.0  ;;  %v10307_v21 = vadd.f32 %v9831_v60, %v13727_v2  ;;  %7132 = vrcp.f32 %v1713_v52 }
 0x1fc   :  { %v1715_v45 = vadd.f32 2.0, %v10297_v12  ;;  %v1083_v19 = vmin.f32 %v10301_v48, 20.0  ;;  %v10313_v25 = vadd.f32 %v9831_v60, %v13728_v62  ;;  %v1963_v5 = vmul.f32 %v7109_v56, %v10198_v54 }
 0x1fd   :  { %v7119_v17 = vpop.eup %7118  ;;  %7134 = vrcp.f32 %v1711_v9  ;;  %v1327_v28 = vmul.f32 1.442695, %v1085_v32  ;;  %v1086_v4 = vmin.f32 %v10307_v21, 20.0  ;;  %v2090_v38 = vmul.f32 %v1962_v8, %v10059_v10 }
 0x1fe   :  { %v7121_v35 = vpop.eup %7120  ;;  %7136 = vrcp.f32 %v1714_v0  ;;  %v10318_v52 = vmul.f32 %v7115_v22, %v1462_v27  ;;  %v1323_v26 = vmul.f32 1.442695, %v1083_v19  ;;  %v10320_v58 = vmul.f32 %v7117_v20, %v1460_v63 }
 0x1ff   :  { %7138 = vrcp.f32 %v1717_v55  ;;  %v1329_v1 = vmul.f32 1.442695, %v1086_v4  ;;  %v1084_v60 = vmin.f32 %v10313_v25, 20.0  ;;  %v10324_v54 = vmul.f32 %v1965_v33, %v10104_v51 }
 0x200   :  { %v7123_v2 = vpop.eup %7122  ;;  %v1966_v56 = vmul.f32 %v7119_v17, %v10234_v47  ;;  %7140 = vrcp.f32 %v1715_v45  ;;  %v2169_v9 = vpack.c.bf16 %v2088_v40, %v10279_v43  ;;  %v10329_v8 = vmul.f32 %v1963_v5, %v10110_v39  ;;  %v10338_v39 = vld [vmem:[%s13507_s2] ss:$0 sm:$0xff] }
 0x201   :  { %v7125_v10 = vpop.eup %7124  ;;  %v1964_v22 = vmul.f32 %v7121_v35, %v10237_v53  ;;  %7142 = vpow2.f32 %v1327_v28  ;;  %v1325_v20 = vmul.f32 1.442695, %v1084_v60  ;;  %v1718_v27 = vadd.f32 2.0, %v10318_v52  ;;  %v13730_v35 = vld [vmem:[#allocation10_spill] sm:$0xff] }
 0x202   :  { %v7127_v0 = vpop.eup %7126  ;;  %v1465_v55 = vadd.f32 2.0, %v7125_v10  ;;  %7144 = vpow2.f32 %v1323_v26  ;;  %6644 = vmatprep.mubr.bf16.mxu1 %v2169_v9  ;;  %v2170_v51 = vpack.c.bf16 %v2090_v38, %v10272_v31  ;;  %v1716_v33 = vadd.f32 2.0, %v10320_v58 }
 0x203   :  { %v7129_v47 = vpop.eup %7128  ;;  %v1463_v43 = vadd.f32 2.0, %v7127_v0  ;;  %7146 = vpow2.f32 %v1329_v1  ;;  %v10342_v53 = vadd.f32 %v10338_v39, %v10024_v23  ;;  %v10348_v31 = vadd.f32 %v10338_v39, %v10033_v37 }
 0x204   :  { %v7131_v40 = vpop.eup %7130  ;;  %v10344_v63 = vmul.f32 %v7125_v10, %v1465_v55  ;;  %v1466_v32 = vadd.f32 2.0, %v7129_v47  ;;  %7148 = vpow2.f32 %v1325_v20  ;;  %6645 = vmatmul.mubr.bf16.gmra.mrb[88].mxu1 %v2170_v51  ;;  %v10355_v17 = vadd.f32 %v10338_v39, %v10037_v49 }
 0x205   :  { %13729 = vst [vmem:[#allocation22_spill] sm:$0xff] %v10342_v53  ;;  %v10350_v45 = vmul.f32 %v7127_v0, %v1463_v43  ;;  %v1464_v19 = vadd.f32 2.0, %v7131_v40  ;;  %v1089_v62 = vmin.f32 %v10342_v53, 20.0  ;;  %v7133_v23 = vpop.eup %7132  ;;  %v1087_v4 = vmin.f32 %v10348_v31, 20.0 }
 0x206   :  { %v1721_v5 = vadd.f32 2.0, %v10344_v63  ;;  %v10358_v28 = vmul.f32 %v7129_v47, %v1466_v32  ;;  %v10363_v37 = vadd.f32 %v10338_v39, %v13730_v35  ;;  %v2092_v1 = vmul.f32 %v1964_v22, %v10128_v24 }
 0x207   :  { %v10365_v38 = vpop.f32.mrb[0].mxu1  ;;  %v7135_v26 = vpop.eup %7134  ;;  %7150 = vrcp.f32 %v1718_v27  ;;  %v1719_v49 = vadd.f32 2.0, %v10350_v45  ;;  %v1090_v60 = vmin.f32 %v10355_v17, 20.0  ;;  %v1968_v20 = vmul.f32 %v7123_v2, %v10268_v13 }
 0x208   :  { %13731 = vst [vmem:[#allocation23_spill] sm:$0xff] %v10363_v37  ;;  %v10370_v9 = vpop.f32.mrb[1].mxu1  ;;  %v7137_v10 = vpop.eup %7136  ;;  %7152 = vrcp.f32 %v1716_v33  ;;  %v1722_v0 = vadd.f32 2.0, %v10358_v28  ;;  %v1335_v55 = vmul.f32 1.442695, %v1089_v62  ;;  %v2094_v24 = vmul.f32 %v1966_v56, %v10120_v42 }
 0x209   :  { %v10374_v51 = vpop.f32.mrb[2].mxu1  ;;  %v10376_v47 = vpop.eup %7138  ;;  %7154 = vrcp.f32 %v1721_v5  ;;  %v10379_v22 = vmul.f32 %v7131_v40, %v1464_v19  ;;  %v1331_v27 = vmul.f32 1.442695, %v1087_v4  ;;  %v1969_v13 = vmul.f32 %v7133_v23, %v10266_v57 }
 0x20a   :  { %v10381_v43 = vpop.f32.mrb[3].mxu1  ;;  %v10383_v32 = vpop.eup %7140  ;;  %7156 = vrcp.f32 %v1719_v49  ;;  %v1337_v2 = vmul.f32 1.442695, %v1090_v60  ;;  %v1088_v33 = vmin.f32 %v10363_v37, 20.0  ;;  %v1967_v35 = vmul.f32 %v7135_v26, %v10274_v61 }
 0x20b   :  { %v7143_v62 = vpop.eup %7142  ;;  %v1970_v53 = vmul.f32 %v7137_v10, %v10281_v36  ;;  %7158 = vrcp.f32 %v1722_v0  ;;  %v2171_v42 = vpack.c.bf16 %v2092_v1, %v10329_v8  ;;  %v2096_v40 = vmul.f32 %v1968_v20, %v10171_v11  ;;  %v13732_v8 = vld [vmem:[#allocation11_spill] sm:$0xff] }
 0x20c   :  { %v7145_v56 = vpop.eup %7144  ;;  %v1469_v19 = vadd.f32 2.0, %v7143_v62  ;;  %7160 = vpow2.f32 %v1335_v55  ;;  %v1333_v5 = vmul.f32 1.442695, %v1088_v33  ;;  %v1720_v57 = vadd.f32 2.0, %v10379_v22  ;;  %v13735_v20 = vld [vmem:[#allocation27_spill] sm:$0xff] }
 0x20d   :  { %v7147_v4 = vpop.eup %7146  ;;  %v1467_v23 = vadd.f32 2.0, %v7145_v56  ;;  %7162 = vpow2.f32 %v1331_v27  ;;  %6648 = vmatprep.mubr.bf16.mxu1 %v2171_v42  ;;  %v2172_v49 = vpack.c.bf16 %v2094_v24, %v10324_v54  ;;  %v10397_v1 = vadd.f32 %v10338_v39, %v13732_v8 }
 0x20e   :  { %v7149_v61 = vpop.eup %7148  ;;  %v10393_v26 = vmul.f32 %v7143_v62, %v1469_v19  ;;  %v1470_v36 = vadd.f32 2.0, %v7147_v4  ;;  %7164 = vpow2.f32 %v1337_v2  ;;  %v10405_v0 = vadd.f32 %v10338_v39, %v13735_v20  ;;  %v13740_v19 = vld [vmem:[#allocation28_spill] sm:$0xff] }
 0x20f   :  { %13733 = vst [vmem:[#allocation24_spill] sm:$0xff] %v10397_v1  ;;  %v10401_v60 = vmul.f32 %v7145_v56, %v1467_v23  ;;  %v1468_v10 = vadd.f32 2.0, %v7149_v61  ;;  %7166 = vpow2.f32 %v1333_v5  ;;  %6649 = vmatmul.mubr.bf16.gmra.mrb[92].mxu1 %v2172_v49  ;;  %v1093_v27 = vmin.f32 %v10397_v1, 20.0  ;;  %v13742_v1 = vld [vmem:[#allocation12_spill] sm:$0xff] }
 0x210   :  { %v10399_v11 = vpop.f32.mrb[4].mxu1  ;;  %13736 = vst [vmem:[#allocation16_spill] sm:$0xff] %v10405_v0  ;;  %v1725_v55 = vadd.f32 2.0, %v10393_v26  ;;  %v10410_v24 = vmul.f32 %v7147_v4, %v1470_v36  ;;  %v10415_v2 = vadd.f32 %v10338_v39, %v10084_v6  ;;  %7168 = vrcp.f32 %v1720_v57 }
 0x211   :  { %13734 = vst [vmem:[#allocation15_spill] sm:$0xff] %v10399_v11  ;;  %v10407_v54 = vpop.f32.mrb[5].mxu1  ;;  %v7151_v62 = vpop.eup %7150  ;;  %v1723_v42 = vadd.f32 2.0, %v10401_v60  ;;  %v1091_v56 = vmin.f32 %v10405_v0, 20.0  ;;  %v10423_v5 = vadd.f32 %v10338_v39, %v13740_v19  ;;  %v10428_v36 = vmul.f32 %v7149_v61, %v1468_v10  ;;  %v13743_v61 = vld [vmem:[#allocation20_spill] sm:$0xff] }
 0x212   :  { %13737 = vst [vmem:[#allocation14_spill] sm:$0xff] %v10407_v54  ;;  %13738 = vst [vmem:[#allocation13_spill] sm:$0xff] %v10415_v2  ;;  %v10417_v33 = vpop.f32.mrb[6].mxu1  ;;  %v7153_v23 = vpop.eup %7152  ;;  %v1726_v49 = vadd.f32 2.0, %v10410_v24  ;;  %v1343_v6 = vmul.f32 1.442695, %v1093_v27  ;;  %v2095_v57 = vmul.f32 %v1967_v35, %v10158_v46  ;;  %v2098_v0 = vmul.f32 %v1970_v53, %v13742_v1 }
 0x213   :  { %13739 = vst [vmem:[#allocation6_spill] sm:$0xff] %v10417_v33  ;;  %v10425_v4 = vpop.f32.mrb[7].mxu1  ;;  %v1094_v8 = vmin.f32 %v10415_v2, 20.0  ;;  %v10431_v20 = vpop.eup %7154  ;;  %7170 = vrcp.f32 %v1725_v55  ;;  %v1339_v33 = vmul.f32 1.442695, %v1091_v56  ;;  %v1092_v54 = vmin.f32 %v10423_v5, 20.0 }
 0x214   :  { %13741 = vst [vmem:[#allocation17_spill] sm:$0xff] %v10425_v4  ;;  %v10435_v19 = vpop.eup %7156  ;;  %7172 = vrcp.f32 %v1723_v42  ;;  %v2097_v10 = vmul.f32 %v1969_v13, %v13743_v61  ;;  %v1972_v27 = vmul.f32 %v7153_v23, %v10320_v58  ;;  %v2173_v2 = vpack.c.bf16 %v2096_v40, %v2095_v57 }
 0x215   :  { %v1345_v4 = vmul.f32 1.442695, %v1094_v8  ;;  %v10438_v11 = vpop.eup %7158  ;;  %7174 = vrcp.f32 %v1726_v49  ;;  %v1724_v46 = vadd.f32 2.0, %v10428_v36  ;;  %v1341_v53 = vmul.f32 1.442695, %v1092_v54  ;;  %v13744_v54 = vld [vmem:[#allocation29_spill] sm:$0xff] }
 0x216   :  { %v7161_v37 = vpop.eup %7160  ;;  %7176 = vpow2.f32 %v1343_v6  ;;  %v1973_v55 = vmul.f32 %v10376_v47, %v10291_v44  ;;  %v1971_v42 = vmul.f32 %v10383_v32, %v10297_v12  ;;  %6652 = vmatprep.mubr.bf16.mxu1 %v2173_v2  ;;  %v2174_v13 = vpack.c.bf16 %v2098_v0, %v2097_v10  ;;  %v13747_v32 = vld [vmem:[#allocation30_spill] sm:$0xff]  ;;  %v13752_v10 = vld [vmem:[#allocation31_spill] sm:$0xff] }
 0x217   :  { %v7163_v1 = vpop.eup %7162  ;;  %7178 = vpow2.f32 %v1339_v33  ;;  %v1974_v56 = vmul.f32 %v7151_v62, %v10318_v52  ;;  %v10454_v49 = vadd.f32 %v10338_v39, %v13744_v54  ;;  %v2100_v47 = vmul.f32 %v1972_v27, %v10218_v18  ;;  %v13750_v62 = vld [vmem:[#allocation19_spill] sm:$0xff] }
 0x218   :  { %v10443_v35 = vpop.f32.mrb[8].mxu1  ;;  %v7165_v40 = vpop.eup %7164  ;;  %v1471_v23 = vadd.f32 2.0, %v7163_v1  ;;  %7180 = vpow2.f32 %v1345_v4  ;;  %6653 = vmatmul.mubr.bf16.gmra.mrb[96].mxu1 %v2174_v13  ;;  %v10461_v0 = vadd.f32 %v10338_v39, %v13747_v32  ;;  %v10469_v4 = vadd.f32 %v10338_v39, %v13750_v62 }
 0x219   :  { %v10449_v58 = vpop.f32.mrb[9].mxu1  ;;  %13745 = vst [vmem:[#allocation18_spill] sm:$0xff] %v10454_v49  ;;  %v7167_v44 = vpop.eup %7166  ;;  %v1474_v12 = vadd.f32 2.0, %v7165_v40  ;;  %7182 = vpow2.f32 %v1341_v53  ;;  %v1473_v57 = vadd.f32 2.0, %v7161_v37  ;;  %v10476_v27 = vadd.f32 %v10338_v39, %v13752_v10 }
 0x21a   :  { %v10456_v6 = vpop.f32.mrb[10].mxu1  ;;  %13748 = vst [vmem:[#allocation9_spill] sm:$0xff] %v10461_v0  ;;  %7184 = vrcp.f32 %v1724_v46  ;;  %v10465_v52 = vmul.f32 %v7163_v1, %v1471_v23  ;;  %v1472_v33 = vadd.f32 2.0, %v7167_v44  ;;  %13751 = vst [vmem:[#allocation25_spill] sm:$0xff] %v10469_v4  ;;  %v7169_v8 = vpop.eup %7168  ;;  %v1095_v61 = vmin.f32 %v10461_v0, 20.0 }
 0x21b   :  { %13746 = vst [vmem:[#allocation8_spill] sm:$0xff] %v10456_v6  ;;  %v10463_v2 = vpop.f32.mrb[11].mxu1  ;;  %v10471_v18 = vmul.f32 %v7165_v40, %v1474_v12  ;;  %13753 = vst [vmem:[#allocation26_spill] sm:$0xff] %v10476_v27  ;;  %v1097_v1 = vmin.f32 %v10454_v49, 20.0  ;;  %v1098_v13 = vmin.f32 %v10469_v4, 20.0  ;;  %v2099_v40 = vmul.f32 %v1971_v42, %v10202_v16 }
 0x21c   :  { %13749 = vst [vmem:[#allocation7_spill] sm:$0xff] %v10463_v2  ;;  %v1727_v53 = vadd.f32 2.0, %v10465_v52  ;;  %v10479_v46 = vmul.f32 %v7167_v44, %v1472_v33  ;;  %v2102_v12 = vmul.f32 %v1974_v56, %v10210_v3  ;;  %v1347_v39 = vmul.f32 1.442695, %v1095_v61 }
 0x21d   :  { %v7171_v23 = vpop.eup %7170  ;;  %v1730_v54 = vadd.f32 2.0, %v10471_v18  ;;  %v10489_v44 = vmul.f32 %v7161_v37, %v1473_v57  ;;  %v1353_v33 = vmul.f32 1.442695, %v1098_v13  ;;  %v1096_v49 = vmin.f32 %v10476_v27, 20.0 }
 0x21e   :  { %v7173_v32 = vpop.eup %7172  ;;  %v1728_v62 = vadd.f32 2.0, %v10479_v46  ;;  %7186 = vrcp.f32 %v1727_v53  ;;  %v2101_v6 = vmul.f32 %v1973_v55, %v10195_v41  ;;  %v1351_v16 = vmul.f32 1.442695, %v1097_v1 }
 0x21f   :  { %v7175_v0 = vpop.eup %7174  ;;  %7188 = vrcp.f32 %v1730_v54  ;;  %v2175_v3 = vpack.c.bf16 %v2100_v47, %v2099_v40  ;;  %v1975_v61 = vmul.f32 %v10435_v19, %v10350_v45  ;;  %v1349_v37 = vmul.f32 1.442695, %v1096_v49 }
 0x220   :  { %v10487_v10 = vpop.f32.mrb[12].mxu1  ;;  %v7177_v2 = vpop.eup %7176  ;;  %7190 = vrcp.f32 %v1728_v62  ;;  %v1976_v13 = vmul.f32 %v7169_v8, %v10379_v22  ;;  %v2176_v41 = vpack.c.bf16 %v2102_v12, %v2101_v6  ;;  %v1729_v47 = vadd.f32 2.0, %v10489_v44  ;;  %v10510_v22 = vld [vmem:[%s13509_s4] ss:$0 sm:$0xff] }
 0x221   :  { %v10492_v4 = vpop.f32.mrb[13].mxu1  ;;  %v7179_v56 = vpop.eup %7178  ;;  %v1477_v27 = vadd.f32 2.0, %v7177_v2  ;;  %7192 = vpow2.f32 %v1347_v39  ;;  %6656 = vmatprep.mubr.bf16.mxu1 %v2175_v3  ;;  %v1977_v54 = vmul.f32 %v10431_v20, %v10344_v63  ;;  %v1978_v45 = vmul.f32 %v10438_v11, %v10358_v28 }
 0x222   :  { %v10495_v42 = vpop.f32.mrb[14].mxu1  ;;  %v7181_v53 = vpop.eup %7180  ;;  %7194 = vpow2.f32 %v1353_v33  ;;  %6657 = vmatmul.mubr.bf16.gmra.mrb[100].mxu1 %v2176_v41  ;;  %v2103_v49 = vmul.f32 %v1975_v61, %v10251_v59  ;;  %v10515_v8 = vadd.f32 %v10220_v7, %v10510_v22  ;;  %v2104_v63 = vmul.f32 %v1976_v13, %v10263_v30 }
 0x223   :  { %v10499_v57 = vpop.f32.mrb[15].mxu1  ;;  %v7183_v55 = vpop.eup %7182  ;;  %7196 = vpow2.f32 %v1351_v16  ;;  %v1478_v6 = vadd.f32 2.0, %v7181_v53  ;;  %v1981_v28 = vmul.f32 %v7171_v23, %v10393_v26  ;;  %v10519_v11 = vmul.f32 %v7177_v2, %v1477_v27 }
 0x224   :  { %v7185_v1 = vpop.eup %7184  ;;  %v1476_v19 = vadd.f32 2.0, %v7183_v55  ;;  %7198 = vpow2.f32 %v1349_v37  ;;  %v1475_v20 = vadd.f32 2.0, %v7179_v56  ;;  %v1979_v12 = vmul.f32 %v7173_v32, %v10401_v60 }
 0x225   :  { %7200 = vrcp.f32 %v1729_v47  ;;  %v10528_v59 = vadd.f32 %v10510_v22, %v10224_v34  ;;  %v2106_v30 = vmul.f32 %v1978_v45, %v10257_v50  ;;  %v1982_v26 = vmul.f32 %v7175_v0, %v10410_v24 }
 0x226   :  { %v10524_v62 = vmul.f32 %v7183_v55, %v1476_v19  ;;  %v1980_v2 = vmul.f32 %v7185_v1, %v10428_v36  ;;  %v2806_v27 = vmin.f32 %v10515_v8, 20.0  ;;  %v10538_v32 = vmul.f32 %v7181_v53, %v1478_v6 }
 0x227   :  { %v2105_v34 = vmul.f32 %v1977_v54, %v10246_v14  ;;  %v1733_v16 = vadd.f32 2.0, %v10519_v11  ;;  %v10544_v3 = vmul.f32 %v7179_v56, %v1475_v20  ;;  %v2177_v50 = vpack.c.bf16 %v2104_v63, %v2103_v49 }
 0x228   :  { %v10521_v40 = vpop.f32.mrb[16].mxu1  ;;  %v7187_v60 = vpop.eup %7186  ;;  %v10547_v36 = vmul.f32 %v1981_v28, %v10295_v29  ;;  %v2107_v0 = vmul.f32 %v1979_v12, %v10301_v48  ;;  %v1732_v61 = vadd.f32 2.0, %v10524_v62  ;;  %v2804_v37 = vmin.f32 %v10528_v59, 20.0 }
 0x229   :  { %v10530_v7 = vpop.f32.mrb[17].mxu1  ;;  %v7189_v33 = vpop.eup %7188  ;;  %v10553_v13 = vmul.f32 %v1982_v26, %v10307_v21  ;;  %v2108_v14 = vmul.f32 %v1980_v2, %v10313_v25  ;;  %v2937_v41 = vmul.f32 1.442695, %v2806_v27  ;;  %6660 = vmatprep.mubr.bf16.mxu1 %v2177_v50  ;;  %v2178_v56 = vpack.c.bf16 %v2106_v30, %v2105_v34 }
 0x22a   :  { %v10536_v23 = vpop.f32.mrb[18].mxu1  ;;  %v7191_v24 = vpop.eup %7190  ;;  %v1734_v47 = vadd.f32 2.0, %v10538_v32  ;;  %v10559_v48 = vadd.f32 %v10204_v15, %v10510_v22  ;;  %v10563_v1 = vadd.f32 %v10365_v38, %v10510_v22  ;;  %7202 = vrcp.f32 %v1733_v16  ;;  %v13754_v16 = vld [vmem:[#allocation21_spill] sm:$0xff] }
 0x22b   :  { %v10540_v39 = vpop.f32.mrb[19].mxu1  ;;  %v7193_v53 = vpop.eup %7192  ;;  %v1731_v21 = vadd.f32 2.0, %v10544_v3  ;;  %6661 = vmatmul.mubr.bf16.gmra.mrb[104].mxu1 %v2178_v56  ;;  %v10568_v45 = vadd.f32 %v10510_v22, %v10370_v9  ;;  %7204 = vrcp.f32 %v1732_v61  ;;  %v2933_v15 = vmul.f32 1.442695, %v2804_v37 }
 0x22c   :  { %v7195_v55 = vpop.eup %7194  ;;  %v1479_v29 = vadd.f32 2.0, %v7193_v53  ;;  %v2809_v6 = vmin.f32 %v10563_v1, 20.0  ;;  %v10575_v38 = vadd.f32 %v10374_v51, %v10510_v22  ;;  %v1983_v28 = vmul.f32 %v7187_v60, %v10465_v52 }
 0x22d   :  { %v7197_v54 = vpop.eup %7196  ;;  %v1482_v25 = vadd.f32 2.0, %v7195_v55  ;;  %7206 = vpow2.f32 %v2937_v41  ;;  %v10584_v9 = vadd.f32 %v10510_v22, %v10381_v43  ;;  %v1986_v26 = vmul.f32 %v7189_v33, %v10471_v18 }
 0x22e   :  { %v7199_v49 = vpop.eup %7198  ;;  %v10580_v20 = vmul.f32 %v7193_v53, %v1479_v29  ;;  %v1984_v2 = vmul.f32 %v7191_v24, %v10479_v46  ;;  %7208 = vrcp.f32 %v1734_v47  ;;  %v2807_v51 = vmin.f32 %v10568_v45, 20.0  ;;  %v13755_v53 = vld [vmem:[#allocation23_spill] sm:$0xff] }
 0x22f   :  { %v7201_v30 = vpop.eup %7200  ;;  %7210 = vrcp.f32 %v1731_v21  ;;  %v1481_v52 = vadd.f32 2.0, %v7197_v54  ;;  %v10593_v60 = vmul.f32 %v7195_v55, %v1482_v25  ;;  %v1480_v34 = vadd.f32 2.0, %v7199_v49 }
 0x230   :  { %v10570_v19 = vpop.f32.mrb[20].mxu1  ;;  %v10597_v43 = vadd.f32 %v10510_v22, %v13754_v16  ;;  %7212 = vpow2.f32 %v2933_v15  ;;  %v2943_v50 = vmul.f32 1.442695, %v2809_v6  ;;  %v2810_v18 = vmin.f32 %v10575_v38, 20.0  ;;  %v13757_v6 = vld [vmem:[#allocation14_spill] sm:$0xff] }
 0x231   :  { %v10577_v63 = vpop.f32.mrb[21].mxu1  ;;  %v1985_v46 = vmul.f32 %v7201_v30, %v10489_v44  ;;  %v2111_v33 = vmul.f32 %v1983_v28, %v10348_v31  ;;  %v1735_v24 = vadd.f32 2.0, %v10580_v20  ;;  %v2808_v61 = vmin.f32 %v10584_v9, 20.0  ;;  %v13759_v28 = vld [vmem:[#allocation17_spill] sm:$0xff] }
 0x232   :  { %v10586_v12 = vpop.f32.mrb[22].mxu1  ;;  %v10605_v37 = vmul.f32 %v1986_v26, %v10355_v17  ;;  %v2112_v41 = vmul.f32 %v1984_v2, %v13755_v53  ;;  %v2939_v56 = vmul.f32 1.442695, %v2807_v51  ;;  %v2179_v55 = vpack.c.bf16 %v2108_v14, %v2107_v0  ;;  %v13756_v17 = vld [vmem:[#allocation15_spill] sm:$0xff]  ;;  %v13760_v51 = vld [vmem:[#allocation22_spill] sm:$0xff] }
 0x233   :  { %v10591_v27 = vpop.f32.mrb[23].mxu1  ;;  %v10608_v47 = vmul.f32 %v7197_v54, %v1481_v52  ;;  %v1738_v29 = vadd.f32 2.0, %v10593_v60  ;;  %v10611_v21 = vmul.f32 %v7199_v49, %v1480_v34  ;;  %v2180_v31 = vpack.c.bf16 %v10553_v13, %v10547_v36  ;;  %v13758_v36 = vld [vmem:[#allocation6_spill] sm:$0xff] }
 0x234   :  { %7214 = vpow2.f32 %v2943_v50  ;;  %v2945_v25 = vmul.f32 1.442695, %v2810_v18  ;;  %6664 = vmatprep.mubr.bf16.mxu1 %v2179_v55  ;;  %v10619_v15 = vadd.f32 %v13756_v17, %v10510_v22  ;;  %v10623_v0 = vadd.f32 %v10510_v22, %v13757_v6  ;;  %v7203_v54 = vpop.eup %7202 }
 0x235   :  { %7216 = vrcp.f32 %v1735_v24  ;;  %v2941_v49 = vmul.f32 1.442695, %v2808_v61  ;;  %6665 = vmatmul.mubr.bf16.gmra.mrb[108].mxu1 %v2180_v31  ;;  %v10629_v13 = vadd.f32 %v13758_v36, %v10510_v22  ;;  %v10633_v30 = vadd.f32 %v10510_v22, %v13759_v28  ;;  %v7205_v2 = vpop.eup %7204 }
 0x236   :  { %v2113_v52 = vmul.f32 %v1985_v46, %v13760_v51  ;;  %7218 = vpow2.f32 %v2939_v56  ;;  %v2813_v34 = vmin.f32 %v10619_v15, 20.0  ;;  %v2811_v16 = vmin.f32 %v10623_v0, 20.0 }
 0x237   :  { %v7207_v18 = vpop.eup %7206  ;;  %v1737_v24 = vadd.f32 2.0, %v10608_v47  ;;  %7220 = vrcp.f32 %v1738_v29  ;;  %v1736_v61 = vadd.f32 2.0, %v10611_v21  ;;  %v2181_v53 = vpack.c.bf16 %v2112_v41, %v2111_v33 }
 0x238   :  { %v10615_v44 = vpop.f32.mrb[24].mxu1  ;;  %v7209_v55 = vpop.eup %7208  ;;  %7222 = vpow2.f32 %v2945_v25  ;;  %v2951_v31 = vmul.f32 1.442695, %v2813_v34  ;;  %v2814_v17 = vmin.f32 %v10629_v13, 20.0  ;;  %v2182_v46 = vpack.c.bf16 %v10605_v37, %v2113_v52 }
 0x239   :  { %v10625_v14 = vpop.f32.mrb[25].mxu1  ;;  %v7211_v56 = vpop.eup %7210  ;;  %7224 = vpow2.f32 %v2941_v49  ;;  %v2947_v6 = vmul.f32 1.442695, %v2811_v16  ;;  %v2812_v36 = vmin.f32 %v10633_v30, 20.0  ;;  %6668 = vmatprep.mubr.bf16.mxu1 %v2181_v53  ;;  %v10649_v28 = vadd.f32 %v10443_v35, %v10510_v22 }
 0x23a   :  { %v10635_v26 = vpop.f32.mrb[26].mxu1  ;;  %v7213_v29 = vpop.eup %7212  ;;  %v1988_v33 = vmul.f32 %v7205_v2, %v10524_v62  ;;  %v2805_v41 = vmin.f32 %v10559_v48, 20.0  ;;  %v3190_v25 = vadd.f32 2.0, %v7207_v18  ;;  %7226 = vpow2.f32 %v2951_v31 }
 0x23b   :  { %v10640_v50 = vpop.f32.mrb[27].mxu1  ;;  %13761 = vst [vmem:[#allocation10_spill] sm:$0xff] %v10649_v28  ;;  %v1990_v51 = vmul.f32 %v7209_v55, %v10538_v32  ;;  %7228 = vrcp.f32 %v1736_v61  ;;  %v2817_v37 = vmin.f32 %v10649_v28, 20.0  ;;  %v10657_v49 = vadd.f32 %v10510_v22, %v10449_v58 }
 0x23c   :  { %v1987_v35 = vmul.f32 %v7211_v56, %v10544_v3  ;;  %7230 = vrcp.f32 %v1737_v24  ;;  %v2803_v62 = vmin.f32 %v10597_v43, 20.0  ;;  %v2953_v2 = vmul.f32 1.442695, %v2814_v17  ;;  %v13767_v17 = vld [vmem:[#allocation13_spill] sm:$0xff] }
 0x23d   :  { %13762 = vst [vmem:[#allocation11_spill] sm:$0xff] %v10657_v49  ;;  %v1989_v16 = vmul.f32 %v7203_v54, %v10519_v11  ;;  %v3188_v32 = vadd.f32 2.0, %v7213_v29  ;;  %7232 = vpow2.f32 %v2947_v6  ;;  %v2949_v61 = vmul.f32 1.442695, %v2812_v36  ;;  %6669 = vmatmul.mubr.bf16.gmra.mrb[112].mxu1 %v2182_v46  ;;  %v13768_v6 = vld [vmem:[#allocation16_spill] sm:$0xff] }
 0x23e   :  { %v7215_v58 = vpop.eup %7214  ;;  %v2116_v55 = vmul.f32 %v1988_v33, %v10423_v5  ;;  %v10669_v31 = vmul.f32 %v7207_v18, %v3190_v25  ;;  %v2959_v3 = vmul.f32 1.442695, %v2817_v37  ;;  %v2815_v11 = vmin.f32 %v10657_v49, 20.0  ;;  %v13771_v18 = vld [vmem:[#allocation24_spill] sm:$0xff] }
 0x23f   :  { %v7217_v56 = vpop.eup %7216  ;;  %v2115_v36 = vmul.f32 %v1987_v35, %v13768_v6  ;;  %v2931_v46 = vmul.f32 1.442695, %v2803_v62  ;;  %7234 = vpow2.f32 %v2953_v2  ;;  %v2117_v33 = vmul.f32 %v1989_v16, %v13771_v18 }
 0x240   :  { %v10659_v52 = vpop.f32.mrb[28].mxu1  ;;  %v7219_v54 = vpop.eup %7218  ;;  %v10681_v25 = vmul.f32 %v7213_v29, %v3188_v32  ;;  %v3193_v37 = vadd.f32 2.0, %v7215_v58  ;;  %7236 = vpow2.f32 %v2949_v61  ;;  %v10693_v32 = vadd.f32 %v10487_v10, %v10510_v22 }
 0x241   :  { %13763 = vst [vmem:[#allocation27_spill] sm:$0xff] %v10659_v52  ;;  %v10663_v34 = vpop.f32.mrb[29].mxu1  ;;  %v2118_v52 = vmul.f32 %v1990_v51, %v13767_v17  ;;  %v7221_v5 = vpop.eup %7220  ;;  %7238 = vpow2.f32 %v2959_v3  ;;  %v13772_v17 = vld [vmem:[#allocation7_spill] sm:$0xff]  ;;  %v2183_v62 = vpack.c.bf16 %v2116_v55, %v2115_v36  ;;  %v3191_v6 = vadd.f32 2.0, %v7219_v54 }
 0x242   :  { %13764 = vst [vmem:[#allocation28_spill] sm:$0xff] %v10663_v34  ;;  %v10666_v53 = vpop.f32.mrb[30].mxu1  ;;  %v2935_v34 = vmul.f32 1.442695, %v2805_v41  ;;  %v7223_v51 = vpop.eup %7222  ;;  %v3446_v41 = vadd.f32 2.0, %v10669_v31  ;;  %v10686_v35 = vadd.f32 %v10510_v22, %v13772_v17  ;;  %13775 = vst [vmem:[#allocation31_spill] sm:$0xff] %v10693_v32  ;;  %v10697_v55 = vmul.f32 %v7215_v58, %v3193_v37 }
 0x243   :  { %13765 = vst [vmem:[#allocation12_spill] sm:$0xff] %v10666_v53  ;;  %v10671_v24 = vpop.f32.mrb[31].mxu1  ;;  %v13769_v53 = vld [vmem:[#allocation8_spill] sm:$0xff]  ;;  %v7225_v2 = vpop.eup %7224  ;;  %6672 = vmatprep.mubr.bf16.mxu1 %v2183_v62  ;;  %v3194_v36 = vadd.f32 2.0, %v7223_v51  ;;  %v1991_v62 = vmul.f32 %v7217_v56, %v10580_v20  ;;  %v10717_v20 = vadd.f32 %v10510_v22, %v10492_v4  ;;  %vm6036_vm1 = vcmask 1041409  }
 0x244   :  { %13766 = vst [vmem:[#allocation20_spill] sm:$0xff] %v10671_v24  ;;  %v10678_v28 = vadd.f32 %v13769_v53, %v10510_v22  ;;  %13773 = vst [vmem:[#allocation30_spill] sm:$0xff] %v10686_v35  ;;  %v2955_v53 = vmul.f32 1.442695, %v2815_v11  ;;  %v2184_v24 = vpack.c.bf16 %v2118_v52, %v2117_v33  ;;  %v7227_v16 = vpop.eup %7226  ;;  %7240 = vpow2.f32 %v2935_v34 }
 0x245   :  { %v7229_v3 = vpop.eup %7228  ;;  %7242 = vpow2.f32 %v2931_v46  ;;  %v3444_v34 = vadd.f32 2.0, %v10681_v25  ;;  %v3192_v18 = vadd.f32 2.0, %v7225_v2  ;;  %v2816_v33 = vmin.f32 %v10686_v35, 20.0  ;;  %13779 = vst [vmem:[#allocation14_spill] sm:$0xff] %v10717_v20 }
 0x246   :  { %13770 = vst [vmem:[#allocation29_spill] sm:$0xff] %v10678_v28  ;;  %v2818_v29 = vmin.f32 %v10678_v28, 20.0  ;;  %6673 = vmatmul.mubr.bf16.gmra.mrb[116].mxu1 %v2184_v24  ;;  %v7231_v11 = vpop.eup %7230  ;;  %7244 = vrcp.f32 %v3446_v41  ;;  %v3197_v58 = vadd.f32 2.0, %v7227_v16  ;;  %v1994_v24 = vmul.f32 %v7221_v5, %v10593_v60 }
 0x247   :  { %v7233_v10 = vpop.eup %7232  ;;  %7246 = vpow2.f32 %v2955_v53  ;;  %v1992_v46 = vmul.f32 %v7229_v3, %v10611_v21  ;;  %v2821_v41 = vmin.f32 %v10693_v32, 20.0  ;;  %v10713_v35 = vmul.f32 %v7223_v51, %v3194_v36  ;;  %v13783_v36 = vld [vmem:[#allocation25_spill] sm:$0xff] }
 0x248   :  { %v10688_v49 = vpop.f32.mrb[32].mxu1  ;;  %v2961_v37 = vmul.f32 1.442695, %v2818_v29  ;;  %7248 = vrcp.f32 %v3444_v34  ;;  %v3195_v60 = vadd.f32 2.0, %v7233_v10  ;;  %v2957_v5 = vmul.f32 1.442695, %v2816_v33 }
 0x249   :  { %13774 = vst [vmem:[#allocation19_spill] sm:$0xff] %v10688_v49  ;;  %v10695_v61 = vpop.f32.mrb[33].mxu1  ;;  %v3449_v49 = vadd.f32 2.0, %v10697_v55  ;;  %v7235_v56 = vpop.eup %7234  ;;  %v10727_v51 = vadd.f32 %v10495_v42, %v10510_v22 }
 0x24a   :  { %13776 = vst [vmem:[#allocation21_spill] sm:$0xff] %v10695_v61  ;;  %v10699_v52 = vpop.f32.mrb[34].mxu1  ;;  %v10706_v61 = vmul.f32 %v7219_v54, %v3191_v6  ;;  %v10719_v54 = vmul.f32 %v7225_v2, %v3192_v18  ;;  %v7237_v21 = vpop.eup %7236  ;;  %v13780_v6 = vld [vmem:[#allocation9_spill] sm:$0xff]  ;;  %v13784_v2 = vld [vmem:[#allocation26_spill] sm:$0xff]  ;;  %7250 = vpow2.f32 %v2961_v37  ;;  %v2967_v18 = vmul.f32 1.442695, %v2821_v41 }
 0x24b   :  { %13777 = vst [vmem:[#allocation23_spill] sm:$0xff] %v10699_v52  ;;  %v10703_v17 = vpop.f32.mrb[35].mxu1  ;;  %v1993_v52 = vmul.f32 %v7231_v11, %v10608_v47  ;;  %v2119_v53 = vmul.f32 %v1991_v62, %v13780_v6  ;;  %v10723_v47 = vmul.f32 %v7227_v16, %v3197_v58  ;;  %13781 = vst [vmem:[#allocation6_spill] sm:$0xff] %v10727_v51  ;;  %v7239_v4 = vpop.eup %7238  ;;  %7252 = vrcp.f32 %v3449_v49 }
 0x24c   :  { %13778 = vst [vmem:[#allocation15_spill] sm:$0xff] %v10703_v17  ;;  %v3447_v29 = vadd.f32 2.0, %v10706_v61  ;;  %v2122_v11 = vmul.f32 %v1994_v24, %v13783_v36  ;;  %v2120_v34 = vmul.f32 %v1992_v46, %v13784_v2  ;;  %v3450_v62 = vadd.f32 2.0, %v10713_v35 }
 0x24d   :  { %v3198_v16 = vadd.f32 2.0, %v7235_v56  ;;  %v2819_v58 = vmin.f32 %v10717_v20, 20.0  ;;  %v10740_v17 = vmul.f32 %v7233_v10, %v3195_v60  ;;  %v3196_v24 = vadd.f32 2.0, %v7237_v21 }
 0x24e   :  { %v7241_v42 = vpop.eup %7240  ;;  %7254 = vpow2.f32 %v2957_v5  ;;  %v3453_v49 = vadd.f32 2.0, %v10723_v47  ;;  %v3201_v41 = vadd.f32 2.0, %v7239_v4  ;;  %v2822_v36 = vmin.f32 %v10727_v51, 20.0 }
 0x24f   :  { %v10744_v37 = vpop.eup %7242  ;;  %7256 = vrcp.f32 %v3447_v29  ;;  %v10751_v10 = vadd.f32 %v10510_v22, %v10499_v57  ;;  %v10753_v5 = vmul.f32 %v7235_v56, %v3198_v16  ;;  %v2185_v20 = vpack.c.bf16 %v2120_v34, %v2119_v53 }
 0x250   :  { %v10729_v3 = vpop.f32.mrb[36].mxu1  ;;  %v7245_v2 = vpop.eup %7244  ;;  %7258 = vpow2.f32 %v2967_v18  ;;  %v3451_v29 = vadd.f32 2.0, %v10740_v17  ;;  %v10756_v32 = vmul.f32 %v7237_v21, %v3196_v24  ;;  %v10758_v51 = vmul.f32 %v7239_v4, %v3201_v41 }
 0x251   :  { %13782 = vst [vmem:[#allocation17_spill] sm:$0xff] %v10729_v3  ;;  %v10733_v33 = vpop.f32.mrb[37].mxu1  ;;  %v3448_v3 = vadd.f32 2.0, %v10719_v54  ;;  %v7247_v60 = vpop.eup %7246  ;;  %7260 = vrcp.f32 %v3450_v62  ;;  %6676 = vmatprep.mubr.bf16.mxu1 %v2185_v20  ;;  %v2820_v28 = vmin.f32 %v10751_v10, 20.0  ;;  %v10763_v56 = vadd.f32 %v10521_v40, %v10510_v22 }
 0x252   :  { %13785 = vst [vmem:[#allocation22_spill] sm:$0xff] %v10733_v33  ;;  %v10737_v6 = vpop.f32.mrb[38].mxu1  ;;  %v13788_v33 = vld [vmem:[#allocation18_spill] sm:$0xff]  ;;  %v3199_v57 = vadd.f32 2.0, %v7247_v60  ;;  %v10767_v53 = vadd.f32 %v10510_v22, %v10530_v7  ;;  %v3702_v21 = vmul.f32 %v7245_v2, %v10669_v31  ;;  %v3189_v20 = vadd.f32 2.0, %v7241_v42 }
 0x253   :  { %13786 = vst [vmem:[#allocation13_spill] sm:$0xff] %v10737_v6  ;;  %v10742_v46 = vpop.f32.mrb[39].mxu1  ;;  %v2121_v6 = vmul.f32 %v1993_v52, %v13788_v33  ;;  %7262 = vrcp.f32 %v3448_v3  ;;  %v2969_v52 = vmul.f32 1.442695, %v2822_v36  ;;  %v7249_v33 = vpop.eup %7248  ;;  %v3454_v3 = vadd.f32 2.0, %v10753_v5 }
 0x254   :  { %13787 = vst [vmem:[#allocation16_spill] sm:$0xff] %v10742_v46  ;;  %v2963_v46 = vmul.f32 1.442695, %v2819_v58  ;;  %7264 = vrcp.f32 %v3453_v49  ;;  %v7251_v4 = vpop.eup %7250  ;;  %v2825_v34 = vmin.f32 %v10763_v56, 20.0  ;;  %v10775_v40 = vadd.f32 %v10536_v23, %v10510_v22 }
 0x255   :  { %v2186_v18 = vpack.c.bf16 %v2122_v11, %v2121_v6  ;;  %v3452_v11 = vadd.f32 2.0, %v10756_v32  ;;  %v7253_v62 = vpop.eup %7252  ;;  %v3457_v7 = vadd.f32 2.0, %v10758_v51  ;;  %v2823_v31 = vmin.f32 %v10767_v53, 20.0 }
 0x256   :  { %7266 = vpow2.f32 %v2963_v46  ;;  %v10779_v16 = vmul.f32 %v7241_v42, %v3189_v20  ;;  %v3700_v24 = vmul.f32 %v7249_v33, %v10681_v25  ;;  %v10784_v46 = vmul.f32 %v7247_v60, %v3199_v57 }
 0x257   :  { %6677 = vmatmul.mubr.bf16.gmra.mrb[120].mxu1 %v2186_v18  ;;  %7268 = vrcp.f32 %v3451_v29  ;;  %v2965_v49 = vmul.f32 1.442695, %v2820_v28  ;;  %v2975_v36 = vmul.f32 1.442695, %v2825_v34  ;;  %v2826_v2 = vmin.f32 %v10775_v40, 20.0 }
 0x258   :  { %7270 = vpow2.f32 %v2969_v52  ;;  %v7255_v6 = vpop.eup %7254  ;;  %v3202_v42 = vadd.f32 2.0, %v7251_v4  ;;  %v3445_v18 = vadd.f32 2.0, %v10779_v16  ;;  %v10795_v60 = vmul.f32 %v3702_v21, %v10515_v8 }
 0x259   :  { %v7257_v23 = vpop.eup %7256  ;;  %7272 = vrcp.f32 %v3454_v3  ;;  %v3200_v28 = vadd.f32 2.0, %v7255_v6  ;;  %v2971_v33 = vmul.f32 1.442695, %v2823_v31  ;;  %v10798_v3 = vmul.f32 %v3700_v24, %v10528_v59 }
 0x25a   :  { %v10781_v58 = vpop.f32.mrb[40].mxu1  ;;  %v7259_v52 = vpop.eup %7258  ;;  %7274 = vrcp.f32 %v3452_v11  ;;  %v3455_v34 = vadd.f32 2.0, %v10784_v46  ;;  %v3187_v11 = vadd.f32 2.0, %v10744_v37  ;;  %v10804_v8 = vadd.f32 %v10510_v22, %v10540_v39 }
 0x25b   :  { %13789 = vst [vmem:[#allocation8_spill] sm:$0xff] %v10781_v58  ;;  %v10786_v41 = vpop.f32.mrb[41].mxu1  ;;  %v7261_v25 = vpop.eup %7260  ;;  %7276 = vrcp.f32 %v3457_v7  ;;  %v3705_v21 = vmul.f32 %v7253_v62, %v10697_v55  ;;  %v10807_v7 = vmul.f32 %v7251_v4, %v3202_v42  ;;  %v3703_v24 = vmul.f32 %v7257_v23, %v10706_v61 }
 0x25c   :  { %13790 = vst [vmem:[#allocation24_spill] sm:$0xff] %v10786_v41  ;;  %v10789_v29 = vpop.f32.mrb[42].mxu1  ;;  %7278 = vpow2.f32 %v2965_v49  ;;  %v3205_v41 = vadd.f32 2.0, %v7259_v52  ;;  %v10810_v59 = vmul.f32 %v10744_v37, %v3187_v11  ;;  %v10813_v49 = vmul.f32 %v7255_v6, %v3200_v28 }
 0x25d   :  { %13791 = vst [vmem:[#allocation7_spill] sm:$0xff] %v10789_v29  ;;  %v10792_v20 = vpop.f32.mrb[43].mxu1  ;;  %v7263_v57 = vpop.eup %7262  ;;  %7280 = vpow2.f32 %v2975_v36  ;;  %v2824_v36 = vmin.f32 %v10804_v8, 20.0  ;;  %v3706_v39 = vmul.f32 %v7261_v25, %v10713_v35  ;;  %v10823_v61 = vadd.f32 %v10570_v19, %v10510_v22 }
 0x25e   :  { %13792 = vst [vmem:[#allocation9_spill] sm:$0xff] %v10792_v20  ;;  %v7265_v29 = vpop.eup %7264  ;;  %v2977_v20 = vmul.f32 1.442695, %v2826_v2  ;;  %7282 = vrcp.f32 %v3445_v18  ;;  %v3704_v58 = vmul.f32 %v7263_v57, %v10719_v54  ;;  %v3443_v55 = vadd.f32 2.0, %v10810_v59 }
 0x25f   :  { %7284 = vpow2.f32 %v2971_v33  ;;  %v10819_v62 = vmul.f32 %v7259_v52, %v3205_v41  ;;  %v2973_v37 = vmul.f32 1.442695, %v2824_v36  ;;  %v3458_v23 = vadd.f32 2.0, %v10807_v7 }
 0x260   :  { %v7267_v31 = vpop.eup %7266  ;;  %7286 = vrcp.f32 %v3455_v34  ;;  %v10830_v35 = vadd.f32 %v10510_v22, %v10577_v63  ;;  %v3709_v52 = vmul.f32 %v7265_v29, %v10723_v47  ;;  %v3456_v18 = vadd.f32 2.0, %v10813_v49 }
 0x261   :  { %v7269_v2 = vpop.eup %7268  ;;  %7288 = vpow2.f32 %v2977_v20  ;;  %v3203_v42 = vadd.f32 2.0, %v7267_v31  ;;  %v2829_v19 = vmin.f32 %v10823_v61, 20.0  ;;  %v10843_v63 = vadd.f32 %v10586_v12, %v10510_v22 }
 0x262   :  { %v7271_v4 = vpop.eup %7270  ;;  %7290 = vrcp.f32 %v3443_v55  ;;  %v3707_v28 = vmul.f32 %v7269_v2, %v10740_v17  ;;  %v2827_v57 = vmin.f32 %v10830_v35, 20.0  ;;  %v10848_v29 = vmul.f32 %v3705_v21, %v10563_v1 }
 0x263   :  { %v7273_v41 = vpop.eup %7272  ;;  %7292 = vpow2.f32 %v2973_v37  ;;  %v3206_v33 = vadd.f32 2.0, %v7271_v4  ;;  %v10851_v11 = vmul.f32 %v3703_v24, %v10568_v45  ;;  %v10854_v36 = vmul.f32 %v3706_v39, %v10575_v38 }
 0x264   :  { %v10825_v6 = vpop.f32.mrb[44].mxu1  ;;  %v7275_v25 = vpop.eup %7274  ;;  %v3461_v17 = vadd.f32 2.0, %v10819_v62  ;;  %v10858_v55 = vmul.f32 %v3704_v58, %v10584_v9  ;;  %v3710_v12 = vmul.f32 %v7273_v41, %v10753_v5  ;;  %v10861_v37 = vmul.f32 %v7267_v31, %v3203_v42 }
 0x265   :  { %v10832_v54 = vpop.f32.mrb[45].mxu1  ;;  %v7277_v47 = vpop.eup %7276  ;;  %v10864_v1 = vmul.f32 %v3709_v52, %v10619_v15  ;;  %7294 = vrcp.f32 %v3458_v23  ;;  %v2979_v45 = vmul.f32 1.442695, %v2827_v57  ;;  %v10868_v38 = vadd.f32 %v10510_v22, %v10591_v27 }
 0x266   :  { %v10837_v20 = vpop.f32.mrb[46].mxu1  ;;  %v7279_v2 = vpop.eup %7278  ;;  %v10871_v24 = vmul.f32 %v3707_v28, %v10623_v0  ;;  %7296 = vrcp.f32 %v3456_v18  ;;  %v10873_v9 = vmul.f32 %v7271_v4, %v3206_v33  ;;  %v2830_v5 = vmin.f32 %v10843_v63, 20.0  ;;  %v10885_v4 = vld [vmem:[%s13510_s5] ss:$0 sm:$0xff] }
 0x267   :  { %13793 = vst [vmem:[#allocation25_spill] sm:$0xff] %v10837_v20  ;;  %v10845_v34 = vpop.f32.mrb[47].mxu1  ;;  %v7281_v20 = vpop.eup %7280  ;;  %v3708_v31 = vmul.f32 %v7275_v25, %v10756_v32  ;;  %7298 = vrcp.f32 %v3461_v17  ;;  %v3204_v15 = vadd.f32 2.0, %v7279_v2  ;;  %v10879_v27 = vmul.f32 %v3710_v12, %v10629_v13 }
 0x268   :  { %13794 = vst [vmem:[#allocation26_spill] sm:$0xff] %v10845_v34  ;;  %v2983_v34 = vmul.f32 1.442695, %v2829_v19  ;;  %v7283_v21 = vpop.eup %7282  ;;  %v3459_v42 = vadd.f32 2.0, %v10861_v37  ;;  %v3209_v0 = vadd.f32 2.0, %v7281_v20  ;;  %v3713_v32 = vmul.f32 %v7277_v47, %v10758_v51 }
 0x269   :  { %v7285_v58 = vpop.eup %7284  ;;  %v3701_v39 = vmul.f32 %v7283_v21, %v10779_v16  ;;  %v2828_v16 = vmin.f32 %v10868_v38, 20.0  ;;  %v3462_v19 = vadd.f32 2.0, %v10873_v9  ;;  %v2985_v28 = vmul.f32 1.442695, %v2830_v5 }
 0x26a   :  { %v7287_v23 = vpop.eup %7286  ;;  %7300 = vpow2.f32 %v2983_v34  ;;  %v3207_v25 = vadd.f32 2.0, %v7285_v58  ;;  %v10895_v33 = vadd.f32 %v10615_v44, %v10510_v22  ;;  %v10899_v51 = vmul.f32 %v7279_v2, %v3204_v15 }
 0x26b   :  { %v7289_v41 = vpop.eup %7288  ;;  %v3829_v52 = vmul.f32 %v3701_v39, %v10559_v48  ;;  %7302 = vpow2.f32 %v2979_v45  ;;  %v10905_v17 = vadd.f32 %v10510_v22, %v10625_v14  ;;  %v3711_v45 = vmul.f32 %v7287_v23, %v10784_v46 }
 0x26c   :  { %v7291_v13 = vpop.eup %7290  ;;  %7304 = vrcp.f32 %v3459_v42  ;;  %v10910_v44 = vmul.f32 %v7281_v20, %v3209_v0  ;;  %v10914_v21 = vadd.f32 %v10635_v26, %v10510_v22  ;;  %v3210_v5 = vadd.f32 2.0, %v7289_v41 }
 0x26d   :  { %v10890_v18 = vpop.f32.mrb[48].mxu1  ;;  %v7293_v34 = vpop.eup %7292  ;;  %v3964_v48 = vmul.f32 %v10885_v4, %v3829_v52  ;;  %v3699_v47 = vmul.f32 %v7291_v13, %v10810_v59  ;;  %v2981_v15 = vmul.f32 1.442695, %v2828_v16  ;;  %v2833_v14 = vmin.f32 %v10895_v33, 20.0 }
 0x26e   :  { %v10897_v57 = vpop.f32.mrb[49].mxu1  ;;  %v10920_v39 = vmul.f32 %v7285_v58, %v3207_v25  ;;  %v3208_v52 = vadd.f32 2.0, %v7293_v34  ;;  %v3965_v46 = vmul.f32 %v10885_v4, %v10795_v60  ;;  %7306 = vpow2.f32 %v2985_v28 }
 0x26f   :  { %v10907_v12 = vpop.f32.mrb[50].mxu1  ;;  %4094 = vadd.xlane.f32.xlu1 %v3964_v48  ;;  %v3827_v59 = vmul.f32 %v3699_v47, %v10597_v43  ;;  %v7295_v20 = vpop.eup %7294  ;;  %7308 = vrcp.f32 %v3462_v19  ;;  %v3460_v26 = vadd.f32 2.0, %v10899_v51  ;;  %v2831_v42 = vmin.f32 %v10905_v17, 20.0  ;;  %v13798_v47 = vld [vmem:[#allocation11_spill] sm:$0xff] }
 0x270   :  { %13795 = vst [vmem:[#allocation18_spill] sm:$0xff] %v10907_v12  ;;  %v10916_v2 = vpop.f32.mrb[51].mxu1  ;;  %v7297_v0 = vpop.eup %7296  ;;  %v10928_v43 = vmul.f32 %v3708_v31, %v10633_v30  ;;  %v3465_v58 = vadd.f32 2.0, %v10910_v44  ;;  %v3969_v16 = vmul.f32 %v10885_v4, %v10854_v36  ;;  %v2834_v60 = vmin.f32 %v10914_v21, 20.0  ;;  %v13797_v31 = vld [vmem:[#allocation10_spill] sm:$0xff] }
 0x271   :  { %13796 = vst [vmem:[#allocation32_spill] sm:$0xff] %v10916_v2  ;;  %v3962_v23 = vmul.f32 %v10885_v4, %v3827_v59  ;;  %v7299_v13 = vpop.eup %7298  ;;  %v10934_v25 = vmul.f32 %v7289_v41, %v3210_v5  ;;  %7310 = vpow2.f32 %v2981_v15  ;;  %v2991_v19 = vmul.f32 1.442695, %v2833_v14  ;;  %v13815_v12 = vld [vmem:[#allocation6_spill] sm:$0xff] }
 0x272   :  { %v10938_v28 = vadd.f32 %v10510_v22, %v10640_v50  ;;  %v10941_v48 = vmul.f32 %v3713_v32, %v13797_v31  ;;  %v10944_v59 = vmul.f32 %v3711_v45, %v13798_v47  ;;  %v3463_v36 = vadd.f32 2.0, %v10920_v39 }
 0x273   :  { %4090 = vadd.xlane.f32.xlu0 %v3962_v23  ;;  %4096 = vadd.xlane.f32.xlu1 %v3965_v46  ;;  %v10947_v2 = vmul.f32 %v7293_v34, %v3208_v52  ;;  %7312 = vrcp.f32 %v3460_v26  ;;  %v3963_v5 = vmul.f32 %v10885_v4, %v10798_v3  ;;  %v2987_v15 = vmul.f32 1.442695, %v2831_v42  ;;  %v13799_v52 = vld [vmem:[#allocation27_spill] sm:$0xff] }
 0x274   :  { %v7301_v30 = vpop.eup %7300  ;;  %v2832_v50 = vmin.f32 %v10938_v28, 20.0  ;;  %v3714_v14 = vmul.f32 %v7295_v20, %v10807_v7  ;;  %7314 = vrcp.f32 %v3465_v58  ;;  %v3968_v32 = vmul.f32 %v10885_v4, %v10848_v29 }
 0x275   :  { %v7303_v41 = vpop.eup %7302  ;;  %v2993_v45 = vmul.f32 1.442695, %v2834_v60  ;;  %v3466_v46 = vadd.f32 2.0, %v10934_v25  ;;  %v3213_v34 = vadd.f32 2.0, %v7301_v30  ;;  %7316 = vpow2.f32 %v2991_v19 }
 0x276   :  { %v10958_v26 = vadd.f32 %v13799_v52, %v10510_v22  ;;  %v7305_v3 = vpop.eup %7304  ;;  %7318 = vrcp.f32 %v3463_v36  ;;  %v3464_v23 = vadd.f32 2.0, %v10947_v2  ;;  %v3211_v7 = vadd.f32 2.0, %v7303_v41 }
 0x277   :  { %4092 = vadd.xlane.f32.xlu0 %v3963_v5  ;;  %4104 = vadd.xlane.f32.xlu1 %v3969_v16  ;;  %v3967_v20 = vmul.f32 %v10885_v4, %v10858_v55  ;;  %7320 = vpow2.f32 %v2987_v15  ;;  %v2989_v42 = vmul.f32 1.442695, %v2832_v50  ;;  %v13801_v16 = vld [vmem:[#allocation28_spill] sm:$0xff]  ;;  %v3712_v47 = vmul.f32 %v7297_v0, %v10813_v49 }
 0x278   :  { %v2837_v58 = vmin.f32 %v10958_v26, 20.0  ;;  %v10968_v60 = vadd.f32 %v10510_v22, %v13801_v16  ;;  %v7307_v31 = vpop.eup %7306  ;;  %v3717_v36 = vmul.f32 %v7299_v13, %v10819_v62  ;;  %7322 = vpow2.f32 %v2993_v45  ;;  %v13803_v55 = vld [vmem:[#allocation12_spill] sm:$0xff] }
 0x279   :  { %v10976_v5 = vadd.f32 %v13803_v55, %v10510_v22  ;;  %v7309_v50 = vpop.eup %7308  ;;  %7324 = vrcp.f32 %v3466_v46  ;;  %v10980_v52 = vmul.f32 %v7301_v30, %v3213_v34  ;;  %v3966_v16 = vmul.f32 %v10885_v4, %v10851_v11  ;;  %v13806_v45 = vld [vmem:[#allocation20_spill] sm:$0xff] }
 0x27a   :  { %v3973_v49 = vmul.f32 %v10885_v4, %v10879_v27  ;;  %7326 = vrcp.f32 %v3464_v23  ;;  %v10988_v0 = vmul.f32 %v7303_v41, %v3211_v7  ;;  %v2835_v13 = vmin.f32 %v10968_v60, 20.0 }
 0x27b   :  { %v10963_v29 = vpop.f32.mrb[52].mxu1  ;;  %4102 = vadd.xlane.f32.xlu0 %v3968_v32  ;;  %4100 = vadd.xlane.f32.xlu1 %v3967_v20  ;;  %v10993_v46 = vadd.f32 %v10510_v22, %v13806_v45  ;;  %v7311_v30 = vpop.eup %7310  ;;  %v3214_v32 = vadd.f32 2.0, %v7307_v31  ;;  %7328 = vpow2.f32 %v2989_v42  ;;  %v2999_v34 = vmul.f32 1.442695, %v2837_v58  ;;  %v13808_v20 = vld [vmem:[#allocation29_spill] sm:$0xff] }
 0x27c   :  { %13800 = vst [vmem:[#allocation10_spill] sm:$0xff] %v10963_v29  ;;  %v10970_v19 = vpop.f32.mrb[53].mxu1  ;;  %v2838_v11 = vmin.f32 %v10976_v5, 20.0  ;;  %v3842_v55 = vmul.f32 %v3714_v14, %v13808_v20  ;;  %v3715_v27 = vmul.f32 %v7305_v3, %v10861_v37  ;;  %v3718_v23 = vmul.f32 %v7309_v50, %v10873_v9  ;;  %v13810_v29 = vld [vmem:[#allocation31_spill] sm:$0xff] }
 0x27d   :  { %13802 = vst [vmem:[#allocation11_spill] sm:$0xff] %v10970_v19  ;;  %v10978_v15 = vpop.f32.mrb[54].mxu1  ;;  %13807 = vst [vmem:[#allocation12_spill] sm:$0xff] %v10993_v46  ;;  %v2995_v41 = vmul.f32 1.442695, %v2835_v13  ;;  %v7313_v7 = vpop.eup %7312  ;;  %v3972_v45 = vmul.f32 %v10885_v4, %v10864_v1  ;;  %v2836_v42 = vmin.f32 %v10993_v46, 20.0  ;;  %v11005_v14 = vmul.f32 %v3717_v36, %v13810_v29 }
 0x27e   :  { %13804 = vst [vmem:[#allocation27_spill] sm:$0xff] %v10978_v15  ;;  %v10986_v62 = vpop.f32.mrb[55].mxu1  ;;  %v3469_v15 = vadd.f32 2.0, %v10980_v52  ;;  %v7315_v58 = vpop.eup %7314  ;;  %v3467_v37 = vadd.f32 2.0, %v10988_v0  ;;  %v3212_v9 = vadd.f32 2.0, %v7311_v30  ;;  %v13811_v3 = vld [vmem:[#allocation19_spill] sm:$0xff]  ;;  %v3971_v1 = vmul.f32 %v10885_v4, %v10928_v43 }
 0x27f   :  { %13805 = vst [vmem:[#allocation28_spill] sm:$0xff] %v10986_v62  ;;  %v13809_v62 = vld [vmem:[#allocation30_spill] sm:$0xff]  ;;  %4098 = vadd.xlane.f32.xlu0 %v3966_v16  ;;  %4112 = vadd.xlane.f32.xlu1 %v3973_v49  ;;  %v11010_v50 = vadd.f32 %v13811_v3, %v10510_v22  ;;  %v7317_v16 = vpop.eup %7316  ;;  %7330 = vpow2.f32 %v2999_v34  ;;  %v3001_v49 = vmul.f32 1.442695, %v2838_v11  ;;  %v3846_v46 = vmul.f32 %v3718_v23, %v13815_v12  ;;  %v11031_v34 = vld [vmem:[%s13509_s4] ss:$0 sm:$0xff] }
 0x280   :  { %v3840_v19 = vmul.f32 %v3712_v47, %v13809_v62  ;;  %v11014_v62 = vmul.f32 %v7307_v31, %v3214_v32  ;;  %v7319_v29 = vpop.eup %7318  ;;  %v13814_v36 = vld [vmem:[#allocation14_spill] sm:$0xff]  ;;  %7332 = vpow2.f32 %v2995_v41  ;;  %v2997_v43 = vmul.f32 1.442695, %v2836_v42  ;;  %v13817_v11 = vld [vmem:[#allocation21_spill] sm:$0xff] }
 0x281   :  { %v11021_v20 = vmul.f32 %v3715_v27, %v13814_v36  ;;  %v2841_v22 = vmin.f32 %v11010_v50, 20.0  ;;  %v7321_v31 = vpop.eup %7320  ;;  %7334 = vrcp.f32 %v3469_v15  ;;  %v3977_v32 = vmul.f32 %v10885_v4, %v3842_v55  ;;  %v13819_v36 = vld [vmem:[#allocation23_spill] sm:$0xff] }
 0x282   :  { %v11035_v12 = vadd.f32 %v11031_v34, %v13817_v11  ;;  %v7323_v23 = vpop.eup %7322  ;;  %7336 = vrcp.f32 %v3467_v37  ;;  %v11039_v41 = vmul.f32 %v7311_v30, %v3212_v9  ;;  %v3217_v15 = vadd.f32 2.0, %v7317_v16 }
 0x283   :  { %v11012_v47 = vpop.f32.mrb[56].mxu1  ;;  %4110 = vadd.xlane.f32.xlu0 %v3972_v45  ;;  %4108 = vadd.xlane.f32.xlu1 %v3971_v1  ;;  %v3007_v45 = vmul.f32 1.442695, %v2841_v22  ;;  %v7325_v42 = vpop.eup %7324  ;;  %v3470_v55 = vadd.f32 2.0, %v11014_v62  ;;  %v3970_v1 = vmul.f32 %v10885_v4, %v10871_v24  ;;  %7338 = vpow2.f32 %v3001_v49 }
 0x284   :  { %13812 = vst [vmem:[#allocation20_spill] sm:$0xff] %v11012_v47  ;;  %v11018_v13 = vpop.f32.mrb[57].mxu1  ;;  %v7327_v11 = vpop.eup %7326  ;;  %v3721_v37 = vmul.f32 %v7315_v58, %v10910_v44  ;;  %v3719_v30 = vmul.f32 %v7319_v29, %v10920_v39  ;;  %v3215_v9 = vadd.f32 2.0, %v7321_v31  ;;  %v3976_v47 = vmul.f32 %v10885_v4, %v10941_v48 }
 0x285   :  { %13813 = vst [vmem:[#allocation29_spill] sm:$0xff] %v11018_v13  ;;  %v11025_v3 = vpop.f32.mrb[58].mxu1  ;;  %v11046_v13 = vadd.f32 %v11031_v34, %v13819_v36  ;;  %v7329_v22 = vpop.eup %7328  ;;  %7340 = vpow2.f32 %v2997_v43  ;;  %v2839_v24 = vmin.f32 %v11035_v12, 20.0  ;;  %v3468_v49 = vadd.f32 2.0, %v11039_v41 }
 0x286   :  { %13816 = vst [vmem:[#allocation30_spill] sm:$0xff] %v11025_v3  ;;  %v11037_v27 = vpop.f32.mrb[59].mxu1  ;;  %v3218_v3 = vadd.f32 2.0, %v7323_v23  ;;  %v11055_v36 = vmul.f32 %v7317_v16, %v3217_v15  ;;  %7342 = vpow2.f32 %v3007_v45  ;;  %v3722_v39 = vmul.f32 %v7325_v42, %v10934_v25 }
 0x287   :  { %13818 = vst [vmem:[#allocation31_spill] sm:$0xff] %v11037_v27  ;;  %v3716_v27 = vmul.f32 %v7313_v7, %v10899_v51  ;;  %4106 = vadd.xlane.f32.xlu0 %v3970_v1  ;;  %4120 = vadd.xlane.f32.xlu1 %v3977_v32  ;;  %v13820_v51 = vld [vmem:[#allocation15_spill] sm:$0xff]  ;;  %7344 = vrcp.f32 %v3470_v55  ;;  %v3975_v7 = vmul.f32 %v10885_v4, %v3840_v19  ;;  %v2842_v48 = vmin.f32 %v11046_v13, 20.0 }
 0x288   :  { %v11059_v44 = vadd.f32 %v11031_v34, %v13820_v51  ;;  %v3720_v29 = vmul.f32 %v7327_v11, %v10947_v2  ;;  %v11066_v43 = vmul.f32 %v7321_v31, %v3215_v9  ;;  %v3216_v16 = vadd.f32 2.0, %v7329_v22 }
 0x289   :  { %v3844_v58 = vmul.f32 %v3716_v27, %v10751_v10  ;;  %v7331_v15 = vpop.eup %7330  ;;  %v11071_v45 = vmul.f32 %v3721_v37, %v10763_v56  ;;  %v11073_v1 = vmul.f32 %v7323_v23, %v3218_v3  ;;  %v3003_v25 = vmul.f32 1.442695, %v2839_v24  ;;  %v13822_v27 = vld [vmem:[#allocation17_spill] sm:$0xff] }
 0x28a   :  { %v3981_v19 = vmul.f32 %v10885_v4, %v3846_v46  ;;  %v7333_v10 = vpop.eup %7332  ;;  %7346 = vrcp.f32 %v3468_v49  ;;  %v3473_v2 = vadd.f32 2.0, %v11055_v36  ;;  %v2840_v31 = vmin.f32 %v11059_v44, 20.0 }
 0x28b   :  { %4118 = vadd.xlane.f32.xlu0 %v3976_v47  ;;  %4116 = vadd.xlane.f32.xlu1 %v3975_v7  ;;  %v11082_v55 = vadd.f32 %v11031_v34, %v13822_v27  ;;  %v7335_v3 = vpop.eup %7334  ;;  %v11087_v47 = vmul.f32 %v3719_v30, %v10767_v53  ;;  %v3850_v46 = vmul.f32 %v3722_v39, %v10775_v40  ;;  %v3009_v11 = vmul.f32 1.442695, %v2842_v48  ;;  %v13825_v39 = vld [vmem:[#allocation13_spill] sm:$0xff] }
 0x28c   :  { %v3974_v23 = vmul.f32 %v10885_v4, %v10944_v59  ;;  %v7337_v9 = vpop.eup %7336  ;;  %v11095_v24 = vmul.f32 %v3720_v29, %v10804_v8  ;;  %v3471_v49 = vadd.f32 2.0, %v11066_v43  ;;  %v11098_v51 = vmul.f32 %v7329_v22, %v3216_v16 }
 0x28d   :  { %v11068_v32 = vpop.f32.mrb[60].mxu1  ;;  %v3221_v7 = vadd.f32 2.0, %v7331_v15  ;;  %v7339_v27 = vpop.eup %7338  ;;  %v3474_v53 = vadd.f32 2.0, %v11073_v1  ;;  %v3219_v30 = vadd.f32 2.0, %v7333_v10  ;;  %7348 = vpow2.f32 %v3003_v25 }
 0x28e   :  { %v11076_v42 = vpop.f32.mrb[61].mxu1  ;;  %v3980_v40 = vmul.f32 %v10885_v4, %v11005_v14  ;;  %7350 = vrcp.f32 %v3473_v2  ;;  %v3005_v59 = vmul.f32 1.442695, %v2840_v31  ;;  %v2845_v8 = vmin.f32 %v11082_v55, 20.0 }
 0x28f   :  { %13821 = vst [vmem:[#allocation19_spill] sm:$0xff] %v11076_v42  ;;  %v11084_v56 = vpop.f32.mrb[62].mxu1  ;;  %4114 = vadd.xlane.f32.xlu0 %v3974_v23  ;;  %4128 = vadd.xlane.f32.xlu1 %v3981_v19  ;;  %v11106_v48 = vadd.f32 %v11031_v34, %v13825_v39  ;;  %v7341_v22 = vpop.eup %7340  ;;  %v3725_v29 = vmul.f32 %v7335_v3, %v10980_v52  ;;  %7352 = vpow2.f32 %v3009_v11  ;;  %v13826_v23 = vld [vmem:[#allocation22_spill] sm:$0xff]  ;;  %v3472_v2 = vadd.f32 2.0, %v11098_v51  ;;  %v13827_v52 = vld [vmem:[#allocation16_spill] sm:$0xff] }
 0x290   :  { %13823 = vst [vmem:[#allocation14_spill] sm:$0xff] %v11084_v56  ;;  %v11092_v37 = vpop.f32.mrb[63].mxu1  ;;  %v3979_v16 = vmul.f32 %v10885_v4, %v3844_v58  ;;  %v11112_v25 = vadd.f32 %v11031_v34, %v13826_v23  ;;  %v7343_v14 = vpop.eup %7342  ;;  %v11115_v19 = vmul.f32 %v7337_v9, %v10988_v0  ;;  %v11118_v31 = vmul.f32 %v7331_v15, %v3221_v7  ;;  %v13830_v23 = vld [vmem:[#allocation8_spill] sm:$0xff] }
 0x291   :  { %13824 = vst [vmem:[#allocation6_spill] sm:$0xff] %v11092_v37  ;;  %v3222_v39 = vadd.f32 2.0, %v7339_v27  ;;  %v7345_v37 = vpop.eup %7344  ;;  %7354 = vrcp.f32 %v3474_v53  ;;  %v11120_v42 = vmul.f32 %v7333_v10, %v3219_v30  ;;  %v11124_v58 = vadd.f32 %v11031_v34, %v13827_v52 }
 0x292   :  { %v3985_v3 = vmul.f32 %v10885_v4, %v3850_v46  ;;  %v3220_v11 = vadd.f32 2.0, %v7341_v22  ;;  %7356 = vpow2.f32 %v3005_v59  ;;  %v3015_v0 = vmul.f32 1.442695, %v2845_v8 }
 0x293   :  { %4126 = vadd.xlane.f32.xlu0 %v3980_v40  ;;  %4124 = vadd.xlane.f32.xlu1 %v3979_v16  ;;  %v2846_v9 = vmin.f32 %v11106_v48, 20.0  ;;  %7358 = vrcp.f32 %v3471_v49  ;;  %v3225_v15 = vadd.f32 2.0, %v7343_v14  ;;  %v3978_v7 = vmul.f32 %v10885_v4, %v11021_v20 }
 0x294   :  { %v2843_v10 = vmin.f32 %v11112_v25, 20.0  ;;  %v7347_v30 = vpop.eup %7346  ;;  %v3726_v40 = vmul.f32 %v7345_v37, %v11014_v62  ;;  %7360 = vrcp.f32 %v3472_v2  ;;  %v3477_v46 = vadd.f32 2.0, %v11118_v31  ;;  %v13832_v2 = vld [vmem:[#allocation24_spill] sm:$0xff] }
 0x295   :  { %v11135_v16 = vmul.f32 %v7339_v27, %v3222_v39  ;;  %v3475_v49 = vadd.f32 2.0, %v11120_v42  ;;  %v3984_v20 = vmul.f32 %v10885_v4, %v11071_v45  ;;  %v2844_v8 = vmin.f32 %v11124_v58, 20.0 }
 0x296   :  { %v11145_v52 = vadd.f32 %v11031_v34, %v13830_v23  ;;  %v11149_v37 = vmul.f32 %v7341_v22, %v3220_v11  ;;  %7362 = vpow2.f32 %v3015_v0  ;;  %v3017_v27 = vmul.f32 1.442695, %v2846_v9 }
 0x297   :  { %4122 = vadd.xlane.f32.xlu0 %v3978_v7  ;;  %4136 = vadd.xlane.f32.xlu1 %v3985_v3  ;;  %v11153_v39 = vadd.f32 %v11031_v34, %v13832_v2  ;;  %v7349_v45 = vpop.eup %7348  ;;  %v11158_v3 = vmul.f32 %v7343_v14, %v3225_v15  ;;  %v3983_v23 = vmul.f32 %v10885_v4, %v11095_v24  ;;  %7364 = vrcp.f32 %v3477_v46  ;;  %v13834_v14 = vld [vmem:[#allocation7_spill] sm:$0xff] }
 0x298   :  { %v11131_v53 = vpop.f32.mrb[64].mxu1  ;;  %v3854_v22 = vmul.f32 %v3726_v40, %v10843_v63  ;;  %v3478_v11 = vadd.f32 2.0, %v11135_v16  ;;  %v2849_v0 = vmin.f32 %v11145_v52, 20.0  ;;  %v3853_v2 = vmul.f32 %v3725_v29, %v10823_v61 }
 0x299   :  { %13828 = vst [vmem:[#allocation21_spill] sm:$0xff] %v11131_v53  ;;  %v11137_v59 = vpop.f32.mrb[65].mxu1  ;;  %v3011_v53 = vmul.f32 1.442695, %v2843_v10  ;;  %7366 = vrcp.f32 %v3475_v49  ;;  %v11168_v15 = vadd.f32 %v11031_v34, %v13834_v14  ;;  %v3476_v24 = vadd.f32 2.0, %v11149_v37 }
 0x29a   :  { %13829 = vst [vmem:[#allocation23_spill] sm:$0xff] %v11137_v59  ;;  %v11147_v62 = vpop.f32.mrb[66].mxu1  ;;  %v3724_v59 = vmul.f32 %v7347_v30, %v11039_v41  ;;  %v3013_v41 = vmul.f32 1.442695, %v2844_v8  ;;  %v3223_v10 = vadd.f32 2.0, %v7349_v45  ;;  %7368 = vpow2.f32 %v3017_v27 }
 0x29b   :  { %13831 = vst [vmem:[#allocation15_spill] sm:$0xff] %v11147_v62  ;;  %v11155_v7 = vpop.f32.mrb[67].mxu1  ;;  %v7351_v62 = vpop.eup %7350  ;;  %4134 = vadd.xlane.f32.xlu0 %v3984_v20  ;;  %4132 = vadd.xlane.f32.xlu1 %v3983_v23  ;;  %v2847_v63 = vmin.f32 %v11153_v39, 20.0  ;;  %v3481_v46 = vadd.f32 2.0, %v11158_v3  ;;  %7370 = vpow2.f32 %v3011_v53  ;;  %v3982_v61 = vmul.f32 %v10885_v4, %v11087_v47 }
 0x29c   :  { %13833 = vst [vmem:[#allocation17_spill] sm:$0xff] %v11155_v7  ;;  %v7353_v9 = vpop.eup %7352  ;;  %v3852_v40 = vmul.f32 %v3724_v59, %v10868_v38  ;;  %7372 = vrcp.f32 %v3478_v11  ;;  %v3023_v20 = vmul.f32 1.442695, %v2849_v0  ;;  %v3989_v8 = vmul.f32 %v10885_v4, %v3854_v22  ;;  %v13835_v38 = vld [vmem:[#allocation9_spill] sm:$0xff] }
 0x29d   :  { %v7355_v30 = vpop.eup %7354  ;;  %v3226_v49 = vadd.f32 2.0, %v7353_v9  ;;  %7374 = vpow2.f32 %v3013_v41  ;;  %v2850_v27 = vmin.f32 %v11168_v15, 20.0  ;;  %v3988_v14 = vmul.f32 %v10885_v4, %v3853_v2 }
 0x29e   :  { %v7357_v29 = vpop.eup %7356  ;;  %v11181_v59 = vadd.f32 %v11031_v34, %v13835_v38  ;;  %v3851_v47 = vmul.f32 %v11115_v19, %v10830_v35  ;;  %7376 = vrcp.f32 %v3476_v24  ;;  %v11185_v11 = vmul.f32 %v7349_v45, %v3223_v10 }
 0x29f   :  { %v7359_v23 = vpop.eup %7358  ;;  %4130 = vadd.xlane.f32.xlu0 %v3982_v61  ;;  %v3019_v0 = vmul.f32 1.442695, %v2847_v63  ;;  %4144 = vadd.xlane.f32.xlu1 %v3989_v8  ;;  %v3729_v41 = vmul.f32 %v7351_v62, %v11055_v36  ;;  %v3730_v61 = vmul.f32 %v7355_v30, %v11073_v1  ;;  %7378 = vrcp.f32 %v3481_v46 }
 0x2a0   :  { %v7361_v53 = vpop.eup %7360  ;;  %v3224_v2 = vadd.f32 2.0, %v7357_v29  ;;  %v11193_v56 = vmul.f32 %v7353_v9, %v3226_v49  ;;  %7380 = vpow2.f32 %v3023_v20  ;;  %v3987_v35 = vmul.f32 %v10885_v4, %v3852_v40 }
 0x2a1   :  { %v7363_v38 = vpop.eup %7362  ;;  %v11198_v19 = vadd.f32 %v11031_v34, %v10825_v6  ;;  %v3727_v36 = vmul.f32 %v7359_v23, %v11066_v43  ;;  %v3025_v62 = vmul.f32 1.442695, %v2850_v27  ;;  %v2848_v1 = vmin.f32 %v11181_v59, 20.0 }
 0x2a2   :  { %v7365_v10 = vpop.eup %7364  ;;  %v3728_v9 = vmul.f32 %v7361_v53, %v11098_v51  ;;  %v3479_v63 = vadd.f32 2.0, %v11185_v11  ;;  %7382 = vpow2.f32 %v3019_v0  ;;  %v11210_v6 = vadd.f32 %v11031_v34, %v10832_v54  ;;  %v13837_v53 = vld [vmem:[#allocation25_spill] sm:$0xff] }
 0x2a3   :  { %v11187_v22 = vpop.f32.mrb[68].mxu1  ;;  %4142 = vadd.xlane.f32.xlu0 %v3988_v14  ;;  %4140 = vadd.xlane.f32.xlu1 %v3987_v35  ;;  %v7367_v30 = vpop.eup %7366  ;;  %v3857_v43 = vmul.f32 %v3729_v41, %v10895_v33  ;;  %v11213_v40 = vmul.f32 %v7357_v29, %v3224_v2  ;;  %v3229_v46 = vadd.f32 2.0, %v7363_v38  ;;  %v3986_v49 = vmul.f32 %v10885_v4, %v3851_v47 }
 0x2a4   :  { %v11191_v7 = vpop.f32.mrb[69].mxu1  ;;  %v7369_v20 = vpop.eup %7368  ;;  %v3858_v8 = vmul.f32 %v3730_v61, %v10914_v21  ;;  %v3482_v51 = vadd.f32 2.0, %v11193_v56  ;;  %v2853_v23 = vmin.f32 %v11198_v19, 20.0  ;;  %v3733_v14 = vmul.f32 %v7365_v10, %v11118_v31 }
 0x2a5   :  { %v11200_v45 = vpop.f32.mrb[70].mxu1  ;;  %v7371_v27 = vpop.eup %7370  ;;  %7384 = vpow2.f32 %v3025_v62  ;;  %v3021_v54 = vmul.f32 1.442695, %v2848_v1  ;;  %v11222_v33 = vadd.f32 %v11031_v34, %v13837_v53  ;;  %v3855_v47 = vmul.f32 %v3727_v36, %v10905_v17 }
 0x2a6   :  { %v11204_v24 = vpop.f32.mrb[71].mxu1  ;;  %v7373_v29 = vpop.eup %7372  ;;  %v3856_v0 = vmul.f32 %v3728_v9, %v10938_v28  ;;  %7386 = vrcp.f32 %v3479_v63  ;;  %v2851_v21 = vmin.f32 %v11210_v6, 20.0  ;;  %v3480_v61 = vadd.f32 2.0, %v11213_v40  ;;  %v13839_v9 = vld [vmem:[#allocation26_spill] sm:$0xff] }
 0x2a7   :  { %13836 = vst [vmem:[#allocation13_spill] sm:$0xff] %v11204_v24  ;;  %4138 = vadd.xlane.f32.xlu0 %v3986_v49  ;;  %v7375_v41 = vpop.eup %7374  ;;  %v11228_v2 = vmul.f32 %v7363_v38, %v3229_v46  ;;  %v3230_v31 = vadd.f32 2.0, %v7369_v20  ;;  %v3992_v35 = vmul.f32 %v10885_v4, %v3857_v43  ;;  %7388 = vrcp.f32 %v3482_v51 }
 0x2a8   :  { %v7377_v62 = vpop.eup %7376  ;;  %v3227_v1 = vadd.f32 2.0, %v7371_v27  ;;  %v3031_v10 = vmul.f32 1.442695, %v2853_v23  ;;  %v2854_v49 = vmin.f32 %v11222_v33, 20.0  ;;  %v3861_v36 = vmul.f32 %v3733_v14, %v10958_v26 }
 0x2a9   :  { %v7379_v28 = vpop.eup %7378  ;;  %7390 = vpow2.f32 %v3021_v54  ;;  %v11237_v38 = vadd.f32 %v11031_v34, %v13839_v9  ;;  %v3993_v63 = vmul.f32 %v10885_v4, %v3858_v8  ;;  %v3731_v51 = vmul.f32 %v7367_v30, %v11120_v42 }
 0x2aa   :  { %v7381_v46 = vpop.eup %7380  ;;  %v3734_v23 = vmul.f32 %v7373_v29, %v11135_v16  ;;  %v3228_v53 = vadd.f32 2.0, %v7375_v41  ;;  %7392 = vrcp.f32 %v3480_v61  ;;  %v3485_v26 = vadd.f32 2.0, %v11228_v2 }
 0x2ab   :  { %4150 = vadd.xlane.f32.xlu0 %v3992_v35  ;;  %v11247_v14 = vmul.f32 %v7369_v20, %v3230_v31  ;;  %4152 = vadd.xlane.f32.xlu1 %v3993_v63  ;;  %v3990_v54 = vmul.f32 %v10885_v4, %v3855_v47  ;;  %v3732_v9 = vmul.f32 %v7377_v62, %v11149_v37  ;;  %7394 = vpow2.f32 %v3031_v10  ;;  %v13841_v10 = vld [vmem:[#allocation12_spill] sm:$0xff] }
 0x2ac   :  { %v7383_v35 = vpop.eup %7382  ;;  %v11253_v42 = vmul.f32 %v7371_v27, %v3227_v1  ;;  %v3033_v16 = vmul.f32 1.442695, %v2854_v49  ;;  %v3737_v30 = vmul.f32 %v7379_v28, %v11158_v3  ;;  %v3233_v29 = vadd.f32 2.0, %v7381_v46  ;;  %v13842_v28 = vld [vmem:[#allocation18_spill] sm:$0xff] }
 0x2ad   :  { %v11232_v17 = vpop.f32.mrb[72].mxu1  ;;  %v3991_v20 = vmul.f32 %v10885_v4, %v3856_v0  ;;  %v11258_v61 = vmul.f32 %v7375_v41, %v3228_v53  ;;  %v11262_v47 = vadd.f32 %v11031_v34, %v10890_v18  ;;  %v3996_v37 = vmul.f32 %v10885_v4, %v3861_v36 }
 0x2ae   :  { %13838 = vst [vmem:[#allocation22_spill] sm:$0xff] %v11232_v17  ;;  %v11240_v43 = vpop.f32.mrb[73].mxu1  ;;  %v3027_v17 = vmul.f32 1.442695, %v2851_v21  ;;  %v2852_v21 = vmin.f32 %v11237_v38, 20.0  ;;  %v3862_v31 = vmul.f32 %v3734_v23, %v10976_v5  ;;  %v3486_v3 = vadd.f32 2.0, %v11247_v14 }
 0x2af   :  { %v11244_v24 = vpop.f32.mrb[74].mxu1  ;;  %4146 = vadd.xlane.f32.xlu0 %v3990_v54  ;;  %v7385_v27 = vpop.eup %7384  ;;  %v3231_v62 = vadd.f32 2.0, %v7383_v35  ;;  %4148 = vadd.xlane.f32.xlu1 %v3991_v20  ;;  %v3859_v0 = vmul.f32 %v3731_v51, %v10968_v60  ;;  %v3483_v41 = vadd.f32 2.0, %v11253_v42  ;;  %v11271_v18 = vadd.f32 %v11031_v34, %v10897_v57 }
 0x2b0   :  { %v11250_v8 = vpop.f32.mrb[75].mxu1  ;;  %7396 = vpow2.f32 %v3027_v17  ;;  %v7387_v1 = vpop.eup %7386  ;;  %v3860_v49 = vmul.f32 %v3732_v9, %v13841_v10  ;;  %v11274_v17 = vmul.f32 %v7381_v46, %v3233_v29  ;;  %v3029_v5 = vmul.f32 1.442695, %v2852_v21  ;;  %v13843_v46 = vld [vmem:[#allocation32_spill] sm:$0xff] }
 0x2b1   :  { %13840 = vst [vmem:[#allocation16_spill] sm:$0xff] %v11250_v8  ;;  %7398 = vrcp.f32 %v3485_v26  ;;  %v11278_v36 = vadd.f32 %v11031_v34, %v13842_v28  ;;  %v7389_v63 = vpop.eup %7388  ;;  %v3865_v60 = vmul.f32 %v3737_v30, %v11010_v50  ;;  %v3484_v51 = vadd.f32 2.0, %v11258_v61  ;;  %v13847_v28 = vld [vmem:[#allocation10_spill] sm:$0xff]  ;;  %v13848_v8 = vld [vmem:[#allocation27_spill] sm:$0xff] }
 0x2b2   :  { %7400 = vpow2.f32 %v3033_v16  ;;  %v3234_v23 = vadd.f32 2.0, %v7385_v27  ;;  %v2857_v53 = vmin.f32 %v11262_v47, 20.0  ;;  %v11283_v26 = vmul.f32 %v7383_v35, %v3231_v62 }
 0x2b3   :  { %4158 = vadd.xlane.f32.xlu0 %v3996_v37  ;;  %v7391_v57 = vpop.eup %7390  ;;  %7402 = vrcp.f32 %v3486_v3  ;;  %v11287_v54 = vadd.f32 %v11031_v34, %v13843_v46  ;;  %v3997_v9 = vmul.f32 %v10885_v4, %v3862_v31  ;;  %v3735_v29 = vmul.f32 %v7387_v1, %v11185_v11 }
 0x2b4   :  { %7404 = vrcp.f32 %v3483_v41  ;;  %v2855_v50 = vmin.f32 %v11271_v18, 20.0  ;;  %v3994_v30 = vmul.f32 %v10885_v4, %v3859_v0  ;;  %v7393_v20 = vpop.eup %7392  ;;  %v3738_v35 = vmul.f32 %v7389_v63, %v11193_v56 }
 0x2b5   :  { %v3489_v37 = vadd.f32 2.0, %v11274_v17  ;;  %7406 = vpow2.f32 %v3029_v5  ;;  %v2858_v3 = vmin.f32 %v11278_v36, 20.0  ;;  %4160 = vadd.xlane.f32.xlu1 %v3997_v9  ;;  %v7395_v62 = vpop.eup %7394  ;;  %v11302_v11 = vmul.f32 %v7385_v27, %v3234_v23 }
 0x2b6   :  { %7408 = vrcp.f32 %v3484_v51  ;;  %v3232_v1 = vadd.f32 2.0, %v7391_v57  ;;  %v3039_v41 = vmul.f32 1.442695, %v2857_v53  ;;  %v3487_v10 = vadd.f32 2.0, %v11283_v26 }
 0x2b7   :  { %4154 = vadd.xlane.f32.xlu0 %v3994_v30  ;;  %v2856_v56 = vmin.f32 %v11287_v54, 20.0  ;;  %v3995_v5 = vmul.f32 %v10885_v4, %v3860_v49  ;;  %v11311_v63 = vadd.f32 %v11031_v34, %v13847_v28  ;;  %v3863_v51 = vmul.f32 %v3735_v29, %v11035_v12 }
 0x2b8   :  { %v11290_v16 = vpop.f32.mrb[76].mxu1  ;;  %v3736_v27 = vmul.f32 %v7393_v20, %v11213_v40  ;;  %v3035_v23 = vmul.f32 1.442695, %v2855_v50  ;;  %v4000_v53 = vmul.f32 %v10885_v4, %v3865_v60  ;;  %7410 = vrcp.f32 %v3489_v37  ;;  %v13849_v37 = vld [vmem:[#allocation11_spill] sm:$0xff] }
 0x2b9   :  { %13844 = vst [vmem:[#allocation8_spill] sm:$0xff] %v11290_v16  ;;  %v11295_v21 = vpop.f32.mrb[77].mxu1  ;;  %v3237_v30 = vadd.f32 2.0, %v7395_v62  ;;  %4156 = vadd.xlane.f32.xlu1 %v3995_v5  ;;  %v3490_v16 = vadd.f32 2.0, %v11302_v11  ;;  %v11318_v28 = vmul.f32 %v7391_v57, %v3232_v1  ;;  %7412 = vpow2.f32 %v3039_v41 }
 0x2ba   :  { %13845 = vst [vmem:[#allocation24_spill] sm:$0xff] %v11295_v21  ;;  %v11300_v31 = vpop.f32.mrb[78].mxu1  ;;  %v7397_v46 = vpop.eup %7396  ;;  %v2861_v21 = vmin.f32 %v11311_v63, 20.0  ;;  %v11322_v12 = vadd.f32 %v11031_v34, %v13848_v8  ;;  %v3866_v40 = vmul.f32 %v3738_v35, %v11046_v13  ;;  %7414 = vrcp.f32 %v3487_v10 }
 0x2bb   :  { %13846 = vst [vmem:[#allocation7_spill] sm:$0xff] %v11300_v31  ;;  %v11304_v0 = vpop.f32.mrb[79].mxu1  ;;  %v7399_v9 = vpop.eup %7398  ;;  %v3041_v31 = vmul.f32 1.442695, %v2858_v3  ;;  %4166 = vadd.xlane.f32.xlu0 %v4000_v53  ;;  %v3235_v60 = vadd.f32 2.0, %v7397_v46  ;;  %v3864_v50 = vmul.f32 %v3736_v27, %v11059_v44  ;;  %7416 = vpow2.f32 %v3035_v23 }
 0x2bc   :  { %v7401_v49 = vpop.eup %7400  ;;  %v3037_v29 = vmul.f32 1.442695, %v2856_v56  ;;  %v3741_v20 = vmul.f32 %v7399_v9, %v11228_v2  ;;  %v11329_v57 = vadd.f32 %v11031_v34, %v13849_v37  ;;  %v11331_v1 = vmul.f32 %v7395_v62, %v3237_v30  ;;  %v13851_v2 = vld [vmem:[#allocation28_spill] sm:$0xff] }
 0x2bd   :  { %v7403_v3 = vpop.eup %7402  ;;  %v3238_v8 = vadd.f32 2.0, %v7401_v49  ;;  %7418 = vpow2.f32 %v3041_v31  ;;  %v3047_v41 = vmul.f32 1.442695, %v2861_v21  ;;  %v3488_v35 = vadd.f32 2.0, %v11318_v28 }
 0x2be   :  { %v7405_v13 = vpop.eup %7404  ;;  %7420 = vrcp.f32 %v3490_v16  ;;  %v2862_v44 = vmin.f32 %v11322_v12, 20.0  ;;  %v11339_v10 = vadd.f32 %v11031_v34, %v13851_v2  ;;  %v11343_v62 = vmul.f32 %v7397_v46, %v3235_v60 }
 0x2bf   :  { %v7407_v27 = vpop.eup %7406  ;;  %7422 = vpow2.f32 %v3037_v29  ;;  %v4001_v21 = vmul.f32 %v10885_v4, %v3866_v40  ;;  %v3998_v31 = vmul.f32 %v10885_v4, %v3863_v51  ;;  %v3742_v53 = vmul.f32 %v7403_v3, %v11247_v14 }
 0x2c0   :  { %v7409_v16 = vpop.eup %7408  ;;  %v2859_v9 = vmin.f32 %v11329_v57, 20.0  ;;  %v3869_v37 = vmul.f32 %v3741_v20, %v11082_v55  ;;  %v3493_v2 = vadd.f32 2.0, %v11331_v1  ;;  %v11355_v46 = vmul.f32 %v7401_v49, %v3238_v8 }
 0x2c1   :  { %7424 = vpow2.f32 %v3047_v41  ;;  %4168 = vadd.xlane.f32.xlu1 %v4001_v21  ;;  %4162 = vadd.xlane.f32.xlu0 %v3998_v31  ;;  %v3236_v51 = vadd.f32 2.0, %v7407_v27  ;;  %v3049_v40 = vmul.f32 1.442695, %v2862_v44  ;;  %v2860_v60 = vmin.f32 %v11339_v10, 20.0  ;;  %v13855_v41 = vld [vmem:[#allocation20_spill] sm:$0xff] }
 0x2c2   :  { %v11333_v5 = vpop.f32.mrb[80].mxu1  ;;  %7426 = vrcp.f32 %v3488_v35  ;;  %v7411_v29 = vpop.eup %7410  ;;  %v3739_v14 = vmul.f32 %v7405_v13, %v11253_v42  ;;  %v3740_v3 = vmul.f32 %v7409_v16, %v11258_v61  ;;  %v3999_v55 = vmul.f32 %v10885_v4, %v3864_v50  ;;  %v13856_v42 = vld [vmem:[#allocation30_spill] sm:$0xff] }
 0x2c3   :  { %13850 = vst [vmem:[#allocation9_spill] sm:$0xff] %v11333_v5  ;;  %v11341_v56 = vpop.f32.mrb[81].mxu1  ;;  %v7413_v20 = vpop.eup %7412  ;;  %v3870_v49 = vmul.f32 %v3742_v53, %v11106_v48  ;;  %v3043_v8 = vmul.f32 1.442695, %v2859_v9  ;;  %v11365_v35 = vadd.f32 %v11031_v34, %v13855_v41  ;;  %7428 = vrcp.f32 %v3493_v2  ;;  %v11377_v48 = vld [vmem:[%s13510_s5] ss:$0 sm:$0xff] }
 0x2c4   :  { %13852 = vst [vmem:[#allocation25_spill] sm:$0xff] %v11341_v56  ;;  %v11347_v23 = vpop.f32.mrb[82].mxu1  ;;  %v7415_v44 = vpop.eup %7414  ;;  %v3494_v21 = vadd.f32 2.0, %v11355_v46  ;;  %v11370_v61 = vadd.f32 %v11031_v34, %v13856_v42  ;;  %v11372_v31 = vmul.f32 %v7407_v27, %v3236_v51  ;;  %7430 = vpow2.f32 %v3049_v40  ;;  %v13857_v51 = vld [vmem:[#allocation29_spill] sm:$0xff] }
 0x2c5   :  { %13853 = vst [vmem:[#allocation26_spill] sm:$0xff] %v11347_v23  ;;  %v11351_v30 = vpop.f32.mrb[83].mxu1  ;;  %4164 = vadd.xlane.f32.xlu1 %v3999_v55  ;;  %v7417_v13 = vpop.eup %7416  ;;  %v3045_v4 = vmul.f32 1.442695, %v2860_v60  ;;  %v4004_v50 = vmul.f32 %v11377_v48, %v3869_v37  ;;  %v3867_v53 = vmul.f32 %v3739_v14, %v11112_v25  ;;  %v3868_v9 = vmul.f32 %v3740_v3, %v11124_v58 }
 0x2c6   :  { %13854 = vst [vmem:[#allocation12_spill] sm:$0xff] %v11351_v30  ;;  %v3491_v30 = vadd.f32 2.0, %v11343_v62  ;;  %v3241_v2 = vadd.f32 2.0, %v7413_v20  ;;  %v2865_v27 = vmin.f32 %v11365_v35, 20.0  ;;  %v11385_v40 = vadd.f32 %v11031_v34, %v13857_v51 }
 0x2c7   :  { %v7419_v16 = vpop.eup %7418  ;;  %4174 = vadd.xlane.f32.xlu0 %v4004_v50  ;;  %v4005_v60 = vmul.f32 %v11377_v48, %v3870_v49  ;;  %v3745_v25 = vmul.f32 %v7411_v29, %v11274_v17  ;;  %v2866_v58 = vmin.f32 %v11370_v61, 20.0  ;;  %v3239_v42 = vadd.f32 2.0, %v7417_v13 }
 0x2c8   :  { %7432 = vrcp.f32 %v3491_v30  ;;  %v7421_v55 = vpop.eup %7420  ;;  %v13859_v30 = vld [vmem:[#allocation31_spill] sm:$0xff]  ;;  %v3242_v50 = vadd.f32 2.0, %v7419_v16  ;;  %v3743_v17 = vmul.f32 %v7415_v44, %v11283_v26  ;;  %v3055_v56 = vmul.f32 1.442695, %v2865_v27 }
 0x2c9   :  { %7434 = vpow2.f32 %v3043_v8  ;;  %v7423_v37 = vpop.eup %7422  ;;  %v11394_v14 = vadd.f32 %v11031_v34, %v13859_v30  ;;  %v3492_v8 = vadd.f32 2.0, %v11372_v31  ;;  %4176 = vadd.xlane.f32.xlu1 %v4005_v60  ;;  %v3746_v29 = vmul.f32 %v7421_v55, %v11302_v11 }
 0x2ca   :  { %7436 = vrcp.f32 %v3494_v21  ;;  %v11403_v21 = vmul.f32 %v7413_v20, %v3241_v2  ;;  %v4002_v30 = vmul.f32 %v11377_v48, %v3867_v53  ;;  %v3240_v23 = vadd.f32 2.0, %v7423_v37 }
 0x2cb   :  { %7438 = vpow2.f32 %v3045_v4  ;;  %v7425_v51 = vpop.eup %7424  ;;  %v2863_v5 = vmin.f32 %v11385_v40, 20.0  ;;  %v4003_v4 = vmul.f32 %v11377_v48, %v3868_v9  ;;  %v3873_v60 = vmul.f32 %v3745_v25, %v11145_v52 }
 0x2cc   :  { %v2864_v26 = vmin.f32 %v11394_v14, 20.0  ;;  %4170 = vadd.xlane.f32.xlu0 %v4002_v30  ;;  %7440 = vrcp.f32 %v3492_v8  ;;  %v11412_v11 = vmul.f32 %v7417_v13, %v3239_v42  ;;  %v11414_v20 = vmul.f32 %v7419_v16, %v3242_v50 }
 0x2cd   :  { %v11388_v41 = vpop.f32.mrb[84].mxu1  ;;  %v3245_v44 = vadd.f32 2.0, %v7425_v51  ;;  %4172 = vadd.xlane.f32.xlu1 %v4003_v4  ;;  %v3874_v2 = vmul.f32 %v3746_v29, %v11168_v15  ;;  %v3497_v9 = vadd.f32 2.0, %v11403_v21  ;;  %v3871_v52 = vmul.f32 %v3743_v17, %v11153_v39  ;;  %v13862_v39 = vld [vmem:[#allocation14_spill] sm:$0xff]  ;;  %v13863_v4 = vld [vmem:[#allocation19_spill] sm:$0xff] }
 0x2ce   :  { %13858 = vst [vmem:[#allocation18_spill] sm:$0xff] %v11388_v41  ;;  %v11396_v3 = vpop.f32.mrb[85].mxu1  ;;  %v11420_v25 = vmul.f32 %v7423_v37, %v3240_v23  ;;  %7442 = vpow2.f32 %v3055_v56  ;;  %v3053_v16 = vmul.f32 1.442695, %v2864_v26  ;;  %v11424_v8 = vadd.f32 %v11031_v34, %v11068_v32 }
 0x2cf   :  { %13860 = vst [vmem:[#allocation32_spill] sm:$0xff] %v11396_v3  ;;  %v11399_v49 = vpop.f32.mrb[86].mxu1  ;;  %v7427_v3 = vpop.eup %7426  ;;  %v4008_v15 = vmul.f32 %v11377_v48, %v3873_v60  ;;  %v11429_v50 = vmul.f32 %v7425_v51, %v3245_v44  ;;  %v11433_v56 = vadd.f32 %v11031_v34, %v13862_v39  ;;  %v11445_v60 = vadd.f32 %v11031_v34, %v13863_v4 }
 0x2d0   :  { %13861 = vst [vmem:[#allocation10_spill] sm:$0xff] %v11399_v49  ;;  %v11406_v41 = vpop.f32.mrb[87].mxu1  ;;  %v3057_v49 = vmul.f32 1.442695, %v2866_v58  ;;  %v7429_v53 = vpop.eup %7428  ;;  %v3744_v55 = vmul.f32 %v7427_v3, %v11318_v28  ;;  %v3051_v58 = vmul.f32 1.442695, %v2863_v5 }
 0x2d1   :  { %v7431_v27 = vpop.eup %7430  ;;  %v3495_v28 = vadd.f32 2.0, %v11412_v11  ;;  %v3498_v3 = vadd.f32 2.0, %v11414_v20  ;;  %4182 = vadd.xlane.f32.xlu0 %v4008_v15  ;;  %v3749_v51 = vmul.f32 %v7429_v53, %v11331_v1  ;;  %v3496_v30 = vadd.f32 2.0, %v11420_v25 }
 0x2d2   :  { %v7433_v13 = vpop.eup %7432  ;;  %7444 = vpow2.f32 %v3057_v49  ;;  %v3872_v37 = vmul.f32 %v3744_v55, %v11181_v59  ;;  %v3246_v32 = vadd.f32 2.0, %v7431_v27  ;;  %v4009_v49 = vmul.f32 %v11377_v48, %v3874_v2 }
 0x2d3   :  { %v7435_v42 = vpop.eup %7434  ;;  %7446 = vrcp.f32 %v3497_v9  ;;  %v2869_v44 = vmin.f32 %v11424_v8, 20.0  ;;  %v4006_v2 = vmul.f32 %v11377_v48, %v3871_v52  ;;  %v3501_v1 = vadd.f32 2.0, %v11429_v50  ;;  %v13866_v9 = vld [vmem:[#allocation6_spill] sm:$0xff] }
 0x2d4   :  { %v7437_v23 = vpop.eup %7436  ;;  %7448 = vpow2.f32 %v3051_v58  ;;  %v3243_v59 = vadd.f32 2.0, %v7435_v42  ;;  %4184 = vadd.xlane.f32.xlu1 %v4009_v49  ;;  %v2870_v53 = vmin.f32 %v11433_v56, 20.0  ;;  %v11457_v58 = vadd.f32 %v11031_v34, %v13866_v9 }
 0x2d5   :  { %v7439_v29 = vpop.eup %7438  ;;  %7450 = vpow2.f32 %v3053_v16  ;;  %v3750_v15 = vmul.f32 %v7437_v23, %v11355_v46  ;;  %v11460_v39 = vmul.f32 %v7431_v27, %v3246_v32  ;;  %4178 = vadd.xlane.f32.xlu0 %v4006_v2  ;;  %v4007_v49 = vmul.f32 %v11377_v48, %v3872_v37  ;;  %v13867_v32 = vld [vmem:[#allocation21_spill] sm:$0xff] }
 0x2d6   :  { %7452 = vrcp.f32 %v3498_v3  ;;  %v3244_v16 = vadd.f32 2.0, %v7439_v29  ;;  %v7441_v52 = vpop.eup %7440  ;;  %v3747_v4 = vmul.f32 %v7433_v13, %v11343_v62  ;;  %v2867_v3 = vmin.f32 %v11445_v60, 20.0 }
 0x2d7   :  { %v11435_v5 = vpop.f32.mrb[88].mxu1  ;;  %7454 = vrcp.f32 %v3495_v28  ;;  %v3063_v9 = vmul.f32 1.442695, %v2869_v44  ;;  %v3065_v27 = vmul.f32 1.442695, %v2870_v53  ;;  %v2868_v23 = vmin.f32 %v11457_v58, 20.0 }
 0x2d8   :  { %v11439_v17 = vpop.f32.mrb[89].mxu1  ;;  %7456 = vrcp.f32 %v3496_v30  ;;  %4180 = vadd.xlane.f32.xlu1 %v4007_v49  ;;  %v7443_v46 = vpop.eup %7442  ;;  %v11471_v37 = vadd.f32 %v11031_v34, %v13867_v32  ;;  %v3878_v13 = vmul.f32 %v3750_v15, %v11222_v33  ;;  %v3748_v28 = vmul.f32 %v7441_v52, %v11372_v31 }
 0x2d9   :  { %v11447_v26 = vpop.f32.mrb[90].mxu1  ;;  %7458 = vrcp.f32 %v3501_v1  ;;  %v3059_v30 = vmul.f32 1.442695, %v2867_v3  ;;  %v3249_v53 = vadd.f32 2.0, %v7443_v46 }
 0x2da   :  { %13864 = vst [vmem:[#allocation27_spill] sm:$0xff] %v11447_v26  ;;  %v11451_v55 = vpop.f32.mrb[91].mxu1  ;;  %v11466_v26 = vmul.f32 %v7435_v42, %v3243_v59  ;;  %v11476_v42 = vmul.f32 %v7439_v29, %v3244_v16  ;;  %v13868_v59 = vld [vmem:[#allocation23_spill] sm:$0xff]  ;;  %7460 = vpow2.f32 %v3063_v9  ;;  %v3061_v29 = vmul.f32 1.442695, %v2868_v23 }
 0x2db   :  { %13865 = vst [vmem:[#allocation11_spill] sm:$0xff] %v11451_v55  ;;  %v3877_v55 = vmul.f32 %v3749_v51, %v11198_v19  ;;  %v3502_v19 = vadd.f32 2.0, %v11460_v39  ;;  %v3875_v51 = vmul.f32 %v3747_v4, %v11210_v6  ;;  %v11481_v44 = vadd.f32 %v11031_v34, %v13868_v59 }
 0x2dc   :  { %v7445_v62 = vpop.eup %7444  ;;  %v3499_v1 = vadd.f32 2.0, %v11466_v26  ;;  %7462 = vpow2.f32 %v3065_v27  ;;  %v2873_v6 = vmin.f32 %v11471_v37, 20.0  ;;  %v3876_v34 = vmul.f32 %v3748_v28, %v11237_v38 }
 0x2dd   :  { %v7447_v2 = vpop.eup %7446  ;;  %v4012_v33 = vmul.f32 %v11377_v48, %v3877_v55  ;;  %v3250_v49 = vadd.f32 2.0, %v7445_v62  ;;  %7464 = vrcp.f32 %v3502_v19  ;;  %v3500_v4 = vadd.f32 2.0, %v11476_v42 }
 0x2de   :  { %v7449_v31 = vpop.eup %7448  ;;  %v4013_v3 = vmul.f32 %v11377_v48, %v3878_v13  ;;  %v3753_v32 = vmul.f32 %v7447_v2, %v11403_v21  ;;  %7466 = vpow2.f32 %v3059_v30  ;;  %v2871_v27 = vmin.f32 %v11481_v44, 20.0 }
 0x2df   :  { %v7451_v52 = vpop.eup %7450  ;;  %4190 = vadd.xlane.f32.xlu0 %v4012_v33  ;;  %7468 = vrcp.f32 %v3499_v1  ;;  %v11499_v59 = vmul.f32 %v7443_v46, %v3249_v53  ;;  %v3247_v38 = vadd.f32 2.0, %v7449_v31  ;;  %v4010_v28 = vmul.f32 %v11377_v48, %v3875_v51  ;;  %v11509_v1 = vld [vmem:[%s13509_s4] ss:$0 sm:$0xff]  ;;  %v13871_v51 = vld [vmem:[#allocation15_spill] sm:$0xff] }
 0x2e0   :  { %v7453_v9 = vpop.eup %7452  ;;  %4192 = vadd.xlane.f32.xlu1 %v4013_v3  ;;  %v11502_v33 = vmul.f32 %v7445_v62, %v3250_v49  ;;  %v3248_v13 = vadd.f32 2.0, %v7451_v52  ;;  %7470 = vpow2.f32 %v3061_v29  ;;  %v4011_v30 = vmul.f32 %v11377_v48, %v3876_v34 }
 0x2e1   :  { %v7455_v19 = vpop.eup %7454  ;;  %v3754_v21 = vmul.f32 %v7453_v9, %v11414_v20  ;;  %7472 = vrcp.f32 %v3500_v4  ;;  %v3067_v46 = vmul.f32 1.442695, %v2871_v27  ;;  %v11513_v62 = vadd.f32 %v11509_v1, %v13871_v51 }
 0x2e2   :  { %v11485_v15 = vpop.f32.mrb[92].mxu1  ;;  %v3881_v53 = vmul.f32 %v3753_v32, %v11262_v47  ;;  %v3751_v49 = vmul.f32 %v7455_v19, %v11412_v11  ;;  %v3505_v20 = vadd.f32 2.0, %v11499_v59  ;;  %v11518_v29 = vmul.f32 %v7449_v31, %v3247_v38 }
 0x2e3   :  { %v11488_v16 = vpop.f32.mrb[93].mxu1  ;;  %4186 = vadd.xlane.f32.xlu0 %v4010_v28  ;;  %v11521_v34 = vmul.f32 %v7451_v52, %v3248_v13  ;;  %v3882_v3 = vmul.f32 %v3754_v21, %v11278_v36  ;;  %v2874_v31 = vmin.f32 %v11513_v62, 20.0 }
 0x2e4   :  { %13869 = vst [vmem:[#allocation28_spill] sm:$0xff] %v11488_v16  ;;  %v11493_v55 = vpop.f32.mrb[94].mxu1  ;;  %v7457_v16 = vpop.eup %7456  ;;  %4188 = vadd.xlane.f32.xlu1 %v4011_v30  ;;  %v3879_v52 = vmul.f32 %v3751_v49, %v11271_v18  ;;  %v4016_v36 = vmul.f32 %v11377_v48, %v3881_v53 }
 0x2e5   :  { %13870 = vst [vmem:[#allocation20_spill] sm:$0xff] %v11493_v55  ;;  %v11497_v23 = vpop.f32.mrb[95].mxu1  ;;  %v3071_v55 = vmul.f32 1.442695, %v2873_v6  ;;  %v7459_v2 = vpop.eup %7458  ;;  %v3506_v6 = vadd.f32 2.0, %v11502_v33  ;;  %v3752_v9 = vmul.f32 %v7457_v16, %v11420_v25 }
 0x2e6   :  { %v7461_v4 = vpop.eup %7460  ;;  %v3757_v27 = vmul.f32 %v7459_v2, %v11429_v50  ;;  %v3504_v50 = vadd.f32 2.0, %v11521_v34  ;;  %v4017_v2 = vmul.f32 %v11377_v48, %v3882_v3  ;;  %v3073_v53 = vmul.f32 1.442695, %v2874_v31 }
 0x2e7   :  { %7474 = vpow2.f32 %v3071_v55  ;;  %v7463_v11 = vpop.eup %7462  ;;  %v3503_v55 = vadd.f32 2.0, %v11518_v29  ;;  %v3253_v16 = vadd.f32 2.0, %v7461_v4  ;;  %v3880_v21 = vmul.f32 %v3752_v9, %v11287_v54  ;;  %4198 = vadd.xlane.f32.xlu0 %v4016_v36 }
 0x2e8   :  { %7476 = vpow2.f32 %v3067_v46  ;;  %v7465_v38 = vpop.eup %7464  ;;  %v3885_v30 = vmul.f32 %v3757_v27, %v11311_v63  ;;  %v3254_v18 = vadd.f32 2.0, %v7463_v11  ;;  %4200 = vadd.xlane.f32.xlu1 %v4017_v2  ;;  %v4014_v54 = vmul.f32 %v11377_v48, %v3879_v52 }
 0x2e9   :  { %7478 = vrcp.f32 %v3505_v20  ;;  %v7467_v25 = vpop.eup %7466  ;;  %v3758_v51 = vmul.f32 %v7465_v38, %v11460_v39  ;;  %v11549_v9 = vmul.f32 %v7461_v4, %v3253_v16  ;;  %v4015_v39 = vmul.f32 %v11377_v48, %v3880_v21 }
 0x2ea   :  { %7480 = vrcp.f32 %v3506_v6  ;;  %v7469_v13 = vpop.eup %7468  ;;  %v3251_v20 = vadd.f32 2.0, %v7467_v25  ;;  %v13873_v6 = vld [vmem:[#allocation17_spill] sm:$0xff]  ;;  %v11551_v3 = vmul.f32 %v7463_v11, %v3254_v18  ;;  %v4020_v31 = vmul.f32 %v11377_v48, %v3885_v30 }
 0x2eb   :  { %v11526_v47 = vpop.f32.mrb[96].mxu1  ;;  %v7471_v46 = vpop.eup %7470  ;;  %7482 = vrcp.f32 %v3503_v55  ;;  %v3755_v63 = vmul.f32 %v7469_v13, %v11466_v26  ;;  %4194 = vadd.xlane.f32.xlu0 %v4014_v54  ;;  %v3886_v55 = vmul.f32 %v3758_v51, %v11322_v12  ;;  %v11564_v16 = vadd.f32 %v11509_v1, %v11187_v22 }
 0x2ec   :  { %v11529_v32 = vpop.f32.mrb[97].mxu1  ;;  %v7473_v49 = vpop.eup %7472  ;;  %7484 = vrcp.f32 %v3504_v50  ;;  %v3252_v27 = vadd.f32 2.0, %v7471_v46  ;;  %v11557_v52 = vmul.f32 %v7467_v25, %v3251_v20  ;;  %4196 = vadd.xlane.f32.xlu1 %v4015_v39  ;;  %v3509_v50 = vadd.f32 2.0, %v11549_v9 }
 0x2ed   :  { %v11534_v28 = vpop.f32.mrb[98].mxu1  ;;  %v3756_v36 = vmul.f32 %v7473_v49, %v11476_v42  ;;  %7486 = vpow2.f32 %v3073_v53  ;;  %v3883_v11 = vmul.f32 %v3755_v63, %v11329_v57  ;;  %v3510_v42 = vadd.f32 2.0, %v11551_v3 }
 0x2ee   :  { %13872 = vst [vmem:[#allocation30_spill] sm:$0xff] %v11534_v28  ;;  %v11537_v19 = vpop.f32.mrb[99].mxu1  ;;  %v11545_v28 = vadd.f32 %v11509_v1, %v13873_v6  ;;  %v11569_v21 = vmul.f32 %v7471_v46, %v3252_v27  ;;  %v4021_v2 = vmul.f32 %v11377_v48, %v3886_v55  ;;  %v3507_v22 = vadd.f32 2.0, %v11557_v52 }
 0x2ef   :  { %4206 = vadd.xlane.f32.xlu0 %v4020_v31  ;;  %v3884_v57 = vmul.f32 %v3756_v36, %v11339_v10  ;;  %7488 = vrcp.f32 %v3509_v50  ;;  %v2877_v46 = vmin.f32 %v11564_v16, 20.0  ;;  %v4018_v6 = vmul.f32 %v11377_v48, %v3883_v11 }
 0x2f0   :  { %v2872_v26 = vmin.f32 %v11545_v28, 20.0  ;;  %4208 = vadd.xlane.f32.xlu1 %v4021_v2  ;;  %7490 = vrcp.f32 %v3510_v42  ;;  %v3508_v27 = vadd.f32 2.0, %v11569_v21  ;;  %v11592_v42 = vadd.f32 %v11509_v1, %v11191_v7 }
 0x2f1   :  { %v7475_v38 = vpop.eup %7474  ;;  %v4019_v55 = vmul.f32 %v11377_v48, %v3884_v57  ;;  %7492 = vrcp.f32 %v3507_v22  ;;  %v3079_v50 = vmul.f32 1.442695, %v2877_v46 }
 0x2f2   :  { %v7477_v4 = vpop.eup %7476  ;;  %v3257_v25 = vadd.f32 2.0, %v7475_v38  ;;  %v3069_v49 = vmul.f32 1.442695, %v2872_v26 }
 0x2f3   :  { %v7479_v12 = vpop.eup %7478  ;;  %v3255_v53 = vadd.f32 2.0, %v7477_v4  ;;  %4202 = vadd.xlane.f32.xlu0 %v4018_v6 }
 0x2f4   :  { %v7481_v18 = vpop.eup %7480  ;;  %v3761_v20 = vmul.f32 %v7479_v12, %v11499_v59  ;;  %v3385_v39 = vmul.f32 %v7475_v38, %v3257_v25  ;;  %7494 = vpow2.f32 %v3069_v49  ;;  %4204 = vadd.xlane.f32.xlu1 %v4019_v55 }
 0x2f5   :  { %v11566_v13 = vpop.f32.mrb[100].mxu1  ;;  %v7483_v63 = vpop.eup %7482  ;;  %v3762_v10 = vmul.f32 %v7481_v18, %v11502_v33  ;;  %v3383_v59 = vmul.f32 %v7477_v4, %v3255_v53  ;;  %7496 = vrcp.f32 %v3508_v27 }
 0x2f6   :  { %v11571_v30 = vpop.f32.mrb[101].mxu1  ;;  %v7485_v31 = vpop.eup %7484  ;;  %v3889_v26 = vmul.f32 %v3761_v20, %v11365_v35  ;;  %v3759_v11 = vmul.f32 %v7483_v63, %v11518_v29  ;;  %v3513_v38 = vadd.f32 2.0, %v3385_v39  ;;  %7498 = vpow2.f32 %v3079_v50 }
 0x2f7   :  { %v11575_v51 = vpop.f32.mrb[102].mxu1  ;;  %v7487_v36 = vpop.eup %7486  ;;  %v3890_v33 = vmul.f32 %v3762_v10, %v11370_v61  ;;  %v3760_v12 = vmul.f32 %v7485_v31, %v11521_v34  ;;  %v3511_v25 = vadd.f32 2.0, %v3383_v59  ;;  %v2875_v34 = vmin.f32 %v11592_v42, 20.0 }
 0x2f8   :  { %v11581_v54 = vpop.f32.mrb[103].mxu1  ;;  %v3258_v4 = vadd.f32 2.0, %v7487_v36  ;;  %v3887_v18 = vmul.f32 %v3759_v11, %v11385_v40  ;;  %v4024_v35 = vmul.f32 %v11377_v48, %v3889_v26  ;;  %7500 = vrcp.f32 %v3513_v38 }
 0x2f9   :  { %v3888_v29 = vmul.f32 %v3760_v12, %v11394_v14  ;;  %v4025_v61 = vmul.f32 %v11377_v48, %v3890_v33  ;;  %v7489_v57 = vpop.eup %7488  ;;  %7502 = vrcp.f32 %v3511_v25  ;;  %v3075_v6 = vmul.f32 1.442695, %v2875_v34 }
 0x2fa   :  { %4214 = vadd.xlane.f32.xlu0 %v4024_v35  ;;  %v7491_v2 = vpop.eup %7490  ;;  %v3386_v7 = vmul.f32 %v7487_v36, %v3258_v4  ;;  %v4022_v22 = vmul.f32 %v11377_v48, %v3887_v18  ;;  %v3765_v40 = vmul.f32 %v7489_v57, %v11549_v9  ;;  %v11613_v26 = vadd.f32 %v11509_v1, %v11200_v45 }
 0x2fb   :  { %4216 = vadd.xlane.f32.xlu1 %v4025_v61  ;;  %v7493_v53 = vpop.eup %7492  ;;  %v4023_v49 = vmul.f32 %v11377_v48, %v3888_v29  ;;  %v3766_v46 = vmul.f32 %v7491_v2, %v11551_v3  ;;  %7504 = vpow2.f32 %v3075_v6  ;;  %v13877_v29 = vld [vmem:[#allocation13_spill] sm:$0xff] }
 0x2fc   :  { %v3514_v27 = vadd.f32 2.0, %v3386_v7  ;;  %v3893_v55 = vmul.f32 %v3765_v40, %v11424_v8  ;;  %v3763_v9 = vmul.f32 %v7493_v53, %v11557_v52  ;;  %v2878_v8 = vmin.f32 %v11613_v26, 20.0 }
 0x2fd   :  { %v3894_v3 = vmul.f32 %v3766_v46, %v11433_v56  ;;  %v11624_v61 = vadd.f32 %v11509_v1, %v13877_v29  ;;  %v13884_v29 = vld [vmem:[#allocation16_spill] sm:$0xff] }
 0x2fe   :  { %v11602_v20 = vpop.f32.mrb[104].mxu1  ;;  %v7495_v14 = vpop.eup %7494  ;;  %4210 = vadd.xlane.f32.xlu0 %v4022_v22  ;;  %7506 = vrcp.f32 %v3514_v27  ;;  %v3891_v38 = vmul.f32 %v3763_v9, %v11445_v60  ;;  %v4028_v52 = vmul.f32 %v11377_v48, %v3893_v55 }
 0x2ff   :  { %13874 = vst [vmem:[#allocation29_spill] sm:$0xff] %v11602_v20  ;;  %v11605_v63 = vpop.f32.mrb[105].mxu1  ;;  %v7497_v10 = vpop.eup %7496  ;;  %4212 = vadd.xlane.f32.xlu1 %v4023_v49  ;;  %v3256_v36 = vadd.f32 2.0, %v7495_v14  ;;  %v4029_v35 = vmul.f32 %v11377_v48, %v3894_v3  ;;  %v2876_v49 = vmin.f32 %v11624_v61, 20.0  ;;  %v11649_v3 = vadd.f32 %v11509_v1, %v11304_v0 }
 0x300   :  { %13875 = vst [vmem:[#allocation31_spill] sm:$0xff] %v11605_v63  ;;  %v11607_v31 = vpop.f32.mrb[106].mxu1  ;;  %v7499_v11 = vpop.eup %7498  ;;  %v3764_v50 = vmul.f32 %v7497_v10, %v11569_v21  ;;  %v3081_v21 = vmul.f32 1.442695, %v2878_v8  ;;  %v4026_v60 = vmul.f32 %v11377_v48, %v3891_v38  ;;  %v11660_v38 = vadd.f32 %v11509_v1, %v11240_v43 }
 0x301   :  { %13876 = vst [vmem:[#allocation14_spill] sm:$0xff] %v11607_v31  ;;  %v3384_v25 = vmul.f32 %v7495_v14, %v3256_v36  ;;  %v3261_v18 = vadd.f32 2.0, %v7499_v11  ;;  %v11627_v57 = vpop.xlane.xlu0 %4090  ;;  %v11629_v34 = vpop.f32.mrb[107].mxu1  ;;  %v3077_v9 = vmul.f32 1.442695, %v2876_v49  ;;  %v13887_v49 = vld [vmem:[#allocation9_spill] sm:$0xff] }
 0x302   :  { %v7501_v33 = vpop.eup %7500  ;;  %v3892_v4 = vmul.f32 %v3764_v50, %v11457_v58  ;;  %4222 = vadd.xlane.f32.xlu0 %v4028_v52  ;;  %13878 = vst [vmem:[#allocation19_spill] sm:$0xff] %v11629_v34  ;;  %7508 = vpow2.f32 %v3081_v21  ;;  %v2879_v43 = vmin.f32 %v11660_v38, 20.0 }
 0x303   :  { %v7503_v12 = vpop.eup %7502  ;;  %v3769_v45 = vmul.f32 %v7501_v33, %v3385_v39  ;;  %4224 = vadd.xlane.f32.xlu1 %v4029_v35  ;;  %v3512_v39 = vadd.f32 2.0, %v3384_v25  ;;  %v3389_v2 = vmul.f32 %v7499_v11, %v3261_v18 }
 0x304   :  { %v3767_v56 = vmul.f32 %v7503_v12, %v3383_v59  ;;  %v4027_v22 = vmul.f32 %v11377_v48, %v3892_v4  ;;  %v2884_v4 = vmin.f32 %v11649_v3, 20.0 }
 0x305   :  { %v3897_v58 = vmul.f32 %v3769_v45, %v11471_v37  ;;  %v7505_v59 = vpop.eup %7504  ;;  %7510 = vrcp.f32 %v3512_v39  ;;  %v3517_v14 = vadd.f32 2.0, %v3389_v2  ;;  %v11636_v10 = vpop.xlane.xlu0 %4092 }
 0x306   :  { %4218 = vadd.xlane.f32.xlu0 %v4026_v60  ;;  %v3895_v53 = vmul.f32 %v3767_v56, %v11481_v44  ;;  %v3259_v6 = vadd.f32 2.0, %v7505_v59  ;;  %v11675_v60 = vadd.f32 %v11509_v1, %v13884_v29 }
 0x307   :  { %4220 = vadd.xlane.f32.xlu1 %v4027_v22  ;;  %v4032_v46 = vmul.f32 %v11377_v48, %v3897_v58  ;;  %7512 = vrcp.f32 %v3517_v14  ;;  %v3093_v58 = vmul.f32 1.442695, %v2884_v4  ;;  %v11686_v14 = vadd.f32 %v11509_v1, %v13887_v49 }
 0x308   :  { %v7507_v40 = vpop.eup %7506  ;;  %v11638_v37 = vpop.f32.mrb[108].mxu1  ;;  %v4030_v55 = vmul.f32 %v11377_v48, %v3895_v53  ;;  %v11645_v11 = vmul.f32 %v7505_v59, %v3259_v6  ;;  %7514 = vpow2.f32 %v3077_v9  ;;  %v13885_v59 = vld [vmem:[#allocation8_spill] sm:$0xff]  ;;  %v2880_v9 = vmin.f32 %v11675_v60, 20.0 }
 0x309   :  { %13879 = vst [vmem:[#allocation6_spill] sm:$0xff] %v11638_v37  ;;  %v3770_v27 = vmul.f32 %v7507_v40, %v3386_v7  ;;  %v11641_v44 = vpop.f32.mrb[109].mxu1  ;;  %v13882_v7 = vld [vmem:[#allocation22_spill] sm:$0xff]  ;;  %v11656_v12 = vpop.xlane.xlu0 %4102  ;;  %v11682_v53 = vadd.f32 %v11509_v1, %v13885_v59 }
 0x30a   :  { %4230 = vadd.xlane.f32.xlu0 %v4032_v46  ;;  %13880 = vst [vmem:[#allocation21_spill] sm:$0xff] %v11641_v44  ;;  %v11643_v36 = vpop.f32.mrb[110].mxu1  ;;  %v11654_v33 = vadd.f32 %v11509_v1, %v13882_v7  ;;  %v3515_v52 = vadd.f32 2.0, %v11645_v11  ;;  %v3083_v46 = vmul.f32 1.442695, %v2879_v43 }
 0x30b   :  { %4226 = vadd.xlane.f32.xlu1 %v4030_v55  ;;  %13881 = vst [vmem:[#allocation23_spill] sm:$0xff] %v11643_v36  ;;  %v3898_v50 = vmul.f32 %v3770_v27, %v11513_v62  ;;  %v11666_v62 = vadd.f32 %v11509_v1, %v11244_v24  ;;  %v11670_v35 = vpop.f32.mrb[111].mxu1  ;;  %13886 = vst [vmem:[#allocation17_spill] sm:$0xff] %v11682_v53  ;;  %v2885_v7 = vmin.f32 %v11682_v53, 20.0  ;;  %v3085_v43 = vmul.f32 1.442695, %v2880_v9 }
 0x30c   :  { %v7509_v8 = vpop.eup %7508  ;;  %v2881_v18 = vmin.f32 %v11654_v33, 20.0  ;;  %13883 = vst [vmem:[#allocation15_spill] sm:$0xff] %v11670_v35  ;;  %7516 = vrcp.f32 %v3515_v52  ;;  %v13888_v52 = vld [vmem:[#allocation24_spill] sm:$0xff]  ;;  %v13900_v35 = vld [vmem:[#allocation18_spill] sm:$0xff] }
 0x30d   :  { %v4033_v45 = vmul.f32 %v11377_v48, %v3898_v50  ;;  %v3262_v56 = vadd.f32 2.0, %v7509_v8  ;;  %v11677_v39 = vpop.xlane.xlu0 %4098  ;;  %v2882_v22 = vmin.f32 %v11666_v62, 20.0  ;;  %7518 = vpow2.f32 %v3093_v58 }
 0x30e   :  { %v3087_v40 = vmul.f32 1.442695, %v2881_v18  ;;  %v11695_v4 = vadd.f32 %v11509_v1, %v13888_v52 }
 0x30f   :  { %v7511_v0 = vpop.eup %7510  ;;  %4232 = vadd.xlane.f32.xlu0 %v4033_v45  ;;  %v3089_v50 = vmul.f32 1.442695, %v2882_v22  ;;  %v2889_v45 = vmin.f32 %v11686_v14, 20.0 }
 0x310   :  { %v3768_v21 = vmul.f32 %v7511_v0, %v3384_v25  ;;  %v11688_v25 = vmul.f32 %v7509_v8, %v3262_v56  ;;  %13889 = vst [vmem:[#allocation13_spill] sm:$0xff] %v11695_v4  ;;  %7520 = vpow2.f32 %v3087_v40  ;;  %v13890_v0 = vld [vmem:[#allocation7_spill] sm:$0xff]  ;;  %v2883_v22 = vmin.f32 %v11695_v4, 20.0  ;;  %v11713_v52 = vpop.f32.mrb[112].mxu1 }
 0x311   :  { %v7513_v24 = vpop.eup %7512  ;;  %v11699_v8 = vadd.f32 %v11509_v1, %v13890_v0  ;;  %v11702_v18 = vpop.xlane.xlu0 %4110  ;;  %7522 = vpow2.f32 %v3083_v46  ;;  %v3103_v49 = vmul.f32 1.442695, %v2889_v45  ;;  %13893 = vst [vmem:[#allocation16_spill] sm:$0xff] %v11713_v52  ;;  %v13894_v46 = vld [vmem:[#allocation26_spill] sm:$0xff] }
 0x312   :  { %v7515_v6 = vpop.eup %7514  ;;  %v3896_v27 = vmul.f32 %v3768_v21, %v11545_v28  ;;  %v3773_v55 = vmul.f32 %v7513_v24, %v3389_v2  ;;  %v3518_v28 = vadd.f32 2.0, %v11688_v25  ;;  %v13892_v21 = vld [vmem:[#allocation25_spill] sm:$0xff]  ;;  %7524 = vpow2.f32 %v3089_v50  ;;  %v11721_v9 = vpop.f32.mrb[113].mxu1  ;;  %v13896_v50 = vld [vmem:[#allocation12_spill] sm:$0xff] }
 0x313   :  { %13891 = vst [vmem:[#allocation22_spill] sm:$0xff] %v11699_v8  ;;  %v3260_v2 = vadd.f32 2.0, %v7515_v6  ;;  %v11708_v29 = vadd.f32 %v11509_v1, %v13892_v21  ;;  %v3095_v24 = vmul.f32 1.442695, %v2885_v7  ;;  %v2886_v40 = vmin.f32 %v11699_v8, 20.0  ;;  %13895 = vst [vmem:[#allocation8_spill] sm:$0xff] %v11721_v9 }
 0x314   :  { %v3901_v56 = vmul.f32 %v3773_v55, %v11564_v16  ;;  %v4031_v58 = vmul.f32 %v11377_v48, %v3896_v27  ;;  %7526 = vrcp.f32 %v3518_v28  ;;  %v11719_v55 = vadd.f32 %v11509_v1, %v13894_v46  ;;  %v11731_v28 = vpop.f32.mrb[114].mxu1 }
 0x315   :  { %v11715_v16 = vmul.f32 %v7515_v6, %v3260_v2  ;;  %7528 = vpow2.f32 %v3085_v43  ;;  %v2887_v27 = vmin.f32 %v11708_v29, 20.0  ;;  %v11726_v7 = vadd.f32 %v11509_v1, %v13896_v50  ;;  %v11729_v45 = vpop.xlane.xlu0 %4106  ;;  %13898 = vst [vmem:[#allocation24_spill] sm:$0xff] %v11731_v28  ;;  %v11734_v21 = vpop.f32.mrb[115].mxu1 }
 0x316   :  { %v7517_v59 = vpop.eup %7516  ;;  %4228 = vadd.xlane.f32.xlu0 %v4031_v58  ;;  %v4036_v0 = vmul.f32 %v11377_v48, %v3901_v56  ;;  %7530 = vpow2.f32 %v3095_v24  ;;  %v3091_v2 = vmul.f32 1.442695, %v2883_v22  ;;  %13899 = vst [vmem:[#allocation7_spill] sm:$0xff] %v11734_v21  ;;  %v3097_v43 = vmul.f32 1.442695, %v2886_v40  ;;  %v13902_v40 = vld [vmem:[#allocation32_spill] sm:$0xff] }
 0x317   :  { %13897 = vst [vmem:[#allocation9_spill] sm:$0xff] %v11726_v7  ;;  %v3771_v6 = vmul.f32 %v7517_v59, %v11645_v11  ;;  %v7519_v58 = vpop.eup %7518  ;;  %7532 = vpow2.f32 %v3103_v49  ;;  %v3516_v46 = vadd.f32 2.0, %v11715_v16  ;;  %v2890_v50 = vmin.f32 %v11719_v55, 20.0  ;;  %v11744_v59 = vpop.xlane.xlu1 %4094 }
 0x318   :  { %v3099_v56 = vmul.f32 1.442695, %v2887_v27  ;;  %v2888_v52 = vmin.f32 %v11726_v7, 20.0  ;;  %v11741_v28 = vadd.f32 %v11509_v1, %v13900_v35  ;;  %7534 = vpow2.f32 %v3091_v2  ;;  %v13905_v35 = vld [vmem:[#allocation10_spill] sm:$0xff] }
 0x319   :  { %v3899_v24 = vmul.f32 %v3771_v6, %v11592_v42  ;;  %v3268_v22 = vadd.f32 2.0, %v7519_v58  ;;  %7536 = vpow2.f32 %v3097_v43  ;;  %v11748_v49 = vadd.f32 %v11509_v1, %v13902_v40  ;;  %v11761_v43 = vpop.f32.mrb[116].mxu1 }
 0x31a   :  { %4238 = vadd.xlane.f32.xlu0 %v4036_v0  ;;  %v7521_v9 = vpop.eup %7520  ;;  %13901 = vst [vmem:[#allocation25_spill] sm:$0xff] %v11741_v28  ;;  %v11750_v0 = vpop.xlane.xlu0 %4118  ;;  %7538 = vrcp.f32 %v3516_v46  ;;  %v3105_v36 = vmul.f32 1.442695, %v2890_v50  ;;  %v11754_v44 = vadd.f32 %v11509_v1, %v13905_v35  ;;  %v3101_v42 = vmul.f32 1.442695, %v2888_v52  ;;  %13908 = vst [vmem:[#allocation10_spill] sm:$0xff] %v11761_v43 }
 0x31b   :  { %v7523_v11 = vpop.eup %7522  ;;  %13903 = vst [vmem:[#allocation26_spill] sm:$0xff] %v11748_v49  ;;  %13904 = vst [vmem:[#allocation12_spill] sm:$0xff] %v11750_v0  ;;  %v3265_v21 = vadd.f32 2.0, %v7521_v9  ;;  %7540 = vpow2.f32 %v3099_v56  ;;  %v2893_v6 = vmin.f32 %v11741_v28, 20.0  ;;  %v11759_v2 = vadd.f32 %v11509_v1, %v11406_v41  ;;  %v11766_v50 = vpop.f32.mrb[117].mxu1 }
 0x31c   :  { %v7525_v27 = vpop.eup %7524  ;;  %13906 = vst [vmem:[#allocation18_spill] sm:$0xff] %v11754_v44  ;;  %v3263_v37 = vadd.f32 2.0, %v7523_v11  ;;  %v11763_v34 = vmul.f32 %v7519_v58, %v3268_v22  ;;  %v4034_v46 = vmul.f32 %v11377_v48, %v3899_v24  ;;  %13909 = vst [vmem:[#allocation33_spill] sm:$0xff] %v11766_v50  ;;  %v2891_v52 = vmin.f32 %v11748_v49, 20.0  ;;  %v11772_v63 = vpop.xlane.xlu1 %4096 }
 0x31d   :  { %13907 = vst [vmem:[#allocation32_spill] sm:$0xff] %v11759_v2  ;;  %v3266_v8 = vadd.f32 2.0, %v7525_v27  ;;  %v11769_v31 = vmul.f32 %v7521_v9, %v3265_v21  ;;  %7542 = vpow2.f32 %v3105_v36  ;;  %v2894_v41 = vmin.f32 %v11754_v44, 20.0 }
 0x31e   :  { %v7527_v40 = vpop.eup %7526  ;;  %4234 = vadd.xlane.f32.xlu0 %v4034_v46  ;;  %7544 = vpow2.f32 %v3101_v42  ;;  %v3111_v24 = vmul.f32 1.442695, %v2893_v6  ;;  %v2892_v22 = vmin.f32 %v11759_v2, 20.0  ;;  %v11776_v50 = vpop.xlane.xlu0 %4114  ;;  %v11778_v20 = vmul.f32 %v7523_v11, %v3263_v37 }
 0x31f   :  { %v7529_v35 = vpop.eup %7528  ;;  %v3774_v58 = vmul.f32 %v7527_v40, %v11688_v25  ;;  %13910 = vst [vmem:[#allocation34_spill] sm:$0xff] %v11776_v50  ;;  %v3524_v9 = vadd.f32 2.0, %v11763_v34  ;;  %v11781_v36 = vmul.f32 %v7525_v27, %v3266_v8  ;;  %v3107_v44 = vmul.f32 1.442695, %v2891_v52  ;;  %v11786_v6 = vpop.f32.mrb[118].mxu1 }
 0x320   :  { %v7531_v56 = vpop.eup %7530  ;;  %v3264_v49 = vadd.f32 2.0, %v7529_v35  ;;  %v3521_v46 = vadd.f32 2.0, %v11769_v31  ;;  %v3113_v25 = vmul.f32 1.442695, %v2894_v41  ;;  %v11784_v42 = vpop.xlane.xlu1 %4104  ;;  %13911 = vst [vmem:[#allocation35_spill] sm:$0xff] %v11786_v6  ;;  %7546 = vpow2.f32 %v3111_v24 }
 0x321   :  { %v7533_v43 = vpop.eup %7532  ;;  %v3269_v21 = vadd.f32 2.0, %v7531_v56  ;;  %v3902_v37 = vmul.f32 %v3774_v58, %v11613_v26  ;;  %v3109_v11 = vmul.f32 1.442695, %v2892_v22  ;;  %v11791_v8 = vadd.f32 %v11509_v1, %v11435_v5  ;;  %v11793_v27 = vpop.f32.mrb[119].mxu1  ;;  %v13915_v5 = vld [vmem:[#allocation27_spill] sm:$0xff] }
 0x322   :  { %v7535_v28 = vpop.eup %7534  ;;  %v3273_v4 = vadd.f32 2.0, %v7533_v43  ;;  %13913 = vst [vmem:[#allocation37_spill] sm:$0xff] %v11793_v27  ;;  %v3519_v2 = vadd.f32 2.0, %v11778_v20  ;;  %v11796_v50 = vmul.f32 %v7529_v35, %v3264_v49  ;;  %7548 = vrcp.f32 %v3524_v9  ;;  %v11809_v22 = vpop.xlane.xlu0 %4126 }
 0x323   :  { %v7537_v40 = vpop.eup %7536  ;;  %13912 = vst [vmem:[#allocation36_spill] sm:$0xff] %v11791_v8  ;;  %v11800_v41 = vadd.f32 %v11509_v1, %v11439_v17  ;;  %v3522_v26 = vadd.f32 2.0, %v11781_v36  ;;  %v11803_v58 = vmul.f32 %v7531_v56, %v3269_v21  ;;  %7550 = vpow2.f32 %v3107_v44  ;;  %13917 = vst [vmem:[#allocation39_spill] sm:$0xff] %v11809_v22 }
 0x324   :  { %v7539_v52 = vpop.eup %7538  ;;  %v11807_v24 = vadd.f32 %v11509_v1, %v13915_v5  ;;  %v3267_v27 = vadd.f32 2.0, %v7535_v28  ;;  %v3270_v49 = vadd.f32 2.0, %v7537_v40  ;;  %v11811_v35 = vmul.f32 %v7533_v43, %v3273_v4  ;;  %v11818_v22 = vpop.xlane.xlu1 %4100 }
 0x325   :  { %13914 = vst [vmem:[#allocation38_spill] sm:$0xff] %v11800_v41  ;;  %v7541_v6 = vpop.eup %7540  ;;  %7552 = vpow2.f32 %v3113_v25  ;;  %v3772_v17 = vmul.f32 %v7539_v52, %v11715_v16  ;;  %v2897_v9 = vmin.f32 %v11791_v8, 20.0  ;;  %v4037_v56 = vmul.f32 %v11377_v48, %v3902_v37 }
 0x326   :  { %13916 = vst [vmem:[#allocation27_spill] sm:$0xff] %v11807_v24  ;;  %7554 = vpow2.f32 %v3109_v11  ;;  %v3520_v44 = vadd.f32 2.0, %v11796_v50  ;;  %v3271_v5 = vadd.f32 2.0, %v7541_v6  ;;  %v2895_v0 = vmin.f32 %v11800_v41, 20.0  ;;  %v11833_v52 = vpop.xlane.xlu0 %4122 }
 0x327   :  { %v7543_v21 = vpop.eup %7542  ;;  %7556 = vrcp.f32 %v3521_v46  ;;  %v3525_v4 = vadd.f32 2.0, %v11803_v58  ;;  %v2898_v16 = vmin.f32 %v11807_v24, 20.0  ;;  %4240 = vadd.xlane.f32.xlu0 %v4037_v56  ;;  %v11822_v43 = vmul.f32 %v7535_v28, %v3267_v27  ;;  %13920 = vst [vmem:[#allocation42_spill] sm:$0xff] %v11833_v52 }
 0x328   :  { %v7545_v53 = vpop.eup %7544  ;;  %7558 = vrcp.f32 %v3519_v2  ;;  %v3529_v48 = vadd.f32 2.0, %v11811_v35  ;;  %v11828_v46 = vstv %s13511_s6  ;;  %v3900_v25 = vmul.f32 %v3772_v17, %v11624_v61 }
 0x329   :  { %7560 = vrcp.f32 %v3522_v26  ;;  %13918 = vst [vmem:[#allocation40_spill] sm:$0xff] %v11822_v43  ;;  %v11831_v37 = vmul.f32 %v7537_v40, %v3270_v49  ;;  %v3274_v2 = vadd.f32 2.0, %v7543_v21  ;;  %v3119_v11 = vmul.f32 1.442695, %v2897_v9  ;;  %v13921_v49 = vld [vmem:[#allocation11_spill] sm:$0xff] }
 0x32a   :  { %7562 = vrcp.f32 %v3520_v44  ;;  %v11835_v56 = vmul.f32 %v7541_v6, %v3271_v5  ;;  %v3272_v28 = vadd.f32 2.0, %v7545_v53  ;;  %v3115_v27 = vmul.f32 1.442695, %v2895_v0  ;;  %v7547_v26 = vpop.eup %7546  ;;  %v11846_v6 = vpop.xlane.xlu1 %4112  ;;  %v11856_v5 = vld [vmem:[%s13510_s5] ss:$0 sm:$0xff] }
 0x32b   :  { %13919 = vst [vmem:[#allocation41_spill] sm:$0xff] %v11831_v37  ;;  %7564 = vrcp.f32 %v3525_v4  ;;  %v4350_v24 = vadd.f32 %v11828_v46, %v11744_v59  ;;  %v3121_v41 = vmul.f32 1.442695, %v2898_v16  ;;  %v3523_v61 = vadd.f32 2.0, %v11822_v43  ;;  %v11848_v0 = vpop.f32.mrb[120].mxu1 }
 0x32c   :  { %v7549_v8 = vpop.eup %7548  ;;  %7566 = vrcp.f32 %v3529_v48  ;;  %v4348_v40 = vadd.f32 %v11828_v46, %v11627_v57  ;;  %v11844_v17 = vadd.f32 %v11509_v1, %v13921_v49  ;;  %13923 = vst [vmem:[#allocation43_spill] sm:$0xff] %v11848_v0  ;;  %v3526_v44 = vadd.f32 2.0, %v11831_v37  ;;  %v11859_v4 = vpop.f32.mrb[121].mxu1 }
 0x32d   :  { %v7551_v9 = vpop.eup %7550  ;;  %v11851_v59 = vmul.f32 %v7543_v21, %v3274_v2  ;;  %7568 = vpow2.f32 %v3119_v11  ;;  %v4035_v57 = vmul.f32 %v11856_v5, %v3900_v25  ;;  %13924 = vst [vmem:[#allocation44_spill] sm:$0xff] %v11859_v4  ;;  %v3527_v48 = vadd.f32 2.0, %v11835_v56  ;;  %v11867_v37 = vpop.xlane.xlu0 %4134 }
 0x32e   :  { %13922 = vst [vmem:[#allocation11_spill] sm:$0xff] %v11844_v17  ;;  %v11862_v49 = vmul.f32 %v7545_v53, %v3272_v28  ;;  %v3277_v0 = vadd.f32 2.0, %v7547_v26  ;;  %7570 = vpow2.f32 %v3115_v27  ;;  %v3780_v21 = vmul.f32 %v7549_v8, %v11763_v34  ;;  %13925 = vst [vmem:[#allocation45_spill] sm:$0xff] %v11867_v37  ;;  %v11884_v37 = vpop.f32.mrb[122].mxu1 }
 0x32f   :  { %v7553_v16 = vpop.eup %7552  ;;  %v6143_v2 = vmul.f32 -1.442695, %v4350_v24  ;;  %7572 = vpow2.f32 %v3121_v41  ;;  %v4351_v11 = vadd.f32 %v11828_v46, %v11772_v63  ;;  %4236 = vadd.xlane.f32.xlu0 %v4035_v57  ;;  %v3275_v4 = vadd.f32 2.0, %v7551_v9  ;;  %13927 = vst [vmem:[#allocation47_spill] sm:$0xff] %v11884_v37 }
 0x330   :  { %v7555_v52 = vpop.eup %7554  ;;  %7574 = vrcp.f32 %v3523_v61  ;;  %v6141_v7 = vmul.f32 -1.442695, %v4348_v40  ;;  %v2896_v53 = vmin.f32 %v11844_v17, 20.0  ;;  %v3530_v27 = vadd.f32 2.0, %v11851_v59  ;;  %v11880_v40 = vpop.xlane.xlu1 %4108 }
 0x331   :  { %v7557_v25 = vpop.eup %7556  ;;  %7576 = vrcp.f32 %v3526_v44  ;;  %v3278_v34 = vadd.f32 2.0, %v7553_v16  ;;  %v4349_v8 = vadd.f32 %v11828_v46, %v11636_v10  ;;  %v3528_v63 = vadd.f32 2.0, %v11862_v49  ;;  %13926 = vst [vmem:[#allocation46_spill] sm:$0xff] %v11880_v40 }
 0x332   :  { %v11870_v28 = vpop.eup %7558  ;;  %7578 = vrcp.f32 %v3527_v48  ;;  %v11878_v24 = vmul.f32 %v7547_v26, %v3277_v0  ;;  %v3276_v61 = vadd.f32 2.0, %v7555_v52  ;;  %v3777_v57 = vmul.f32 %v7557_v25, %v11769_v31  ;;  %v11894_v0 = vpop.f32.mrb[123].mxu1 }
 0x333   :  { %v11875_v41 = vpop.eup %7560  ;;  %v3908_v44 = vmul.f32 %v3780_v21, %v11649_v3  ;;  %7580 = vpow2.f32 %v6143_v2  ;;  %v6144_v17 = vmul.f32 -1.442695, %v4351_v11  ;;  %v11888_v10 = vmul.f32 %v7551_v9, %v3275_v4  ;;  %13929 = vst [vmem:[#allocation49_spill] sm:$0xff] %v11894_v0  ;;  %v13931_v21 = vld [vmem:[#allocation28_spill] sm:$0xff]  ;;  %v11904_v9 = vpop.xlane.xlu0 %4130 }
 0x334   :  { %v11886_v43 = vpop.eup %7562  ;;  %7582 = vpow2.f32 %v6141_v7  ;;  %v3117_v48 = vmul.f32 1.442695, %v2896_v53  ;;  %v11892_v26 = vadd.f32 %v11509_v1, %v11485_v15  ;;  %v11898_v31 = vmul.f32 %v7553_v16, %v3278_v34  ;;  %13933 = vst [vmem:[#allocation51_spill] sm:$0xff] %v11904_v9  ;;  %v13935_v11 = vld [vmem:[#allocation20_spill] sm:$0xff] }
 0x335   :  { %v11896_v40 = vpop.eup %7564  ;;  %7584 = vrcp.f32 %v3530_v27  ;;  %v6142_v3 = vmul.f32 -1.442695, %v4349_v8  ;;  %v11902_v2 = vadd.f32 %v11509_v1, %v13931_v21  ;;  %v3533_v4 = vadd.f32 2.0, %v11878_v24 }
 0x336   :  { %13928 = vst [vmem:[#allocation48_spill] sm:$0xff] %v11892_v26  ;;  %13930 = vst [vmem:[#allocation50_spill] sm:$0xff] %v11898_v31  ;;  %v7567_v7 = vpop.eup %7566  ;;  %7586 = vrcp.f32 %v3528_v63  ;;  %v11907_v15 = vmul.f32 %v7555_v52, %v3276_v61  ;;  %v11911_v25 = vadd.f32 %v11509_v1, %v13935_v11  ;;  %v3905_v16 = vmul.f32 %v3777_v57, %v11654_v33  ;;  %v11919_v61 = vpop.xlane.xlu1 %4120 }
 0x337   :  { %13932 = vst [vmem:[#allocation28_spill] sm:$0xff] %v11902_v2  ;;  %v7569_v53 = vpop.eup %7568  ;;  %7588 = vpow2.f32 %v6144_v17  ;;  %v4354_v27 = vadd.f32 %v11828_v46, %v11656_v12  ;;  %v4043_v34 = vmul.f32 %v11856_v5, %v3908_v44  ;;  %v3531_v63 = vadd.f32 2.0, %v11888_v10 }
 0x338   :  { %13934 = vst [vmem:[#allocation52_spill] sm:$0xff] %v11907_v15  ;;  %13936 = vst [vmem:[#allocation20_spill] sm:$0xff] %v11911_v25  ;;  %v7571_v8 = vpop.eup %7570  ;;  %7590 = vpow2.f32 %v3117_v48  ;;  %v2901_v52 = vmin.f32 %v11892_v26, 20.0  ;;  %v3785_v11 = vmul.f32 %v7567_v7, %v11811_v35  ;;  %v3534_v37 = vadd.f32 2.0, %v11898_v31  ;;  %v11933_v7 = vpop.xlane.xlu0 %4142 }
 0x339   :  { %v7573_v21 = vpop.eup %7572  ;;  %7592 = vpow2.f32 %v6142_v3  ;;  %v2899_v33 = vmin.f32 %v11902_v2, 20.0  ;;  %4252 = vadd.xlane.f32.xlu1 %v4043_v34  ;;  %v3532_v17 = vadd.f32 2.0, %v11907_v15  ;;  %v3281_v57 = vadd.f32 2.0, %v7569_v53  ;;  %13938 = vst [vmem:[#allocation54_spill] sm:$0xff] %v11933_v7 }
 0x33a   :  { %v11924_v12 = vpop.eup %7574  ;;  %7594 = vrcp.f32 %v3533_v4  ;;  %v2902_v44 = vmin.f32 %v11911_v25, 20.0  ;;  %v3279_v0 = vadd.f32 2.0, %v7571_v8  ;;  %v6147_v26 = vmul.f32 -1.442695, %v4354_v27 }
 0x33b   :  { %v11928_v48 = vpop.eup %7576  ;;  %v4355_v35 = vadd.f32 %v11828_v46, %v11784_v42  ;;  %v4040_v3 = vmul.f32 %v11856_v5, %v3905_v16  ;;  %7596 = vrcp.f32 %v3531_v63  ;;  %v3282_v2 = vadd.f32 2.0, %v7573_v21 }
 0x33c   :  { %13937 = vst [vmem:[#allocation53_spill] sm:$0xff] %v11928_v48  ;;  %v7579_v34 = vpop.eup %7578  ;;  %v3127_v4 = vmul.f32 1.442695, %v2901_v52  ;;  %v3775_v15 = vmul.f32 %v11870_v28, %v11778_v20  ;;  %7598 = vrcp.f32 %v3534_v37  ;;  %v3123_v25 = vmul.f32 1.442695, %v2899_v33  ;;  %v11940_v48 = vpop.xlane.xlu1 %4116 }
 0x33d   :  { %v7581_v9 = vpop.eup %7580  ;;  %4246 = vadd.xlane.f32.xlu0 %v4040_v3  ;;  %v3913_v27 = vmul.f32 %v3785_v11, %v11686_v14  ;;  %7600 = vrcp.f32 %v3532_v17  ;;  %v11938_v42 = vmul.f32 %v7569_v53, %v3281_v57  ;;  %v3129_v16 = vmul.f32 1.442695, %v2902_v44  ;;  %v11954_v33 = vpop.xlane.xlu0 %4138 }
 0x33e   :  { %v7583_v31 = vpop.eup %7582  ;;  %v11944_v63 = vmul.f32 %v7571_v8, %v3279_v0  ;;  %7602 = vpow2.f32 %v6147_v26  ;;  %v6148_v52 = vmul.f32 -1.442695, %v4355_v35  ;;  %v11948_v20 = vadd.f32 %v11509_v1, %v11497_v23  ;;  %13940 = vst [vmem:[#allocation56_spill] sm:$0xff] %v11954_v33 }
 0x33f   :  { %v11942_v7 = vpop.eup %7584  ;;  %v4862_v28 = vadd.f32 1.0, %v7581_v9  ;;  %v11952_v14 = vmul.f32 %v7573_v21, %v3282_v2  ;;  %7604 = vpow2.f32 %v3127_v4  ;;  %v4860_v11 = vadd.f32 1.0, %v7583_v31 }
 0x340   :  { %v11950_v37 = vpop.eup %7586  ;;  %7606 = vpow2.f32 %v3123_v25  ;;  %v3537_v0 = vadd.f32 2.0, %v11938_v42  ;;  %v4048_v26 = vmul.f32 %v11856_v5, %v3913_v27  ;;  %v3903_v23 = vmul.f32 %v3775_v15, %v11660_v38  ;;  %v11968_v44 = vpop.xlane.xlu1 %4128 }
 0x341   :  { %13939 = vst [vmem:[#allocation55_spill] sm:$0xff] %v11952_v14  ;;  %v7589_v53 = vpop.eup %7588  ;;  %7608 = vpow2.f32 %v3129_v16  ;;  %v3535_v57 = vadd.f32 2.0, %v11944_v63  ;;  %v2900_v2 = vmin.f32 %v11948_v20, 20.0  ;;  %v3778_v31 = vmul.f32 %v11875_v41, %v11781_v36  ;;  %v11984_v16 = vld [vmem:[%s13509_s4] ss:$0 sm:$0xff] }
 0x342   :  { %v7591_v17 = vpop.eup %7590  ;;  %7610 = vpow2.f32 %v6148_v52  ;;  %v3538_v25 = vadd.f32 2.0, %v11952_v14  ;;  %v4352_v21 = vadd.f32 %v11828_v46, %v11677_v39  ;;  %4262 = vadd.xlane.f32.xlu1 %v4048_v26  ;;  %v4863_v38 = vadd.f32 1.0, %v7589_v53 }
 0x343   :  { %v7593_v8 = vpop.eup %7592  ;;  %7612 = vrcp.f32 %v4862_v28  ;;  %v3280_v15 = vadd.f32 2.0, %v7591_v17  ;;  %v4353_v35 = vadd.f32 %v11828_v46, %v11818_v22  ;;  %v3783_v4 = vmul.f32 %v7579_v34, %v11835_v56  ;;  %v11991_v34 = vpop.xlane.xlu0 %4150 }
 0x344   :  { %v11961_v9 = vpop.eup %7594  ;;  %7614 = vrcp.f32 %v4860_v11  ;;  %v4861_v36 = vadd.f32 1.0, %v7593_v8  ;;  %v11977_v41 = vadd.f32 %v11509_v1, %v11526_v47  ;;  %v3125_v27 = vmul.f32 1.442695, %v2900_v2  ;;  %13941 = vst [vmem:[#allocation57_spill] sm:$0xff] %v11991_v34  ;;  %v13942_v11 = vld [vmem:[#allocation30_spill] sm:$0xff] }
 0x345   :  { %v11972_v3 = vpop.eup %7596  ;;  %7616 = vrcp.f32 %v3537_v0  ;;  %v11988_v22 = vadd.f32 %v11984_v16, %v11529_v32  ;;  %v4038_v56 = vmul.f32 %v11856_v5, %v3903_v23  ;;  %v6145_v1 = vmul.f32 -1.442695, %v4352_v21 }
 0x346   :  { %v11979_v39 = vpop.eup %7598  ;;  %7618 = vrcp.f32 %v3535_v57  ;;  %v11995_v28 = vmul.f32 %v7591_v17, %v3280_v15  ;;  %v6146_v53 = vmul.f32 -1.442695, %v4353_v35  ;;  %v11999_v0 = vadd.f32 %v11984_v16, %v13942_v11  ;;  %v12007_v57 = vpop.xlane.xlu1 %4124 }
 0x347   :  { %v11993_v52 = vpop.eup %7600  ;;  %7620 = vrcp.f32 %v3538_v25  ;;  %4242 = vadd.xlane.f32.xlu0 %v4038_v56  ;;  %v3911_v26 = vmul.f32 %v3783_v4, %v11708_v29  ;;  %v2905_v8 = vmin.f32 %v11977_v41, 20.0  ;;  %v12005_v23 = vadd.f32 %v11984_v16, %v11537_v19 }
 0x348   :  { %v7603_v47 = vpop.eup %7602  ;;  %7622 = vrcp.f32 %v4863_v38  ;;  %v3906_v2 = vmul.f32 %v3778_v31, %v11666_v62  ;;  %v2903_v25 = vmin.f32 %v11988_v22, 20.0  ;;  %v3786_v38 = vmul.f32 %v11942_v7, %v11851_v59 }
 0x349   :  { %v7605_v32 = vpop.eup %7604  ;;  %7624 = vrcp.f32 %v4861_v36  ;;  %v4866_v29 = vadd.f32 1.0, %v7603_v47  ;;  %v3536_v35 = vadd.f32 2.0, %v11995_v28  ;;  %v2906_v19 = vmin.f32 %v11999_v0, 20.0  ;;  %v12015_v36 = vpop.xlane.xlu0 %4146 }
 0x34a   :  { %v7607_v17 = vpop.eup %7606  ;;  %7626 = vpow2.f32 %v3125_v27  ;;  %v3285_v4 = vadd.f32 2.0, %v7605_v32  ;;  %13943 = vst [vmem:[#allocation30_spill] sm:$0xff] %v12015_v36  ;;  %v3135_v31 = vmul.f32 1.442695, %v2905_v8  ;;  %v2904_v27 = vmin.f32 %v12005_v23, 20.0 }
 0x34b   :  { %v7609_v21 = vpop.eup %7608  ;;  %7628 = vpow2.f32 %v6145_v1  ;;  %v3283_v62 = vadd.f32 2.0, %v7607_v17  ;;  %v4046_v11 = vmul.f32 %v11856_v5, %v3911_v26  ;;  %v4358_v1 = vadd.f32 %v11828_v46, %v11702_v18 }
 0x34c   :  { %v7611_v15 = vpop.eup %7610  ;;  %7630 = vpow2.f32 %v6146_v53  ;;  %v3286_v7 = vadd.f32 2.0, %v7609_v21  ;;  %v3131_v47 = vmul.f32 1.442695, %v2903_v25  ;;  %v4041_v53 = vmul.f32 %v11856_v5, %v3906_v2 }
 0x34d   :  { %v12017_v56 = vpop.eup %7612  ;;  %7632 = vrcp.f32 %v4866_v29  ;;  %v4867_v36 = vadd.f32 1.0, %v7611_v15  ;;  %v4359_v8 = vadd.f32 %v11828_v46, %v11846_v6  ;;  %4258 = vadd.xlane.f32.xlu1 %v4046_v11  ;;  %v12036_v18 = vmul.f32 %v7605_v32, %v3285_v4 }
 0x34e   :  { %13944 = vst [vmem:[#allocation58_spill] sm:$0xff] %v12017_v56  ;;  %v12021_v59 = vpop.eup %7614  ;;  %v12030_v56 = vpop.xlane.xlu1 %4136  ;;  %7634 = vrcp.f32 %v3536_v35  ;;  %v3137_v25 = vmul.f32 1.442695, %v2906_v19  ;;  %4248 = vadd.xlane.f32.xlu0 %v4041_v53  ;;  %v12040_v29 = vmul.f32 %v7607_v17, %v3283_v62  ;;  %v3133_v15 = vmul.f32 1.442695, %v2904_v27  ;;  %v13954_v53 = vld [vmem:[#allocation46_spill] sm:$0xff] }
 0x34f   :  { %13945 = vst [vmem:[#allocation59_spill] sm:$0xff] %v12021_v59  ;;  %v12026_v14 = vpop.eup %7616  ;;  %v3776_v59 = vmul.f32 %v11886_v43, %v11796_v50  ;;  %7636 = vpow2.f32 %v3135_v31  ;;  %v3914_v11 = vmul.f32 %v3786_v38, %v11719_v55  ;;  %v12045_v34 = vmul.f32 %v7609_v21, %v3286_v7  ;;  %v12047_v50 = vpop.xlane.xlu0 %4158 }
 0x350   :  { %v12032_v26 = vpop.eup %7618  ;;  %v6151_v33 = vmul.f32 -1.442695, %v4358_v1  ;;  %7638 = vpow2.f32 %v3131_v47  ;;  %13948 = vst [vmem:[#allocation62_spill] sm:$0xff] %v12047_v50  ;;  %v6152_v32 = vmul.f32 -1.442695, %v4359_v8  ;;  %v4356_v17 = vadd.f32 %v11828_v46, %v11729_v45 }
 0x351   :  { %v12038_v2 = vpop.eup %7620  ;;  %7640 = vrcp.f32 %v4867_v36  ;;  %v12055_v35 = vadd.f32 %v11984_v16, %v11566_v13  ;;  %v3904_v55 = vmul.f32 %v3776_v59, %v11675_v60  ;;  %v3541_v21 = vadd.f32 2.0, %v12036_v18 }
 0x352   :  { %13946 = vst [vmem:[#allocation60_spill] sm:$0xff] %v12038_v2  ;;  %v12042_v6 = vpop.eup %7622  ;;  %7642 = vpow2.f32 %v3137_v25  ;;  %v12061_v38 = vadd.f32 %v11984_v16, %v11571_v30  ;;  %v3781_v36 = vmul.f32 %v11896_v40, %v11803_v58  ;;  %v3784_v45 = vmul.f32 %v11950_v37, %v11862_v49  ;;  %v12068_v62 = vpop.xlane.xlu1 %4132 }
 0x353   :  { %13947 = vst [vmem:[#allocation61_spill] sm:$0xff] %v12042_v6  ;;  %v12049_v43 = vpop.eup %7624  ;;  %v3539_v13 = vadd.f32 2.0, %v12040_v29  ;;  %7644 = vpow2.f32 %v3133_v15  ;;  %v3542_v31 = vadd.f32 2.0, %v12045_v34  ;;  %v12073_v30 = vadd.f32 %v11984_v16, %v11575_v51  ;;  %v12083_v7 = vpop.xlane.xlu0 %4154 }
 0x354   :  { %13949 = vst [vmem:[#allocation63_spill] sm:$0xff] %v12049_v43  ;;  %v7627_v4 = vpop.eup %7626  ;;  %7646 = vpow2.f32 %v6151_v33  ;;  %v4049_v27 = vmul.f32 %v11856_v5, %v3914_v11  ;;  %v6149_v58 = vmul.f32 -1.442695, %v4356_v17  ;;  %v2909_v40 = vmin.f32 %v12055_v35, 20.0  ;;  %13952 = vst [vmem:[#allocation66_spill] sm:$0xff] %v12083_v7  ;;  %v13956_v11 = vld [vmem:[#allocation9_spill] sm:$0xff] }
 0x355   :  { %v7629_v19 = vpop.eup %7628  ;;  %13950 = vst [vmem:[#allocation64_spill] sm:$0xff] %v12073_v30  ;;  %7648 = vpow2.f32 %v6152_v32  ;;  %v12079_v49 = vadd.f32 %v11984_v16, %v11581_v54  ;;  %v2907_v59 = vmin.f32 %v12061_v38, 20.0  ;;  %v4039_v33 = vmul.f32 %v11856_v5, %v3904_v55  ;;  %v13955_v54 = vld [vmem:[#allocation40_spill] sm:$0xff] }
 0x356   :  { %v7631_v60 = vpop.eup %7630  ;;  %7650 = vrcp.f32 %v3541_v21  ;;  %v4864_v37 = vadd.f32 1.0, %v7629_v19  ;;  %4264 = vadd.xlane.f32.xlu1 %v4049_v27  ;;  %v3284_v1 = vadd.f32 2.0, %v7627_v4  ;;  %v4357_v8 = vadd.f32 %v11828_v46, %v13954_v53  ;;  %v13957_v21 = vld [vmem:[#allocation17_spill] sm:$0xff]  ;;  %v12097_v27 = vpop.xlane.xlu1 %4144 }
 0x357   :  { %13951 = vst [vmem:[#allocation65_spill] sm:$0xff] %v12079_v49  ;;  %v12085_v51 = vpop.eup %7632  ;;  %7652 = vrcp.f32 %v3539_v13  ;;  %v4865_v47 = vadd.f32 1.0, %v7631_v60  ;;  %v3779_v15 = vmul.f32 %v11924_v12, %v13955_v54  ;;  %v3912_v32 = vmul.f32 %v3784_v45, %v13956_v11  ;;  %4244 = vadd.xlane.f32.xlu0 %v4039_v33  ;;  %v13958_v12 = vld [vmem:[#allocation12_spill] sm:$0xff] }
 0x358   :  { %13953 = vst [vmem:[#allocation67_spill] sm:$0xff] %v12085_v51  ;;  %v12089_v25 = vpop.eup %7634  ;;  %7654 = vrcp.f32 %v3542_v31  ;;  %v2910_v17 = vmin.f32 %v12073_v30, 20.0  ;;  %v3909_v19 = vmul.f32 %v3781_v36, %v13957_v21  ;;  %v3143_v13 = vmul.f32 1.442695, %v2909_v40 }
 0x359   :  { %v7637_v55 = vpop.eup %7636  ;;  %7656 = vpow2.f32 %v6149_v58  ;;  %v2908_v60 = vmin.f32 %v12079_v49, 20.0  ;;  %v3789_v51 = vmul.f32 %v11961_v9, %v11878_v24  ;;  %v4362_v45 = vadd.f32 %v11828_v46, %v13958_v12  ;;  %v12110_v24 = vpop.xlane.xlu0 %4166 }
 0x35a   :  { %v7639_v53 = vpop.eup %7638  ;;  %7658 = vrcp.f32 %v4864_v37  ;;  %v3139_v31 = vmul.f32 1.442695, %v2907_v59  ;;  %v12105_v33 = vmul.f32 %v7627_v4, %v3284_v1  ;;  %v6150_v36 = vmul.f32 -1.442695, %v4357_v8  ;;  %13960 = vst [vmem:[#allocation40_spill] sm:$0xff] %v12110_v24  ;;  %v13961_v1 = vld [vmem:[#allocation13_spill] sm:$0xff] }
 0x35b   :  { %v12103_v54 = vpop.eup %7640  ;;  %7660 = vrcp.f32 %v4865_v47  ;;  %v3289_v40 = vadd.f32 2.0, %v7637_v55  ;;  %v4363_v11 = vadd.f32 %v11828_v46, %v11919_v61  ;;  %v3145_v21 = vmul.f32 1.442695, %v2910_v17  ;;  %v13962_v8 = vld [vmem:[#allocation25_spill] sm:$0xff]  ;;  %v13963_v24 = vld [vmem:[#allocation34_spill] sm:$0xff] }
 0x35c   :  { %13959 = vst [vmem:[#allocation46_spill] sm:$0xff] %v12103_v54  ;;  %v7643_v58 = vpop.eup %7642  ;;  %v4047_v6 = vmul.f32 %v11856_v5, %v3912_v32  ;;  %v3287_v37 = vadd.f32 2.0, %v7639_v53  ;;  %7662 = vpow2.f32 %v3143_v13  ;;  %v3141_v59 = vmul.f32 1.442695, %v2908_v60  ;;  %v12118_v13 = vpop.xlane.xlu1 %4140 }
 0x35d   :  { %v7645_v9 = vpop.eup %7644  ;;  %v4044_v12 = vmul.f32 %v11856_v5, %v3909_v19  ;;  %v3907_v47 = vmul.f32 %v3779_v15, %v13961_v1  ;;  %v3917_v54 = vmul.f32 %v3789_v51, %v13962_v8  ;;  %v6155_v43 = vmul.f32 -1.442695, %v4362_v45 }
 0x35e   :  { %v7647_v4 = vpop.eup %7646  ;;  %7664 = vpow2.f32 %v3139_v31  ;;  %4260 = vadd.xlane.f32.xlu1 %v4047_v6  ;;  %v3540_v17 = vadd.f32 2.0, %v12105_v33  ;;  %v3290_v32 = vadd.f32 2.0, %v7643_v58  ;;  %v4360_v7 = vadd.f32 %v11828_v46, %v13963_v24 }
 0x35f   :  { %v7649_v61 = vpop.eup %7648  ;;  %7666 = vpow2.f32 %v6150_v36  ;;  %4254 = vadd.xlane.f32.xlu0 %v4044_v12  ;;  %v12122_v60 = vmul.f32 %v7637_v55, %v3289_v40  ;;  %v3288_v15 = vadd.f32 2.0, %v7645_v9  ;;  %v6156_v51 = vmul.f32 -1.442695, %v4363_v11  ;;  %v13964_v36 = vld [vmem:[#allocation29_spill] sm:$0xff]  ;;  %v13966_v40 = vld [vmem:[#allocation31_spill] sm:$0xff] }
 0x360   :  { %v12120_v19 = vpop.eup %7650  ;;  %7668 = vpow2.f32 %v3145_v21  ;;  %v4870_v6 = vadd.f32 1.0, %v7647_v4  ;;  %v12126_v31 = vmul.f32 %v7639_v53, %v3287_v37  ;;  %v12130_v1 = vadd.f32 %v11984_v16, %v13964_v36  ;;  %v12140_v21 = vpop.xlane.xlu0 %4162 }
 0x361   :  { %v12124_v45 = vpop.eup %7652  ;;  %7670 = vpow2.f32 %v3141_v59  ;;  %v3787_v12 = vmul.f32 %v11972_v3, %v11888_v10  ;;  %v4871_v55 = vadd.f32 1.0, %v7649_v61  ;;  %v12138_v11 = vadd.f32 %v11984_v16, %v13966_v40  ;;  %13968 = vst [vmem:[#allocation12_spill] sm:$0xff] %v12140_v21  ;;  %v13971_v61 = vld [vmem:[#allocation41_spill] sm:$0xff] }
 0x362   :  { %13965 = vst [vmem:[#allocation9_spill] sm:$0xff] %v12130_v1  ;;  %v12132_v24 = vpop.eup %7654  ;;  %7672 = vpow2.f32 %v6155_v43  ;;  %v12142_v37 = vmul.f32 %v7643_v58, %v3290_v32  ;;  %v6153_v59 = vmul.f32 -1.442695, %v4360_v7  ;;  %v4052_v4 = vmul.f32 %v11856_v5, %v3917_v54  ;;  %v13972_v40 = vld [vmem:[#allocation53_spill] sm:$0xff]  ;;  %v12157_v54 = vpop.xlane.xlu1 %4152  ;;  %v13974_v32 = vld [vmem:[#allocation14_spill] sm:$0xff] }
 0x363   :  { %13967 = vst [vmem:[#allocation17_spill] sm:$0xff] %v12138_v11  ;;  %v7657_v53 = vpop.eup %7656  ;;  %7674 = vrcp.f32 %v3540_v17  ;;  %v3545_v36 = vadd.f32 2.0, %v12122_v60  ;;  %v12148_v10 = vmul.f32 %v7645_v9, %v3288_v15  ;;  %v4042_v3 = vmul.f32 %v11856_v5, %v3907_v47  ;;  %13973 = vst [vmem:[#allocation34_spill] sm:$0xff] %v12157_v54 }
 0x364   :  { %v12145_v8 = vpop.eup %7658  ;;  %7676 = vpow2.f32 %v6156_v51  ;;  %v3782_v21 = vmul.f32 %v13972_v40, %v13971_v61  ;;  %v3543_v58 = vadd.f32 2.0, %v12126_v31  ;;  %v2913_v7 = vmin.f32 %v12130_v1, 20.0  ;;  %4270 = vadd.xlane.f32.xlu1 %v4052_v4  ;;  %v13976_v4 = vld [vmem:[#allocation26_spill] sm:$0xff] }
 0x365   :  { %13969 = vst [vmem:[#allocation13_spill] sm:$0xff] %v12145_v8  ;;  %v12151_v43 = vpop.eup %7660  ;;  %7678 = vrcp.f32 %v4870_v6  ;;  %v4868_v17 = vadd.f32 1.0, %v7657_v53  ;;  %v2911_v9 = vmin.f32 %v12138_v11, 20.0  ;;  %v12162_v47 = vadd.f32 %v11984_v16, %v13974_v32  ;;  %4250 = vadd.xlane.f32.xlu0 %v4042_v3  ;;  %v13977_v53 = vld [vmem:[#allocation39_spill] sm:$0xff]  ;;  %v12171_v8 = vpop.xlane.xlu0 %4174  ;;  %v13979_v3 = vld [vmem:[#allocation22_spill] sm:$0xff] }
 0x366   :  { %13970 = vst [vmem:[#allocation25_spill] sm:$0xff] %v12151_v43  ;;  %7680 = vrcp.f32 %v4871_v55  ;;  %v7663_v15 = vpop.eup %7662  ;;  %v3546_v51 = vadd.f32 2.0, %v12142_v37  ;;  %v4361_v6 = vadd.f32 %v11828_v46, %v11940_v48  ;;  %v3915_v40 = vmul.f32 %v3787_v12, %v13976_v4  ;;  %13978 = vst [vmem:[#allocation31_spill] sm:$0xff] %v12171_v8  ;;  %v12177_v54 = vpop.xlane.xlu1 %4148 }
 0x367   :  { %13975 = vst [vmem:[#allocation29_spill] sm:$0xff] %v12162_v47  ;;  %7682 = vpow2.f32 %v6153_v59  ;;  %v3544_v55 = vadd.f32 2.0, %v12148_v10  ;;  %v4366_v43 = vadd.f32 %v11828_v46, %v13977_v53  ;;  %v3910_v2 = vmul.f32 %v3782_v21, %v13979_v3  ;;  %13981 = vst [vmem:[#allocation41_spill] sm:$0xff] %v12177_v54 }
 0x368   :  { %v7665_v61 = vpop.eup %7664  ;;  %7684 = vrcp.f32 %v3545_v36  ;;  %v3151_v50 = vmul.f32 1.442695, %v2913_v7  ;;  %v3293_v11 = vadd.f32 2.0, %v7663_v15  ;;  %v3147_v48 = vmul.f32 1.442695, %v2911_v9  ;;  %v13980_v36 = vld [vmem:[#allocation50_spill] sm:$0xff] }
 0x369   :  { %v7667_v32 = vpop.eup %7666  ;;  %7686 = vrcp.f32 %v3543_v58  ;;  %v2914_v1 = vmin.f32 %v12162_v47, 20.0  ;;  %v3790_v4 = vmul.f32 %v11979_v39, %v13980_v36  ;;  %v3291_v49 = vadd.f32 2.0, %v7665_v61  ;;  %v14002_v47 = vld [vmem:[#allocation52_spill] sm:$0xff] }
 0x36a   :  { %v7669_v59 = vpop.eup %7668  ;;  %7688 = vrcp.f32 %v4868_v17  ;;  %v6154_v53 = vmul.f32 -1.442695, %v4361_v6  ;;  %v6159_v21 = vmul.f32 -1.442695, %v4366_v43  ;;  %v4367_v58 = vadd.f32 %v11828_v46, %v11968_v44  ;;  %v12187_v43 = vpop.xlane.xlu0 %4170 }
 0x36b   :  { %v7671_v12 = vpop.eup %7670  ;;  %7690 = vrcp.f32 %v3546_v51  ;;  %v4050_v7 = vmul.f32 %v11856_v5, %v3915_v40  ;;  %v4869_v9 = vadd.f32 1.0, %v7667_v32  ;;  %v3294_v3 = vadd.f32 2.0, %v7669_v59  ;;  %13982 = vst [vmem:[#allocation53_spill] sm:$0xff] %v12187_v43  ;;  %v13984_v32 = vld [vmem:[#allocation19_spill] sm:$0xff] }
 0x36c   :  { %v7673_v8 = vpop.eup %7672  ;;  %7692 = vrcp.f32 %v3544_v55  ;;  %v4045_v39 = vmul.f32 %v11856_v5, %v3910_v2  ;;  %v12185_v36 = vmul.f32 %v7663_v15, %v3293_v11  ;;  %v3292_v6 = vadd.f32 2.0, %v7671_v12  ;;  %v13987_v11 = vld [vmem:[#allocation18_spill] sm:$0xff] }
 0x36d   :  { %v12182_v17 = vpop.eup %7674  ;;  %7694 = vpow2.f32 %v3151_v50  ;;  %v3153_v54 = vmul.f32 1.442695, %v2914_v1  ;;  %4266 = vadd.xlane.f32.xlu1 %v4050_v7  ;;  %v4874_v44 = vadd.f32 1.0, %v7673_v8  ;;  %v12191_v40 = vmul.f32 %v7665_v61, %v3291_v49  ;;  %v13988_v8 = vld [vmem:[#allocation6_spill] sm:$0xff]  ;;  %v12206_v61 = vpop.xlane.xlu1 %4160 }
 0x36e   :  { %v7677_v51 = vpop.eup %7676  ;;  %7696 = vpow2.f32 %v3147_v48  ;;  %v12195_v50 = vadd.f32 %v11984_v16, %v13984_v32  ;;  %4256 = vadd.xlane.f32.xlu0 %v4045_v39  ;;  %v3918_v15 = vmul.f32 %v3790_v4, %v13987_v11  ;;  %v6160_v1 = vmul.f32 -1.442695, %v4367_v58  ;;  %13990 = vst [vmem:[#allocation50_spill] sm:$0xff] %v12206_v61 }
 0x36f   :  { %v12189_v55 = vpop.eup %7678  ;;  %7698 = vpow2.f32 %v6154_v53  ;;  %v4875_v7 = vadd.f32 1.0, %v7677_v51  ;;  %v12200_v43 = vmul.f32 %v7669_v59, %v3294_v3  ;;  %v12204_v49 = vadd.f32 %v11984_v16, %v13988_v8  ;;  %v13993_v51 = vld [vmem:[#allocation42_spill] sm:$0xff] }
 0x370   :  { %13983 = vst [vmem:[#allocation14_spill] sm:$0xff] %v12189_v55  ;;  %13985 = vst [vmem:[#allocation26_spill] sm:$0xff] %v12195_v50  ;;  %v12197_v2 = vpop.eup %7680  ;;  %7700 = vpow2.f32 %v6159_v21  ;;  %v3549_v39 = vadd.f32 2.0, %v12185_v36  ;;  %v12211_v32 = vmul.f32 %v7671_v12, %v3292_v6  ;;  %v3798_v21 = vmul.f32 %v12132_v24, %v12045_v34  ;;  %v13998_v55 = vld [vmem:[#allocation20_spill] sm:$0xff] }
 0x371   :  { %13986 = vst [vmem:[#allocation39_spill] sm:$0xff] %v12197_v2  ;;  %v7683_v48 = vpop.eup %7682  ;;  %7702 = vrcp.f32 %v4869_v9  ;;  %13989 = vst [vmem:[#allocation22_spill] sm:$0xff] %v12204_v49  ;;  %v3547_v59 = vadd.f32 2.0, %v12191_v40  ;;  %v2912_v58 = vmin.f32 %v12195_v50, 20.0  ;;  %v4364_v11 = vadd.f32 %v11828_v46, %v13993_v51  ;;  %v13996_v51 = vld [vmem:[#allocation21_spill] sm:$0xff] }
 0x372   :  { %v12208_v53 = vpop.eup %7684  ;;  %13991 = vst [vmem:[#allocation19_spill] sm:$0xff] %v12211_v32  ;;  %7704 = vpow2.f32 %v3153_v54  ;;  %v4872_v3 = vadd.f32 1.0, %v7683_v48  ;;  %v4053_v12 = vmul.f32 %v11856_v5, %v3918_v15  ;;  %v12224_v54 = vpop.xlane.xlu0 %4182  ;;  %v3550_v34 = vadd.f32 2.0, %v12200_v43  ;;  %v13995_v48 = vld [vmem:[#allocation45_spill] sm:$0xff] }
 0x373   :  { %v12213_v4 = vpop.eup %7686  ;;  %7706 = vrcp.f32 %v4874_v44  ;;  %13994 = vst [vmem:[#allocation6_spill] sm:$0xff] %v12224_v54  ;;  %v4365_v24 = vadd.f32 %v11828_v46, %v12007_v57  ;;  %v2917_v44 = vmin.f32 %v12204_v49, 20.0  ;;  %v4370_v15 = vadd.f32 %v11828_v46, %v13995_v48  ;;  %v13999_v54 = vld [vmem:[#allocation23_spill] sm:$0xff] }
 0x374   :  { %v12219_v9 = vpop.eup %7688  ;;  %7708 = vpow2.f32 %v6160_v1  ;;  %v3548_v1 = vadd.f32 2.0, %v12211_v32  ;;  %v12239_v2 = vadd.f32 %v11984_v16, %v13996_v51  ;;  %4272 = vadd.xlane.f32.xlu1 %v4053_v12  ;;  %v3149_v57 = vmul.f32 1.442695, %v2912_v58  ;;  %v14003_v51 = vld [vmem:[#allocation15_spill] sm:$0xff] }
 0x375   :  { %13992 = vst [vmem:[#allocation18_spill] sm:$0xff] %v12219_v9  ;;  %v12226_v6 = vpop.eup %7690  ;;  %7710 = vrcp.f32 %v4875_v7  ;;  %v3926_v9 = vmul.f32 %v3798_v21, %v13998_v55  ;;  %v12244_v50 = vadd.f32 %v11984_v16, %v13999_v54  ;;  %v3788_v48 = vmul.f32 %v11993_v52, %v14002_v47 }
 0x376   :  { %v12232_v8 = vpop.eup %7692  ;;  %7712 = vrcp.f32 %v3549_v39  ;;  %13997 = vst [vmem:[#allocation42_spill] sm:$0xff] %v12239_v2  ;;  %v12246_v39 = vpop.xlane.xlu1 %4156  ;;  %v6157_v49 = vmul.f32 -1.442695, %v4364_v11  ;;  %v12252_v12 = vadd.f32 %v11984_v16, %v14003_v51  ;;  %v3796_v55 = vmul.f32 %v12182_v17, %v12105_v33  ;;  %v14006_v17 = vld [vmem:[#allocation32_spill] sm:$0xff] }
 0x377   :  { %v7695_v7 = vpop.eup %7694  ;;  %7714 = vrcp.f32 %v3547_v59  ;;  %14000 = vst [vmem:[#allocation45_spill] sm:$0xff] %v12244_v50  ;;  %14001 = vst [vmem:[#allocation21_spill] sm:$0xff] %v12246_v39  ;;  %v6158_v21 = vmul.f32 -1.442695, %v4365_v24  ;;  %v3159_v59 = vmul.f32 1.442695, %v2917_v44  ;;  %v12257_v52 = vpop.xlane.xlu0 %4178  ;;  %v4061_v51 = vmul.f32 %v11856_v5, %v3926_v9 }
 0x378   :  { %v7697_v61 = vpop.eup %7696  ;;  %7716 = vrcp.f32 %v4872_v3  ;;  %v3297_v54 = vadd.f32 2.0, %v7695_v7  ;;  %v6163_v39 = vmul.f32 -1.442695, %v4370_v15  ;;  %v2915_v32 = vmin.f32 %v12239_v2, 20.0  ;;  %14004 = vst [vmem:[#allocation20_spill] sm:$0xff] %v12257_v52 }
 0x379   :  { %v7699_v30 = vpop.eup %7698  ;;  %7718 = vrcp.f32 %v3550_v34  ;;  %v3295_v3 = vadd.f32 2.0, %v7697_v61  ;;  %v2918_v11 = vmin.f32 %v12244_v50, 20.0  ;;  %v3916_v34 = vmul.f32 %v3788_v48, %v14006_v17  ;;  %4288 = vadd.xlane.f32.xlu0 %v4061_v51 }
 0x37a   :  { %v7701_v58 = vpop.eup %7700  ;;  %7720 = vrcp.f32 %v3548_v1  ;;  %v4873_v24 = vadd.f32 1.0, %v7699_v30  ;;  %v2916_v44 = vmin.f32 %v12252_v12, 20.0  ;;  %v3924_v15 = vmul.f32 %v3796_v55, %v11948_v20 }
 0x37b   :  { %v12259_v47 = vpop.eup %7702  ;;  %7722 = vpow2.f32 %v3149_v57  ;;  %v4878_v52 = vadd.f32 1.0, %v7701_v58  ;;  %v12270_v50 = vmul.f32 %v7695_v7, %v3297_v54  ;;  %v3155_v9 = vmul.f32 1.442695, %v2915_v32  ;;  %v12281_v7 = vpop.xlane.xlu0 %4190 }
 0x37c   :  { %14005 = vst [vmem:[#allocation23_spill] sm:$0xff] %v12259_v47  ;;  %v7705_v33 = vpop.eup %7704  ;;  %7724 = vpow2.f32 %v6157_v49  ;;  %v12268_v47 = vpop.xlane.xlu1 %4168  ;;  %v12274_v30 = vmul.f32 %v7697_v61, %v3295_v3  ;;  %v3161_v48 = vmul.f32 1.442695, %v2918_v11  ;;  %v4371_v20 = vadd.f32 %v11828_v46, %v12030_v56  ;;  %14009 = vst [vmem:[#allocation32_spill] sm:$0xff] %v12281_v7 }
 0x37d   :  { %v12265_v1 = vpop.eup %7706  ;;  %7726 = vpow2.f32 %v3159_v59  ;;  %v3298_v49 = vadd.f32 2.0, %v7705_v33  ;;  %v3157_v55 = vmul.f32 1.442695, %v2916_v44  ;;  %v4051_v59 = vmul.f32 %v11856_v5, %v3916_v34 }
 0x37e   :  { %14007 = vst [vmem:[#allocation52_spill] sm:$0xff] %v12265_v1  ;;  %v7709_v57 = vpop.eup %7708  ;;  %7728 = vpow2.f32 %v6158_v21  ;;  %v5372_v32 = vlaneseq  ;;  %v4059_v58 = vmul.f32 %v11856_v5, %v3924_v15  ;;  %v3793_v54 = vmul.f32 %v12026_v14, %v11938_v42  ;;  %v14011_v15 = vld [vmem:[#allocation51_spill] sm:$0xff] }
 0x37f   :  { %v12272_v2 = vpop.eup %7710  ;;  %7730 = vpow2.f32 %v6163_v39  ;;  %v4879_v61 = vadd.f32 1.0, %v7709_v57  ;;  %v3791_v56 = vmul.f32 %v12032_v26, %v11944_v63  ;;  %v3553_v3 = vadd.f32 2.0, %v12270_v50  ;;  %4268 = vadd.xlane.f32.xlu1 %v4051_v59 }
 0x380   :  { %14008 = vst [vmem:[#allocation15_spill] sm:$0xff] %v12272_v2  ;;  %v12276_v17 = vpop.eup %7712  ;;  %7732 = vrcp.f32 %v4873_v24  ;;  %v3551_v51 = vadd.f32 2.0, %v12274_v30  ;;  %4284 = vadd.xlane.f32.xlu0 %v4059_v58  ;;  %v12298_v34 = vpop.xlane.xlu1 %4164  ;;  %v3801_v42 = vmul.f32 %v12208_v53, %v12122_v60  ;;  %v6164_v63 = vmul.f32 -1.442695, %v4371_v20  ;;  %v14014_v58 = vld [vmem:[#allocation16_spill] sm:$0xff]  ;;  %v14020_v2 = vld [vmem:[#allocation54_spill] sm:$0xff] }
 0x381   :  { %v12283_v21 = vpop.eup %7714  ;;  %7734 = vrcp.f32 %v4878_v52  ;;  %v12296_v52 = vmul.f32 %v7705_v33, %v3298_v49  ;;  %v12304_v26 = vand.u32 127, %v5372_v32  ;;  %v12306_v44 = vshrl.u32 %v5372_v32, 7  ;;  %v12318_v53 = vpop.xlane.xlu0 %4186 }
 0x382   :  { %v12286_v39 = vpop.eup %7716  ;;  %7736 = vpow2.f32 %v3155_v9  ;;  %v4368_v33 = vadd.f32 %v11828_v46, %v14011_v15  ;;  %v14012_v9 = vld [vmem:[#allocation36_spill] sm:$0xff]  ;;  %v12316_v60 = vadd.f32 %v11984_v16, %v14014_v58  ;;  %14015 = vst [vmem:[#allocation51_spill] sm:$0xff] %v12318_v53  ;;  %v12326_v32 = vmul.f32 %v12120_v19, %v12036_v18 }
 0x383   :  { %14010 = vst [vmem:[#allocation68_spill] sm:$0xff] %v12286_v39  ;;  %v12293_v11 = vpop.eup %7718  ;;  %7738 = vpow2.f32 %v3161_v48  ;;  %v3921_v49 = vmul.f32 %v3793_v54, %v14012_v9  ;;  %v14013_v48 = vld [vmem:[#allocation38_spill] sm:$0xff]  ;;  %v14016_v15 = vld [vmem:[#allocation8_spill] sm:$0xff]  ;;  %v4369_v18 = vadd.f32 %v11828_v46, %v12068_v62 }
 0x384   :  { %v12300_v24 = vpop.eup %7720  ;;  %7740 = vpow2.f32 %v3157_v55  ;;  %v12312_v59 = vmul.f32 %v3791_v56, %v14013_v48  ;;  %v12322_v55 = vmul.f32 %v12089_v25, %v11995_v28  ;;  %v3929_v56 = vmul.f32 %v3801_v42, %v11977_v41  ;;  %v14017_v19 = vld [vmem:[#allocation24_spill] sm:$0xff]  ;;  %v12342_v58 = vpop.xlane.xlu1 %4176 }
 0x385   :  { %v7723_v14 = vpop.eup %7722  ;;  %7742 = vrcp.f32 %v4879_v61  ;;  %v3554_v61 = vadd.f32 2.0, %v12296_v52  ;;  %v12334_v9 = vadd.f32 %v11984_v16, %v14016_v15  ;;  %v6161_v48 = vmul.f32 -1.442695, %v4368_v33 }
 0x386   :  { %v7725_v57 = vpop.eup %7724  ;;  %7744 = vrcp.f32 %v3553_v3  ;;  %v3799_v3 = vmul.f32 %v12213_v4, %v12126_v31  ;;  %v3296_v25 = vadd.f32 2.0, %v7723_v14  ;;  %v2921_v42 = vmin.f32 %v12316_v60, 20.0 }
 0x387   :  { %v7727_v20 = vpop.eup %7726  ;;  %7746 = vrcp.f32 %v3551_v51  ;;  %v12340_v51 = vadd.f32 %v11984_v16, %v14017_v19  ;;  %v4876_v31 = vadd.f32 1.0, %v7725_v57  ;;  %v3795_v33 = vmul.f32 %v12124_v45, %v12040_v29  ;;  %v14021_v57 = vld [vmem:[#allocation7_spill] sm:$0xff]  ;;  %v12365_v45 = vpop.xlane.xlu0 %4198 }
 0x388   :  { %v7729_v54 = vpop.eup %7728  ;;  %7748 = vpow2.f32 %v6164_v63  ;;  %v3301_v4 = vadd.f32 2.0, %v7727_v20  ;;  %v4056_v63 = vmul.f32 %v11856_v5, %v3921_v49  ;;  %v4374_v19 = vadd.f32 %v11828_v46, %v14020_v2  ;;  %v12362_v5 = vld [vmem:[%s13510_s5] ss:$0 sm:$0xff]  ;;  %14022 = vst [vmem:[#allocation16_spill] sm:$0xff] %v12365_v45 }
 0x389   :  { %v7731_v28 = vpop.eup %7730  ;;  %7750 = vrcp.f32 %v3554_v61  ;;  %v4877_v62 = vadd.f32 1.0, %v7729_v54  ;;  %v12357_v53 = vadd.f32 %v11984_v16, %v14021_v57  ;;  %v4064_v29 = vmul.f32 %v12362_v5, %v3929_v56 }
 0x38a   :  { %v12344_v41 = vpop.eup %7732  ;;  %v4882_v39 = vadd.f32 1.0, %v7731_v28  ;;  %4278 = vadd.xlane.f32.xlu1 %v4056_v63  ;;  %v3927_v2 = vmul.f32 %v3799_v3, %v11988_v22  ;;  %7752 = vpow2.f32 %v6161_v48  ;;  %v6162_v61 = vmul.f32 -1.442695, %v4369_v18  ;;  %v12377_v3 = vpop.xlane.xlu1 %4172 }
 0x38b   :  { %14018 = vst [vmem:[#allocation36_spill] sm:$0xff] %v12344_v41  ;;  %v12348_v15 = vpop.eup %7734  ;;  %v2919_v41 = vmin.f32 %v12334_v9, 20.0  ;;  %v2922_v54 = vmin.f32 %v12340_v51, 20.0  ;;  %v12369_v57 = vmul.f32 %v7723_v14, %v3296_v25  ;;  %7754 = vrcp.f32 %v4876_v31  ;;  %4294 = vadd.xlane.f32.xlu0 %v4064_v29  ;;  %14024 = vst [vmem:[#allocation24_spill] sm:$0xff] %v12377_v3 }
 0x38c   :  { %14019 = vst [vmem:[#allocation38_spill] sm:$0xff] %v12348_v15  ;;  %v7737_v1 = vpop.eup %7736  ;;  %v12371_v63 = vmul.f32 %v7727_v20, %v3301_v4  ;;  %v3167_v15 = vmul.f32 1.442695, %v2921_v42  ;;  %7756 = vrcp.f32 %v4877_v62  ;;  %v6167_v45 = vmul.f32 -1.442695, %v4374_v19 }
 0x38d   :  { %v7739_v49 = vpop.eup %7738  ;;  %v3299_v56 = vadd.f32 2.0, %v7737_v1  ;;  %v4375_v22 = vadd.f32 %v11828_v46, %v12097_v27  ;;  %7758 = vrcp.f32 %v4882_v39  ;;  %v3163_v25 = vmul.f32 1.442695, %v2919_v41  ;;  %v12390_v41 = vpop.xlane.xlu0 %4194 }
 0x38e   :  { %v7741_v28 = vpop.eup %7740  ;;  %v3302_v14 = vadd.f32 2.0, %v7739_v49  ;;  %v2920_v20 = vmin.f32 %v12357_v53, 20.0  ;;  %7760 = vpow2.f32 %v6162_v61  ;;  %v3169_v4 = vmul.f32 1.442695, %v2922_v54  ;;  %14025 = vst [vmem:[#allocation54_spill] sm:$0xff] %v12390_v41  ;;  %v14026_v61 = vld [vmem:[#allocation43_spill] sm:$0xff] }
 0x38f   :  { %v12373_v7 = vpop.eup %7742  ;;  %v3300_v31 = vadd.f32 2.0, %v7741_v28  ;;  %v4054_v42 = vmul.f32 %v12362_v5, %v12312_v59  ;;  %v3802_v27 = vmul.f32 %v12226_v6, %v12142_v37  ;;  %v3557_v19 = vadd.f32 2.0, %v12371_v63  ;;  %v14027_v59 = vld [vmem:[#allocation11_spill] sm:$0xff] }
 0x390   :  { %14023 = vst [vmem:[#allocation8_spill] sm:$0xff] %v12373_v7  ;;  %v12379_v48 = vpop.eup %7744  ;;  %7762 = vpow2.f32 %v3167_v15  ;;  %v4062_v39 = vmul.f32 %v12362_v5, %v3927_v2  ;;  %v12392_v29 = vmul.f32 %v7737_v1, %v3299_v56  ;;  %v6168_v7 = vmul.f32 -1.442695, %v4375_v22  ;;  %v14028_v2 = vld [vmem:[#allocation48_spill] sm:$0xff]  ;;  %v12411_v22 = vpop.xlane.xlu1 %4184 }
 0x391   :  { %v12382_v18 = vpop.eup %7746  ;;  %7764 = vpow2.f32 %v6167_v45  ;;  %4274 = vadd.xlane.f32.xlu1 %v4054_v42  ;;  %v12396_v54 = vadd.f32 %v11984_v16, %v14026_v61  ;;  %v3920_v3 = vmul.f32 %v12322_v55, %v14027_v59  ;;  %v12400_v37 = vmul.f32 %v7739_v49, %v3302_v14  ;;  %v14029_v42 = vld [vmem:[#allocation28_spill] sm:$0xff] }
 0x392   :  { %v7749_v62 = vpop.eup %7748  ;;  %7766 = vpow2.f32 %v3163_v25  ;;  %v3165_v6 = vmul.f32 1.442695, %v2920_v20  ;;  %4290 = vadd.xlane.f32.xlu0 %v4062_v39  ;;  %v12406_v1 = vmul.f32 %v12326_v32, %v14028_v2  ;;  %v3552_v45 = vadd.f32 2.0, %v12369_v57  ;;  %v14035_v39 = vld [vmem:[#allocation10_spill] sm:$0xff] }
 0x393   :  { %v12402_v15 = vpop.eup %7750  ;;  %v12409_v56 = vmul.f32 %v7741_v28, %v3300_v31  ;;  %7768 = vpow2.f32 %v3169_v4  ;;  %v12414_v55 = vmul.f32 %v3795_v33, %v14029_v42  ;;  %v3930_v49 = vmul.f32 %v3802_v27, %v11999_v0 }
 0x394   :  { %7770 = vrcp.f32 %v3557_v19  ;;  %v4883_v14 = vadd.f32 1.0, %v7749_v62  ;;  %v7753_v25 = vpop.eup %7752  ;;  %v3800_v20 = vmul.f32 %v12232_v8, %v12148_v10  ;;  %v3555_v32 = vadd.f32 2.0, %v12392_v29  ;;  %v12427_v62 = vpop.xlane.xlu0 %4206 }
 0x395   :  { %7772 = vpow2.f32 %v6168_v7  ;;  %v2929_v28 = vmin.f32 %v12396_v54, 20.0  ;;  %v12421_v31 = vpop.eup %7754  ;;  %v3805_v4 = vmul.f32 %v12276_v17, %v12185_v36  ;;  %v3558_v33 = vadd.f32 2.0, %v12400_v37  ;;  %14031 = vst [vmem:[#allocation43_spill] sm:$0xff] %v12427_v62  ;;  %v14033_v7 = vld [vmem:[#allocation49_spill] sm:$0xff] }
 0x396   :  { %14030 = vst [vmem:[#allocation7_spill] sm:$0xff] %v12421_v31  ;;  %7774 = vpow2.f32 %v3165_v6  ;;  %v4055_v0 = vmul.f32 %v12362_v5, %v3920_v3  ;;  %v12429_v27 = vpop.eup %7756  ;;  %v3803_v10 = vmul.f32 %v12283_v21, %v12191_v40  ;;  %v3556_v8 = vadd.f32 2.0, %v12409_v56  ;;  %v14036_v21 = vld [vmem:[#allocation33_spill] sm:$0xff] }
 0x397   :  { %14032 = vst [vmem:[#allocation11_spill] sm:$0xff] %v12429_v27  ;;  %7776 = vrcp.f32 %v3552_v45  ;;  %v12436_v19 = vadd.f32 %v11984_v16, %v14033_v7  ;;  %v12438_v36 = vpop.eup %7758  ;;  %v4880_v17 = vadd.f32 1.0, %v7753_v25  ;;  %v12442_v3 = vadd.f32 %v11984_v16, %v14035_v39  ;;  %v12450_v45 = vpop.xlane.xlu1 %4180  ;;  %v14037_v25 = vld [vmem:[#allocation56_spill] sm:$0xff] }
 0x398   :  { %14034 = vst [vmem:[#allocation48_spill] sm:$0xff] %v12438_v36  ;;  %7778 = vrcp.f32 %v4883_v14  ;;  %4276 = vadd.xlane.f32.xlu1 %v4055_v0  ;;  %v4065_v61 = vmul.f32 %v12362_v5, %v3930_v49  ;;  %v7761_v59 = vpop.eup %7760  ;;  %v3928_v40 = vmul.f32 %v3800_v20, %v12005_v23  ;;  %v12448_v6 = vadd.f32 %v11984_v16, %v14036_v21  ;;  %v12464_v39 = vpop.xlane.xlu0 %4202 }
 0x399   :  { %7780 = vrcp.f32 %v3555_v32  ;;  %v3183_v2 = vmul.f32 1.442695, %v2929_v28  ;;  %v3806_v14 = vmul.f32 %v12293_v11, %v12200_v43  ;;  %v4372_v0 = vadd.f32 %v11828_v46, %v14037_v25  ;;  %14038 = vst [vmem:[#allocation28_spill] sm:$0xff] %v12464_v39 }
 0x39a   :  { %v7763_v42 = vpop.eup %7762  ;;  %7782 = vrcp.f32 %v3558_v33  ;;  %v2928_v49 = vmin.f32 %v12436_v19, 20.0  ;;  %4296 = vadd.xlane.f32.xlu0 %v4065_v61  ;;  %v3933_v20 = vmul.f32 %v3805_v4, %v12055_v35  ;;  %v12459_v32 = vmul.f32 %v3803_v10, %v12061_v38  ;;  %v14039_v61 = vld [vmem:[#allocation19_spill] sm:$0xff]  ;;  %v14040_v10 = vld [vmem:[#allocation64_spill] sm:$0xff] }
 0x39b   :  { %v7765_v23 = vpop.eup %7764  ;;  %7784 = vrcp.f32 %v3556_v8  ;;  %v4373_v28 = vadd.f32 %v11828_v46, %v12118_v13  ;;  %v4881_v43 = vadd.f32 1.0, %v7761_v59  ;;  %v2925_v11 = vmin.f32 %v12442_v3, 20.0  ;;  %v12480_v41 = vpop.xlane.xlu1 %4192 }
 0x39c   :  { %v7767_v7 = vpop.eup %7766  ;;  %7786 = vrcp.f32 %v4880_v17  ;;  %v3181_v33 = vmul.f32 1.442695, %v2928_v49  ;;  %v12468_v25 = vmul.f32 %v12300_v24, %v14039_v61  ;;  %v3305_v35 = vadd.f32 2.0, %v7763_v42  ;;  %v14041_v24 = vld [vmem:[#allocation57_spill] sm:$0xff]  ;;  %14042 = vst [vmem:[#allocation49_spill] sm:$0xff] %v12480_v41  ;;  %v12498_v31 = vpop.xlane.xlu0 %4214 }
 0x39d   :  { %v7769_v21 = vpop.eup %7768  ;;  %v2923_v38 = vmin.f32 %v12448_v6, 20.0  ;;  %7788 = vpow2.f32 %v3183_v2  ;;  %v12472_v13 = vmul.f32 %v3806_v14, %v14040_v10  ;;  %v12476_v8 = vmul.f32 %v12379_v48, %v12270_v50  ;;  %14046 = vst [vmem:[#allocation33_spill] sm:$0xff] %v12498_v31 }
 0x39e   :  { %v7771_v4 = vpop.eup %7770  ;;  %v6165_v17 = vmul.f32 -1.442695, %v4372_v0  ;;  %7790 = vpow2.f32 %v3181_v33  ;;  %v4886_v49 = vadd.f32 1.0, %v7765_v23  ;;  %v3303_v39 = vadd.f32 2.0, %v7767_v7  ;;  %v14043_v23 = vld [vmem:[#allocation35_spill] sm:$0xff] }
 0x39f   :  { %v7773_v59 = vpop.eup %7772  ;;  %v6166_v62 = vmul.f32 -1.442695, %v4373_v28  ;;  %v4378_v61 = vadd.f32 %v11828_v46, %v14041_v24  ;;  %7792 = vrcp.f32 %v4881_v43  ;;  %v3306_v36 = vadd.f32 2.0, %v7769_v21 }
 0x3a0   :  { %v7775_v2 = vpop.eup %7774  ;;  %v3175_v14 = vmul.f32 1.442695, %v2925_v11  ;;  %v4060_v10 = vmul.f32 %v12362_v5, %v12406_v1  ;;  %v12486_v48 = vmul.f32 %v7763_v42, %v3305_v35  ;;  %v3171_v0 = vmul.f32 1.442695, %v2923_v38  ;;  %v14045_v11 = vld [vmem:[#allocation34_spill] sm:$0xff] }
 0x3a1   :  { %v12484_v50 = vpop.eup %7776  ;;  %v12490_v28 = vadd.f32 %v11984_v16, %v14043_v23  ;;  %v4063_v33 = vmul.f32 %v12362_v5, %v3928_v40  ;;  %v3813_v43 = vmul.f32 %v7771_v4, %v12371_v63  ;;  %v4887_v27 = vadd.f32 1.0, %v7773_v59  ;;  %v8251_v63 = vld [vmem:[%s13509_s4] ss:$0 sm:$0xff] }
 0x3a2   :  { %v12493_v24 = vpop.eup %7778  ;;  %7794 = vpow2.f32 %v6165_v17  ;;  %v4379_v1 = vadd.f32 %v11828_v46, %v14045_v11  ;;  %4286 = vadd.xlane.f32.xlu1 %v4060_v10  ;;  %v12502_v35 = vmul.f32 %v7767_v7, %v3303_v39  ;;  %v3304_v16 = vadd.f32 2.0, %v7775_v2  ;;  %v14047_v4 = vld [vmem:[#allocation37_spill] sm:$0xff] }
 0x3a3   :  { %14044 = vst [vmem:[#allocation10_spill] sm:$0xff] %v12493_v24  ;;  %v12500_v42 = vpop.eup %7780  ;;  %7796 = vpow2.f32 %v6166_v62  ;;  %v6171_v38 = vmul.f32 -1.442695, %v4378_v61  ;;  %4292 = vadd.xlane.f32.xlu0 %v4063_v33  ;;  %v12506_v23 = vmul.f32 %v7769_v21, %v3306_v36  ;;  %v12512_v17 = vadd.f32 %v8251_v63, %v14047_v4  ;;  %v12521_v21 = vpop.xlane.xlu1 %4188  ;;  %v14050_v33 = vld [vmem:[#allocation44_spill] sm:$0xff]  ;;  %v14052_v24 = vld [vmem:[#allocation22_spill] sm:$0xff] }
 0x3a4   :  { %v12504_v40 = vpop.eup %7782  ;;  %7798 = vpow2.f32 %v3175_v14  ;;  %v4058_v7 = vmul.f32 %v12362_v5, %v12414_v55  ;;  %v3561_v62 = vadd.f32 2.0, %v12486_v48  ;;  %v2926_v59 = vmin.f32 %v12490_v28, 20.0  ;;  %14048 = vst [vmem:[#allocation56_spill] sm:$0xff] %v12521_v21 }
 0x3a5   :  { %v12516_v39 = vpop.eup %7784  ;;  %7800 = vpow2.f32 %v3171_v0  ;;  %v4068_v36 = vmul.f32 %v12362_v5, %v3933_v20  ;;  %v3807_v14 = vmul.f32 %v12382_v18, %v12274_v30  ;;  %v6172_v10 = vmul.f32 -1.442695, %v4379_v1 }
 0x3a6   :  { %v12523_v61 = vpop.eup %7786  ;;  %7802 = vrcp.f32 %v4886_v49  ;;  %v12528_v55 = vadd.f32 %v8251_v63, %v14050_v33  ;;  %4282 = vadd.xlane.f32.xlu1 %v4058_v7  ;;  %v3810_v0 = vmul.f32 %v12402_v15, %v12296_v52  ;;  %v3559_v20 = vadd.f32 2.0, %v12502_v35  ;;  %v12538_v49 = vpop.xlane.xlu0 %4210  ;;  %v14054_v7 = vld [vmem:[#allocation30_spill] sm:$0xff] }
 0x3a7   :  { %14049 = vst [vmem:[#allocation19_spill] sm:$0xff] %v12523_v61  ;;  %v7789_v11 = vpop.eup %7788  ;;  %7804 = vrcp.f32 %v4887_v27  ;;  %v12533_v4 = vmul.f32 %v7775_v2, %v3304_v16  ;;  %4302 = vadd.xlane.f32.xlu0 %v4068_v36  ;;  %v3941_v61 = vmul.f32 %v3813_v43, %v14052_v24  ;;  %v3562_v30 = vadd.f32 2.0, %v12506_v23  ;;  %14053 = vst [vmem:[#allocation57_spill] sm:$0xff] %v12538_v49  ;;  %v14056_v16 = vld [vmem:[#allocation47_spill] sm:$0xff]  ;;  %v12553_v36 = vpop.xlane.xlu1 %4200 }
 0x3a8   :  { %14051 = vst [vmem:[#allocation64_spill] sm:$0xff] %v12528_v55  ;;  %v7791_v31 = vpop.eup %7790  ;;  %7806 = vpow2.f32 %v6171_v38  ;;  %v2924_v18 = vmin.f32 %v12512_v17, 20.0  ;;  %v3177_v1 = vmul.f32 1.442695, %v2926_v59  ;;  %v4376_v52 = vadd.f32 %v11828_v46, %v14054_v7  ;;  %14058 = vst [vmem:[#allocation37_spill] sm:$0xff] %v12553_v36 }
 0x3a9   :  { %7808 = vrcp.f32 %v3561_v62  ;;  %v3312_v15 = vadd.f32 2.0, %v7791_v31  ;;  %v12542_v27 = vpop.eup %7792  ;;  %v2927_v2 = vmin.f32 %v12528_v55, 20.0  ;;  %v12546_v24 = vadd.f32 %v8251_v63, %v14056_v16 }
 0x3aa   :  { %14055 = vst [vmem:[#allocation35_spill] sm:$0xff] %v12542_v27  ;;  %7810 = vpow2.f32 %v6172_v10  ;;  %v4066_v43 = vmul.f32 %v12362_v5, %v12459_v32  ;;  %v3560_v38 = vadd.f32 2.0, %v12533_v4  ;;  %v3313_v62 = vadd.f32 2.0, %v7789_v11  ;;  %v14059_v10 = vld [vmem:[#allocation65_spill] sm:$0xff] }
 0x3ab   :  { %14057 = vst [vmem:[#allocation34_spill] sm:$0xff] %v12546_v24  ;;  %7812 = vrcp.f32 %v3559_v20  ;;  %v12551_v59 = vmul.f32 %v7791_v31, %v3312_v15  ;;  %v12556_v7 = vadd.s32 4294967280, %v12304_v26  ;;  %v3932_v49 = vmul.f32 %v12468_v25, %v14059_v10  ;;  %v14060_v32 = vld [vmem:[#allocation9_spill] sm:$0xff] }
 0x3ac   :  { %v7795_v33 = vpop.eup %7794  ;;  %7814 = vrcp.f32 %v3562_v30  ;;  %v3173_v63 = vmul.f32 1.442695, %v2924_v18  ;;  %4298 = vadd.xlane.f32.xlu0 %v4066_v43  ;;  %v3937_v20 = vmul.f32 %v12476_v8, %v14060_v32  ;;  %v14061_v27 = vld [vmem:[#allocation17_spill] sm:$0xff]  ;;  %v6169_v31 = vmul.f32 -1.442695, %v4376_v52  ;;  %v12567_v30 = vpop.xlane.xlu0 %4222 }
 0x3ad   :  { %v7797_v16 = vpop.eup %7796  ;;  %v3935_v21 = vmul.f32 %v3807_v14, %v14061_v27  ;;  %7816 = vpow2.f32 %v3177_v1  ;;  %v3179_v36 = vmul.f32 1.442695, %v2927_v2  ;;  %v2930_v55 = vmin.f32 %v12546_v24, 20.0  ;;  %v14062_v43 = vld [vmem:[#allocation29_spill] sm:$0xff]  ;;  %v12585_v32 = vpop.xlane.xlu1 %4196 }
 0x3ae   :  { %v7799_v15 = vpop.eup %7798  ;;  %v4076_v41 = vmul.f32 %v12362_v5, %v3941_v61  ;;  %v4069_v25 = vmul.f32 %v12362_v5, %v12472_v13  ;;  %v3938_v10 = vmul.f32 %v3810_v0, %v14062_v43  ;;  %7818 = vrcp.f32 %v3560_v38  ;;  %v14064_v61 = vld [vmem:[#allocation41_spill] sm:$0xff]  ;;  %v14066_v38 = vld [vmem:[#allocation62_spill] sm:$0xff]  ;;  %14067 = vst [vmem:[#allocation30_spill] sm:$0xff] %v12585_v32 }
 0x3af   :  { %v7801_v18 = vpop.eup %7800  ;;  %v12570_v8 = vmul.f32 %v7789_v11, %v3313_v62  ;;  %v3568_v14 = vadd.f32 2.0, %v12551_v59  ;;  %v3811_v52 = vmul.f32 %v12500_v42, %v12392_v29  ;;  %v4884_v27 = vadd.f32 1.0, %v7795_v33 }
 0x3b0   :  { %v12573_v1 = vpop.eup %7802  ;;  %7820 = vpow2.f32 %v3173_v63  ;;  %v4377_v13 = vadd.f32 %v11828_v46, %v14064_v61  ;;  %4318 = vadd.xlane.f32.xlu1 %v4076_v41  ;;  %4304 = vadd.xlane.f32.xlu0 %v4069_v25  ;;  %v3814_v11 = vmul.f32 %v12504_v40, %v12400_v37  ;;  %v4885_v0 = vadd.f32 1.0, %v7797_v16  ;;  %v14068_v16 = vld [vmem:[#allocation55_spill] sm:$0xff] }
 0x3b1   :  { %14063 = vst [vmem:[#allocation44_spill] sm:$0xff] %v12573_v1  ;;  %v12579_v2 = vpop.eup %7804  ;;  %7822 = vpow2.f32 %v6169_v31  ;;  %v4382_v62 = vadd.f32 %v11828_v46, %v14066_v38  ;;  %v3309_v42 = vadd.f32 2.0, %v7799_v15  ;;  %v3307_v33 = vadd.f32 2.0, %v7801_v18  ;;  %v14069_v31 = vld [vmem:[#allocation60_spill] sm:$0xff] }
 0x3b2   :  { %14065 = vst [vmem:[#allocation22_spill] sm:$0xff] %v12579_v2  ;;  %v7807_v29 = vpop.eup %7806  ;;  %7824 = vpow2.f32 %v3179_v36  ;;  %v3185_v63 = vmul.f32 1.442695, %v2930_v55  ;;  %v3569_v41 = vadd.f32 2.0, %v12570_v8  ;;  %v4072_v25 = vmul.f32 %v12362_v5, %v3937_v20  ;;  %v12594_v2 = vpop.xlane.xlu0 %4218  ;;  %v14070_v36 = vld [vmem:[#allocation42_spill] sm:$0xff] }
 0x3b3   :  { %v7809_v43 = vpop.eup %7808  ;;  %7826 = vrcp.f32 %v3568_v14  ;;  %v4067_v37 = vmul.f32 %v12362_v5, %v3932_v49  ;;  %v3794_v61 = vmul.f32 %v14069_v31, %v14068_v16  ;;  %v3808_v38 = vmul.f32 %v12484_v50, %v12369_v57  ;;  %v14071_v16 = vld [vmem:[#allocation45_spill] sm:$0xff] }
 0x3b4   :  { %v7811_v40 = vpop.eup %7810  ;;  %7828 = vrcp.f32 %v4884_v27  ;;  %v6170_v32 = vmul.f32 -1.442695, %v4377_v13  ;;  %v3939_v1 = vmul.f32 %v3811_v52, %v14070_v36  ;;  %v3812_v14 = vmul.f32 %v12516_v39, %v12409_v56  ;;  %4310 = vadd.xlane.f32.xlu1 %v4072_v25  ;;  %v12608_v39 = vpop.xlane.xlu1 %4208  ;;  %v14076_v36 = vld [vmem:[#allocation27_spill] sm:$0xff] }
 0x3b5   :  { %v7813_v55 = vpop.eup %7812  ;;  %7830 = vrcp.f32 %v4885_v0  ;;  %v6175_v20 = vmul.f32 -1.442695, %v4382_v62  ;;  %4300 = vadd.xlane.f32.xlu0 %v4067_v37  ;;  %v3942_v31 = vmul.f32 %v3814_v11, %v14071_v16  ;;  %v4890_v24 = vadd.f32 1.0, %v7807_v29  ;;  %v14072_v62 = vld [vmem:[#allocation50_spill] sm:$0xff]  ;;  %v14075_v37 = vld [vmem:[#allocation21_spill] sm:$0xff] }
 0x3b6   :  { %v12599_v49 = vpop.eup %7814  ;;  %v12602_v57 = vmul.f32 %v7799_v15, %v3309_v42  ;;  %7832 = vpow2.f32 %v3185_v63  ;;  %v12604_v27 = vmul.f32 %v7801_v18, %v3307_v33  ;;  %v4073_v52 = vmul.f32 %v12362_v5, %v3938_v10  ;;  %v14073_v29 = vld [vmem:[#allocation26_spill] sm:$0xff] }
 0x3b7   :  { %v7817_v50 = vpop.eup %7816  ;;  %7834 = vrcp.f32 %v3569_v41  ;;  %v4070_v56 = vmul.f32 %v12362_v5, %v3935_v21  ;;  %v3817_v13 = vmul.f32 %v7809_v43, %v12486_v48  ;;  %v4891_v0 = vadd.f32 1.0, %v7811_v40  ;;  %v14074_v33 = vld [vmem:[#allocation66_spill] sm:$0xff]  ;;  %v12619_v43 = vpop.xlane.xlu0 %4230 }
 0x3b8   :  { %7836 = vpow2.f32 %v6170_v32  ;;  %v4383_v11 = vadd.f32 %v11828_v46, %v14072_v62  ;;  %v7819_v15 = vpop.eup %7818  ;;  %v3936_v42 = vmul.f32 %v3808_v38, %v14073_v29  ;;  %v3815_v18 = vmul.f32 %v7813_v55, %v12502_v35  ;;  %4312 = vadd.xlane.f32.xlu1 %v4073_v52  ;;  %v14077_v62 = vld [vmem:[#allocation40_spill] sm:$0xff] }
 0x3b9   :  { %7838 = vpow2.f32 %v6175_v20  ;;  %v4380_v10 = vadd.f32 %v11828_v46, %v14074_v33  ;;  %4306 = vadd.xlane.f32.xlu0 %v4070_v56  ;;  %v3940_v63 = vmul.f32 %v3812_v14, %v12252_v12  ;;  %v3565_v48 = vadd.f32 2.0, %v12602_v57 }
 0x3ba   :  { %v7821_v21 = vpop.eup %7820  ;;  %7840 = vrcp.f32 %v4890_v24  ;;  %v3310_v32 = vadd.f32 2.0, %v7817_v50  ;;  %v3563_v25 = vadd.f32 2.0, %v12604_v27  ;;  %v4381_v35 = vadd.f32 %v11828_v46, %v14075_v37 }
 0x3bb   :  { %v7823_v41 = vpop.eup %7822  ;;  %v4077_v40 = vmul.f32 %v12362_v5, %v3942_v31  ;;  %v4074_v38 = vmul.f32 %v12362_v5, %v3939_v1  ;;  %v3922_v20 = vmul.f32 %v3794_v61, %v14076_v36  ;;  %v3945_v12 = vmul.f32 %v3817_v13, %v12316_v60  ;;  %v12631_v31 = vpop.xlane.xlu1 %4204 }
 0x3bc   :  { %v7825_v55 = vpop.eup %7824  ;;  %7842 = vrcp.f32 %v4891_v0  ;;  %v6176_v24 = vmul.f32 -1.442695, %v4383_v11  ;;  %v3943_v16 = vmul.f32 %v3815_v18, %v12334_v9  ;;  %v3308_v52 = vadd.f32 2.0, %v7821_v21 }
 0x3bd   :  { %v7827_v14 = vpop.eup %7826  ;;  %v6173_v56 = vmul.f32 -1.442695, %v4380_v10  ;;  %v4386_v29 = vadd.f32 %v11828_v46, %v14077_v62  ;;  %4320 = vadd.xlane.f32.xlu1 %v4077_v40  ;;  %4314 = vadd.xlane.f32.xlu0 %v4074_v38  ;;  %7844 = vrcp.f32 %v3565_v48  ;;  %v12635_v61 = vmul.f32 %v7817_v50, %v3310_v32  ;;  %v14078_v48 = vld [vmem:[#allocation12_spill] sm:$0xff]  ;;  %v12646_v32 = vpop.xlane.xlu0 %4232 }
 0x3be   :  { %v12633_v1 = vpop.eup %7828  ;;  %v4888_v60 = vadd.f32 1.0, %v7823_v41  ;;  %v4387_v13 = vadd.f32 %v11828_v46, %v12268_v47  ;;  %7846 = vrcp.f32 %v3563_v25  ;;  %v6174_v9 = vmul.f32 -1.442695, %v4381_v35 }
 0x3bf   :  { %v12639_v0 = vpop.eup %7830  ;;  %v4075_v11 = vmul.f32 %v12362_v5, %v3940_v63  ;;  %v4071_v18 = vmul.f32 %v12362_v5, %v3936_v42  ;;  %7848 = vpow2.f32 %v6176_v24  ;;  %v3311_v10 = vadd.f32 2.0, %v7825_v55 }
 0x3c0   :  { %v7833_v33 = vpop.eup %7832  ;;  %v3824_v37 = vmul.f32 %v7827_v14, %v12551_v59  ;;  %v4384_v50 = vadd.f32 %v11828_v46, %v14078_v48  ;;  %v3818_v47 = vmul.f32 %v12599_v49, %v12506_v23  ;;  %v12650_v25 = vmul.f32 %v7821_v21, %v3308_v52  ;;  %v12656_v49 = vpop.xlane.xlu1 %4216 }
 0x3c1   :  { %v7835_v41 = vpop.eup %7834  ;;  %7850 = vpow2.f32 %v6173_v56  ;;  %v6179_v63 = vmul.f32 -1.442695, %v4386_v29  ;;  %4316 = vadd.xlane.f32.xlu1 %v4075_v11  ;;  %4308 = vadd.xlane.f32.xlu0 %v4071_v18  ;;  %v3816_v35 = vmul.f32 %v7819_v15, %v12533_v4  ;;  %v3566_v59 = vadd.f32 2.0, %v12635_v61  ;;  %14079 = vst [vmem:[#allocation47_spill] sm:$0xff] %v12656_v49 }
 0x3c2   :  { %v7837_v42 = vpop.eup %7836  ;;  %7852 = vrcp.f32 %v4888_v60  ;;  %v6180_v40 = vmul.f32 -1.442695, %v4387_v13  ;;  %v3314_v36 = vadd.f32 2.0, %v7833_v33  ;;  %v4080_v24 = vmul.f32 %v12362_v5, %v3945_v12 }
 0x3c3   :  { %v7839_v38 = vpop.eup %7838  ;;  %7854 = vpow2.f32 %v6174_v9  ;;  %v4057_v23 = vmul.f32 %v12362_v5, %v3922_v20  ;;  %v3825_v14 = vmul.f32 %v7835_v41, %v12570_v8  ;;  %v12661_v52 = vmul.f32 %v7825_v55, %v3311_v10  ;;  %v14082_v55 = vld [vmem:[#allocation31_spill] sm:$0xff] }
 0x3c4   :  { %v12658_v21 = vpop.eup %7840  ;;  %v3952_v4 = vmul.f32 %v3824_v37, %v12436_v19  ;;  %v6177_v15 = vmul.f32 -1.442695, %v4384_v50  ;;  %v3946_v56 = vmul.f32 %v3818_v47, %v12340_v51  ;;  %v3564_v62 = vadd.f32 2.0, %v12650_v25  ;;  %v12672_v19 = vpop.xlane.xlu0 %4228  ;;  %v14084_v47 = vld [vmem:[#allocation53_spill] sm:$0xff] }
 0x3c5   :  { %14080 = vst [vmem:[#allocation65_spill] sm:$0xff] %v12658_v21  ;;  %7856 = vpow2.f32 %v6179_v63  ;;  %v4385_v12 = vadd.f32 %v11828_v46, %v12298_v34  ;;  %4326 = vadd.xlane.f32.xlu1 %v4080_v24  ;;  %4280 = vadd.xlane.f32.xlu0 %v4057_v23  ;;  %v4889_v29 = vadd.f32 1.0, %v7837_v42  ;;  %v4894_v8 = vadd.f32 1.0, %v7839_v38 }
 0x3c6   :  { %v12668_v20 = vpop.eup %7842  ;;  %7858 = vrcp.f32 %v3566_v59  ;;  %v4390_v60 = vadd.f32 %v11828_v46, %v14082_v55  ;;  %v12674_v13 = vmul.f32 %v7833_v33, %v3314_v36  ;;  %v4391_v51 = vadd.f32 %v11828_v46, %v12342_v58  ;;  %v12687_v58 = vpop.xlane.xlu1 %4212  ;;  %v14086_v55 = vld [vmem:[#allocation24_spill] sm:$0xff] }
 0x3c7   :  { %14081 = vst [vmem:[#allocation9_spill] sm:$0xff] %v12668_v20  ;;  %7860 = vpow2.f32 %v6180_v40  ;;  %v4078_v34 = vmul.f32 %v12362_v5, %v3943_v16  ;;  %v7845_v9 = vpop.eup %7844  ;;  %v3953_v11 = vmul.f32 %v3825_v14, %v12396_v54  ;;  %v3567_v18 = vadd.f32 2.0, %v12661_v52  ;;  %14083 = vst [vmem:[#allocation17_spill] sm:$0xff] %v12687_v58 }
 0x3c8   :  { %7862 = vpow2.f32 %v6177_v15  ;;  %v4087_v10 = vmul.f32 %v12362_v5, %v3952_v4  ;;  %v7847_v37 = vpop.eup %7846  ;;  %v12684_v48 = vsub.s32 %v12304_v26, %v12306_v44  ;;  %v5392_v33 = vadd.s32 4294967272, %v12304_v26  ;;  %v12699_v23 = vpop.xlane.xlu0 %4238 }
 0x3c9   :  { %7864 = vrcp.f32 %v3564_v62  ;;  %v6178_v50 = vmul.f32 -1.442695, %v4385_v12  ;;  %4322 = vadd.xlane.f32.xlu1 %v4078_v34  ;;  %v7849_v16 = vpop.eup %7848  ;;  %v3944_v54 = vmul.f32 %v3816_v35, %v12357_v53  ;;  %v6183_v41 = vmul.f32 -1.442695, %v4390_v60 }
 0x3ca   :  { %7866 = vrcp.f32 %v4889_v29  ;;  %v4388_v63 = vadd.f32 %v11828_v46, %v14084_v47  ;;  %4340 = vadd.xlane.f32.xlu0 %v4087_v10  ;;  %v3821_v59 = vmul.f32 %v7845_v9, %v12602_v57  ;;  %v6184_v40 = vmul.f32 -1.442695, %v4391_v51  ;;  %v12712_v34 = vpop.xlane.xlu1 %4224 }
 0x3cb   :  { %v7851_v42 = vpop.eup %7850  ;;  %7868 = vrcp.f32 %v4894_v8  ;;  %v4081_v38 = vmul.f32 %v12362_v5, %v3946_v56  ;;  %v5378_v24 = vadd.s32 4294967288, %v12304_v26  ;;  %v3570_v53 = vadd.f32 2.0, %v12674_v13 }
 0x3cc   :  { %v12694_v36 = vpop.eup %7852  ;;  %7870 = vrcp.f32 %v3567_v18  ;;  %v4088_v35 = vmul.f32 %v12362_v5, %v3953_v11  ;;  %v5413_v4 = vadd.s32 4294967248, %v12304_v26  ;;  %v5420_v57 = vadd.s32 4294967240, %v12304_v26  ;;  %v12729_v47 = vpop.xlane.xlu0 %4234 }
 0x3cd   :  { %14085 = vst [vmem:[#allocation29_spill] sm:$0xff] %v12694_v36  ;;  %v7855_v14 = vpop.eup %7854  ;;  %v4895_v15 = vadd.f32 1.0, %v7849_v16  ;;  %7872 = vpow2.f32 %v6178_v50  ;;  %4328 = vadd.xlane.f32.xlu1 %v4081_v38  ;;  %v12705_v56 = vsub.s32 %v12556_v7, %v12306_v44  ;;  %v3819_v62 = vmul.f32 %v7847_v37, %v12604_v27 }
 0x3ce   :  { %7874 = vpow2.f32 %v6183_v41  ;;  %v6181_v12 = vmul.f32 -1.442695, %v4388_v63  ;;  %4342 = vadd.xlane.f32.xlu0 %v4088_v35  ;;  %v3949_v8 = vmul.f32 %v3821_v59, %v12442_v3  ;;  %v4389_v60 = vadd.f32 %v11828_v46, %v14086_v55  ;;  %v14089_v35 = vld [vmem:[#allocation20_spill] sm:$0xff] }
 0x3cf   :  { %v7857_v29 = vpop.eup %7856  ;;  %7876 = vpow2.f32 %v6184_v40  ;;  %v4079_v51 = vmul.f32 %v12362_v5, %v3944_v54  ;;  %v12715_v7 = vsub.s32 %v5392_v33, %v12306_v44  ;;  %v12718_v27 = vsub.s32 %v5378_v24, %v12306_v44  ;;  %v14087_v54 = vld [vmem:[#allocation6_spill] sm:$0xff] }
 0x3d0   :  { %v7859_v9 = vpop.eup %7858  ;;  %7878 = vrcp.f32 %v3570_v53  ;;  %v4892_v11 = vadd.f32 1.0, %v7851_v42  ;;  %v12721_v3 = vsub.s32 %v5413_v4, %v12306_v44  ;;  %v12724_v10 = vsub.s32 %v5420_v57, %v12306_v44 }
 0x3d1   :  { %v7861_v18 = vpop.eup %7860  ;;  %7880 = vrcp.f32 %v4895_v15  ;;  %v4893_v37 = vadd.f32 1.0, %v7855_v14  ;;  %4324 = vadd.xlane.f32.xlu1 %v4079_v51  ;;  %v3947_v16 = vmul.f32 %v3819_v62, %v12448_v6  ;;  %v4898_v33 = vadd.f32 1.0, %v7857_v29  ;;  %v4221_v15 = vpop.xlane.xlu1 %4220 }
 0x3d2   :  { %v7863_v50 = vpop.eup %7862  ;;  %7882 = vpow2.f32 %v6181_v12  ;;  %v4394_v41 = vadd.f32 %v11828_v46, %v14087_v54  ;;  %v3822_v42 = vmul.f32 %v7859_v9, %v12635_v61  ;;  %v6182_v59 = vmul.f32 -1.442695, %v4389_v60  ;;  %v14090_v12 = vld [vmem:[#allocation58_spill] sm:$0xff] }
 0x3d3   :  { %v7865_v63 = vpop.eup %7864  ;;  %v4395_v40 = vadd.f32 %v11828_v46, %v12411_v22  ;;  %v4084_v38 = vmul.f32 %v12362_v5, %v3949_v8  ;;  %v5399_v6 = vadd.s32 4294967264, %v12304_v26  ;;  %7884 = vrcp.f32 %v4892_v11 }
 0x3d4   :  { %v12735_v24 = vpop.eup %7866  ;;  %v4899_v53 = vadd.f32 1.0, %v7861_v18  ;;  %v4392_v14 = vadd.f32 %v11828_v46, %v14089_v35  ;;  %v5406_v57 = vadd.s32 4294967256, %v12304_v26  ;;  %7886 = vrcp.f32 %v4893_v37 }
 0x3d5   :  { %14088 = vst [vmem:[#allocation41_spill] sm:$0xff] %v12735_v24  ;;  %v12740_v4 = vpop.eup %7868  ;;  %v4896_v61 = vadd.f32 1.0, %v7863_v50  ;;  %v4393_v22 = vadd.f32 %v11828_v46, %v12450_v45  ;;  %4334 = vadd.xlane.f32.xlu1 %v4084_v38  ;;  %v5389_v29 = vrot.slane %v14090_v12, %v12705_v56  ;;  %v3820_v8 = vmul.f32 %v7865_v63, %v12650_v25  ;;  %v14091_v45 = vld [vmem:[#allocation59_spill] sm:$0xff]  ;;  %v12755_v38 = vpop.xlane.xlu0 %4240 }
 0x3d6   :  { %v7871_v62 = vpop.eup %7870  ;;  %7888 = vrcp.f32 %v4898_v33  ;;  %v6187_v55 = vmul.f32 -1.442695, %v4394_v41  ;;  %v3950_v51 = vmul.f32 %v3822_v42, %v12490_v28  ;;  %v6188_v9 = vmul.f32 -1.442695, %v4395_v40 }
 0x3d7   :  { %v7873_v60 = vpop.eup %7872  ;;  %7890 = vpow2.f32 %v6182_v59  ;;  %v4082_v11 = vmul.f32 %v12362_v5, %v3947_v16  ;;  %v5377_v37 = vrot.slane %v14091_v45, %v12684_v48  ;;  %v12753_v50 = vsub.s32 %v5399_v6, %v12306_v44  ;;  %v14092_v59 = vld [vmem:[#allocation32_spill] sm:$0xff] }
 0x3d8   :  { %v7875_v18 = vpop.eup %7874  ;;  %7892 = vrcp.f32 %v4899_v53  ;;  %v6185_v54 = vmul.f32 -1.442695, %v4392_v14  ;;  %v12758_v33 = vsub.s32 %v5406_v57, %v12306_v44  ;;  %v6186_v28 = vmul.f32 -1.442695, %v4393_v22  ;;  %v4227_v57 = vpop.xlane.xlu1 %4226 }
 0x3d9   :  { %v7877_v25 = vpop.eup %7876  ;;  %7894 = vrcp.f32 %v4896_v61  ;;  %4330 = vadd.xlane.f32.xlu1 %v4082_v11  ;;  %v4414_v16 = vadd.f32 %v11828_v46, %v12567_v30  ;;  %v3823_v63 = vmul.f32 %v7871_v62, %v12661_v52  ;;  %v4897_v42 = vadd.f32 1.0, %v7873_v60  ;;  %v14094_v30 = vld [vmem:[#allocation63_spill] sm:$0xff]  ;;  %v14095_v62 = vld [vmem:[#allocation49_spill] sm:$0xff] }
 0x3da   :  { %v7879_v41 = vpop.eup %7878  ;;  %7896 = vpow2.f32 %v6187_v55  ;;  %v4398_v40 = vadd.f32 %v11828_v46, %v14092_v59  ;;  %v3948_v53 = vmul.f32 %v3820_v8, %v12512_v17  ;;  %v4902_v35 = vadd.f32 1.0, %v7875_v18 }
 0x3db   :  { %v12765_v6 = vpop.eup %7880  ;;  %7898 = vpow2.f32 %v6188_v9  ;;  %v4085_v14 = vmul.f32 %v12362_v5, %v3950_v51  ;;  %v5382_v22 = vrot.slane %v14094_v30, %v12718_v27  ;;  %v4903_v52 = vadd.f32 1.0, %v7877_v25  ;;  %v14096_v51 = vld [vmem:[#allocation64_spill] sm:$0xff]  ;;  %v14100_v30 = vld [vmem:[#allocation51_spill] sm:$0xff] }
 0x3dc   :  { %14093 = vst [vmem:[#allocation62_spill] sm:$0xff] %v12765_v6  ;;  %v7883_v61 = vpop.eup %7882  ;;  %7900 = vpow2.f32 %v6185_v54  ;;  %v4399_v55 = vadd.f32 %v11828_v46, %v14095_v62  ;;  %v3826_v60 = vmul.f32 %v7879_v41, %v12674_v13  ;;  %v6207_v11 = vmul.f32 -1.442695, %v4414_v16  ;;  %v12781_v54 = vpop.xlane.xlu0 %4236  ;;  %v14125_v6 = vld [vmem:[#allocation23_spill] sm:$0xff] }
 0x3dd   :  { %7902 = vpow2.f32 %v6186_v28  ;;  %4336 = vadd.xlane.f32.xlu1 %v4085_v14  ;;  %v4415_v17 = vadd.f32 %v11828_v46, %v12712_v34  ;;  %v12776_v8 = vpop.eup %7884  ;;  %v3951_v9 = vmul.f32 %v3823_v63, %v14096_v51  ;;  %v6191_v18 = vmul.f32 -1.442695, %v4398_v40  ;;  %v12787_v16 = vpop.xlane.xlu1 %4252  ;;  %v14099_v14 = vld [vmem:[#allocation34_spill] sm:$0xff] }
 0x3de   :  { %7904 = vrcp.f32 %v4897_v42  ;;  %v4412_v45 = vadd.f32 %v11828_v46, %v12594_v2  ;;  %v12783_v25 = vpop.eup %7886  ;;  %v4900_v13 = vadd.f32 1.0, %v7883_v61  ;;  %v4083_v28 = vmul.f32 %v12362_v5, %v3948_v53 }
 0x3df   :  { %7906 = vrcp.f32 %v4902_v35  ;;  %v4413_v34 = vadd.f32 %v11828_v46, %v4221_v15  ;;  %v5441_v63 = vadd.s32 4294967216, %v12304_v26  ;;  %v5448_v42 = vadd.s32 4294967208, %v12304_v26 }
 0x3e0   :  { %v12789_v41 = vpop.eup %7888  ;;  %7908 = vrcp.f32 %v4903_v52  ;;  %v6192_v2 = vmul.f32 -1.442695, %v4399_v55  ;;  %v5384_v40 = vsel %vm5383_vm2, %v5382_v22, %v5377_v37  ;;  %v6208_v35 = vmul.f32 -1.442695, %v4415_v17 }
 0x3e1   :  { %14097 = vst [vmem:[#allocation55_spill] sm:$0xff] %v12789_v41  ;;  %v7891_v59 = vpop.eup %7890  ;;  %7910 = vpow2.f32 %v6207_v11  ;;  %4332 = vadd.xlane.f32.xlu1 %v4083_v28  ;;  %v4418_v53 = vadd.f32 %v11828_v46, %v12619_v43  ;;  %v3954_v61 = vmul.f32 %v3826_v60, %v14099_v14  ;;  %v4396_v62 = vadd.f32 %v11828_v46, %v14100_v30  ;;  %v14102_v60 = vld [vmem:[#allocation56_spill] sm:$0xff]  ;;  %v12810_v28 = vpop.xlane.xlu0 %4246 }
 0x3e2   :  { %v12796_v15 = vpop.eup %7892  ;;  %7912 = vpow2.f32 %v6191_v18  ;;  %v6205_v52 = vmul.f32 -1.442695, %v4412_v45  ;;  %v6206_v37 = vmul.f32 -1.442695, %v4413_v34  ;;  %v4086_v22 = vmul.f32 %v12362_v5, %v3951_v9  ;;  %v12819_v9 = vpop.xlane.xlu1 %4262 }
 0x3e3   :  { %14098 = vst [vmem:[#allocation60_spill] sm:$0xff] %v12796_v15  ;;  %v12801_v55 = vpop.eup %7894  ;;  %7914 = vrcp.f32 %v4900_v13  ;;  %v4416_v11 = vadd.f32 %v11828_v46, %v4227_v57  ;;  %v12806_v43 = vsub.s32 %v5441_v63, %v12306_v44  ;;  %v4901_v51 = vadd.f32 1.0, %v7891_v59  ;;  %v14103_v13 = vld [vmem:[#allocation61_spill] sm:$0xff] }
 0x3e4   :  { %14101 = vst [vmem:[#allocation42_spill] sm:$0xff] %v12801_v55  ;;  %v7897_v17 = vpop.eup %7896  ;;  %7916 = vpow2.f32 %v6192_v2  ;;  %v4397_v18 = vadd.f32 %v11828_v46, %v14102_v60  ;;  %v5396_v34 = vrot.slane %v14103_v13, %v12715_v7  ;;  %v12817_v5 = vsub.s32 %v5448_v42, %v12306_v44 }
 0x3e5   :  { %v12812_v45 = vpop.eup %7898  ;;  %7918 = vpow2.f32 %v6208_v35  ;;  %4338 = vadd.xlane.f32.xlu1 %v4086_v22  ;;  %v6211_v57 = vmul.f32 -1.442695, %v4418_v53  ;;  %v5391_v2 = vsel %vm5390_vm3, %v5389_v29, %v5384_v40  ;;  %v6189_v59 = vmul.f32 -1.442695, %v4396_v62  ;;  %v8252_v35 = vld [vmem:[%s13510_s5] ss:$0 sm:$0xff]  ;;  %v12852_v13 = vpop.xlane.xlu0 %4242 }
 0x3e6   :  { %v12821_v63 = vpop.eup %7900  ;;  %7920 = vpow2.f32 %v6205_v52  ;;  %v4419_v14 = vadd.f32 %v11828_v46, %v12646_v32  ;;  %v6209_v42 = vmul.f32 -1.442695, %v4416_v11  ;;  %v4089_v53 = vmul.f32 %v8252_v35, %v3954_v61  ;;  %v14105_v29 = vld [vmem:[#allocation67_spill] sm:$0xff]  ;;  %s8277_s5 = smov [#allocation3]  }
 0x3e7   :  { %v12829_v30 = vpop.eup %7902  ;;  %7922 = vpow2.f32 %v6206_v37  ;;  %v4417_v22 = vadd.f32 %v11828_v46, %v12672_v19  ;;  %v6190_v62 = vmul.f32 -1.442695, %v4397_v18  ;;  %v4422_v32 = vadd.f32 %v11828_v46, %v12699_v23  ;;  %v14107_v37 = vld [vmem:[#allocation13_spill] sm:$0xff]  ;;  %s6058_s30 = sshll.u32 %s8277_s5, 4  ;;  %s6059_s30 = int_to_ptr.vmem [resolvable:$true] %s6058_s30 }
 0x3e8   :  { %v12836_v12 = vpop.eup %7904  ;;  %7924 = vrcp.f32 %v4901_v51  ;;  %v5403_v11 = vrot.slane %v14107_v37, %v12753_v50  ;;  %v4906_v61 = vadd.f32 1.0, %v7897_v17  ;;  %v4420_v19 = vadd.f32 %v11828_v46, %v12729_v47  ;;  %v14109_v37 = vld [vmem:[#allocation46_spill] sm:$0xff]  ;;  %s8253_s0 = scalar_lea.vmem %s6059_s30, 128  ;;  %p8258_p1 = scmp.lt.s32.totalorder %s6059_s30, %s6059_s30 }
 0x3e9   :  { %14104 = vst [vmem:[#allocation45_spill] sm:$0xff] %v12836_v12  ;;  %v12842_v52 = vpop.eup %7906  ;;  %7926 = vpow2.f32 %v6211_v57  ;;  %4344 = vadd.xlane.f32.xlu1 %v4089_v53  ;;  %v5398_v51 = vsel %vm5397_vm4, %v5396_v34, %v5391_v2  ;;  %v5427_v18 = vadd.s32 4294967232, %v12304_v26  ;;  %v6212_v23 = vmul.f32 -1.442695, %v4419_v14  ;;  %v12857_v53 = vpop.xlane.xlu1 %4258  ;;  %v14110_v34 = vld [vmem:[#allocation25_spill] sm:$0xff]  ;;  %p8254_p0 = scmp.ne.s32.totalorder %s6059_s30, %s8253_s0  ;;  %p8259_p2 = scmp.lt.s32.totalorder %s8253_s0, %s8253_s0 }
 0x3ea   :  { %14106 = vst [vmem:[#allocation50_spill] sm:$0xff] %v12842_v52  ;;  %v12848_v60 = vpop.eup %7908  ;;  %7928 = vpow2.f32 %v6189_v59  ;;  %v5434_v17 = vadd.s32 4294967224, %v12304_v26  ;;  %v6210_v57 = vmul.f32 -1.442695, %v4417_v22  ;;  %v5410_v2 = vrot.slane %v14110_v34, %v12758_v33 }
 0x3eb   :  { %14108 = vst [vmem:[#allocation26_spill] sm:$0xff] %v12848_v60  ;;  %v7911_v35 = vpop.eup %7910  ;;  %7930 = vpow2.f32 %v6209_v42  ;;  %v6215_v59 = vmul.f32 -1.442695, %v4422_v32  ;;  %v5405_v60 = vsel %vm5404_vm5, %v5403_v11, %v5398_v51  ;;  %v6213_v40 = vmul.f32 -1.442695, %v4420_v19  ;;  %v14113_v51 = vld [vmem:[#allocation7_spill] sm:$0xff]  ;;  %p8260_p3 = por %p8259_p2, %p8258_p1 }
 0x3ec   :  { %v12859_v47 = vpop.eup %7912  ;;  %7932 = vpow2.f32 %v6190_v62  ;;  %v4423_v42 = vadd.f32 %v11828_v46, %v12755_v38  ;;  %v12871_v52 = vsub.s32 %v5427_v18, %v12306_v44  ;;  %v4926_v20 = vadd.f32 1.0, %v7911_v35 }
 0x3ed   :  { %v12863_v14 = vpop.eup %7914  ;;  %7934 = vrcp.f32 %v4906_v61  ;;  %v12874_v62 = vsub.s32 %v5434_v17, %v12306_v44  ;;  %v5469_v32 = vadd.s32 4294967184, %v12304_v26  ;;  %v4421_v11 = vadd.f32 %v11828_v46, %v12781_v54  ;;  %v14114_v17 = vld [vmem:[#allocation11_spill] sm:$0xff]  ;;  %v12885_v24 = vpop.xlane.xlu1 %4264  ;;  %p8261_p4 = pnand %p8260_p3, %p8254_p0 }
 0x3ee   :  { %14111 = vst [vmem:[#allocation66_spill] sm:$0xff] %v12863_v14  ;;  %v12868_v22 = vpop.eup %7916  ;;  %14112 = vst [vmem:[#allocation21_spill] sm:$0xff] %v12871_v52  ;;  %7936 = vpow2.f32 %v6212_v23  ;;  %v5412_v38 = vsel %vm5411_vm6, %v5410_v2, %v5405_v60  ;;  %v5476_v19 = vadd.s32 4294967176, %v12304_v26  ;;  %v5486_v18 = vrot.slane %v14113_v51, %v12684_v48  ;;  %v4249_v23 = vpop.xlane.xlu0 %4248 }
 0x3ef   :  { %v7919_v34 = vpop.eup %7918  ;;  %7938 = vpow2.f32 %v6210_v57  ;;  %v5490_v15 = vrot.slane %v14114_v17, %v12718_v27  ;;  %v6216_v57 = vmul.f32 -1.442695, %v4423_v42  ;;  %v4426_v41 = vadd.f32 %v11828_v46, %v12810_v28  ;;  %v14118_v17 = vld [vmem:[#allocation14_spill] sm:$0xff] }
 0x3f0   :  { %v7921_v61 = vpop.eup %7920  ;;  %7940 = vpow2.f32 %v6215_v59  ;;  %v4927_v60 = vadd.f32 1.0, %v7919_v34  ;;  %v12892_v59 = vsub.s32 %v5469_v32, %v12306_v44  ;;  %v5455_v21 = vadd.s32 4294967200, %v12304_v26  ;;  %v14117_v34 = vld [vmem:[#allocation18_spill] sm:$0xff] }
 0x3f1   :  { %v7923_v35 = vpop.eup %7922  ;;  %v4924_v14 = vadd.f32 1.0, %v7921_v61  ;;  %7942 = vpow2.f32 %v6213_v40  ;;  %v6214_v61 = vmul.f32 -1.442695, %v4421_v11  ;;  %v14116_v42 = vrot.slane %v14105_v29, %v12721_v3  ;;  %v14120_v29 = vld [vmem:[#allocation38_spill] sm:$0xff] }
 0x3f2   :  { %v12887_v54 = vpop.eup %7924  ;;  %7944 = vrcp.f32 %v4926_v20  ;;  %v4925_v2 = vadd.f32 1.0, %v7923_v35  ;;  %v5431_v35 = vrot.slane %v14117_v34, %v12871_v52  ;;  %v12904_v28 = vsub.s32 %v5476_v19, %v12306_v44  ;;  %v4245_v36 = vpop.xlane.xlu0 %4244 }
 0x3f3   :  { %14115 = vst [vmem:[#allocation27_spill] sm:$0xff] %v12887_v54  ;;  %v7927_v51 = vpop.eup %7926  ;;  %7946 = vrcp.f32 %v4924_v14  ;;  %v5419_v20 = vsel %vm5418_vm7, %v14116_v42, %v5412_v38  ;;  %v5491_v14 = vsel %vm5383_vm2, %v5490_v15, %v5486_v18  ;;  %v5495_v38 = vrot.slane %v14120_v29, %v12705_v56 }
 0x3f4   :  { %v12895_v40 = vpop.eup %7928  ;;  %7948 = vrcp.f32 %v4925_v2  ;;  %v4930_v11 = vadd.f32 1.0, %v7927_v51  ;;  %v6219_v34 = vmul.f32 -1.442695, %v4426_v41  ;;  %v14122_v2 = vld [vmem:[#allocation39_spill] sm:$0xff]  ;;  %v14123_v54 = vrot.slane %v14109_v37, %v12724_v10 }
 0x3f5   :  { %v7931_v32 = vpop.eup %7930  ;;  %7950 = vpow2.f32 %v6216_v57  ;;  %v12922_v18 = vsub.s32 %v5455_v21, %v12306_v44  ;;  %v12924_v57 = vpop.xlane.xlu1 %4260  ;;  %v5496_v51 = vsel %vm5390_vm3, %v5495_v38, %v5491_v14  ;;  %v14124_v37 = vld [vmem:[#allocation19_spill] sm:$0xff]  ;;  %v4907_v21 = vadd.f32 1.0, %v12812_v45 }
 0x3f6   :  { %v12909_v12 = vpop.eup %7932  ;;  %7952 = vrcp.f32 %v4927_v60  ;;  %v4928_v42 = vadd.f32 1.0, %v7931_v32  ;;  %v5426_v15 = vsel %vm5425_vm8, %v14123_v54, %v5419_v20  ;;  %v4424_v32 = vadd.f32 %v11828_v46, %v12852_v13  ;;  %v14127_v13 = vld [vmem:[#allocation48_spill] sm:$0xff]  ;;  %v4255_v58 = vpop.xlane.xlu0 %4254 }
 0x3f7   :  { %14119 = vst [vmem:[#allocation40_spill] sm:$0xff] %v12909_v12  ;;  %v12913_v19 = vpop.eup %7934  ;;  %7954 = vpow2.f32 %v6214_v61  ;;  %v12927_v41 = vsel %vm5432_vm9, %v5431_v35, %v5426_v15  ;;  %v5505_v54 = vrot.slane %v14124_v37, %v12753_v50  ;;  %v14126_v35 = vld [vmem:[#allocation8_spill] sm:$0xff]  ;;  %v4904_v55 = vadd.f32 1.0, %v12821_v63 }
 0x3f8   :  { %14121 = vst [vmem:[#allocation12_spill] sm:$0xff] %v12913_v19  ;;  %v7937_v60 = vpop.eup %7936  ;;  %7956 = vrcp.f32 %v4928_v42  ;;  %v5500_v15 = vrot.slane %v14126_v35, %v12715_v7  ;;  %v4427_v45 = vadd.f32 %v11828_v46, %v4249_v23  ;;  %v6217_v19 = vmul.f32 -1.442695, %v4424_v32 }
 0x3f9   :  { %v7939_v29 = vpop.eup %7938  ;;  %7958 = vrcp.f32 %v4930_v11  ;;  %v4931_v61 = vadd.f32 1.0, %v7937_v60  ;;  %v4271_v12 = vpop.xlane.xlu1 %4270 }
 0x3fa   :  { %v7941_v20 = vpop.eup %7940  ;;  %v4929_v14 = vadd.f32 1.0, %v7939_v29  ;;  %7960 = vpow2.f32 %v6219_v34  ;;  %v5501_v60 = vsel %vm5397_vm4, %v5500_v15, %v5496_v51  ;;  %v14128_v34 = vld [vmem:[#allocation35_spill] sm:$0xff]  ;;  %v4429_v51 = vadd.f32 %v11828_v46, %v12787_v16 }
 0x3fb   :  { %v7943_v38 = vpop.eup %7942  ;;  %7962 = vrcp.f32 %v4931_v61  ;;  %v5506_v29 = vsel %vm5404_vm5, %v5505_v54, %v5501_v60  ;;  %v5510_v35 = vrot.slane %v14128_v34, %v12758_v33  ;;  %v4934_v42 = vadd.f32 1.0, %v7941_v20 }
 0x3fc   :  { %v7945_v11 = vpop.eup %7944  ;;  %7964 = vrcp.f32 %v4929_v14  ;;  %v4932_v37 = vadd.f32 1.0, %v7943_v38  ;;  %v4905_v61 = vadd.f32 1.0, %v12829_v30  ;;  %v4434_v54 = vadd.f32 %v11828_v46, %v12819_v9 }
 0x3fd   :  { %v7947_v49 = vpop.eup %7946  ;;  %7966 = vrcp.f32 %v4907_v21  ;;  %v6220_v14 = vmul.f32 -1.442695, %v4427_v45  ;;  %v5732_v20 = vrot.slane %v7945_v11, %v12705_v56  ;;  %v4425_v30 = vadd.f32 %v11828_v46, %v4245_v36 }
 0x3fe   :  { %v7949_v63 = vpop.eup %7948  ;;  %v5723_v23 = vrot.slane %v7947_v49, %v12684_v48  ;;  %7968 = vrcp.f32 %v4932_v37  ;;  %v4432_v16 = vadd.f32 %v11828_v46, %v12857_v53  ;;  %v6222_v11 = vmul.f32 -1.442695, %v4429_v51 }
 0x3ff   :  { %v7951_v32 = vpop.eup %7950  ;;  %7970 = vrcp.f32 %v4904_v55  ;;  %v5727_v15 = vrot.slane %v7949_v63, %v12718_v27  ;;  %v4435_v55 = vadd.f32 %v11828_v46, %v12885_v24  ;;  %v6227_v63 = vmul.f32 -1.442695, %v4434_v54 }
 0x400   :  { %v7953_v21 = vpop.eup %7952  ;;  %v4935_v38 = vadd.f32 1.0, %v7951_v32  ;;  %7972 = vpow2.f32 %v6217_v19  ;;  %v4251_v19 = vpop.xlane.xlu0 %4250  ;;  %v5511_v32 = vsel %vm5411_vm6, %v5510_v35, %v5506_v29  ;;  %v4433_v54 = vadd.f32 %v11828_v46, %v12924_v57 }
 0x401   :  { %v7955_v49 = vpop.eup %7954  ;;  %v5728_v60 = vsel %vm5383_vm2, %v5727_v15, %v5723_v23  ;;  %7974 = vrcp.f32 %v4934_v42  ;;  %v5737_v36 = vrot.slane %v7953_v21, %v12715_v7  ;;  %v4430_v42 = vadd.f32 %v11828_v46, %v4255_v58  ;;  %v4267_v23 = vpop.xlane.xlu1 %4266 }
 0x402   :  { %v7957_v37 = vpop.eup %7956  ;;  %v5733_v9 = vsel %vm5390_vm3, %v5732_v20, %v5728_v60  ;;  %7976 = vrcp.f32 %v4935_v38  ;;  %v4933_v45 = vadd.f32 1.0, %v7955_v49  ;;  %v6218_v15 = vmul.f32 -1.442695, %v4425_v30 }
 0x403   :  { %v7959_v34 = vpop.eup %7958  ;;  %7978 = vpow2.f32 %v6220_v14  ;;  %v5742_v24 = vrot.slane %v7957_v37, %v12753_v50  ;;  %v5738_v51 = vsel %vm5397_vm4, %v5737_v36, %v5733_v9  ;;  %v6225_v38 = vmul.f32 -1.442695, %v4432_v16 }
 0x404   :  { %v7961_v53 = vpop.eup %7960  ;;  %7980 = vrcp.f32 %v4933_v45  ;;  %v6228_v49 = vmul.f32 -1.442695, %v4435_v55  ;;  %v4438_v58 = vadd.f32 %v11828_v46, %v4271_v12  ;;  %v4428_v14 = vadd.f32 %v11828_v46, %v4251_v19  ;;  %v4257_v57 = vpop.xlane.xlu0 %4256 }
 0x405   :  { %v7963_v20 = vpop.eup %7962  ;;  %7982 = vrcp.f32 %v4905_v61  ;;  %v4938_v21 = vadd.f32 1.0, %v7961_v53  ;;  %v6223_v61 = vmul.f32 -1.442695, %v4430_v42  ;;  %v5752_v16 = vrot.slane %v7959_v34, %v12721_v3  ;;  %v4273_v19 = vpop.xlane.xlu1 %4272 }
 0x406   :  { %v7965_v60 = vpop.eup %7964  ;;  %7984 = vpow2.f32 %v6222_v11  ;;  %v5743_v55 = vsel %vm5404_vm5, %v5742_v24, %v5738_v51  ;;  %v4436_v37 = vadd.f32 %v11828_v46, %v4267_v23  ;;  %v5757_v12 = vrot.slane %v7963_v20, %v12724_v10 }
 0x407   :  { %v12971_v29 = vpop.eup %7966  ;;  %v5747_v35 = vrot.slane %v7965_v60, %v12758_v33  ;;  %7986 = vpow2.f32 %v6227_v63  ;;  %v6226_v63 = vmul.f32 -1.442695, %v4433_v54  ;;  %v6221_v42 = vmul.f32 -1.442695, %v4428_v14 }
 0x408   :  { %v7969_v30 = vpop.eup %7968  ;;  %7988 = vpow2.f32 %v6218_v15  ;;  %v4431_v15 = vadd.f32 %v11828_v46, %v4257_v57  ;;  %v4439_v60 = vadd.f32 %v11828_v46, %v4273_v19  ;;  %v5462_v14 = vadd.s32 4294967192, %v12304_v26  ;;  %v14133_v19 = vld [vmem:[#allocation54_spill] sm:$0xff] }
 0x409   :  { %v12977_v9 = vpop.eup %7970  ;;  %v5748_v45 = vsel %vm5411_vm6, %v5747_v35, %v5743_v55  ;;  %v5762_v11 = vrot.slane %v7969_v30, %v12871_v52  ;;  %7990 = vpow2.f32 %v6225_v38  ;;  %v6231_v38 = vmul.f32 -1.442695, %v4438_v58 }
 0x40a   :  { %v7973_v36 = vpop.eup %7972  ;;  %v5753_v34 = vsel %vm5418_vm7, %v5752_v16, %v5748_v45  ;;  %7992 = vpow2.f32 %v6228_v49  ;;  %v14129_v49 = vrot.slane %v14125_v6, %v12874_v62  ;;  %v14130_v16 = vrot.slane %v14127_v13, %v12721_v3  ;;  %v14132_v6 = vld [vmem:[#allocation37_spill] sm:$0xff] }
 0x40b   :  { %v7975_v23 = vpop.eup %7974  ;;  %v5758_v53 = vsel %vm5425_vm8, %v5757_v12, %v5753_v34  ;;  %7994 = vrcp.f32 %v4938_v21  ;;  %v4936_v24 = vadd.f32 1.0, %v7973_v36  ;;  %v6229_v21 = vmul.f32 -1.442695, %v4436_v37 }
 0x40c   :  { %v7977_v20 = vpop.eup %7976  ;;  %v5763_v51 = vsel %vm5432_vm9, %v5762_v11, %v5758_v53  ;;  %7996 = vpow2.f32 %v6223_v61  ;;  %v5440_v54 = vsel %vm5439_vm10, %v14129_v49, %v12927_v41  ;;  %v5516_v58 = vsel %vm5418_vm7, %v14130_v16, %v5511_v32  ;;  %v14131_v61 = vld [vmem:[#allocation16_spill] sm:$0xff]  ;;  %v4269_v45 = vpop.xlane.xlu1 %4268 }
 0x40d   :  { %v7979_v35 = vpop.eup %7978  ;;  %7998 = vrcp.f32 %v4936_v24  ;;  %v4402_v55 = vadd.f32 %v11828_v46, %v14131_v61  ;;  %v4403_v41 = vadd.f32 %v11828_v46, %v14132_v6  ;;  %v6224_v37 = vmul.f32 -1.442695, %v4431_v15 }
 0x40e   :  { %v7981_v30 = vpop.eup %7980  ;;  %v4939_v57 = vadd.f32 1.0, %v7979_v35  ;;  %8000 = vpow2.f32 %v6226_v63  ;;  %v4400_v13 = vadd.f32 %v11828_v46, %v14133_v19  ;;  %v5772_v32 = vrot.slane %v7975_v23, %v12806_v43  ;;  %v13011_v35 = vpop.xlane.xlu0 %4288 }
 0x40f   :  { %v12999_v12 = vpop.eup %7982  ;;  %v5767_v26 = vrot.slane %v7981_v30, %v12874_v62  ;;  %8002 = vpow2.f32 %v6221_v42  ;;  %v6232_v36 = vmul.f32 -1.442695, %v4439_v60  ;;  %v5525_v63 = vrot.slane %v12633_v1, %v12871_v52 }
 0x410   :  { %v7985_v11 = vpop.eup %7984  ;;  %8004 = vpow2.f32 %v6231_v38  ;;  %v5777_v53 = vrot.slane %v7977_v20, %v12817_v5  ;;  %v6195_v15 = vmul.f32 -1.442695, %v4402_v55  ;;  %v4437_v49 = vadd.f32 %v11828_v46, %v4269_v45 }
 0x411   :  { %v7987_v34 = vpop.eup %7986  ;;  %v5768_v24 = vsel %vm5439_vm10, %v5767_v26, %v5763_v51  ;;  %8006 = vpow2.f32 %v6229_v21  ;;  %v6196_v60 = vmul.f32 -1.442695, %v4403_v41  ;;  %v13017_v20 = vsub.s32 %v5462_v14, %v12306_v44  ;;  %v14134_v51 = vld [vmem:[#allocation10_spill] sm:$0xff]  ;;  %v14136_v41 = vld [vmem:[#allocation68_spill] sm:$0xff] }
 0x412   :  { %v7989_v42 = vpop.eup %7988  ;;  %8008 = vrcp.f32 %v4939_v57  ;;  %v5773_v23 = vsel %vm5446_vm11, %v5772_v32, %v5768_v24  ;;  %v5520_v21 = vrot.slane %v14134_v51, %v12724_v10  ;;  %v6193_v61 = vmul.f32 -1.442695, %v4400_v13  ;;  %v13040_v24 = vpop.xlane.xlu0 %4284 }
 0x413   :  { %v7991_v38 = vpop.eup %7990  ;;  %v4937_v30 = vadd.f32 1.0, %v7989_v42  ;;  %8010 = vpow2.f32 %v6224_v37  ;;  %v5778_v1 = vsel %vm5453_vm12, %v5777_v53, %v5773_v23  ;;  %v14135_v57 = vrot.slane %v14118_v17, %v12806_v43  ;;  %v14138_v53 = vld [vmem:[#allocation36_spill] sm:$0xff] }
 0x414   :  { %v7993_v16 = vpop.eup %7992  ;;  %8012 = vpow2.f32 %v6232_v36  ;;  %v5459_v26 = vrot.slane %v14136_v41, %v12922_v18  ;;  %v4941_v37 = vadd.f32 1.0, %v7985_v11  ;;  %v5521_v44 = vsel %vm5425_vm8, %v5520_v21, %v5516_v58 }
 0x415   :  { %v13021_v55 = vpop.eup %7994  ;;  %v5447_v6 = vsel %vm5446_vm11, %v14135_v57, %v5440_v54  ;;  %8014 = vrcp.f32 %v4937_v30  ;;  %v5530_v14 = vrot.slane %v12639_v0, %v12874_v62  ;;  %v6230_v19 = vmul.f32 -1.442695, %v4437_v49 }
 0x416   :  { %v7997_v45 = vpop.eup %7996  ;;  %8016 = vpow2.f32 %v6195_v15  ;;  %v5526_v32 = vsel %vm5432_vm9, %v5525_v63, %v5521_v44  ;;  %v4946_v17 = vadd.f32 1.0, %v7987_v34  ;;  %v14137_v36 = vrot.slane %v14122_v2, %v12817_v5  ;;  %v14139_v63 = vld [vmem:[#allocation52_spill] sm:$0xff] }
 0x417   :  { %v7999_v13 = vpop.eup %7998  ;;  %8018 = vpow2.f32 %v6196_v60  ;;  %v5466_v58 = vrot.slane %v14138_v53, %v13017_v20  ;;  %v4279_v42 = vpop.xlane.xlu1 %4278  ;;  %v4942_v23 = vadd.f32 1.0, %v7997_v45  ;;  %v5531_v60 = vsel %vm5439_vm10, %v5530_v14, %v5526_v32  ;;  %v14142_v45 = vld [vmem:[#allocation22_spill] sm:$0xff] }
 0x418   :  { %v8001_v54 = vpop.eup %8000  ;;  %v5454_v11 = vsel %vm5453_vm12, %v14137_v36, %v5447_v6  ;;  %8020 = vpow2.f32 %v6193_v61  ;;  %v5782_v0 = vrot.slane %v7999_v13, %v12922_v18  ;;  %v4944_v30 = vadd.f32 1.0, %v7991_v38  ;;  %v14140_v61 = vld [vmem:[#allocation44_spill] sm:$0xff]  ;;  %v14141_v13 = vld [vmem:[#allocation15_spill] sm:$0xff]  ;;  %v13062_v53 = vpop.xlane.xlu0 %4294 }
 0x419   :  { %v8003_v15 = vpop.eup %8002  ;;  %v5461_v34 = vsel %vm5460_vm13, %v5459_v26, %v5454_v11  ;;  %8022 = vrcp.f32 %v4941_v37  ;;  %v5535_v57 = vrot.slane %v14140_v61, %v12806_v43  ;;  %v4945_v6 = vadd.f32 1.0, %v8001_v54 }
 0x41a   :  { %v8005_v2 = vpop.eup %8004  ;;  %v4940_v51 = vadd.f32 1.0, %v8003_v15  ;;  %8024 = vpow2.f32 %v6230_v19  ;;  %v5783_v41 = vsel %vm5460_vm13, %v5782_v0, %v5778_v1  ;;  %v13052_v37 = vsel %vm13609_vm14, %v5466_v58, %v5461_v34  ;;  %v14143_v34 = vld [vmem:[#allocation30_spill] sm:$0xff] }
 0x41b   :  { %v8007_v21 = vpop.eup %8006  ;;  %8026 = vrcp.f32 %v4946_v17  ;;  %v5540_v38 = vrot.slane %v14142_v45, %v12817_v5  ;;  %v13057_v19 = vsel %vm5446_vm11, %v5535_v57, %v5531_v60  ;;  %v4947_v32 = vadd.f32 1.0, %v7993_v16 }
 0x41c   :  { %v8009_v44 = vpop.eup %8008  ;;  %8028 = vrcp.f32 %v4940_v51  ;;  %v4442_v17 = vadd.f32 %v11828_v46, %v4279_v42  ;;  %v5565_v54 = vrot.slane %v12776_v8, %v12684_v48  ;;  %v4948_v36 = vadd.f32 1.0, %v8007_v21 }
 0x41d   :  { %v8011_v14 = vpop.eup %8010  ;;  %8030 = vrcp.f32 %v4942_v23  ;;  %v5569_v15 = vrot.slane %v12783_v25, %v12718_v27  ;;  %v4401_v16 = vadd.f32 %v11828_v46, %v14143_v34  ;;  %v4950_v60 = vadd.f32 1.0, %v8005_v2 }
 0x41e   :  { %v8013_v1 = vpop.eup %8012  ;;  %8032 = vrcp.f32 %v4944_v30  ;;  %v4943_v11 = vadd.f32 1.0, %v8011_v14  ;;  %v4275_v58 = vpop.xlane.xlu1 %4274  ;;  %v5792_v51 = vrot.slane %v13021_v55, %v12892_v59  ;;  %v6235_v25 = vmul.f32 -1.442695, %v4442_v17  ;;  %v14144_v17 = vld [vmem:[#allocation43_spill] sm:$0xff] }
 0x41f   :  { %v8015_v0 = vpop.eup %8014  ;;  %8034 = vrcp.f32 %v4945_v6  ;;  %v4440_v42 = vadd.f32 %v11828_v46, %v4275_v58  ;;  %v4951_v57 = vadd.f32 1.0, %v8013_v1  ;;  %v5797_v14 = vrot.slane %v8009_v44, %v12904_v28  ;;  %v13086_v1 = vpop.xlane.xlu0 %4290 }
 0x420   :  { %v13069_v23 = vpop.eup %8016  ;;  %v5787_v8 = vrot.slane %v8015_v0, %v13017_v20  ;;  %8036 = vrcp.f32 %v4943_v11  ;;  %v5574_v2 = vrot.slane %v12740_v4, %v12705_v56  ;;  %v4406_v0 = vadd.f32 %v11828_v46, %v14144_v17 }
 0x421   :  { %v13072_v30 = vpop.eup %8018  ;;  %8038 = vrcp.f32 %v4947_v32  ;;  %v6233_v21 = vmul.f32 -1.442695, %v4440_v42  ;;  %v4910_v32 = vadd.f32 1.0, %v12859_v47  ;;  %v6194_v4 = vmul.f32 -1.442695, %v4401_v16 }
 0x422   :  { %v13076_v61 = vpop.eup %8020  ;;  %8040 = vrcp.f32 %v4948_v36  ;;  %v5788_v6 = vsel %vm13609_vm14, %v5787_v8, %v5783_v41  ;;  %v5570_v36 = vsel %vm5383_vm2, %v5569_v15, %v5565_v54  ;;  %v4407_v47 = vadd.f32 %v11828_v46, %v12608_v39 }
 0x423   :  { %v8023_v58 = vpop.eup %8022  ;;  %8042 = vpow2.f32 %v6233_v21  ;;  %v5793_v11 = vsel %vm13610_vm15, %v5792_v51, %v5788_v6  ;;  %v4911_v51 = vadd.f32 1.0, %v12868_v22  ;;  %v14146_v6 = vld [vmem:[#allocation28_spill] sm:$0xff]  ;;  %v6199_v16 = vmul.f32 -1.442695, %v4406_v0 }
 0x424   :  { %v8025_v55 = vpop.eup %8024  ;;  %8044 = vrcp.f32 %v4950_v60  ;;  %v13089_v41 = vsel %vm5481_vm0, %v5797_v14, %v5793_v11  ;;  %v4404_v14 = vadd.f32 %v11828_v46, %v14146_v6  ;;  %v5806_v11 = vrot.slane %v8023_v58, %v12718_v27  ;;  %v14148_v6 = vld [vmem:[#allocation33_spill] sm:$0xff] }
 0x425   :  { %14145 = vst [vmem:[#allocation31_spill] sm:$0xff] %v13089_v41  ;;  %v8027_v44 = vpop.eup %8026  ;;  %v4949_v34 = vadd.f32 1.0, %v8025_v55  ;;  %8046 = vpow2.f32 %v6235_v25  ;;  %v4277_v42 = vpop.xlane.xlu1 %4276  ;;  %v4405_v22 = vadd.f32 %v11828_v46, %v12631_v31  ;;  %v4908_v55 = vadd.f32 1.0, %v12895_v40 }
 0x426   :  { %v8029_v8 = vpop.eup %8028  ;;  %8048 = vrcp.f32 %v4951_v57  ;;  %v4441_v60 = vadd.f32 %v11828_v46, %v4277_v42  ;;  %v13103_v57 = vsel %vm5390_vm3, %v5574_v2, %v5570_v36  ;;  %v14147_v42 = vld [vmem:[#allocation40_spill] sm:$0xff]  ;;  %v4410_v2 = vadd.f32 %v11828_v46, %v14148_v6 }
 0x427   :  { %v8031_v21 = vpop.eup %8030  ;;  %v5802_v54 = vrot.slane %v8029_v8, %v12684_v48  ;;  %8050 = vrcp.f32 %v4949_v34  ;;  %v4909_v34 = vadd.f32 1.0, %v14147_v42  ;;  %v6200_v8 = vmul.f32 -1.442695, %v4407_v47  ;;  %v13109_v0 = vpop.xlane.xlu0 %4296 }
 0x428   :  { %v8033_v15 = vpop.eup %8032  ;;  %8052 = vrcp.f32 %v4910_v32  ;;  %v6234_v25 = vmul.f32 -1.442695, %v4441_v60  ;;  %v5811_v32 = vrot.slane %v8031_v21, %v12705_v56  ;;  %v6197_v60 = vmul.f32 -1.442695, %v4404_v14  ;;  %v14149_v21 = vld [vmem:[#allocation47_spill] sm:$0xff] }
 0x429   :  { %v8035_v39 = vpop.eup %8034  ;;  %8054 = vpow2.f32 %v6194_v4  ;;  %v5807_v17 = vsel %vm5383_vm2, %v5806_v11, %v5802_v54  ;;  %v6198_v4 = vmul.f32 -1.442695, %v4405_v22  ;;  %v4411_v54 = vadd.f32 %v11828_v46, %v14149_v21 }
 0x42a   :  { %v8037_v58 = vpop.eup %8036  ;;  %8056 = vrcp.f32 %v4911_v51  ;;  %v5821_v51 = vrot.slane %v8033_v15, %v12753_v50  ;;  %v5812_v11 = vsel %vm5390_vm3, %v5811_v32, %v5807_v17  ;;  %v5826_v14 = vrot.slane %v8035_v39, %v12758_v33 }
 0x42b   :  { %v8039_v31 = vpop.eup %8038  ;;  %v5816_v36 = vrot.slane %v8037_v58, %v12715_v7  ;;  %8058 = vpow2.f32 %v6234_v25  ;;  %v5831_v25 = vrot.slane %v8027_v44, %v12721_v3  ;;  %v6203_v15 = vmul.f32 -1.442695, %v4410_v2 }
 0x42c   :  { %v8041_v40 = vpop.eup %8040  ;;  %8060 = vpow2.f32 %v6199_v16  ;;  %v5836_v17 = vrot.slane %v8039_v31, %v12724_v10  ;;  %v4914_v21 = vadd.f32 1.0, %v13069_v23  ;;  %v6204_v23 = vmul.f32 -1.442695, %v4411_v54 }
 0x42d   :  { %v8043_v47 = vpop.eup %8042  ;;  %8062 = vrcp.f32 %v4908_v55  ;;  %v5817_v42 = vsel %vm5397_vm4, %v5816_v36, %v5812_v11  ;;  %v5841_v39 = vrot.slane %v8041_v40, %v12871_v52 }
 0x42e   :  { %v8045_v6 = vpop.eup %8044  ;;  %8064 = vrcp.f32 %v4909_v34  ;;  %v5822_v16 = vsel %vm5404_vm5, %v5821_v51, %v5817_v42  ;;  %v4952_v22 = vadd.f32 1.0, %v8043_v47  ;;  %v4915_v51 = vadd.f32 1.0, %v13072_v30  ;;  %v14151_v42 = vld [vmem:[#allocation17_spill] sm:$0xff] }
 0x42f   :  { %v8047_v58 = vpop.eup %8046  ;;  %8066 = vpow2.f32 %v6200_v8  ;;  %v5827_v55 = vsel %vm5411_vm6, %v5826_v14, %v5822_v16  ;;  %v14150_v8 = vld [vmem:[#allocation57_spill] sm:$0xff]  ;;  %v5851_v30 = vrot.slane %v8045_v6, %v12806_v43  ;;  %v4287_v16 = vpop.xlane.xlu1 %4286 }
 0x430   :  { %v8049_v32 = vpop.eup %8048  ;;  %v5832_v36 = vsel %vm5418_vm7, %v5831_v25, %v5827_v55  ;;  %8068 = vrcp.f32 %v4952_v22  ;;  %v13127_v34 = vpop.xlane.xlu0 %4292  ;;  %v4408_v2 = vadd.f32 %v11828_v46, %v14150_v8  ;;  %v4409_v25 = vadd.f32 %v11828_v46, %v14151_v42 }
 0x431   :  { %v8051_v44 = vpop.eup %8050  ;;  %8070 = vpow2.f32 %v6197_v60  ;;  %v5837_v31 = vsel %vm5425_vm8, %v5836_v17, %v5832_v36  ;;  %v4954_v60 = vadd.f32 1.0, %v8047_v58  ;;  %v14152_v17 = vld [vmem:[#allocation42_spill] sm:$0xff]  ;;  %v4912_v36 = vadd.f32 1.0, %v13076_v61 }
 0x432   :  { %v13133_v11 = vpop.eup %8052  ;;  %8072 = vpow2.f32 %v6198_v4  ;;  %v5842_v40 = vsel %vm5432_vm9, %v5841_v39, %v5837_v31  ;;  %v5846_v47 = vrot.slane %v8051_v44, %v12874_v62  ;;  %v5584_v55 = vrot.slane %v14152_v17, %v12753_v50 }
 0x433   :  { %v8055_v14 = vpop.eup %8054  ;;  %8074 = vpow2.f32 %v6203_v15  ;;  %v5856_v4 = vrot.slane %v8049_v32, %v12817_v5  ;;  %v6201_v44 = vmul.f32 -1.442695, %v4408_v2  ;;  %v4447_v8 = vadd.f32 %v11828_v46, %v13011_v35  ;;  %v14154_v2 = vld [vmem:[#allocation29_spill] sm:$0xff] }
 0x434   :  { %v13140_v22 = vpop.eup %8056  ;;  %8076 = vrcp.f32 %v4914_v21  ;;  %v5847_v54 = vsel %vm5439_vm10, %v5846_v47, %v5842_v40  ;;  %v13146_v39 = vpop.xlane.xlu0 %4302  ;;  %v14153_v40 = vld [vmem:[#allocation62_spill] sm:$0xff]  ;;  %v6202_v42 = vmul.f32 -1.442695, %v4409_v25  ;;  %v4445_v61 = vadd.f32 %v11828_v46, %v13040_v24 }
 0x435   :  { %v8059_v15 = vpop.eup %8058  ;;  %8078 = vrcp.f32 %v4915_v51  ;;  %v5852_v6 = vsel %vm5446_vm11, %v5851_v30, %v5847_v54  ;;  %v5579_v47 = vrot.slane %v14153_v40, %v12715_v7  ;;  %v4913_v30 = vadd.f32 1.0, %v8055_v14  ;;  %v14155_v14 = vld [vmem:[#allocation45_spill] sm:$0xff] }
 0x436   :  { %v8061_v58 = vpop.eup %8060  ;;  %8080 = vpow2.f32 %v6204_v23  ;;  %v4953_v31 = vadd.f32 1.0, %v8059_v15  ;;  %v5857_v21 = vsel %vm5453_vm12, %v5856_v4, %v5852_v6  ;;  %v5545_v23 = vrot.slane %v14154_v2, %v12922_v18 }
 0x437   :  { %v13153_v32 = vpop.eup %8062  ;;  %8082 = vrcp.f32 %v4954_v60  ;;  %v4450_v35 = vadd.f32 %v11828_v46, %v13062_v53  ;;  %v5580_v4 = vsel %vm5397_vm4, %v5579_v47, %v13103_v57  ;;  %v4918_v25 = vadd.f32 1.0, %v8061_v58  ;;  %v4283_v60 = vpop.xlane.xlu1 %4282  ;;  %v14156_v58 = vld [vmem:[#allocation65_spill] sm:$0xff] }
 0x438   :  { %v13159_v51 = vpop.eup %8064  ;;  %8084 = vrcp.f32 %v4953_v31  ;;  %v4448_v24 = vadd.f32 %v11828_v46, %v13086_v1  ;;  %v5585_v6 = vsel %vm5404_vm5, %v5584_v55, %v5580_v4  ;;  %v5589_v40 = vrot.slane %v14155_v14, %v12758_v33 }
 0x439   :  { %v8067_v17 = vpop.eup %8066  ;;  %8086 = vrcp.f32 %v4912_v36  ;;  %v13169_v54 = vpop.xlane.xlu0 %4298  ;;  %v6240_v53 = vmul.f32 -1.442695, %v4447_v8  ;;  %v6238_v2 = vmul.f32 -1.442695, %v4445_v61  ;;  %v4451_v36 = vadd.f32 %v11828_v46, %v13109_v0 }
 0x43a   :  { %v8069_v15 = vpop.eup %8068  ;;  %8088 = vpow2.f32 %v6201_v44  ;;  %v6243_v26 = vmul.f32 -1.442695, %v4450_v35  ;;  %v4446_v55 = vadd.f32 %v11828_v46, %v4287_v16  ;;  %v5541_v44 = vsel %vm5453_vm12, %v5540_v38, %v13057_v19  ;;  %v14157_v19 = vld [vmem:[#allocation55_spill] sm:$0xff] }
 0x43b   :  { %v8071_v31 = vpop.eup %8070  ;;  %8090 = vpow2.f32 %v6202_v42  ;;  %v5861_v57 = vrot.slane %v8069_v15, %v12922_v18  ;;  %v6241_v8 = vmul.f32 -1.442695, %v4448_v24  ;;  %v4919_v16 = vadd.f32 1.0, %v8067_v17 }
 0x43c   :  { %v8073_v1 = vpop.eup %8072  ;;  %8092 = vrcp.f32 %v4913_v30  ;;  %v5590_v30 = vsel %vm5411_vm6, %v5589_v40, %v5585_v6  ;;  %v4449_v35 = vadd.f32 %v11828_v46, %v13127_v34  ;;  %v13198_v38 = vsel %vm5460_vm13, %v5545_v23, %v5541_v44  ;;  %v14158_v40 = vld [vmem:[#allocation41_spill] sm:$0xff] }
 0x43d   :  { %v8075_v4 = vpop.eup %8074  ;;  %8094 = vrcp.f32 %v4918_v25  ;;  %v13185_v42 = vpop.xlane.xlu1 %4318  ;;  %v5862_v61 = vsel %vm5460_vm13, %v5861_v57, %v5857_v21  ;;  %v5594_v25 = vrot.slane %v14157_v19, %v12721_v3  ;;  %v6244_v24 = vmul.f32 -1.442695, %v4451_v36 }
 0x43e   :  { %v13187_v0 = vpop.xlane.xlu0 %4304  ;;  %v13190_v15 = vpop.eup %8076  ;;  %8096 = vpow2.f32 %v6240_v53  ;;  %v5644_v14 = vrot.slane %v13153_v32, %v12684_v48  ;;  %v5648_v17 = vrot.slane %v13159_v51, %v12718_v27  ;;  %v6239_v6 = vmul.f32 -1.442695, %v4446_v55 }
 0x43f   :  { %v13195_v45 = vpop.eup %8078  ;;  %8098 = vpow2.f32 %v6238_v2  ;;  %v5595_v23 = vsel %vm5418_vm7, %v5594_v25, %v5590_v30  ;;  %v4916_v57 = vadd.f32 1.0, %v8071_v31  ;;  %v14159_v2 = vld [vmem:[#allocation66_spill] sm:$0xff]  ;;  %v6242_v19 = vmul.f32 -1.442695, %v4449_v35 }
 0x440   :  { %v8081_v21 = vpop.eup %8080  ;;  %8100 = vpow2.f32 %v6243_v26  ;;  %v5604_v36 = vrot.slane %v14159_v2, %v12871_v52  ;;  %v4444_v32 = vadd.f32 %v11828_v46, %v4283_v60  ;;  %v5653_v55 = vrot.slane %v13133_v11, %v12705_v56 }
 0x441   :  { %v8083_v34 = vpop.eup %8082  ;;  %8102 = vpow2.f32 %v6241_v8  ;;  %v13212_v49 = vpop.xlane.xlu1 %4310  ;;  %v4917_v47 = vadd.f32 1.0, %v8073_v1  ;;  %v5649_v30 = vsel %vm5383_vm2, %v5648_v17, %v5644_v14  ;;  %v4922_v25 = vadd.f32 1.0, %v8075_v4 }
 0x442   :  { %v8085_v44 = vpop.eup %8084  ;;  %8104 = vrcp.f32 %v4919_v16  ;;  %v13214_v26 = vpop.xlane.xlu0 %4300  ;;  %v5871_v16 = vrot.slane %v8083_v34, %v12892_v59  ;;  %v4923_v35 = vadd.f32 1.0, %v8081_v21  ;;  %v4454_v2 = vadd.f32 %v11828_v46, %v13146_v39  ;;  %v14160_v21 = vld [vmem:[#allocation60_spill] sm:$0xff] }
 0x443   :  { %v8087_v51 = vpop.eup %8086  ;;  %v5866_v31 = vrot.slane %v8085_v44, %v13017_v20  ;;  %8106 = vpow2.f32 %v6244_v24  ;;  %v6237_v1 = vmul.f32 -1.442695, %v4444_v32  ;;  %v4452_v24 = vadd.f32 %v11828_v46, %v13169_v54 }
 0x444   :  { %v8089_v8 = vpop.eup %8088  ;;  %8108 = vpow2.f32 %v6239_v6  ;;  %v5599_v39 = vrot.slane %v14160_v21, %v12724_v10  ;;  %v5658_v54 = vrot.slane %v13140_v22, %v12715_v7  ;;  %v6247_v21 = vmul.f32 -1.442695, %v4454_v2  ;;  %v14162_v2 = vld [vmem:[#allocation9_spill] sm:$0xff] }
 0x445   :  { %v8091_v60 = vpop.eup %8090  ;;  %8110 = vrcp.f32 %v4916_v57  ;;  %v5867_v53 = vsel %vm13609_vm14, %v5866_v31, %v5862_v61  ;;  %v13226_v44 = vpop.xlane.xlu1 %4312  ;;  %v5654_v61 = vsel %vm5390_vm3, %v5653_v55, %v5649_v30  ;;  %v4920_v6 = vadd.f32 1.0, %v8089_v8  ;;  %v14161_v31 = vld [vmem:[#allocation27_spill] sm:$0xff] }
 0x446   :  { %v8093_v11 = vpop.eup %8092  ;;  %8112 = vpow2.f32 %v6242_v19  ;;  %v13228_v4 = vpop.xlane.xlu0 %4306  ;;  %v13231_v14 = vsel %vm13610_vm15, %v5871_v16, %v5867_v53  ;;  %v5663_v57 = vrot.slane %v8087_v51, %v12753_v50  ;;  %v4921_v19 = vadd.f32 1.0, %v8091_v60 }
 0x447   :  { %v13233_v17 = vpop.eup %8094  ;;  %8114 = vrcp.f32 %v4917_v47  ;;  %v5600_v53 = vsel %vm5425_vm8, %v5599_v39, %v5595_v23  ;;  %v5609_v16 = vrot.slane %v14161_v31, %v12874_v62  ;;  %v5659_v55 = vsel %vm5397_vm4, %v5658_v54, %v5654_v61  ;;  %v14164_v54 = vld [vmem:[#allocation50_spill] sm:$0xff] }
 0x448   :  { %v8097_v34 = vpop.eup %8096  ;;  %8116 = vrcp.f32 %v4922_v25  ;;  %v5605_v47 = vsel %vm5432_vm9, %v5604_v36, %v5600_v53  ;;  %v6245_v8 = vmul.f32 -1.442695, %v4452_v24  ;;  %v5668_v25 = vrot.slane %v8093_v11, %v12758_v33 }
 0x449   :  { %v8099_v32 = vpop.eup %8098  ;;  %8118 = vrcp.f32 %v4923_v35  ;;  %v4959_v23 = vadd.f32 1.0, %v8097_v34  ;;  %v4462_v60 = vadd.f32 %v11828_v46, %v13185_v42  ;;  %v5664_v39 = vsel %vm5404_vm5, %v5663_v57, %v5659_v55 }
 0x44a   :  { %v8101_v41 = vpop.eup %8100  ;;  %8120 = vpow2.f32 %v6237_v1  ;;  %v13246_v22 = vpop.xlane.xlu1 %4320  ;;  %v4957_v1 = vadd.f32 1.0, %v8099_v32  ;;  %v14163_v61 = vrot.slane %v14158_v40, %v13017_v20  ;;  %v5614_v53 = vrot.slane %v14164_v54, %v12806_v43 }
 0x44b   :  { %v4315_v51 = vpop.xlane.xlu0 %4314  ;;  %v8103_v30 = vpop.eup %8102  ;;  %8122 = vrcp.f32 %v4920_v6  ;;  %v5610_v6 = vsel %vm5439_vm10, %v5609_v16, %v5605_v47  ;;  %v4962_v42 = vadd.f32 1.0, %v8101_v41  ;;  %v4455_v57 = vadd.f32 %v11828_v46, %v13187_v0 }
 0x44c   :  { %v13251_v35 = vpop.eup %8104  ;;  %8124 = vrcp.f32 %v4921_v19  ;;  %v13261_v11 = vsel %vm13609_vm14, %v14163_v61, %v13198_v38  ;;  %v4960_v31 = vadd.f32 1.0, %v8103_v30  ;;  %v14165_v38 = vld [vmem:[#allocation26_spill] sm:$0xff]  ;;  %v5669_v16 = vsel %vm5411_vm6, %v5668_v25, %v5664_v39  ;;  %v14166_v61 = vld [vmem:[#allocation12_spill] sm:$0xff] }
 0x44d   :  { %v8107_v24 = vpop.eup %8106  ;;  %8126 = vpow2.f32 %v6247_v21  ;;  %v5619_v55 = vrot.slane %v14165_v38, %v12817_v5  ;;  %v6255_v41 = vmul.f32 -1.442695, %v4462_v60  ;;  %v5615_v47 = vsel %vm5446_vm11, %v5614_v53, %v5610_v6 }
 0x44e   :  { %v8109_v34 = vpop.eup %8108  ;;  %8128 = vpow2.f32 %v6245_v8  ;;  %v4317_v19 = vpop.xlane.xlu1 %4316  ;;  %v5673_v8 = vrot.slane %v13190_v15, %v12721_v3  ;;  %v4963_v30 = vadd.f32 1.0, %v8107_v24  ;;  %v4453_v38 = vadd.f32 %v11828_v46, %v13214_v26 }
 0x44f   :  { %v13268_v32 = vpop.xlane.xlu0 %4308  ;;  %v8111_v40 = vpop.eup %8110  ;;  %8130 = vrcp.f32 %v4959_v23  ;;  %v4958_v36 = vadd.f32 1.0, %v8109_v34  ;;  %v6248_v60 = vmul.f32 -1.442695, %v4455_v57  ;;  %v4460_v39 = vadd.f32 %v11828_v46, %v4315_v51 }
 0x450   :  { %v8113_v21 = vpop.eup %8112  ;;  %8132 = vrcp.f32 %v4957_v1  ;;  %v5674_v23 = vsel %vm5418_vm7, %v5673_v8, %v5669_v16  ;;  %v5678_v6 = vrot.slane %v13195_v45, %v12724_v10  ;;  %v4458_v51 = vadd.f32 %v11828_v46, %v13212_v49 }
 0x451   :  { %v8115_v0 = vpop.eup %8114  ;;  %8134 = vrcp.f32 %v4962_v42  ;;  %v5683_v42 = vrot.slane %v8111_v40, %v12871_v52  ;;  %v4961_v34 = vadd.f32 1.0, %v8113_v21  ;;  %v6246_v45 = vmul.f32 -1.442695, %v4453_v38 }
 0x452   :  { %v13280_v25 = vpop.eup %8116  ;;  %8136 = vrcp.f32 %v4960_v31  ;;  %v13284_v15 = vpop.xlane.xlu1 %4326  ;;  %v5679_v16 = vsel %vm5425_vm8, %v5678_v6, %v5674_v23  ;;  %v4461_v40 = vadd.f32 %v11828_v46, %v4317_v19  ;;  %v6253_v8 = vmul.f32 -1.442695, %v4460_v39 }
 0x453   :  { %v4281_v1 = vpop.xlane.xlu0 %4280  ;;  %v13286_v24 = vpop.eup %8118  ;;  %8138 = vpow2.f32 %v6255_v41  ;;  %v5688_v41 = vrot.slane %v8115_v0, %v12874_v62  ;;  %v5620_v49 = vsel %vm5453_vm12, %v5619_v55, %v5615_v47  ;;  %v6251_v19 = vmul.f32 -1.442695, %v4458_v51 }
 0x454   :  { %v8121_v26 = vpop.eup %8120  ;;  %8140 = vrcp.f32 %v4963_v30  ;;  %v4443_v31 = vadd.f32 %v11828_v46, %v4281_v1  ;;  %v5684_v1 = vsel %vm5432_vm9, %v5683_v42, %v5679_v16  ;;  %v4463_v38 = vadd.f32 %v11828_v46, %v13246_v22 }
 0x455   :  { %v13296_v57 = vpop.eup %8122  ;;  %8142 = vrcp.f32 %v4958_v36  ;;  %v4956_v52 = vadd.f32 1.0, %v8121_v26  ;;  %v5624_v36 = vrot.slane %v12977_v9, %v12922_v18  ;;  %v4459_v55 = vadd.f32 %v11828_v46, %v13226_v44 }
 0x456   :  { %v13300_v21 = vpop.eup %8124  ;;  %8144 = vpow2.f32 %v6248_v60  ;;  %v6236_v30 = vmul.f32 -1.442695, %v4443_v31  ;;  %v4323_v53 = vpop.xlane.xlu1 %4322  ;;  %v5629_v60 = vrot.slane %v12999_v12, %v13017_v20  ;;  %v6254_v47 = vmul.f32 -1.442695, %v4461_v40 }
 0x457   :  { %v8127_v54 = vpop.eup %8126  ;;  %8146 = vrcp.f32 %v4961_v34  ;;  %v5689_v6 = vsel %vm5439_vm10, %v5688_v41, %v5684_v1  ;;  %v4456_v42 = vadd.f32 %v11828_v46, %v13228_v4  ;;  %v5693_v12 = vrot.slane %v13233_v17, %v12806_v43 }
 0x458   :  { %v8129_v23 = vpop.eup %8128  ;;  %8148 = vpow2.f32 %v6236_v30  ;;  %v4966_v9 = vadd.f32 1.0, %v8127_v54  ;;  %v4464_v44 = vadd.f32 %v11828_v46, %v4323_v53  ;;  %v5625_v31 = vsel %vm5460_vm13, %v5624_v36, %v5620_v49 }
 0x459   :  { %v13309_v0 = vpop.eup %8130  ;;  %8150 = vpow2.f32 %v6246_v45  ;;  %v4964_v26 = vadd.f32 1.0, %v8129_v23  ;;  %v5698_v54 = vrot.slane %v13251_v35, %v12817_v5  ;;  %v6256_v4 = vmul.f32 -1.442695, %v4463_v38 }
 0x45a   :  { %v13315_v39 = vpop.eup %8132  ;;  %8152 = vpow2.f32 %v6253_v8  ;;  %v4329_v22 = vpop.xlane.xlu1 %4328  ;;  %v5694_v45 = vsel %vm5446_vm11, %v5693_v12, %v5689_v6  ;;  %v5703_v40 = vrot.slane %v13296_v57, %v12922_v18  ;;  %v6252_v17 = vmul.f32 -1.442695, %v4459_v55 }
 0x45b   :  { %v13320_v34 = vpop.eup %8134  ;;  %8154 = vrcp.f32 %v4956_v52  ;;  %v5713_v53 = vrot.slane %v13280_v25, %v12892_v59  ;;  %v5708_v41 = vrot.slane %v13300_v21, %v13017_v20  ;;  %v6249_v35 = vmul.f32 -1.442695, %v4456_v42 }
 0x45c   :  { %v13325_v51 = vpop.eup %8136  ;;  %8156 = vpow2.f32 %v6251_v19  ;;  %v6257_v49 = vmul.f32 -1.442695, %v4464_v44  ;;  %v5630_v57 = vsel %vm13609_vm14, %v5629_v60, %v5625_v31  ;;  %v4457_v25 = vadd.f32 %v11828_v46, %v13268_v32 }
 0x45d   :  { %v8139_v16 = vpop.eup %8138  ;;  %8158 = vpow2.f32 %v6254_v47  ;;  %v5699_v19 = vsel %vm5453_vm12, %v5698_v54, %v5694_v45  ;;  %v4466_v38 = vadd.f32 %v11828_v46, %v13284_v15  ;;  %v14167_v55 = vrot.slane %v14156_v58, %v12892_v59 }
 0x45e   :  { %v13333_v52 = vpop.eup %8140  ;;  %8160 = vrcp.f32 %v4966_v9  ;;  %v4325_v8 = vpop.xlane.xlu1 %4324  ;;  %v4974_v36 = vadd.f32 1.0, %v8139_v16  ;;  %v5704_v47 = vsel %vm5460_vm13, %v5703_v40, %v5699_v19  ;;  %v5718_v32 = vrot.slane %v13286_v24, %v12904_v28 }
 0x45f   :  { %v13339_v30 = vpop.eup %8142  ;;  %8162 = vrcp.f32 %v4964_v26  ;;  %v4465_v1 = vadd.f32 %v11828_v46, %v4325_v8  ;;  %v5556_v60 = vsel %vm13610_vm15, %v14167_v55, %v13261_v11  ;;  %v4341_v9 = vpop.xlane.xlu0 %4340  ;;  %v14168_v15 = vrot.slane %v14139_v63, %v12892_v59 }
 0x460   :  { %v8145_v23 = vpop.eup %8144  ;;  %8164 = vpow2.f32 %v6256_v4  ;;  %v14169_v11 = vrot.slane %v14166_v61, %v12892_v59  ;;  %v6250_v4 = vmul.f32 -1.442695, %v4457_v25  ;;  %v14170_v16 = vrot.slane %v14162_v2, %v12904_v28 }
 0x461   :  { %v13346_v21 = vpop.eup %8146  ;;  %8166 = vpow2.f32 %v6252_v17  ;;  %v6258_v42 = vmul.f32 -1.442695, %v4465_v1  ;;  %v5475_v26 = vsel %vm13610_vm15, %v14168_v15, %v13052_v37  ;;  %v4967_v58 = vadd.f32 1.0, %v8145_v23 }
 0x462   :  { %v8149_v6 = vpop.eup %8148  ;;  %8168 = vpow2.f32 %v6249_v35  ;;  %v4335_v12 = vpop.xlane.xlu1 %4334  ;;  %v5635_v54 = vsel %vm13610_vm15, %v14169_v11, %v5630_v57  ;;  %v5561_v45 = vsel %vm5481_vm0, %v14170_v16, %v5556_v60  ;;  %v5709_v63 = vsel %vm13609_vm14, %v5708_v41, %v5704_v47 }
 0x463   :  { %v8151_v44 = vpop.eup %8150  ;;  %v4955_v31 = vadd.f32 1.0, %v8149_v6  ;;  %8170 = vpow2.f32 %v6257_v49  ;;  %v6259_v40 = vmul.f32 -1.442695, %v4466_v38  ;;  %v4467_v17 = vadd.f32 %v11828_v46, %v4329_v22  ;;  %v4343_v19 = vpop.xlane.xlu0 %4342 }
 0x464   :  { %v8153_v24 = vpop.eup %8152  ;;  %8172 = vrcp.f32 %v4974_v36  ;;  %v4965_v61 = vadd.f32 1.0, %v8151_v44  ;;  %v14171_v49 = vrot.slane %v14141_v13, %v12904_v28  ;;  %v14172_v1 = vrot.slane %v12971_v29, %v12904_v28 }
 0x465   :  { %v8155_v37 = vpop.eup %8154  ;;  %8174 = vrcp.f32 %v4955_v31  ;;  %v4972_v23 = vadd.f32 1.0, %v8153_v24  ;;  %v4470_v22 = vadd.f32 %v11828_v46, %v4335_v12  ;;  %v5714_v13 = vsel %vm13610_vm15, %v5713_v53, %v5709_v63 }
 0x466   :  { %v13373_v35 = vpop.eup %8156  ;;  %8176 = vpow2.f32 %v6258_v42  ;;  %v4331_v8 = vpop.xlane.xlu1 %4330  ;;  %v5482_v2 = vsel %vm5481_vm0, %v14171_v49, %v5475_v26  ;;  %v5640_v41 = vsel %vm5481_vm0, %v14172_v1, %v5635_v54  ;;  %vm6038_vm14 = vcmask 1042434  }
 0x467   :  { %v8159_v57 = vpop.eup %8158  ;;  %8178 = vrcp.f32 %v4967_v58  ;;  %v4468_v36 = vadd.f32 %v11828_v46, %v4331_v8  ;;  %v6037_v38 = vsel %vm6036_vm1, %v5561_v45, %v5482_v2  ;;  %v5881_v29 = vrot.slane %v8155_v37, %v12684_v48 }
 0x468   :  { %v13385_v25 = vpop.eup %8160  ;;  %8180 = vpow2.f32 %v6250_v4  ;;  %v6260_v60 = vmul.f32 -1.442695, %v4467_v17  ;;  %v5885_v42 = vrot.slane %v13315_v39, %v12718_v27  ;;  %v4973_v12 = vadd.f32 1.0, %v8159_v57 }
 0x469   :  { %v13389_v55 = vpop.eup %8162  ;;  %8182 = vpow2.f32 %v6259_v40  ;;  %v6261_v47 = vmul.f32 -1.442695, %v4468_v36  ;;  %v4473_v15 = vadd.f32 %v11828_v46, %v4341_v9  ;;  %v4474_v44 = vadd.f32 %v11828_v46, %v4343_v19 }
 0x46a   :  { %v8165_v6 = vpop.eup %8164  ;;  %8184 = vrcp.f32 %v4965_v61  ;;  %v4337_v26 = vpop.xlane.xlu1 %4336  ;;  %v6263_v58 = vmul.f32 -1.442695, %v4470_v22  ;;  %v5719_v54 = vsel %vm5481_vm0, %v5718_v32, %v5714_v13  ;;  %v6039_v24 = vsel %vm6038_vm14, %v5640_v41, %v6037_v38  ;;  %v14173_v38 = vld [vmem:[#allocation31_spill] sm:$0xff] }
 0x46b   :  { %v13395_v53 = vpop.eup %8166  ;;  %8186 = vrcp.f32 %v4972_v23  ;;  %v4471_v31 = vadd.f32 %v11828_v46, %v4337_v26  ;;  %vm6040_vm1 = vcmask 1043459   ;;  %v5886_v4 = vsel %vm5383_vm2, %v5885_v42, %v5881_v29 }
 0x46c   :  { %v8169_v11 = vpop.eup %8168  ;;  %8188 = vpow2.f32 %v6261_v47  ;;  %v4975_v9 = vadd.f32 1.0, %v8165_v6  ;;  %v5890_v63 = vrot.slane %v13339_v30, %v12705_v56  ;;  %v6266_v37 = vmul.f32 -1.442695, %v4473_v15 }
 0x46d   :  { %v8171_v39 = vpop.eup %8170  ;;  %8190 = vpow2.f32 %v6260_v60  ;;  %v6264_v16 = vmul.f32 -1.442695, %v4471_v31  ;;  %vm6042_vm15 = vcmask 1044484   ;;  %v6267_v32 = vmul.f32 -1.442695, %v4474_v44 }
 0x46e   :  { %v13402_v45 = vpop.eup %8172  ;;  %8192 = vrcp.f32 %v4973_v12  ;;  %v4333_v40 = vpop.xlane.xlu1 %4332  ;;  %vm6044_vm14 = vcmask 1045509   ;;  %v5891_v49 = vsel %vm5390_vm3, %v5890_v63, %v5886_v4  ;;  %v4976_v2 = vadd.f32 1.0, %v8171_v39 }
 0x46f   :  { %v8175_v17 = vpop.eup %8174  ;;  %8194 = vpow2.f32 %v6263_v58  ;;  %v4469_v61 = vadd.f32 %v11828_v46, %v4333_v40  ;;  %v5895_v30 = vrot.slane %v13309_v0, %v12715_v7  ;;  %v6041_v23 = vsel %vm6040_vm1, %v5719_v54, %v6039_v24 }
 0x470   :  { %v8177_v8 = vpop.eup %8176  ;;  %8196 = vpow2.f32 %v6264_v16  ;;  %v5876_v1 = vrot.slane %v8175_v17, %v12904_v28  ;;  %v6043_v29 = vsel %vm6042_vm15, %v14173_v38, %v6041_v23  ;;  %v5900_v12 = vrot.slane %v13325_v51, %v12753_v50 }
 0x471   :  { %v13409_v41 = vpop.eup %8178  ;;  %8198 = vrcp.f32 %v4975_v9  ;;  %v6262_v57 = vmul.f32 -1.442695, %v4469_v61  ;;  %v4977_v36 = vadd.f32 1.0, %v8177_v8  ;;  %v5896_v47 = vsel %vm5397_vm4, %v5895_v30, %v5891_v49 }
 0x472   :  { %v8181_v22 = vpop.eup %8180  ;;  %8200 = vpow2.f32 %v6266_v37  ;;  %v4339_v19 = vpop.xlane.xlu1 %4338  ;;  %v5877_v13 = vsel %vm5481_vm0, %v5876_v1, %v13231_v14  ;;  %v4970_v15 = vadd.f32 1.0, %v13373_v35  ;;  %v4968_v26 = vadd.f32 1.0, %v8169_v11 }
 0x473   :  { %v8183_v60 = vpop.eup %8182  ;;  %8202 = vpow2.f32 %v6267_v32  ;;  %v4472_v0 = vadd.f32 %v11828_v46, %v4339_v19  ;;  %v13421_v6 = vsel %vm6044_vm14, %v5877_v13, %v6043_v29  ;;  %v5901_v31 = vsel %vm5404_vm5, %v5900_v12, %v5896_v47 }
 0x474   :  { %v13423_v42 = vpop.eup %8184  ;;  %8204 = vrcp.f32 %v4976_v2  ;;  %v4978_v54 = vadd.f32 1.0, %v8183_v60  ;;  %v5905_v4 = vrot.slane %v13346_v21, %v12758_v33  ;;  %v4969_v35 = vadd.f32 1.0, %v8181_v22  ;;  %v14174_v22 = vld [vmem:[#allocation21_spill] sm:$0xff] }
 0x475   :  { %v8187_v14 = vpop.eup %8186  ;;  %8206 = vpow2.f32 %v6262_v57  ;;  %v6265_v44 = vmul.f32 -1.442695, %v4472_v0  ;;  %v5910_v17 = vrot.slane %v13320_v34, %v12721_v3  ;;  %v4971_v21 = vadd.f32 1.0, %v13395_v53 }
 0x476   :  { %v8189_v58 = vpop.eup %8188  ;;  %8208 = vrcp.f32 %v4977_v36  ;;  %v4345_v24 = vpop.xlane.xlu1 %4344  ;;  %v5906_v11 = vsel %vm5411_vm6, %v5905_v4, %v5901_v31  ;;  %v5915_v30 = vrot.slane %v13333_v52, %v12724_v10  ;;  %v5960_v57 = vrot.slane %v8187_v14, %v12684_v48 }
 0x477   :  { %v8191_v39 = vpop.eup %8190  ;;  %8210 = vpow2.f32 %v6265_v44  ;;  %v4475_v51 = vadd.f32 %v11828_v46, %v4345_v24  ;;  %v4980_v63 = vadd.f32 1.0, %v8189_v58  ;;  %v5911_v49 = vsel %vm5418_vm7, %v5910_v17, %v5906_v11 }
 0x478   :  { %v8193_v9 = vpop.eup %8192  ;;  %8212 = vrcp.f32 %v4970_v15  ;;  %v4979_v32 = vadd.f32 1.0, %v8191_v39  ;;  %v5920_v53 = vrot.slane %v13389_v55, %v14174_v22  ;;  %v5916_v36 = vsel %vm5425_vm8, %v5915_v30, %v5911_v49 }
 0x479   :  { %v8195_v16 = vpop.eup %8194  ;;  %8214 = vrcp.f32 %v4968_v26  ;;  %v6268_v37 = vmul.f32 -1.442695, %v4475_v51  ;;  %v5964_v46 = vrot.slane %v8193_v9, %v12718_v27  ;;  %v5969_v52 = vrot.slane %v13402_v45, %v12705_v56 }
 0x47a   :  { %v8197_v40 = vpop.eup %8196  ;;  %8216 = vrcp.f32 %v4978_v54  ;;  %v4982_v2 = vadd.f32 1.0, %v8195_v16  ;;  %v5925_v48 = vrot.slane %v13423_v42, %v12874_v62  ;;  %v5921_v26 = vsel %vm5432_vm9, %v5920_v53, %v5916_v36 }
 0x47b   :  { %v8199_v61 = vpop.eup %8198  ;;  %8218 = vpow2.f32 %v6268_v37  ;;  %v4983_v34 = vadd.f32 1.0, %v8197_v40  ;;  %v5965_v19 = vsel %vm5383_vm2, %v5964_v46, %v5960_v57  ;;  %v5930_v31 = vrot.slane %v13385_v25, %v12806_v43 }
 0x47c   :  { %v8201_v8 = vpop.eup %8200  ;;  %8220 = vrcp.f32 %v4969_v35  ;;  %v5970_v0 = vsel %vm5390_vm3, %v5969_v52, %v5965_v19  ;;  %v5974_v56 = vrot.slane %v8199_v61, %v12715_v7  ;;  %v5926_v44 = vsel %vm5439_vm10, %v5925_v48, %v5921_v26 }
 0x47d   :  { %v8203_v1 = vpop.eup %8202  ;;  %8222 = vrcp.f32 %v4980_v63  ;;  %v4985_v13 = vadd.f32 1.0, %v8201_v8  ;;  %v5935_v9 = vrot.slane %v13409_v41, %v12817_v5  ;;  %vm14175_vm2 = vcmask 917312  }
 0x47e   :  { %v8205_v23 = vpop.eup %8204  ;;  %8224 = vrcp.f32 %v4979_v32  ;;  %v4986_v47 = vadd.f32 1.0, %v8203_v1  ;;  %vm14176_vm3 = vcmask 982912  }
 0x47f   :  { %v8207_v27 = vpop.eup %8206  ;;  %8226 = vrcp.f32 %v4971_v21  ;;  %v5979_v12 = vrot.slane %v8205_v23, %v12753_v50  ;;  %v5975_v50 = vsel %vm5397_vm4, %v5974_v56, %v5970_v0  ;;  %vm6046_vm4 = vcmask 1046534  }
 0x480   :  { %v8209_v38 = vpop.eup %8208  ;;  %8228 = vrcp.f32 %v4982_v2  ;;  %v4981_v29 = vadd.f32 1.0, %v8207_v27 }
 0x481   :  { %v8211_v60 = vpop.eup %8210  ;;  %8230 = vrcp.f32 %v4983_v34  ;;  %v5984_v45 = vrot.slane %v8209_v38, %v12758_v33  ;;  %v5980_v24 = vsel %vm5404_vm5, %v5979_v12, %v5975_v50  ;;  %v5931_v33 = vsel %vm5446_vm11, %v5930_v31, %v5926_v44  ;;  %vm14177_vm5 = vmmov %vm14175_vm2 }
 0x482   :  { %v8213_v55 = vpop.eup %8212  ;;  %8232 = vrcp.f32 %v4981_v29  ;;  %v4984_v15 = vadd.f32 1.0, %v8211_v60  ;;  %v5936_v40 = vsel %vm5453_vm12, %v5935_v9, %v5931_v33 }
 0x483   :  { %v8215_v14 = vpop.eup %8214  ;;  %8234 = vrcp.f32 %v4985_v13  ;;  %v5985_v7 = vsel %vm5411_vm6, %v5984_v45, %v5980_v24  ;;  %vm6048_vm6 = vcmask 1047559  }
 0x484   :  { %v8217_v42 = vpop.eup %8216  ;;  %8236 = vrcp.f32 %v4984_v15  ;;  %v5940_v16 = vrot.slane %v8215_v14, %v12922_v18 }
 0x485   :  { %v8219_v58 = vpop.eup %8218  ;;  %8238 = vrcp.f32 %v4986_v47  ;;  %v5989_v35 = vrot.slane %v8217_v42, %v12721_v3 }
 0x486   :  { %v8221_v54 = vpop.eup %8220  ;;  %v4987_v39 = vadd.f32 1.0, %v8219_v58  ;;  %v5941_v46 = vsel %vm5460_vm13, %v5940_v16, %v5936_v40 }
 0x487   :  { %v8223_v4 = vpop.eup %8222  ;;  %v5990_v63 = vsel %vm5418_vm7, %v5989_v35, %v5985_v7  ;;  %v5945_v17 = vrot.slane %v8221_v54, %v13017_v20  ;;  %vm14178_vm7 = vmmov %vm14176_vm3 }
 0x488   :  { %v8225_v51 = vpop.eup %8224  ;;  %8240 = vrcp.f32 %v4987_v39  ;;  %v5999_v37 = vrot.slane %v8223_v4, %v14174_v22 }
 0x489   :  { %v8227_v25 = vpop.eup %8226  ;;  %v5994_v61 = vrot.slane %v8225_v51, %v12724_v10  ;;  %v5946_v1 = vsel %vm14175_vm2, %v5945_v17, %v5941_v46  ;;  %v5950_v10 = vrot.slane %v8213_v55, %v12892_v59 }
 0x48a   :  { %v8229_v11 = vpop.eup %8228  ;;  %v5955_v19 = vrot.slane %v8227_v25, %v12904_v28 }
 0x48b   :  { %v8231_v32 = vpop.eup %8230  ;;  %v5995_v8 = vsel %vm5425_vm8, %v5994_v61, %v5990_v63  ;;  %v6009_v2 = vrot.slane %v8229_v11, %v12806_v43  ;;  %v5951_v53 = vsel %vm14176_vm3, %v5950_v10, %v5946_v1 }
 0x48c   :  { %v8233_v21 = vpop.eup %8232  ;;  %v6000_v30 = vsel %vm5432_vm9, %v5999_v37, %v5995_v8  ;;  %v6014_v34 = vrot.slane %v8231_v32, %v12817_v5  ;;  %v5956_v52 = vsel %vm5481_vm0, %v5955_v19, %v5951_v53 }
 0x48d   :  { %v8235_v41 = vpop.eup %8234  ;;  %v6004_v3 = vrot.slane %v8233_v21, %v12874_v62  ;;  %v6047_v29 = vsel %vm6046_vm4, %v5956_v52, %v13421_v6 }
 0x48e   :  { %v8237_v49 = vpop.eup %8236  ;;  %v6024_v43 = vrot.slane %v8235_v41, %v13017_v20 }
 0x48f   :  { %v8239_v57 = vpop.eup %8238  ;;  %v6005_v23 = vsel %vm5439_vm10, %v6004_v3, %v6000_v30  ;;  %v6019_v62 = vrot.slane %v8237_v49, %v12922_v18 }
 0x490   :  { %v6010_v22 = vsel %vm5446_vm11, %v6009_v2, %v6005_v23  ;;  %v6029_v5 = vrot.slane %v8239_v57, %v12892_v59 }
 0x491   :  { %v6015_v27 = vsel %vm5453_vm12, %v6014_v34, %v6010_v22 }
 0x492   :  { %v8241_v36 = vpop.eup %8240  ;;  %v6020_v13 = vsel %vm5460_vm13, %v6019_v62, %v6015_v27 }
 0x493   :  { %v6025_v18 = vsel %vm14177_vm5, %v6024_v43, %v6020_v13  ;;  %v6034_v38 = vrot.slane %v8241_v36, %v12904_v28 }
 0x494   :  { %v6030_v48 = vsel %vm14178_vm7, %v6029_v5, %v6025_v18 }
 0x495   :  { %v6035_v20 = vsel %vm5481_vm0, %v6034_v38, %v6030_v48 }
 0x496   :  { %v6049_v60 = vsel %vm6048_vm6, %v6035_v20, %v6047_v29 }
 0x497   :  { %6051 = vst [vmem:[#allocation3] sm:$0xff] %v6049_v60 }
 0x498   :  { %8264 = shalt.err (!%p8261_p4)
}
 0x499   :  { %s8265_s10 = scalar_lea.hbm %s13512_s7, 128 }
 0x49a   :  { %p8266_p5 = scmp.ne.s32.totalorder %s13512_s7, %s8265_s10  ;;  %p8269_p6 = scmp.lt.u32.totalorder %s8265_s10, %s13512_s7 }
 0x49c   :  { %p8271_p7 = pnand %p8269_p6, %p8266_p5 }
 0x49e   :  { %8274 = shalt.err (!%p8271_p7)
}
 0x49f   :  { %6061 = dma.vmem_to_hbm [thread:$0]  %s6059_s30, 128, %s13512_s7, [#allocation4]  }
 0x4a0   :  { %8275 = dma.done.wait [#allocation4], 128  }
 0x4a1   :  { %8276 = vsyncadd [#allocation4], 4294967168 }
 0x4a2   :  { %6065 = vsyncpa [#allocation4], 1 }

</bundles_post_ra>
